<compile_context>
chip_gen: v5e
topology: v5e:2x2
jax: 0.10.0
libtpu: 0.0.40
codegen_flags: <defaults>
</compile_context>

<pallas_src>
import math

import numpy as np
import jax
import jax.numpy as jnp
from jax.experimental import pallas as pl
from jax.experimental.pallas import tpu as pltpu

_SUB = 8      # sublane granularity
_LANE = 128   # lane granularity


def _round_up(a: int, b: int) -> int:
    return ((a + b - 1) // b) * b


def _largest_dividing_tile(total: int, unit: int, cap: int) -> int:
    """Largest multiple of `unit` that divides `total` and is <= cap."""
    best = unit
    t = unit
    limit = min(total, cap)
    while t <= limit:
        if total % t == 0:
            best = t
        t += unit
    return best


# --------------------------------------------------------------------------
# Parameter construction (glue, plain JAX) — reproduces reset_parameters().
# --------------------------------------------------------------------------
def _init_expm_matrix(key, n: int) -> jnp.ndarray:
    # zeros with the first superdiagonal set (every other entry ~ U(-pi, pi))
    d = jnp.zeros((max(n - 1, 0),), jnp.float32)
    vals = jax.random.uniform(key, (n // 2,), minval=-math.pi, maxval=math.pi,
                              dtype=jnp.float32)
    d = d.at[::2].set(vals)
    return jnp.diag(d, k=1)


def init_params(key, in_features: int, out_features: int):
    k_l, k_r, k_s, k_b = jax.random.split(key, 4)
    L = _init_expm_matrix(k_l, out_features)          # (out, out)
    R = _init_expm_matrix(k_r, in_features)           # (in, in)
    s = jax.random.uniform(k_s, (min(in_features, out_features),),
                           minval=-5.0, maxval=5.0, dtype=jnp.float32)
    bound = 1.0 / math.sqrt(in_features)
    b = jax.random.uniform(k_b, (out_features,), minval=-bound, maxval=bound,
                           dtype=jnp.float32)
    return L, R, s, b


# --------------------------------------------------------------------------
# Weight construction (plain JAX; small matrices, computed once per forward).
# --------------------------------------------------------------------------
def _skew_expm(M):
    T = jnp.triu(M, k=1)
    return jax.scipy.linalg.expm(T - T.T)


def compute_weight(L, R, s):
    in_features = R.shape[0]
    out_features = L.shape[0]
    U = _skew_expm(L)[:, :in_features]                # (out, min(in,out))
    V = _skew_expm(R)[:, :out_features]               # (in,  min(in,out))
    S = jax.nn.sigmoid(s)                             # (min(in,out),)
    return (U * S) @ V.T                              # (out, in)


# --------------------------------------------------------------------------
# Pallas kernel: one (row-tile, col-tile) of  Y = X @ W.T + b
# x_ref: (tm, Kg)  wt_ref: (Kg, tn)  b_ref: (1, tn)  o_ref: (tm, tn)
# --------------------------------------------------------------------------
def _linear_bias_kernel(x_ref, wt_ref, b_ref, o_ref):
    acc = jnp.dot(x_ref[...], wt_ref[...], preferred_element_type=jnp.float32)
    o_ref[...] = (acc + b_ref[...]).astype(o_ref.dtype)


def pallas_linear(x, W, b, *, tm: int = 512):
    """x: (..., K) ; W: (N, K) ; b: (N,)  ->  (..., N), float32."""
    orig_shape = x.shape
    K = int(orig_shape[-1])
    N = int(W.shape[0])
    M = int(np.prod(orig_shape[:-1], dtype=np.int64)) if len(orig_shape) > 1 else 1
    x2 = x.reshape(M, K).astype(jnp.float32)

    Wt = W.T.astype(jnp.float32)                       # (K, N)
    bias = b.astype(jnp.float32)                       # (N,)

    # ---- lane-dense output layout ----
    if N < _LANE and _LANE % N == 0:
        # Group G consecutive rows so the output block is exactly 128 lanes.
        G = _LANE // N
        N_pad = N
    else:
        # Pad N up to a multiple of 128 so output stores are unmasked.
        G = 1
        N_pad = _round_up(N, _LANE)
        if N_pad != N:
            Wt = jnp.pad(Wt, ((0, 0), (0, N_pad - N)))
            bias = jnp.pad(bias, (0, N_pad - N))

    Kg, Ng = G * K, G * N_pad
    if G > 1:
        Wt_g = jnp.kron(jnp.eye(G, dtype=jnp.float32), Wt)        # (Kg, Ng)
        b_g = jnp.tile(bias, G)[None, :]                           # (1, Ng)
    else:
        Wt_g = Wt
        b_g = bias[None, :]

    # ---- column tile: multiple of 128 that divides Ng ----
    tn = _largest_dividing_tile(Ng, _LANE, 2048)
    n_col_steps = Ng // tn

    # ---- row tile selection (grouped rows) ----
    Mg = -(-M // G)                                   # ceil(M / G)
    tm_g = max(_SUB, ((tm // G) // _SUB) * _SUB)      # ~tm original rows/step
    # VMEM cap: keep double-buffered (x + out) blocks ~<= 16 MiB total
    row_bytes = 4 * (Kg + tn)
    vmem_cap_rows = max(_SUB, ((16 * 1024 * 1024) // (2 * row_bytes) // _SUB) * _SUB)
    tm_g = min(tm_g, vmem_cap_rows)
    tm_g = min(tm_g, _round_up(Mg, _SUB))             # don't exceed the work
    if n_col_steps == 1 and Mg >= 2 * _SUB:           # keep >=2 grid steps (v7x)
        tm_g = min(tm_g, _round_up(Mg, 2 * _SUB) // 2)

    Mg_pad = _round_up(Mg, tm_g)
    M_pad = Mg_pad * G
    if M_pad != M:
        x2 = jnp.pad(x2, ((0, M_pad - M), (0, 0)))
    x_grp = x2.reshape(Mg_pad, Kg)                    # same bytes, row-major

    out = pl.pallas_call(
        _linear_bias_kernel,
        out_shape=jax.ShapeDtypeStruct((Mg_pad, Ng), jnp.float32),
        grid_spec=pltpu.PrefetchScalarGridSpec(
            num_scalar_prefetch=0,
            grid=(Mg_pad // tm_g, n_col_steps),
            in_specs=[
                pl.BlockSpec((tm_g, Kg), lambda i, j: (i, 0)),
                pl.BlockSpec((Kg, tn), lambda i, j: (0, j)),
                pl.BlockSpec((1, tn), lambda i, j: (0, j)),
            ],
            out_specs=pl.BlockSpec((tm_g, tn), lambda i, j: (i, j)),
        ),
        compiler_params=pltpu.CompilerParams(
            dimension_semantics=("parallel", "parallel")),
        cost_estimate=pl.CostEstimate(
            flops=2 * M * K * N,
            transcendentals=0,
            bytes_accessed=4 * (M * K + K * N + N + M * N)),
    )(x_grp, Wt_g, b_g)

    y = out.reshape(M_pad, N_pad)[:M, :N]
    return y.reshape(*orig_shape[:-1], N)


def matrix_exp_spectral_lim_linear(x, L, R, s, b, *, tm: int = 512):
    """Full forward: weight from matrix-exp parameterization, then F.linear."""
    W = compute_weight(L, R, s)
    return pallas_linear(x, W, b, tm=tm)


# --------------------------------------------------------------------------
if __name__ == "__main__":
    in_features, out_features = 32, 64

    key = jax.random.PRNGKey(0)
    k_param, k_x = jax.random.split(key)
    L, R, s, b = init_params(k_param, in_features, out_features)

    # small input consistent with forward: (batch=2, seq=8, in_features=32)
    x = jax.random.normal(k_x, (2, 8, in_features), dtype=jnp.float32)

    fwd = jax.jit(matrix_exp_spectral_lim_linear)
    y = fwd(x, L, R, s, b)
    y = jax.block_until_ready(y)

    # float64 host reference using the same constructed weight
    W = compute_weight(L, R, s)
    x_np = np.asarray(x, dtype=np.float64)
    W_np = np.asarray(W, dtype=np.float64)
    b_np = np.asarray(b, dtype=np.float64)
    y_ref = (x_np.reshape(-1, in_features) @ W_np.T + b_np).reshape(
        2, 8, out_features)

    np.testing.assert_allclose(np.asarray(y, dtype=np.float64), y_ref,
                               rtol=1e-4, atol=1e-4)
    print("KERNEL_OK")
</pallas_src>

<mosaic_0001>
module attributes {stable_mosaic.version = 11 : i64} {
  func.func @_linear_bias_kernel(%arg0: i32, %arg1: i32, %arg2: memref<8x64xf32, #tpu.memory_space<vmem>>, %arg3: memref<64x128xf32, #tpu.memory_space<vmem>>, %arg4: memref<1x128xf32, #tpu.memory_space<vmem>>, %arg5: memref<8x128xf32, #tpu.memory_space<vmem>>) attributes {dimension_semantics = [#tpu.dimension_semantics<parallel>, #tpu.dimension_semantics<parallel>], iteration_bounds = array<i64: 1, 1>, scalar_prefetch = 0 : i64, scratch_operands = 0 : i64, tpu.core_type = #tpu.core_type<tc>, window_params = [{transform_indices = @transform_0, window_bounds = array<i64: 8, 64>}, {transform_indices = @transform_1, window_bounds = array<i64: 64, 128>}, {transform_indices = @transform_2, window_bounds = array<i64: 1, 128>}, {transform_indices = @transform_3, window_bounds = array<i64: 8, 128>}]} {
    %c0 = arith.constant 0 : index
    %c0_0 = arith.constant 0 : index
    %0 = vector.load %arg2[%c0, %c0_0] : memref<8x64xf32, #tpu.memory_space<vmem>>, vector<8x64xf32>
    %c0_1 = arith.constant 0 : index
    %c0_2 = arith.constant 0 : index
    %1 = vector.load %arg3[%c0_1, %c0_2] : memref<64x128xf32, #tpu.memory_space<vmem>>, vector<64x128xf32>
    %cst = arith.constant dense<0.000000e+00> : vector<8x128xf32>
    %2 = tpu.matmul %0, %1, %cst {dimension_numbers = #tpu.dot_dimension_numbers<[1], [0], [0], [1], [0, 0, 1, 1], [], []>} : vector<8x64xf32>, vector<64x128xf32>, vector<8x128xf32> -> vector<8x128xf32>
    %c0_3 = arith.constant 0 : index
    %c0_4 = arith.constant 0 : index
    %3 = vector.load %arg4[%c0_3, %c0_4] : memref<1x128xf32, #tpu.memory_space<vmem>>, vector<1x128xf32>
    %4 = vector.broadcast %3 : vector<1x128xf32> to vector<8x128xf32>
    %5 = arith.addf %2, %4 : vector<8x128xf32>
    %c0_5 = arith.constant 0 : index
    %c0_6 = arith.constant 0 : index
    %6 = vector.load %arg5[%c0_5, %c0_6] : memref<8x128xf32, #tpu.memory_space<vmem>>, vector<8x128xf32>
    tpu.vector_store %arg5[%c0_5, %c0_6], %5 {strides = array<i32>} : memref<8x128xf32, #tpu.memory_space<vmem>>, vector<8x128xf32>,
    return
  }
  func.func @transform_0(%arg0: i32, %arg1: i32) -> (i32, i32) {
    %c0_i32 = arith.constant 0 : i32
    %c0_i32_0 = arith.constant 0 : i32
    return %arg0, %c0_i32 : i32, i32
  }
  func.func @transform_1(%arg0: i32, %arg1: i32) -> (i32, i32) {
    %c0_i32 = arith.constant 0 : i32
    %c0_i32_0 = arith.constant 0 : i32
    return %c0_i32, %arg1 : i32, i32
  }
  func.func @transform_2(%arg0: i32, %arg1: i32) -> (i32, i32) {
    %c0_i32 = arith.constant 0 : i32
    %c0_i32_0 = arith.constant 0 : i32
    return %c0_i32, %arg1 : i32, i32
  }
  func.func @transform_3(%arg0: i32, %arg1: i32) -> (i32, i32) {
    %c0_i32 = arith.constant 0 : i32
    return %arg0, %arg1 : i32, i32
  }
}

</mosaic_0001>

<bundles_post_ra>
// kernel: custom-call.25
= control target key start
LH: loop header
LB: loop body
LE: loop exit
PB: predicated region body
PF: predicated region fallthrough
CT: control target
= control target key end

     0   :  { %5 = vsyncpa [#allocation4], 0  ;;  %s1445_s0 = inlined_call_operand.vmem [shape: f32[64,64], index: 0, kind: input, shape index: {}]   ;;  %s1446_s1 = inlined_call_operand.vmem [shape: f32[64,64], index: 1, kind: output, shape index: {0}]   ;;  %s1447_s2 = inlined_call_operand.hbm [shape: s32[64], index: 2, kind: output, shape index: {1}]   ;;  %s1448_s3 = inlined_call_operand.vmem [shape: s32[64], index: 3, kind: output, shape index: {2}]  }
   0x1   :  { %s15_s14 = scalar_lea.vmem %s1445_s0, 56 }
   0x2   :  { %p736_p0 = scmp.gt.s32.totalorder %s1445_s0, %s15_s14 }
   0x3   :  { %s1043_s17 = smov (!%p736_p0), [#allocation0]   ;;  %s1047_s20 = smov (!%p736_p0), %s1445_s0  }
   0x4   :  { %737 = sbr.rel (%p736_p0) target bundleno = 17 (0x11), region = 181 }
   0x9 LB: > { %v49_v0 = vld [vmem:[%s1049_s20] sm:$0xff]  ;;  %s51_s20 = scalar_lea.vmem %s1049_s20, 8   ;;  %s1049_s20 = sphi %s1047_s20, %s51_s20   ;;  %s1045_s17 = sphi %s1043_s17, %s52_s17  }
   0xa   : > { %50 = vst [vmem:[%s1045_s17] sm:$0xff] %v49_v0  ;;  %s52_s17 = scalar_lea.vmem %s1045_s17, 8   ;;  %p46_p1 = scmp.gt.s32.totalorder %s51_s20, %s15_s14 }
   0xc   :  { %48 = sbr.rel (!%p46_p1) target bundleno = 9 (0x9), region = 187 }
  0x11 PF:  { %v62_v1 = vld [vmem:[#allocation0] sm:$0xff]  ;;  %v66_v2 = vld [vmem:[#allocation0 + $0x8] sm:$0xff]  ;;  %v70_v3 = vld [vmem:[#allocation0 + $0x10] sm:$0xff]  ;;  %v93_v4 = vlaneseq  ;;  %v1067_v11 = vmov 0   ;;  %s1051_s0 = smov 0  }
  0x12   :  { %63 = vst [vmem:[#allocation1] sm:$0xff] %v62_v1  ;;  %v74_v5 = vld [vmem:[#allocation0 + $0x18] sm:$0xff]  ;;  %v78_v6 = vld [vmem:[#allocation0 + $0x20] sm:$0xff]  ;;  %v82_v8 = vld [vmem:[#allocation0 + $0x28] sm:$0xff] }
  0x13   :  { %67 = vst [vmem:[#allocation1 + $0x8] sm:$0xff] %v66_v2  ;;  %v1099_v7 = vshrl.u32 %v93_v4, 7  ;;  %v86_v9 = vld [vmem:[#allocation0 + $0x30] sm:$0xff]  ;;  %v90_v10 = vld [vmem:[#allocation0 + $0x38] sm:$0xff] }
  0x14   :  { %71 = vst [vmem:[#allocation1 + $0x10] sm:$0xff] %v70_v3 }
  0x15   :  { %75 = vst [vmem:[#allocation1 + $0x18] sm:$0xff] %v74_v5 }
  0x16   :  { %79 = vst [vmem:[#allocation1 + $0x20] sm:$0xff] %v78_v6 }
  0x17   :  { %83 = vst [vmem:[#allocation1 + $0x28] sm:$0xff] %v82_v8 }
  0x18   :  { %87 = vst [vmem:[#allocation1 + $0x30] sm:$0xff] %v86_v9 }
  0x19   :  { %91 = vst [vmem:[#allocation1 + $0x38] sm:$0xff] %v90_v10 }
  0x1a   :  { %92 = vst [vmem:[#allocation2] sm:$0x1] %v1067_v11 }
  0x1b LB: > { %s794_s21 = sshll.u32 %s1053_s0, 3  ;;  %s101_s0 = sadd.s32 1, %s1053_s0   ;;  %s1053_s0 = sphi %s1051_s0, %s101_s0  }
  0x1c   : > { %v105_v12 = vstv %s794_s21  ;;  %s103_s22 = scalar_lea.vmem [#allocation7], %s794_s21  ;;  %p98_p2 = scmp.ge.s32.totalorder %s101_s0, 8  }
  0x1d   : > { %v106_v13 = vadd.s32 %v105_v12, %v1099_v7  ;;  %s1102_s23 = smov (%p98_p2), 0  }
  0x1e   :  { %100 = sbr.rel (!%p98_p2) target bundleno = 27 (0x1b), region = 198 }
  0x1f   : > { %107 = vst [vmem:[%s103_s22] sm:$0xff] %v106_v13 }
  0x23 LB: > { %v118_v14 = vld [vmem:[#allocation1] sm:$0xff]  ;;  %v130_v15 = vld [vmem:[#allocation1 + $0x8] sm:$0xff]  ;;  %v1108_v16 = vadd.s32 8, %v1099_v7  ;;  %v1111_v18 = vstv %s1057_s23  ;;  %v142_v20 = vld [vmem:[#allocation1 + $0x10] sm:$0xff]  ;;  %v1116_v21 = vadd.s32 16, %v1099_v7  ;;  %v1123_v26 = vadd.s32 24, %v1099_v7  ;;  %s1057_s23 = sphi %s1102_s23, %s113_s23  }
  0x24   : > { %v119_v17 = vand.u32 2147483647, %v118_v14  ;;  %v131_v19 = vand.u32 2147483647, %v130_v15  ;;  %vm122_vm0 = vcmp.ge.s32.totalorder %v1099_v7, %v1111_v18  ;;  %v143_v24 = vand.u32 2147483647, %v142_v20 }
  0x25   : > { %vm134_vm3 = vcmp.ge.s32.totalorder %v1108_v16, %v1111_v18  ;;  %v154_v25 = vld [vmem:[#allocation1 + $0x18] sm:$0xff]  ;;  %vm146_vm6 = vcmp.ge.s32.totalorder %v1116_v21, %v1111_v18  ;;  %v166_v30 = vld [vmem:[#allocation1 + $0x20] sm:$0xff]  ;;  %v1129_v31 = vadd.s32 32, %v1099_v7  ;;  %vm158_vm9 = vcmp.ge.s32.totalorder %v1123_v26, %v1111_v18  ;;  %v178_v35 = vld [vmem:[#allocation1 + $0x28] sm:$0xff]  ;;  %s248_s24 = ssub.s32 128, %s1057_s23  ;;  %s260_s26 = scalar_lea.vmem [#allocation1], %s1057_s23 }
  0x26   : > { %vm796_vm1 = vcmp.gt.f32.partialorder %v119_v17, -inf  ;;  %v155_v29 = vand.u32 2147483647, %v154_v25  ;;  %v167_v34 = vand.u32 2147483647, %v166_v30  ;;  %v1135_v36 = vadd.s32 40, %v1099_v7 }
  0x27   : > { %vm126_vm2 = vmand %vm122_vm0, %vm796_vm1  ;;  %vm170_vm12 = vcmp.ge.s32.totalorder %v1129_v31, %v1111_v18  ;;  %v179_v39 = vand.u32 2147483647, %v178_v35  ;;  %v190_v40 = vld [vmem:[#allocation1 + $0x30] sm:$0xff]  ;;  %v1141_v41 = vadd.s32 48, %v1099_v7  ;;  %v202_v45 = vld [vmem:[#allocation1 + $0x38] sm:$0xff]  ;;  %v1147_v46 = vadd.s32 56, %v1099_v7 }
  0x28   : > { %v127_v22 = vsel %vm126_vm2, %v1099_v7, %v1111_v18  ;;  %v128_v23 = vsel %vm126_vm2, %v119_v17, -inf  ;;  %vm182_vm15 = vcmp.ge.s32.totalorder %v1135_v36, %v1111_v18  ;;  %v191_v44 = vand.u32 2147483647, %v190_v40  ;;  %v257_v25 = vld [vmem:[#allocation2] ss:$0 sm:$0xff]  ;;  %s266_s28 = scalar_lea.vmem [#allocation7], %s1057_s23 }
  0x29   : > { %vm137_vm4 = vcmp.lt.f32.partialorder %v128_v23, %v131_v19  ;;  %vm194_vm2 = vcmp.ge.s32.totalorder %v1141_v41, %v1111_v18  ;;  %v203_v49 = vand.u32 2147483647, %v202_v45  ;;  %s113_s23 = sadd.s32 1, %s1057_s23  }
  0x2a   : > { %vm138_vm5 = vmand %vm134_vm3, %vm137_vm4  ;;  %p110_p3 = scmp.ge.s32.totalorder %s113_s23, 64  }
  0x2b   : > { %v139_v27 = vsel %vm138_vm5, %v1108_v16, %v127_v22  ;;  %v140_v28 = vsel %vm138_vm5, %v131_v19, %v128_v23  ;;  %vm206_vm5 = vcmp.ge.s32.totalorder %v1147_v46, %v1111_v18  ;;  %v1158_v23 = vand.u32 127, %v93_v4  ;;  %s1059_s5 = smov (%p110_p3), %s1446_s1   ;;  %s1063_s6 = smov (%p110_p3), [#allocation1]  }
  0x2c   : > { %vm149_vm7 = vcmp.lt.f32.partialorder %v140_v28, %v143_v24 }
  0x2d   : > { %vm150_vm8 = vmand %vm146_vm6, %vm149_vm7 }
  0x2e   : > { %v151_v32 = vsel %vm150_vm8, %v1116_v21, %v139_v27  ;;  %v152_v33 = vsel %vm150_vm8, %v143_v24, %v140_v28  ;;  %v262_v27 = vld [vmem:[%s260_s26] ss:$0 sm:$0xff] }
  0x2f   : > { %vm161_vm10 = vcmp.lt.f32.partialorder %v152_v33, %v155_v29 }
  0x30   : > { %vm162_vm11 = vmand %vm158_vm9, %vm161_vm10 }
  0x31   : > { %v163_v37 = vsel %vm162_vm11, %v1123_v26, %v151_v32  ;;  %v164_v38 = vsel %vm162_vm11, %v155_v29, %v152_v33  ;;  %v268_v32 = vld [vmem:[%s266_s28] ss:$0 sm:$0xff] }
  0x32   : > { %vm173_vm13 = vcmp.lt.f32.partialorder %v164_v38, %v167_v34 }
  0x33   : > { %vm174_vm14 = vmand %vm170_vm12, %vm173_vm13 }
  0x34   : > { %v175_v42 = vsel %vm174_vm14, %v1129_v31, %v163_v37  ;;  %v176_v43 = vsel %vm174_vm14, %v167_v34, %v164_v38 }
  0x35   : > { %vm185_vm0 = vcmp.lt.f32.partialorder %v176_v43, %v179_v39 }
  0x36   : > { %vm186_vm1 = vmand %vm182_vm15, %vm185_vm0  ;;  %vm1162_vm15 = vcmp.eq.s32.totalorder %v1158_v23, %v1111_v18 }
  0x37   : > { %v187_v47 = vsel %vm186_vm1, %v1135_v36, %v175_v42  ;;  %v188_v48 = vsel %vm186_vm1, %v179_v39, %v176_v43  ;;  %vm370_vm1 = vcmp.gt.s32.totalorder %v1123_v26, %v1111_v18 }
  0x38   : > { %vm197_vm3 = vcmp.lt.f32.partialorder %v188_v48, %v191_v44 }
  0x39   : > { %vm198_vm4 = vmand %vm194_vm2, %vm197_vm3  ;;  %vm314_vm2 = vcmp.gt.s32.totalorder %v1108_v16, %v1111_v18  ;;  %vm1452_vm3 = vcmp.gt.s32.totalorder %v1099_v7, %v1111_v18 }
  0x3a   : > { %v199_v50 = vsel %vm198_vm4, %v1141_v41, %v187_v47  ;;  %v200_v51 = vsel %vm198_vm4, %v191_v44, %v188_v48 }
  0x3b   : > { %vm209_vm6 = vcmp.lt.f32.partialorder %v200_v51, %v203_v49 }
  0x3c   : > { %vm210_vm7 = vmand %vm206_vm5, %vm209_vm6  ;;  %vm1451_vm5 = vcmp.gt.s32.totalorder %v1129_v31, %v1111_v18  ;;  %vm1450_vm6 = vcmp.gt.s32.totalorder %v1116_v21, %v1111_v18 }
  0x3d   : > { %v211_v52 = vsel %vm210_vm7, %v1147_v46, %v199_v50  ;;  %v212_v53 = vsel %vm210_vm7, %v203_v49, %v200_v51  ;;  %vm1449_vm7 = vcmp.gt.s32.totalorder %v1141_v41, %v1111_v18 }
  0x3e   : > { %v213_v54 = vrot.slane %v212_v53, 1  ;;  %v214_v55 = vrot.slane %v211_v52, 1 }
  0x40   : > { %vm215_vm8 = vcmp.ge.f32.partialorder %v213_v54, %v212_v53  ;;  %v218_v56 = vrot.slane %v213_v54, 1  ;;  %v219_v57 = vrot.slane %v214_v55, 1 }
  0x41   : > { %v216_v58 = vsel %vm215_vm8, %v213_v54, %v212_v53  ;;  %v217_v59 = vsel %vm215_vm8, %v214_v55, %v211_v52  ;;  %vm1453_vm8 = vcmp.gt.s32.totalorder %v1135_v36, %v1111_v18 }
  0x42   : > { %vm220_vm9 = vcmp.ge.f32.partialorder %v218_v56, %v216_v58  ;;  %v223_v60 = vrot.slane %v218_v56, 1  ;;  %v224_v61 = vrot.slane %v219_v57, 1 }
  0x43   : > { %v221_v62 = vsel %vm220_vm9, %v218_v56, %v216_v58  ;;  %v222_v63 = vsel %vm220_vm9, %v219_v57, %v217_v59 }
  0x44   : > { %vm225_vm10 = vcmp.ge.f32.partialorder %v223_v60, %v221_v62  ;;  %v228_v0 = vrot.slane %v223_v60, 1  ;;  %v229_v1 = vrot.slane %v224_v61, 1 }
  0x45   : > { %v226_v2 = vsel %vm225_vm10, %v223_v60, %v221_v62  ;;  %v227_v3 = vsel %vm225_vm10, %v224_v61, %v222_v63 }
  0x46   : > { %vm230_vm11 = vcmp.ge.f32.partialorder %v228_v0, %v226_v2  ;;  %v233_v5 = vrot.slane %v228_v0, 1  ;;  %v234_v6 = vrot.slane %v229_v1, 1 }
  0x47   : > { %v231_v8 = vsel %vm230_vm11, %v228_v0, %v226_v2  ;;  %v232_v9 = vsel %vm230_vm11, %v229_v1, %v227_v3 }
  0x48   : > { %vm235_vm12 = vcmp.ge.f32.partialorder %v233_v5, %v231_v8  ;;  %v238_v10 = vrot.slane %v233_v5, 1  ;;  %v239_v11 = vrot.slane %v234_v6, 1 }
  0x49   : > { %v236_v12 = vsel %vm235_vm12, %v233_v5, %v231_v8  ;;  %v237_v13 = vsel %vm235_vm12, %v234_v6, %v232_v9 }
  0x4a   : > { %vm240_vm13 = vcmp.ge.f32.partialorder %v238_v10, %v236_v12  ;;  %v243_v14 = vrot.slane %v238_v10, 1  ;;  %v244_v15 = vrot.slane %v239_v11, 1 }
  0x4b   : > { %v241_v17 = vsel %vm240_vm13, %v238_v10, %v236_v12  ;;  %v242_v19 = vsel %vm240_vm13, %v239_v11, %v237_v13 }
  0x4c   : > { %vm245_vm14 = vcmp.ge.f32.partialorder %v243_v14, %v241_v17 }
  0x4d   : > { %v247_v20 = vsel %vm245_vm14, %v244_v15, %v242_v19 }
  0x4e   : > { %249 = vrot.lane.b32.xlu0 %v247_v20, %s248_s24 }
  0xc0   : > { %v250_v22 = vpop.permute.xlu0 %249 }
  0xc1   : > { %804 = vpush %v250_v22 }
  0xf2   : > { %s805_s25 = spop %804 }
  0xf3   : > { %v256_v28 = vstv %s805_s25  ;;  %s261_s27 = scalar_lea.vmem [#allocation1], %s805_s25  ;;  %s267_s29 = scalar_lea.vmem [#allocation7], %s805_s25 }
  0xf4   : > { %v258_v29 = vsel %vm1162_vm15, %v256_v28, %v257_v25  ;;  %v1169_v30 = vld [vmem:[%s261_s27] ss:$0 sm:$0xff] }
  0xf5   : > { %v269_v33 = vld [vmem:[%s267_s29] ss:$0 sm:$0xff]  ;;  %259 = vst [vmem:[#allocation2] sm:$0x1] %v258_v29  ;;  %vm272_vm0 = vcmp.ne.f32.partialorder %v1169_v30, 0.0 }
  0xf6   : > { %264 = vst [vmem:[%s261_s27] sm:$0x1] %v262_v27  ;;  %vm273_vm4 = vmand %vm1162_vm15, %vm272_vm0 }
  0xf7   : > { %270 = vst [vmem:[%s267_s29] sm:$0x1] %v268_v32  ;;  %v1182_v34 = vsel %vm273_vm4, %v1169_v30, 1.0 }
  0xf8   : > { %271 = vst [vmem:[%s266_s28] sm:$0x1] %v269_v33  ;;  %v1190_v35 = vsel %vm370_vm1, %v1182_v34, 1.0  ;;  %v1196_v37 = vsel %vm314_vm2, %v1182_v34, 1.0  ;;  %v1202_v38 = vsel %vm1452_vm3, %v1182_v34, 1.0  ;;  %v1211_v39 = vsel %vm1451_vm5, %v1182_v34, 1.0 }
  0xf9   : > { %265 = vst [vmem:[%s260_s26] sm:$0x1] %v1169_v30  ;;  %937 = vrcp.f32 %v1190_v35  ;;  %v381_v40 = vand.u32 2147483647, %v1190_v35  ;;  %v383_v42 = vand.u32 2147483648, %v1190_v35  ;;  %v325_v43 = vand.u32 2147483647, %v1196_v37 }
  0xfa   : > { %939 = vrcp.f32 %v1196_v37  ;;  %v327_v44 = vand.u32 2147483648, %v1196_v37  ;;  %vm377_vm9 = vweird.f32 %v1190_v35  ;;  %v297_v45 = vand.u32 2147483647, %v1202_v38 }
  0xfb   : > { %941 = vrcp.f32 %v1202_v38  ;;  %v1231_v47 = vsel %vm1450_vm6, %v1182_v34, 1.0  ;;  %v1237_v48 = vsel %vm1449_vm7, %v1182_v34, 1.0  ;;  %vm321_vm10 = vweird.f32 %v1196_v37  ;;  %vm1275_vm6 = vmand %vm370_vm1, %vm1162_vm15 }
  0xfc   : > { %943 = vrcp.f32 %v1211_v39  ;;  %v299_v50 = vand.u32 2147483648, %v1202_v38  ;;  %v411_v51 = vand.u32 2147483648, %v1211_v39  ;;  %vm1244_vm11 = vcmp.eq.f32.partialorder %v381_v40, 8.507059e+37  ;;  %vm1293_vm1 = vmand %vm314_vm2, %vm1162_vm15 }
  0xfd   : > { %945 = vrcp.f32 %v1231_v47  ;;  %v384_v55 = vor.u32 1.1754944e-38, %v383_v42  ;;  %v409_v56 = vand.u32 2147483647, %v1211_v39  ;;  %vm1251_vm13 = vcmp.eq.f32.partialorder %v325_v43, 8.507059e+37 }
  0xfe   : > { %v328_v60 = vor.u32 1.1754944e-38, %v327_v44  ;;  %947 = vrcp.f32 %v1237_v48  ;;  %vm1257_vm14 = vcmp.eq.f32.partialorder %v297_v45, 8.507059e+37  ;;  %v300_v2 = vor.u32 1.1754944e-38, %v299_v50 }
  0xff   : > { %v938_v49 = vpop.eup %937  ;;  %v412_v3 = vor.u32 1.1754944e-38, %v411_v51  ;;  %vm1263_vm7 = vcmp.eq.f32.partialorder %v409_v56, 8.507059e+37  ;;  %v353_v10 = vand.u32 2147483647, %v1231_v47  ;;  %v1284_v14 = vsel %vm1453_vm8, %v1182_v34, 1.0 }
 0x100   : > { %v940_v52 = vpop.eup %939  ;;  %v373_v53 = vmul.f32 %v938_v49, %v1190_v35  ;;  %vm378_vm4 = vweird.f32 %v938_v49  ;;  %v355_v27 = vand.u32 2147483648, %v1231_v47  ;;  %949 = vrcp.f32 %v1284_v14  ;;  %v367_v33 = vld [vmem:[#allocation1 + $0x18] sm:$0xff]  ;;  %v311_v43 = vld [vmem:[#allocation1 + $0x8] sm:$0xff]  ;;  %v283_v51 = vld [vmem:[#allocation1] sm:$0xff] }
 0x101   : > { %v942_v57 = vpop.eup %941  ;;  %v317_v58 = vmul.f32 %v940_v52, %v1196_v37  ;;  %vm322_vm5 = vweird.f32 %v940_v52  ;;  %vm379_vm8 = vmor %vm377_vm9, %vm378_vm4  ;;  %vm461_vm3 = vweird.f32 %v1237_v48  ;;  %vm1468_vm9 = vweird.f32 %v1202_v38 }
 0x102   : > { %v374_v61 = vsub.f32 1.0, %v373_v53  ;;  %v289_v62 = vmul.f32 %v942_v57, %v1202_v38  ;;  %v944_v0 = vpop.eup %943  ;;  %vm294_vm0 = vweird.f32 %v942_v57  ;;  %vm323_vm2 = vmor %vm321_vm10, %vm322_vm5  ;;  %vm1469_vm5 = vcmp.gt.s32.totalorder %v1099_v7, %v1111_v18 }
 0x103   : > { %v318_v1 = vsub.f32 1.0, %v317_v58  ;;  %v401_v8 = vmul.f32 %v944_v0, %v1211_v39  ;;  %v1268_v11 = vpop.eup %945  ;;  %vm406_vm12 = vweird.f32 %v944_v0  ;;  %vm295_vm4 = vmor %vm1468_vm9, %vm294_vm0  ;;  %vm1344_vm0 = vcmp.eq.f32.partialorder %v353_v10, 8.507059e+37  ;;  %v339_v10 = vld [vmem:[#allocation1 + $0x10] sm:$0xff] }
 0x104   : > { %v375_v5 = vmul.f32 %v938_v49, %v374_v61  ;;  %v290_v6 = vsub.f32 1.0, %v289_v62  ;;  %v345_v20 = vmul.f32 %v1268_v11, %v1231_v47  ;;  %v1299_v22 = vpop.eup %947  ;;  %vm1327_vm10 = vmand %vm1469_vm5, %vm1162_vm15  ;;  %v439_v26 = vand.u32 2147483648, %v1284_v14 }
 0x105   : > { %v319_v13 = vmul.f32 %v940_v52, %v318_v1  ;;  %v402_v19 = vsub.f32 1.0, %v401_v8  ;;  %v457_v37 = vmul.f32 %v1299_v22, %v1237_v48  ;;  %v467_v8 = vand.u32 2147483648, %v1237_v48 }
 0x106   : > { %v376_v15 = vadd.f32 %v938_v49, %v375_v5  ;;  %v291_v17 = vmul.f32 %v942_v57, %v290_v6  ;;  %v346_v32 = vsub.f32 1.0, %v345_v20  ;;  %v950_v59 = vpop.eup %949  ;;  %v465_v6 = vand.u32 2147483647, %v1237_v48 }
 0x107   : > { %v320_v25 = vadd.f32 %v940_v52, %v319_v13  ;;  %v403_v29 = vmul.f32 %v944_v0, %v402_v19  ;;  %v458_v54 = vsub.f32 1.0, %v457_v37  ;;  %v429_v1 = vmul.f32 %v950_v59, %v1284_v14 }
 0x108   : > { %v380_v16 = vsel %vm379_vm8, %v938_v49, %v376_v15  ;;  %v292_v28 = vadd.f32 %v942_v57, %v291_v17  ;;  %vm350_vm8 = vweird.f32 %v1268_v11  ;;  %v347_v53 = vmul.f32 %v1268_v11, %v346_v32 }
 0x109   : > { %v385_v35 = vsel %vm1244_vm11, %v384_v55, %v380_v16  ;;  %v324_v40 = vsel %vm323_vm2, %v940_v52, %v320_v25  ;;  %v404_v49 = vadd.f32 %v944_v0, %v403_v29  ;;  %vm1472_vm11 = vweird.f32 %v1211_v39  ;;  %v451_v29 = vld [vmem:[#allocation1 + $0x30] sm:$0xff] }
 0x10a   : > { %v1318_v42 = vmul.f32 %v385_v35, %v367_v33  ;;  %v329_v44 = vsel %vm1251_vm13, %v328_v60, %v324_v40  ;;  %v296_v45 = vsel %vm295_vm4, %v942_v57, %v292_v28  ;;  %vm407_vm13 = vmor %vm1472_vm11, %vm406_vm12  ;;  %v348_v61 = vadd.f32 %v1268_v11, %v347_v53  ;;  %v423_v35 = vld [vmem:[#allocation1 + $0x28] sm:$0xff]  ;;  %v479_v53 = vld [vmem:[#allocation1 + $0x38] sm:$0xff] }
 0x10b   : > { %v1331_v50 = vmul.f32 %v329_v44, %v311_v43  ;;  %v301_v52 = vsel %vm1257_vm14, %v300_v2, %v296_v45  ;;  %v408_v57 = vsel %vm407_vm13, %v944_v0, %v404_v49  ;;  %v459_v62 = vmul.f32 %v1299_v22, %v458_v54  ;;  %v395_v2 = vld [vmem:[#allocation1 + $0x20] sm:$0xff] }
 0x10c   : > { %v388_v55 = vsel %vm1275_vm6, %v1318_v42, 0.0  ;;  %v1342_v56 = vmul.f32 %v301_v52, %v283_v51  ;;  %v413_v60 = vsel %vm1263_vm7, %v412_v3, %v408_v57  ;;  %vm1475_vm6 = vweird.f32 %v1231_v47 }
 0x10d   : > { %389 = vadd.xlane.f32.xlu2 %v388_v55  ;;  %v332_v39 = vsel %vm1293_vm1, %v1331_v50, 0.0  ;;  %vm351_vm12 = vmor %vm1475_vm6, %vm350_vm8  ;;  %v356_v0 = vor.u32 1.1754944e-38, %v355_v27  ;;  %vm462_vm14 = vweird.f32 %v1299_v22  ;;  %v460_v5 = vadd.f32 %v1299_v22, %v459_v62 }
 0x10e   : > { %333 = vadd.xlane.f32.xlu1 %v332_v39  ;;  %v304_v63 = vsel %vm1327_vm10, %v1342_v56, 0.0  ;;  %v352_v3 = vsel %vm351_vm12, %v1268_v11, %v348_v61  ;;  %v1368_v9 = vmul.f32 %v413_v60, %v395_v2  ;;  %vm1476_vm7 = vcmp.gt.s32.totalorder %v1129_v31, %v1111_v18  ;;  %vm1391_vm9 = vmor %vm461_vm3, %vm462_vm14  ;;  %v516_v31 = vld [vmem:[#allocation7 + $0x28] sm:$0xff] (%p110_p3) }
 0x10f   : > { %305 = vadd.xlane.f32.xlu0 %v304_v63  ;;  %vm1375_vm1 = vmand %vm1476_vm7, %vm1162_vm15  ;;  %v357_v11 = vsel %vm1344_vm0, %v356_v0, %v352_v3  ;;  %v430_v12 = vsub.f32 1.0, %v429_v1  ;;  %vm1479_vm2 = vcmp.gt.s32.totalorder %v1147_v46, %v1111_v18  ;;  %vm1482_vm4 = vcmp.gt.s32.totalorder %v1116_v21, %v1111_v18 }
 0x110   : > { %v483_v13 = vsel %vm1479_vm2, %v1182_v34, 1.0  ;;  %v1385_v15 = vmul.f32 %v357_v11, %v339_v10  ;;  %vm359_vm8 = vmand %vm1482_vm4, %vm1162_vm15  ;;  %v464_v34 = vsel %vm1391_vm9, %v1299_v22, %v460_v5  ;;  %vm434_vm5 = vweird.f32 %v950_v59  ;;  %v508_v11 = vld [vmem:[#allocation7 + $0x8] sm:$0xff] (%p110_p3) }
 0x111   : > { %951 = vrcp.f32 %v483_v13  ;;  %v431_v17 = vmul.f32 %v950_v59, %v430_v12  ;;  %v437_v48 = vand.u32 2147483647, %v1284_v14  ;;  %v468_v19 = vor.u32 1.1754944e-38, %v467_v8  ;;  %v510_v12 = vld [vmem:[#allocation7 + $0x10] sm:$0xff] (%p110_p3) }
 0x112   : > { %v416_v20 = vsel %vm1375_vm1, %v1368_v9, 0.0  ;;  %vm466_vm3 = vcmp.eq.f32.partialorder %v465_v6, 8.507059e+37  ;;  %vm433_vm10 = vweird.f32 %v1284_v14  ;;  %v360_v21 = vsel %vm359_vm8, %v1385_v15, 0.0 }
 0x113   : > { %v432_v25 = vadd.f32 %v950_v59, %v431_v17  ;;  %v469_v27 = vsel %vm466_vm3, %v468_v19, %v464_v34  ;;  %vm435_vm11 = vmor %vm433_vm10, %vm434_vm5  ;;  %v440_v16 = vor.u32 1.1754944e-38, %v439_v26  ;;  %vm438_vm13 = vcmp.eq.f32.partialorder %v437_v48, 8.507059e+37  ;;  %v518_v26 = vld [vmem:[#allocation7 + $0x30] sm:$0xff] (%p110_p3)  ;;  %v520_v34 = vld [vmem:[#allocation7 + $0x38] sm:$0xff] (%p110_p3) }
 0x114   : > { %v470_v33 = vmul.f32 %v469_v27, %v451_v29  ;;  %vm1483_vm0 = vcmp.gt.s32.totalorder %v1141_v41, %v1111_v18  ;;  %vm1484_vm12 = vcmp.gt.s32.totalorder %v1135_v36, %v1111_v18  ;;  %v495_v43 = vand.u32 2147483648, %v483_v13  ;;  %v564_v17 = vld [vmem:[#allocation2] sm:$0x1] (%p110_p3) }
 0x115   : > { %417 = vadd.xlane.f32.xlu2 %v416_v20  ;;  %v436_v22 = vsel %vm435_vm11, %v950_v59, %v432_v25  ;;  %vm471_vm6 = vmand %vm1483_vm0, %vm1162_vm15  ;;  %v493_v38 = vand.u32 2147483647, %v483_v13  ;;  %vm489_vm1 = vweird.f32 %v483_v13  ;;  %vm1485_vm4 = vcmp.gt.s32.totalorder %v1147_v46, %v1111_v18  ;;  %567 = vst [vmem:[#allocation3] sm:$0x1] (%p110_p3), %v564_v17 }
 0x116   : > { %361 = vadd.xlane.f32.xlu1 %v360_v21  ;;  %v441_v32 = vsel %vm438_vm13, %v440_v16, %v436_v22  ;;  %vm443_vm14 = vmand %vm1484_vm12, %vm1162_vm15  ;;  %v472_v44 = vsel %vm471_vm6, %v470_v33, 0.0  ;;  %v496_v41 = vor.u32 1.1754944e-38, %v495_v43  ;;  %vm278_vm5 = vcmp.gt.s32.totalorder %v1158_v23, %v1111_v18 }
 0x117   : > { %v952_v28 = vpop.eup %951  ;;  %v442_v14 = vmul.f32 %v441_v32, %v423_v35  ;;  %vm494_vm9 = vcmp.eq.f32.partialorder %v493_v38, 8.507059e+37  ;;  %vm499_vm8 = vmand %vm1485_vm4, %vm1162_vm15  ;;  %v279_v57 = vsel %vm278_vm5, %v1169_v30, 0.0 }
 0x118   : > { %v485_v40 = vmul.f32 %v952_v28, %v483_v13  ;;  %vm490_vm7 = vweird.f32 %v952_v28  ;;  %v512_v13 = vld [vmem:[#allocation7 + $0x18] sm:$0xff] (%p110_p3) }
 0x119   : > { %v444_v49 = vsel %vm443_vm14, %v442_v14, 0.0  ;;  %vm491_vm2 = vmor %vm489_vm1, %vm490_vm7 }
 0x11a   : > { %v486_v37 = vsub.f32 1.0, %v485_v40 }
 0x11c   : > { %v487_v45 = vmul.f32 %v952_v28, %v486_v37 }
 0x11d   : > { %473 = vadd.xlane.f32.xlu2 %v472_v44 }
 0x11e   : > { %445 = vadd.xlane.f32.xlu1 %v444_v49  ;;  %v488_v51 = vadd.f32 %v952_v28, %v487_v45 }
 0x120   : > { %v492_v52 = vsel %vm491_vm2, %v952_v28, %v488_v51 }
 0x121   : > { %v497_v54 = vsel %vm494_vm9, %v496_v41, %v492_v52 }
 0x122   : > { %v498_v55 = vmul.f32 %v497_v54, %v479_v53 }
 0x124   : > { %v500_v36 = vsel %vm499_vm8, %v498_v55, 0.0 }
 0x126   : > { %501 = vadd.xlane.f32.xlu1 %v500_v36 }
 0x180   : > { %v390_v58 = vpop.xlane.xlu2 %389 }
 0x181   : > { %v391_v59 = vmul.f32 %v390_v58, %v279_v57  ;;  %v334_v39 = vpop.xlane.xlu1 %333 }
 0x182   : > { %v335_v60 = vmul.f32 %v334_v39, %v279_v57  ;;  %v306_v61 = vpop.xlane.xlu0 %305 }
 0x183   : > { %v392_v62 = vsub.f32 %v1318_v42, %v391_v59  ;;  %v307_v63 = vmul.f32 %v306_v61, %v279_v57 }
 0x184   : > { %v336_v24 = vsub.f32 %v1331_v50, %v335_v60 }
 0x185   : > { %393 = vst [vmem:[#allocation1 + $0x18] sm:$0xff] %v392_v62  ;;  %v308_v46 = vsub.f32 %v1342_v56, %v307_v63 }
 0x186   : > { %337 = vst [vmem:[#allocation1 + $0x8] sm:$0xff] %v336_v24 }
 0x187   : > { %309 = vst [vmem:[#allocation1] sm:$0xff] %v308_v46 }
 0x188   : > { %v418_v0 = vpop.xlane.xlu2 %417 }
 0x189   : > { %v419_v1 = vmul.f32 %v418_v0, %v279_v57  ;;  %v362_v18 = vpop.xlane.xlu1 %361 }
 0x18a   : > { %v363_v23 = vmul.f32 %v362_v18, %v279_v57 }
 0x18b   : > { %v420_v30 = vsub.f32 %v1368_v9, %v419_v1  ;;  %v506_v9 = vld [vmem:[#allocation7] sm:$0xff] (%p110_p3) }
 0x18c   : > { %v364_v2 = vsub.f32 %v1385_v15, %v363_v23  ;;  %529 = vxpose.xlu0.b32.start [1/8] (short) (narrow) (%p110_p3), %v506_v9, 8  ;;  %v514_v15 = vld [vmem:[#allocation7 + $0x20] sm:$0xff] (%p110_p3) }
 0x18d   : > { %421 = vst [vmem:[#allocation1 + $0x20] sm:$0xff] %v420_v30 }
 0x18e   : > { %365 = vst [vmem:[#allocation1 + $0x10] sm:$0xff] %v364_v2 }
 0x190   : > { %v474_v3 = vpop.xlane.xlu2 %473 }
 0x191   : > { %v475_v42 = vmul.f32 %v474_v3, %v279_v57  ;;  %v446_v5 = vpop.xlane.xlu1 %445 }
 0x192   : > { %v447_v6 = vmul.f32 %v446_v5, %v279_v57 }
 0x193   : > { %v476_v50 = vsub.f32 %v470_v33, %v475_v42 }
 0x194   : > { %v448_v8 = vsub.f32 %v442_v14, %v447_v6  ;;  %530 = vxpose.xlu0.b32.cont [2/8] (short) (narrow) (%p110_p3), %v508_v11, 8 }
 0x195   : > { %477 = vst [vmem:[#allocation1 + $0x30] sm:$0xff] %v476_v50 }
 0x196   : > { %449 = vst [vmem:[#allocation1 + $0x28] sm:$0xff] %v448_v8 }
 0x199   : > { %v502_v56 = vpop.xlane.xlu1 %501 }
 0x19a   : > { %v503_v47 = vmul.f32 %v502_v56, %v279_v57  ;;  %112 = sbr.rel (!%p110_p3) target bundleno = 35 (0x23), region = 209 }
 0x19c   : > { %v504_v10 = vsub.f32 %v498_v55, %v503_v47  ;;  %531 = vxpose.xlu0.b32.cont [3/8] (short) (narrow) (%p110_p3), %v510_v12, 8 }
 0x19e   : > { %505 = vst [vmem:[#allocation1 + $0x38] sm:$0xff] %v504_v10 }
 0x1a4   :  { %532 = vxpose.xlu0.b32.cont [4/8] (short) (narrow) %v512_v13, 8 }
 0x1ac   :  { %533 = vxpose.xlu0.b32.cont [5/8] (short) (narrow) %v514_v15, 8 }
 0x1b4   :  { %534 = vxpose.xlu0.b32.cont [6/8] (short) (narrow) %v516_v31, 8 }
 0x1bc   :  { %535 = vxpose.xlu0.b32.cont [7/8] (short) (narrow) %v518_v26, 8 }
 0x1c4   :  { %536 = vxpose.xlu0.b32.end [8/8] (short) (narrow) %v520_v34, 8 }
 0x230   :  { %v545_v48 = vpop.trf.xlu0 }
 0x231   :  { %561 = vst [vmem:[#allocation5] sm:$0x1] %v545_v48 }
 0x238   :  { %v570_v4 = vld [vmem:[#allocation5] sm:$0x1] }
 0x239   :  { %573 = vst [vmem:[#allocation6] sm:$0x1] %v570_v4 }
 0x23a LB: > { %v617_v7 = vld [vmem:[%s1065_s6] sm:$0xff]  ;;  %s619_s6 = scalar_lea.vmem %s1065_s6, 8   ;;  %s1065_s6 = sphi %s1063_s6, %s619_s6   ;;  %s1061_s5 = sphi %s1059_s5, %s620_s5  }
 0x23b   : > { %618 = vst [vmem:[%s1061_s5] sm:$0xff] %v617_v7  ;;  %s620_s5 = scalar_lea.vmem %s1061_s5, 8   ;;  %p614_p4 = scmp.gt.s32.totalorder %s619_s6, [#allocation1 + $0x38] }
 0x23c   :  { %s637_s9 = sshll.u32 (%p614_p4), %s1447_s2, 4  ;;  %s1068_s10 = smov (%p614_p4), [#allocation3]   ;;  %s638_s9 = int_to_ptr.hbm [resolvable:$true] %s637_s9 }
 0x23d   :  { %616 = sbr.rel (!%p614_p4) target bundleno = 570 (0x23a), region = 231  ;;  %s635_s1 = sshll.u32 (%p614_p4), %s1068_s10, 4  ;;  %s636_s1 = int_to_ptr.vmem [resolvable:$true] %s635_s1 }
 0x23e   :  { %640 = dma.vmem_to_hbm [thread:$0]  (%p614_p4), %s636_s1, 16, %s638_s9, [#allocation4]  }
 0x240   :  { %v697_v19 = vld [vmem:[#allocation6] sm:$0x1] (%p614_p4) }
 0x241   :  { %698 = vst [vmem:[%s1448_s3] sm:$0x1] (%p614_p4), %v697_v19 }
 0x242   :  { %1041 = dma.done.wait [#allocation4], 16  }
 0x243   :  { %1042 = vsyncadd [#allocation4], 4294967280 }
 0x244   :  { %705 = vsyncpa [#allocation4], 1 }

// kernel: custom-call.27
= control target key start
LH: loop header
LB: loop body
LE: loop exit
PB: predicated region body
PF: predicated region fallthrough
CT: control target
= control target key end

     0   :  { %v63_v0 = vlaneseq  ;;  %v2120_v18 = vmov -1.0   ;;  %v2121_v61 = vmov 0.0   ;;  %s2920_s0 = inlined_call_operand.vmem [shape: f32[1,64,64], index: 0, kind: input, shape index: {}]   ;;  %s2921_s1 = inlined_call_operand.vmem [shape: f32[1,64,64], index: 1, kind: output, shape index: {}]  }
   0x1   :  { %v44_v1 = vld [vmem:[%s2920_s0] sm:$0xff]  ;;  %v46_v39 = vld [vmem:[%s2920_s0 + $0x8] sm:$0xff] }
   0x2   :  { %v2135_v2 = vand.u32 127, %v63_v0  ;;  %v2137_v3 = vshrl.u32 %v63_v0, 7 }
   0x4   :  { %vm69_vm0 = vcmp.eq.s32.totalorder %v2137_v3, %v2135_v2  ;;  %vm65_vm1 = vcmp.lt.s32.totalorder %v2135_v2, 64  ;;  %vm74_vm2 = vcmp.ge.s32.totalorder %v2137_v3, %v2135_v2  ;;  %vm304_vm8 = vcmp.eq.s32.totalorder %v2135_v2, 0 }
   0x5   :  { %v71_v4 = vsel %vm69_vm0, %v44_v1, 0.0  ;;  %vm75_vm3 = vmand %vm74_vm2, %vm65_vm1  ;;  %vm301_vm9 = vcmp.eq.s32.totalorder %v2135_v2, %v2137_v3  ;;  %v305_v19 = vsel %vm304_vm8, 1.0, %v2120_v18  ;;  %vm361_vm10 = vcmp.eq.s32.totalorder %v2135_v2, 1 }
   0x6   :  { %72 = vadd.xlane.f32.xlu0 %v71_v4  ;;  %v76_v13 = vsel %vm75_vm3, %v44_v1, 0.0  ;;  %v306_v20 = vsel %vm301_vm9, %v305_v19, 0.0  ;;  %vm371_vm11 = vcmp.eq.s32.totalorder %v2135_v2, 2  ;;  %vm381_vm12 = vcmp.eq.s32.totalorder %v2135_v2, 3 }
   0x7   :  { %v97_v40 = vadd.s32 8, %v2137_v3  ;;  %vm391_vm14 = vcmp.eq.s32.totalorder %v2135_v2, 4  ;;  %vm401_vm8 = vcmp.eq.s32.totalorder %v2135_v2, 5  ;;  %vm411_vm9 = vcmp.eq.s32.totalorder %v2135_v2, 6 }
   0x9   :  { %vm98_vm13 = vcmp.eq.s32.totalorder %v97_v40, %v2135_v2  ;;  %vm103_vm15 = vcmp.ge.s32.totalorder %v97_v40, %v2135_v2 }
   0xa   :  { %v100_v41 = vsel %vm98_vm13, %v46_v39, 0.0  ;;  %vm104_vm3 = vmand %vm103_vm15, %vm65_vm1  ;;  %vm459_vm13 = vcmp.eq.s32.totalorder %v2135_v2, 10  ;;  %vm487_vm15 = vcmp.eq.s32.totalorder %v2135_v2, 12 }
   0xb   :  { %v105_v56 = vsel %vm104_vm3, %v46_v39, 0.0  ;;  %vm501_vm3 = vcmp.eq.s32.totalorder %v2135_v2, 13 }
  0x79   :  { %v2141_v5 = vpop.xlane.xlu0 %72 }
  0x7a   :  { %2104 = vrcp.f32 %v2141_v5  ;;  %v88_v9 = vand.u32 2147483648, %v2141_v5  ;;  %v86_v11 = vand.u32 2147483647, %v2141_v5  ;;  %vm82_vm5 = vweird.f32 %v2141_v5 }
  0x7c   :  { %v89_v14 = vor.u32 1.1754944e-38, %v88_v9  ;;  %vm87_vm7 = vcmp.eq.f32.partialorder %v86_v11, 8.507059e+37 }
  0x80   :  { %v2105_v6 = vpop.eup %2104 }
  0x81   :  { %v78_v7 = vmul.f32 %v2105_v6, %v2141_v5  ;;  %vm83_vm4 = vweird.f32 %v2105_v6 }
  0x82   :  { %vm84_vm6 = vmor %vm82_vm5, %vm83_vm4 }
  0x83   :  { %v79_v8 = vsub.f32 1.0, %v78_v7 }
  0x85   :  { %v80_v10 = vmul.f32 %v2105_v6, %v79_v8 }
  0x87   :  { %v81_v12 = vadd.f32 %v2105_v6, %v80_v10 }
  0x89   :  { %v85_v15 = vsel %vm84_vm6, %v2105_v6, %v81_v12 }
  0x8a   :  { %v2155_v16 = vsel %vm87_vm7, %v89_v14, %v85_v15  ;;  %vm312_vm7 = vcmp.eq.s32.totalorder %v2135_v2, %v97_v40 }
  0x8b   :  { %v91_v17 = vmul.f32 %v2155_v16, %v76_v13  ;;  %v313_v62 = vsel %vm312_vm7, -1.0, %v2121_v61 }
  0x8d   :  { %92 = vst [vmem:[#allocation2] sm:$0xff] %v91_v17 }
  0x94   :  { %v357_v21 = vld [vmem:[#allocation2 + $0x1] ss:$0 sm:$0xff]  ;;  %v367_v24 = vld [vmem:[#allocation2 + $0x2] ss:$0 sm:$0xff]  ;;  %v377_v29 = vld [vmem:[#allocation2 + $0x3] ss:$0 sm:$0xff] }
  0x95   :  { %v358_v22 = vxor.u32 2147483648, %v357_v21  ;;  %v368_v26 = vxor.u32 2147483648, %v367_v24  ;;  %v378_v31 = vxor.u32 2147483648, %v377_v29  ;;  %v387_v34 = vld [vmem:[#allocation2 + $0x4] ss:$0 sm:$0xff] }
  0x96   :  { %v388_v36 = vxor.u32 2147483648, %v387_v34  ;;  %v397_v42 = vld [vmem:[#allocation2 + $0x5] ss:$0 sm:$0xff]  ;;  %v407_v60 = vld [vmem:[#allocation2 + $0x6] ss:$0 sm:$0xff] }
  0x97   :  { %v362_v23 = vmul.f32 %v358_v22, %v306_v20  ;;  %v398_v44 = vxor.u32 2147483648, %v397_v42  ;;  %v408_v1 = vxor.u32 2147483648, %v407_v60  ;;  %v417_v9 = vld [vmem:[#allocation2 + $0x7] ss:$0 sm:$0xff] }
  0x98   :  { %v418_v11 = vxor.u32 2147483648, %v417_v9 }
  0x99   :  { %363 = vadd.xlane.f32.xlu0 %v362_v23 }
 0x10c   :  { %v364_v25 = vpop.xlane.xlu0 %363 }
 0x10d   :  { %v365_v27 = vsel %vm361_vm10, %v364_v25, %v306_v20  ;;  %vm421_vm10 = vcmp.eq.s32.totalorder %v2135_v2, 7 }
 0x10e   :  { %v372_v28 = vmul.f32 %v368_v26, %v365_v27 }
 0x110   :  { %373 = vadd.xlane.f32.xlu1 %v372_v28 }
 0x183   :  { %v374_v30 = vpop.xlane.xlu1 %373 }
 0x184   :  { %v375_v32 = vsel %vm371_vm11, %v374_v30, %v365_v27  ;;  %vm431_vm11 = vcmp.eq.s32.totalorder %v2135_v2, 8 }
 0x185   :  { %v382_v33 = vmul.f32 %v378_v31, %v375_v32 }
 0x187   :  { %383 = vadd.xlane.f32.xlu1 %v382_v33 }
 0x18f   :  { %101 = vadd.xlane.f32.xlu1 %v100_v41 }
 0x1fa   :  { %v384_v35 = vpop.xlane.xlu1 %383 }
 0x1fb   :  { %v385_v37 = vsel %vm381_vm12, %v384_v35, %v375_v32  ;;  %vm445_vm12 = vcmp.eq.s32.totalorder %v2135_v2, 9 }
 0x1fc   :  { %v392_v38 = vmul.f32 %v388_v36, %v385_v37 }
 0x1fe   :  { %393 = vadd.xlane.f32.xlu2 %v392_v38 }
 0x202   :  { %v2170_v47 = vpop.xlane.xlu1 %101 }
 0x203   :  { %2106 = vrcp.f32 %v2170_v47  ;;  %v117_v50 = vand.u32 2147483648, %v2170_v47  ;;  %vm111_vm0 = vweird.f32 %v2170_v47  ;;  %v115_v52 = vand.u32 2147483647, %v2170_v47 }
 0x205   :  { %v118_v54 = vor.u32 1.1754944e-38, %v117_v50  ;;  %vm116_vm6 = vcmp.eq.f32.partialorder %v115_v52, 8.507059e+37 }
 0x209   :  { %v2107_v48 = vpop.eup %2106 }
 0x20a   :  { %v107_v49 = vmul.f32 %v2107_v48, %v2170_v47  ;;  %vm112_vm2 = vweird.f32 %v2107_v48 }
 0x20b   :  { %vm113_vm4 = vmor %vm111_vm0, %vm112_vm2 }
 0x20c   :  { %v108_v51 = vsub.f32 1.0, %v107_v49 }
 0x20e   :  { %v109_v53 = vmul.f32 %v2107_v48, %v108_v51 }
 0x210   :  { %v110_v55 = vadd.f32 %v2107_v48, %v109_v53 }
 0x212   :  { %v114_v57 = vsel %vm113_vm4, %v2107_v48, %v110_v55 }
 0x213   :  { %v2182_v58 = vsel %vm116_vm6, %v118_v54, %v114_v57  ;;  %v48_v57 = vld [vmem:[%s2920_s0 + $0x10] sm:$0xff] }
 0x214   :  { %v120_v59 = vmul.f32 %v2182_v58, %v105_v56  ;;  %v126_v56 = vadd.s32 16, %v2137_v3 }
 0x216   :  { %121 = vst [vmem:[#allocation2 + $0x8] sm:$0xff] %v120_v59  ;;  %vm127_vm2 = vcmp.eq.s32.totalorder %v126_v56, %v2135_v2  ;;  %vm132_vm4 = vcmp.ge.s32.totalorder %v126_v56, %v2135_v2 }
 0x217   :  { %v129_v59 = vsel %vm127_vm2, %v48_v57, 0.0  ;;  %vm579_vm2 = vcmp.eq.s32.totalorder %v2135_v2, 18 }
 0x21d   :  { %v427_v63 = vld [vmem:[#allocation2 + $0x8] ss:$0 sm:$0xff]  ;;  %v441_v18 = vld [vmem:[#allocation2 + $0x9] ss:$0 sm:$0xff]  ;;  %v455_v26 = vld [vmem:[#allocation2 + $0xa] ss:$0 sm:$0xff] }
 0x21e   :  { %v428_v4 = vxor.u32 2147483648, %v427_v63  ;;  %v442_v20 = vxor.u32 2147483648, %v441_v18  ;;  %v456_v28 = vxor.u32 2147483648, %v455_v26  ;;  %v469_v34 = vld [vmem:[#allocation2 + $0xb] ss:$0 sm:$0xff] }
 0x21f   :  { %v470_v36 = vxor.u32 2147483648, %v469_v34  ;;  %v483_v42 = vld [vmem:[#allocation2 + $0xc] ss:$0 sm:$0xff]  ;;  %v497_v51 = vld [vmem:[#allocation2 + $0xd] ss:$0 sm:$0xff] }
 0x220   :  { %v436_v8 = vmul.f32 %v428_v4, %v313_v62  ;;  %v498_v53 = vxor.u32 2147483648, %v497_v51 }
 0x222   :  { %437 = vadd.xlane.f32.xlu1 %v436_v8 }
 0x271   :  { %v394_v43 = vpop.xlane.xlu2 %393 }
 0x272   :  { %v395_v45 = vsel %vm391_vm14, %v394_v43, %v385_v37  ;;  %vm473_vm14 = vcmp.eq.s32.totalorder %v2135_v2, 11 }
 0x273   :  { %v402_v46 = vmul.f32 %v398_v44, %v395_v45  ;;  %v484_v44 = vxor.u32 2147483648, %v483_v42 }
 0x275   :  { %403 = vadd.xlane.f32.xlu2 %v402_v46 }
 0x295   :  { %v438_v19 = vpop.xlane.xlu1 %437 }
 0x296   :  { %v439_v21 = vsel %vm431_vm11, %v438_v19, %v313_v62 }
 0x297   :  { %v450_v22 = vmul.f32 %v442_v20, %v439_v21 }
 0x2e8   :  { %v404_v0 = vpop.xlane.xlu2 %403 }
 0x2e9   :  { %v405_v6 = vsel %vm401_vm8, %v404_v0, %v395_v45  ;;  %v511_v0 = vld [vmem:[#allocation2 + $0xe] ss:$0 sm:$0xff]  ;;  %vm133_vm8 = vmand %vm132_vm4, %vm65_vm1  ;;  %vm615_vm4 = vcmp.eq.s32.totalorder %v2135_v2, 20 }
 0x2ea   :  { %v412_v7 = vmul.f32 %v408_v1, %v405_v6  ;;  %v134_v18 = vsel %vm133_vm8, %v48_v57, 0.0 }
 0x2ec   :  { %413 = vadd.xlane.f32.xlu0 %v412_v7 }
 0x35f   :  { %v414_v10 = vpop.xlane.xlu0 %413 }
 0x360   :  { %v415_v12 = vsel %vm411_vm9, %v414_v10, %v405_v6 }
 0x361   :  { %v422_v13 = vmul.f32 %v418_v11, %v415_v12 }
 0x363   :  { %423 = vadd.xlane.f32.xlu2 %v422_v13 }
 0x3d6   :  { %v424_v14 = vpop.xlane.xlu2 %423 }
 0x3d7   :  { %v425_v15 = vsel %vm421_vm10, %v424_v14, %v415_v12 }
 0x3d8   :  { %v432_v17 = vmul.f32 %v428_v4, %v425_v15  ;;  %v512_v4 = vxor.u32 2147483648, %v511_v0 }
 0x3da   :  { %433 = vadd.xlane.f32.xlu0 %v432_v17 }
 0x3e2   :  { %451 = vadd.xlane.f32.xlu0 %v450_v22 }
 0x44d   :  { %v434_v23 = vpop.xlane.xlu0 %433 }
 0x44e   :  { %v435_v24 = vsel %vm431_vm11, %v434_v23, %v425_v15  ;;  %vm515_vm11 = vcmp.eq.s32.totalorder %v2135_v2, 14 }
 0x44f   :  { %v446_v25 = vmul.f32 %v442_v20, %v435_v24 }
 0x451   :  { %447 = vadd.xlane.f32.xlu2 %v446_v25  ;;  %v525_v25 = vld [vmem:[#allocation2 + $0xf] ss:$0 sm:$0xff] }
 0x455   :  { %v452_v27 = vpop.xlane.xlu0 %451 }
 0x456   :  { %v453_v29 = vsel %vm445_vm12, %v452_v27, %v439_v21  ;;  %v526_v27 = vxor.u32 2147483648, %v525_v25 }
 0x457   :  { %v464_v30 = vmul.f32 %v456_v28, %v453_v29 }
 0x459   :  { %465 = vadd.xlane.f32.xlu2 %v464_v30 }
 0x4c4   :  { %v448_v31 = vpop.xlane.xlu2 %447 }
 0x4c5   :  { %v449_v32 = vsel %vm445_vm12, %v448_v31, %v435_v24  ;;  %vm319_vm12 = vcmp.eq.s32.totalorder %v2135_v2, %v126_v56 }
 0x4c6   :  { %v460_v33 = vmul.f32 %v456_v28, %v449_v32 }
 0x4c8   :  { %461 = vadd.xlane.f32.xlu1 %v460_v33 }
 0x4cc   :  { %v466_v35 = vpop.xlane.xlu2 %465 }
 0x4cd   :  { %v467_v37 = vsel %vm459_vm13, %v466_v35, %v453_v29 }
 0x4ce   :  { %v478_v38 = vmul.f32 %v470_v36, %v467_v37 }
 0x4d0   :  { %479 = vadd.xlane.f32.xlu1 %v478_v38 }
 0x53b   :  { %v462_v39 = vpop.xlane.xlu1 %461 }
 0x53c   :  { %v463_v40 = vsel %vm459_vm13, %v462_v39, %v449_v32  ;;  %v320_v32 = vsel %vm319_vm12, -1.0, %v2121_v61  ;;  %vm529_vm13 = vcmp.eq.s32.totalorder %v2135_v2, 15 }
 0x53d   :  { %v474_v41 = vmul.f32 %v470_v36, %v463_v40 }
 0x53f   :  { %475 = vadd.xlane.f32.xlu0 %v474_v41 }
 0x543   :  { %v480_v43 = vpop.xlane.xlu1 %479 }
 0x544   :  { %v481_v45 = vsel %vm473_vm14, %v480_v43, %v467_v37 }
 0x545   :  { %v492_v46 = vmul.f32 %v484_v44, %v481_v45 }
 0x547   :  { %493 = vadd.xlane.f32.xlu0 %v492_v46 }
 0x5b2   :  { %v476_v48 = vpop.xlane.xlu0 %475 }
 0x5b3   :  { %v477_v49 = vsel %vm473_vm14, %v476_v48, %v463_v40  ;;  %vm543_vm14 = vcmp.eq.s32.totalorder %v2135_v2, 16 }
 0x5b4   :  { %v488_v50 = vmul.f32 %v484_v44, %v477_v49 }
 0x5b6   :  { %489 = vadd.xlane.f32.xlu2 %v488_v50 }
 0x5ba   :  { %v494_v52 = vpop.xlane.xlu0 %493 }
 0x5bb   :  { %v495_v54 = vsel %vm487_vm15, %v494_v52, %v481_v45 }
 0x5bc   :  { %v506_v55 = vmul.f32 %v498_v53, %v495_v54 }
 0x5be   :  { %507 = vadd.xlane.f32.xlu2 %v506_v55 }
 0x5c6   :  { %130 = vadd.xlane.f32.xlu2 %v129_v59 }
 0x629   :  { %v490_v60 = vpop.xlane.xlu2 %489 }
 0x62a   :  { %v491_v62 = vsel %vm487_vm15, %v490_v60, %v477_v49  ;;  %vm561_vm15 = vcmp.eq.s32.totalorder %v2135_v2, 17 }
 0x62b   :  { %v502_v63 = vmul.f32 %v498_v53, %v491_v62 }
 0x62d   :  { %503 = vadd.xlane.f32.xlu1 %v502_v63 }
 0x631   :  { %v508_v1 = vpop.xlane.xlu2 %507 }
 0x632   :  { %v509_v6 = vsel %vm501_vm3, %v508_v1, %v495_v54 }
 0x633   :  { %v520_v7 = vmul.f32 %v512_v4, %v509_v6 }
 0x635   :  { %521 = vadd.xlane.f32.xlu1 %v520_v7 }
 0x639   :  { %v2203_v8 = vpop.xlane.xlu2 %130 }
 0x63a   :  { %2108 = vrcp.f32 %v2203_v8  ;;  %v146_v11 = vand.u32 2147483648, %v2203_v8  ;;  %vm140_vm6 = vweird.f32 %v2203_v8  ;;  %v144_v13 = vand.u32 2147483647, %v2203_v8 }
 0x63c   :  { %v147_v15 = vor.u32 1.1754944e-38, %v146_v11  ;;  %vm145_vm10 = vcmp.eq.f32.partialorder %v144_v13, 8.507059e+37 }
 0x640   :  { %v2109_v9 = vpop.eup %2108 }
 0x641   :  { %v136_v10 = vmul.f32 %v2109_v9, %v2203_v8  ;;  %vm141_vm7 = vweird.f32 %v2109_v9 }
 0x642   :  { %vm142_vm9 = vmor %vm140_vm6, %vm141_vm7  ;;  %vm633_vm7 = vcmp.eq.s32.totalorder %v2135_v2, 21 }
 0x643   :  { %v137_v12 = vsub.f32 1.0, %v136_v10 }
 0x645   :  { %v138_v14 = vmul.f32 %v2109_v9, %v137_v12 }
 0x647   :  { %v139_v17 = vadd.f32 %v2109_v9, %v138_v14 }
 0x649   :  { %v143_v19 = vsel %vm142_vm9, %v2109_v9, %v139_v17  ;;  %vm651_vm9 = vcmp.eq.s32.totalorder %v2135_v2, 22 }
 0x64a   :  { %v2215_v20 = vsel %vm145_vm10, %v147_v15, %v143_v19 }
 0x64b   :  { %v149_v21 = vmul.f32 %v2215_v20, %v134_v18 }
 0x64d   :  { %150 = vst [vmem:[#allocation2 + $0x10] sm:$0xff] %v149_v21 }
 0x654   :  { %v539_v29 = vld [vmem:[#allocation2 + $0x10] ss:$0 sm:$0xff]  ;;  %v557_v40 = vld [vmem:[#allocation2 + $0x11] ss:$0 sm:$0xff]  ;;  %v575_v52 = vld [vmem:[#allocation2 + $0x12] ss:$0 sm:$0xff] }
 0x655   :  { %v540_v31 = vxor.u32 2147483648, %v539_v29  ;;  %v558_v41 = vxor.u32 2147483648, %v557_v40  ;;  %v576_v54 = vxor.u32 2147483648, %v575_v52  ;;  %v593_v1 = vld [vmem:[#allocation2 + $0x13] ss:$0 sm:$0xff] }
 0x656   :  { %v611_v17 = vld [vmem:[#allocation2 + $0x14] ss:$0 sm:$0xff]  ;;  %v629_v29 = vld [vmem:[#allocation2 + $0x15] ss:$0 sm:$0xff]  ;;  %v647_v40 = vld [vmem:[#allocation2 + $0x16] ss:$0 sm:$0xff] }
 0x657   :  { %v552_v33 = vmul.f32 %v540_v31, %v320_v32  ;;  %v612_v19 = vxor.u32 2147483648, %v611_v17 }
 0x6a0   :  { %v504_v22 = vpop.xlane.xlu1 %503 }
 0x6a1   :  { %v505_v23 = vsel %vm501_vm3, %v504_v22, %v491_v62  ;;  %vm597_vm3 = vcmp.eq.s32.totalorder %v2135_v2, 19 }
 0x6a2   :  { %v516_v24 = vmul.f32 %v512_v4, %v505_v23 }
 0x6a4   :  { %517 = vadd.xlane.f32.xlu0 %v516_v24 }
 0x6a8   :  { %v522_v26 = vpop.xlane.xlu1 %521 }
 0x6a9   :  { %v523_v28 = vsel %vm515_vm11, %v522_v26, %v509_v6  ;;  %v594_v6 = vxor.u32 2147483648, %v593_v1 }
 0x6aa   :  { %v534_v30 = vmul.f32 %v526_v27, %v523_v28 }
 0x6ac   :  { %535 = vadd.xlane.f32.xlu1 %v534_v30 }
 0x6b4   :  { %553 = vadd.xlane.f32.xlu1 %v552_v33 }
 0x717   :  { %v518_v34 = vpop.xlane.xlu0 %517 }
 0x718   :  { %v519_v35 = vsel %vm515_vm11, %v518_v34, %v505_v23 }
 0x719   :  { %v530_v36 = vmul.f32 %v526_v27, %v519_v35 }
 0x71b   :  { %531 = vadd.xlane.f32.xlu0 %v530_v36 }
 0x71f   :  { %v536_v37 = vpop.xlane.xlu1 %535 }
 0x720   :  { %v537_v38 = vsel %vm529_vm13, %v536_v37, %v523_v28 }
 0x721   :  { %v548_v39 = vmul.f32 %v540_v31, %v537_v38 }
 0x723   :  { %549 = vadd.xlane.f32.xlu0 %v548_v39 }
 0x727   :  { %v554_v42 = vpop.xlane.xlu1 %553 }
 0x728   :  { %v555_v43 = vsel %vm543_vm14, %v554_v42, %v320_v32  ;;  %v648_v42 = vxor.u32 2147483648, %v647_v40 }
 0x729   :  { %v570_v44 = vmul.f32 %v558_v41, %v555_v43 }
 0x72b   :  { %571 = vadd.xlane.f32.xlu1 %v570_v44 }
 0x78e   :  { %v532_v45 = vpop.xlane.xlu0 %531 }
 0x78f   :  { %v533_v46 = vsel %vm529_vm13, %v532_v45, %v519_v35 }
 0x790   :  { %v544_v48 = vmul.f32 %v540_v31, %v533_v46  ;;  %v630_v31 = vxor.u32 2147483648, %v629_v29 }
 0x792   :  { %545 = vadd.xlane.f32.xlu2 %v544_v48 }
 0x796   :  { %v550_v49 = vpop.xlane.xlu0 %549 }
 0x797   :  { %v551_v50 = vsel %vm543_vm14, %v550_v49, %v537_v38 }
 0x798   :  { %v566_v51 = vmul.f32 %v558_v41, %v551_v50 }
 0x79a   :  { %567 = vadd.xlane.f32.xlu0 %v566_v51 }
 0x79e   :  { %v572_v53 = vpop.xlane.xlu1 %571 }
 0x79f   :  { %v573_v55 = vsel %vm561_vm15, %v572_v53, %v555_v43 }
 0x7a0   :  { %v588_v56 = vmul.f32 %v576_v54, %v573_v55 }
 0x7a2   :  { %589 = vadd.xlane.f32.xlu1 %v588_v56  ;;  %v665_v56 = vld [vmem:[#allocation2 + $0x17] ss:$0 sm:$0xff] }
 0x805   :  { %v546_v57 = vpop.xlane.xlu2 %545 }
 0x806   :  { %v547_v59 = vsel %vm543_vm14, %v546_v57, %v533_v46  ;;  %v50_v57 = vld [vmem:[%s2920_s0 + $0x18] sm:$0xff] }
 0x807   :  { %v562_v60 = vmul.f32 %v558_v41, %v547_v59 }
 0x809   :  { %563 = vadd.xlane.f32.xlu2 %v562_v60  ;;  %v666_v60 = vxor.u32 2147483648, %v665_v56 }
 0x80d   :  { %v568_v62 = vpop.xlane.xlu0 %567 }
 0x80e   :  { %v569_v63 = vsel %vm561_vm15, %v568_v62, %v551_v50 }
 0x80f   :  { %v584_v0 = vmul.f32 %v576_v54, %v569_v63 }
 0x811   :  { %585 = vadd.xlane.f32.xlu0 %v584_v0 }
 0x815   :  { %v590_v4 = vpop.xlane.xlu1 %589 }
 0x816   :  { %v591_v7 = vsel %vm579_vm2, %v590_v4, %v573_v55  ;;  %v155_v55 = vadd.s32 24, %v2137_v3 }
 0x817   :  { %v606_v9 = vmul.f32 %v594_v6, %v591_v7 }
 0x818   :  { %vm156_vm8 = vcmp.eq.s32.totalorder %v155_v55, %v2135_v2  ;;  %vm161_vm10 = vcmp.ge.s32.totalorder %v155_v55, %v2135_v2 }
 0x819   :  { %607 = vadd.xlane.f32.xlu1 %v606_v9  ;;  %vm162_vm13 = vmand %vm161_vm10, %vm65_vm1  ;;  %vm775_vm10 = vcmp.eq.s32.totalorder %v2135_v2, 28 }
 0x87c   :  { %v564_v10 = vpop.xlane.xlu2 %563 }
 0x87d   :  { %v565_v11 = vsel %vm561_vm15, %v564_v10, %v547_v59 }
 0x87e   :  { %v580_v12 = vmul.f32 %v576_v54, %v565_v11 }
 0x880   :  { %581 = vadd.xlane.f32.xlu2 %v580_v12 }
 0x884   :  { %v586_v13 = vpop.xlane.xlu0 %585 }
 0x885   :  { %v587_v14 = vsel %vm579_vm2, %v586_v13, %v569_v63  ;;  %v158_v63 = vsel %vm156_vm8, %v50_v57, 0.0  ;;  %vm731_vm8 = vcmp.eq.s32.totalorder %v2135_v2, 26 }
 0x886   :  { %v602_v15 = vmul.f32 %v594_v6, %v587_v14 }
 0x888   :  { %603 = vadd.xlane.f32.xlu0 %v602_v15 }
 0x88c   :  { %v608_v18 = vpop.xlane.xlu1 %607 }
 0x88d   :  { %v609_v21 = vsel %vm597_vm3, %v608_v18, %v591_v7 }
 0x88e   :  { %v624_v22 = vmul.f32 %v612_v19, %v609_v21 }
 0x890   :  { %625 = vadd.xlane.f32.xlu1 %v624_v22  ;;  %v163_v22 = vsel %vm162_vm13, %v50_v57, 0.0 }
 0x8f3   :  { %v582_v23 = vpop.xlane.xlu2 %581 }
 0x8f4   :  { %v583_v24 = vsel %vm579_vm2, %v582_v23, %v565_v11  ;;  %vm669_vm2 = vcmp.eq.s32.totalorder %v2135_v2, 23 }
 0x8f5   :  { %v598_v25 = vmul.f32 %v594_v6, %v583_v24 }
 0x8f7   :  { %599 = vadd.xlane.f32.xlu2 %v598_v25 }
 0x8fb   :  { %v604_v26 = vpop.xlane.xlu0 %603 }
 0x8fc   :  { %v605_v27 = vsel %vm597_vm3, %v604_v26, %v587_v14 }
 0x8fd   :  { %v620_v28 = vmul.f32 %v612_v19, %v605_v27 }
 0x8ff   :  { %621 = vadd.xlane.f32.xlu0 %v620_v28 }
 0x903   :  { %v626_v30 = vpop.xlane.xlu1 %625 }
 0x904   :  { %v627_v32 = vsel %vm615_vm4, %v626_v30, %v609_v21 }
 0x905   :  { %v642_v33 = vmul.f32 %v630_v31, %v627_v32 }
 0x907   :  { %643 = vadd.xlane.f32.xlu1 %v642_v33 }
 0x96a   :  { %v600_v34 = vpop.xlane.xlu2 %599 }
 0x96b   :  { %v601_v35 = vsel %vm597_vm3, %v600_v34, %v583_v24  ;;  %vm326_vm3 = vcmp.eq.s32.totalorder %v2135_v2, %v155_v55 }
 0x96c   :  { %v616_v36 = vmul.f32 %v612_v19, %v601_v35 }
 0x96e   :  { %617 = vadd.xlane.f32.xlu2 %v616_v36 }
 0x972   :  { %v622_v37 = vpop.xlane.xlu0 %621 }
 0x973   :  { %v623_v38 = vsel %vm615_vm4, %v622_v37, %v605_v27  ;;  %v327_v37 = vsel %vm326_vm3, -1.0, %v2121_v61 }
 0x974   :  { %v638_v39 = vmul.f32 %v630_v31, %v623_v38 }
 0x976   :  { %639 = vadd.xlane.f32.xlu0 %v638_v39 }
 0x97a   :  { %v644_v41 = vpop.xlane.xlu1 %643 }
 0x97b   :  { %v645_v43 = vsel %vm633_vm7, %v644_v41, %v627_v32 }
 0x97c   :  { %v660_v44 = vmul.f32 %v648_v42, %v645_v43 }
 0x97e   :  { %661 = vadd.xlane.f32.xlu1 %v660_v44 }
 0x9e1   :  { %v618_v45 = vpop.xlane.xlu2 %617 }
 0x9e2   :  { %v619_v46 = vsel %vm615_vm4, %v618_v45, %v601_v35  ;;  %vm687_vm4 = vcmp.eq.s32.totalorder %v2135_v2, 24 }
 0x9e3   :  { %v634_v48 = vmul.f32 %v630_v31, %v619_v46 }
 0x9e5   :  { %635 = vadd.xlane.f32.xlu2 %v634_v48 }
 0x9e9   :  { %v640_v49 = vpop.xlane.xlu0 %639 }
 0x9ea   :  { %v641_v50 = vsel %vm633_vm7, %v640_v49, %v623_v38 }
 0x9eb   :  { %v656_v51 = vmul.f32 %v648_v42, %v641_v50 }
 0x9ed   :  { %657 = vadd.xlane.f32.xlu0 %v656_v51 }
 0x9f1   :  { %v662_v1 = vpop.xlane.xlu1 %661 }
 0x9f2   :  { %v663_v4 = vsel %vm651_vm9, %v662_v1, %v645_v43 }
 0x9f3   :  { %v678_v6 = vmul.f32 %v666_v60, %v663_v4 }
 0xa58   :  { %v636_v52 = vpop.xlane.xlu2 %635 }
 0xa59   :  { %v637_v53 = vsel %vm633_vm7, %v636_v52, %v619_v46  ;;  %vm709_vm7 = vcmp.eq.s32.totalorder %v2135_v2, 25 }
 0xa5a   :  { %v652_v54 = vmul.f32 %v648_v42, %v637_v53 }
 0xa5c   :  { %653 = vadd.xlane.f32.xlu2 %v652_v54 }
 0xa60   :  { %v658_v59 = vpop.xlane.xlu0 %657 }
 0xa61   :  { %v659_v62 = vsel %vm651_vm9, %v658_v59, %v641_v50 }
 0xa62   :  { %v674_v0 = vmul.f32 %v666_v60, %v659_v62 }
 0xa64   :  { %159 = vadd.xlane.f32.xlu2 %v158_v63  ;;  %675 = vadd.xlane.f32.xlu1 %v674_v0 }
 0xa6c   :  { %679 = vadd.xlane.f32.xlu2 %v678_v6 }
 0xacf   :  { %v654_v7 = vpop.xlane.xlu2 %653 }
 0xad0   :  { %v655_v9 = vsel %vm651_vm9, %v654_v7, %v637_v53  ;;  %vm753_vm9 = vcmp.eq.s32.totalorder %v2135_v2, 27 }
 0xad1   :  { %v670_v10 = vmul.f32 %v666_v60, %v655_v9 }
 0xad3   :  { %671 = vadd.xlane.f32.xlu0 %v670_v10 }
 0xad7   :  { %v2266_v11 = vpop.xlane.xlu2 %159  ;;  %v676_v26 = vpop.xlane.xlu1 %675 }
 0xad8   :  { %2110 = vrcp.f32 %v2266_v11  ;;  %v175_v14 = vand.u32 2147483648, %v2266_v11  ;;  %vm169_vm11 = vweird.f32 %v2266_v11  ;;  %v173_v17 = vand.u32 2147483647, %v2266_v11 }
 0xad9   :  { %v677_v30 = vsel %vm669_vm2, %v676_v26, %v659_v62 }
 0xada   :  { %v176_v19 = vor.u32 1.1754944e-38, %v175_v14  ;;  %vm174_vm15 = vcmp.eq.f32.partialorder %v173_v17, 8.507059e+37 }
 0xade   :  { %v2111_v12 = vpop.eup %2110 }
 0xadf   :  { %v165_v13 = vmul.f32 %v2111_v12, %v2266_v11  ;;  %vm170_vm12 = vweird.f32 %v2111_v12  ;;  %v680_v27 = vpop.xlane.xlu2 %679 }
 0xae0   :  { %vm171_vm14 = vmor %vm169_vm11, %vm170_vm12  ;;  %v681_v31 = vsel %vm669_vm2, %v680_v27, %v663_v4  ;;  %vm797_vm12 = vcmp.eq.s32.totalorder %v2135_v2, 29 }
 0xae1   :  { %v166_v15 = vsub.f32 1.0, %v165_v13 }
 0xae3   :  { %v167_v18 = vmul.f32 %v2111_v12, %v166_v15 }
 0xae5   :  { %v168_v21 = vadd.f32 %v2111_v12, %v167_v18 }
 0xae7   :  { %v172_v23 = vsel %vm171_vm14, %v2111_v12, %v168_v21  ;;  %vm819_vm14 = vcmp.eq.s32.totalorder %v2135_v2, 30 }
 0xae8   :  { %v2278_v24 = vsel %vm174_vm15, %v176_v19, %v172_v23 }
 0xae9   :  { %v178_v25 = vmul.f32 %v2278_v24, %v163_v22 }
 0xaeb   :  { %179 = vst [vmem:[#allocation2 + $0x18] sm:$0xff] %v178_v25 }
 0xaf2   :  { %v683_v28 = vld [vmem:[#allocation2 + $0x18] ss:$0 sm:$0xff]  ;;  %v705_v39 = vld [vmem:[#allocation2 + $0x19] ss:$0 sm:$0xff]  ;;  %v727_v54 = vld [vmem:[#allocation2 + $0x1a] ss:$0 sm:$0xff] }
 0xaf3   :  { %v684_v29 = vxor.u32 2147483648, %v683_v28  ;;  %v706_v42 = vxor.u32 2147483648, %v705_v39  ;;  %v728_v57 = vxor.u32 2147483648, %v727_v54  ;;  %v749_v10 = vld [vmem:[#allocation2 + $0x1b] ss:$0 sm:$0xff] }
 0xaf4   :  { %v750_v14 = vxor.u32 2147483648, %v749_v10  ;;  %v771_v28 = vld [vmem:[#allocation2 + $0x1c] ss:$0 sm:$0xff] }
 0xaf5   :  { %v696_v32 = vmul.f32 %v684_v29, %v681_v31  ;;  %v692_v33 = vmul.f32 %v684_v29, %v677_v30  ;;  %v700_v38 = vmul.f32 %v684_v29, %v327_v37 }
 0xaf7   :  { %697 = vadd.xlane.f32.xlu2 %v696_v32  ;;  %693 = vadd.xlane.f32.xlu1 %v692_v33 }
 0xb46   :  { %v672_v34 = vpop.xlane.xlu0 %671 }
 0xb47   :  { %v673_v35 = vsel %vm669_vm2, %v672_v34, %v655_v9 }
 0xb48   :  { %v688_v36 = vmul.f32 %v684_v29, %v673_v35 }
 0xb4a   :  { %689 = vadd.xlane.f32.xlu0 %v688_v36 }
 0xb52   :  { %701 = vadd.xlane.f32.xlu0 %v700_v38 }
 0xb6a   :  { %v698_v40 = vpop.xlane.xlu2 %697  ;;  %v694_v41 = vpop.xlane.xlu1 %693 }
 0xb6b   :  { %v699_v43 = vsel %vm687_vm4, %v698_v40, %v681_v31  ;;  %v695_v44 = vsel %vm687_vm4, %v694_v41, %v677_v30  ;;  %v772_v31 = vxor.u32 2147483648, %v771_v28 }
 0xb6c   :  { %v714_v45 = vmul.f32 %v706_v42, %v695_v44  ;;  %v718_v46 = vmul.f32 %v706_v42, %v699_v43 }
 0xb6e   :  { %715 = vadd.xlane.f32.xlu2 %v714_v45  ;;  %719 = vadd.xlane.f32.xlu0 %v718_v46 }
 0xbbd   :  { %v690_v48 = vpop.xlane.xlu0 %689 }
 0xbbe   :  { %v691_v49 = vsel %vm687_vm4, %v690_v48, %v673_v35 }
 0xbbf   :  { %v710_v50 = vmul.f32 %v706_v42, %v691_v49 }
 0xbc1   :  { %711 = vadd.xlane.f32.xlu1 %v710_v50 }
 0xbc5   :  { %v702_v51 = vpop.xlane.xlu0 %701 }
 0xbc6   :  { %v703_v52 = vsel %vm687_vm4, %v702_v51, %v327_v37 }
 0xbc7   :  { %v722_v53 = vmul.f32 %v706_v42, %v703_v52  ;;  %v793_v42 = vld [vmem:[#allocation2 + $0x1d] ss:$0 sm:$0xff] }
 0xbc8   :  { %v794_v45 = vxor.u32 2147483648, %v793_v42 }
 0xbc9   :  { %723 = vadd.xlane.f32.xlu1 %v722_v53 }
 0xbe1   :  { %v716_v55 = vpop.xlane.xlu2 %715  ;;  %v720_v56 = vpop.xlane.xlu0 %719 }
 0xbe2   :  { %v717_v59 = vsel %vm709_vm7, %v716_v55, %v695_v44  ;;  %v721_v60 = vsel %vm709_vm7, %v720_v56, %v699_v43 }
 0xbe3   :  { %v736_v62 = vmul.f32 %v728_v57, %v717_v59  ;;  %v740_v63 = vmul.f32 %v728_v57, %v721_v60 }
 0xbe5   :  { %737 = vadd.xlane.f32.xlu0 %v736_v62  ;;  %741 = vadd.xlane.f32.xlu1 %v740_v63 }
 0xc34   :  { %v712_v0 = vpop.xlane.xlu1 %711 }
 0xc35   :  { %v713_v1 = vsel %vm709_vm7, %v712_v0, %v691_v49 }
 0xc36   :  { %v732_v4 = vmul.f32 %v728_v57, %v713_v1 }
 0xc38   :  { %733 = vadd.xlane.f32.xlu2 %v732_v4 }
 0xc3c   :  { %v724_v6 = vpop.xlane.xlu1 %723 }
 0xc3d   :  { %v725_v7 = vsel %vm709_vm7, %v724_v6, %v703_v52  ;;  %v2295_v6 = vadd.s32 32, %v2137_v3 }
 0xc3e   :  { %v744_v9 = vmul.f32 %v728_v57, %v725_v7  ;;  %v815_v57 = vld [vmem:[#allocation2 + $0x1e] ss:$0 sm:$0xff] }
 0xc3f   :  { %v816_v62 = vxor.u32 2147483648, %v815_v57  ;;  %vm185_vm13 = vcmp.eq.s32.totalorder %v2295_v6, %v2135_v2  ;;  %vm190_vm15 = vcmp.ge.s32.totalorder %v2295_v6, %v2135_v2 }
 0xc40   :  { %745 = vadd.xlane.f32.xlu2 %v744_v9  ;;  %vm191_vm4 = vmand %vm190_vm15, %vm65_vm1  ;;  %vm941_vm15 = vcmp.eq.s32.totalorder %v2135_v2, 35 }
 0xc58   :  { %v742_v12 = vpop.xlane.xlu1 %741  ;;  %v738_v13 = vpop.xlane.xlu0 %737 }
 0xc59   :  { %v743_v15 = vsel %vm731_vm8, %v742_v12, %v721_v60  ;;  %v739_v17 = vsel %vm731_vm8, %v738_v13, %v717_v59 }
 0xc5a   :  { %v762_v18 = vmul.f32 %v750_v14, %v743_v15  ;;  %v758_v19 = vmul.f32 %v750_v14, %v739_v17 }
 0xc5c   :  { %763 = vadd.xlane.f32.xlu2 %v762_v18  ;;  %759 = vadd.xlane.f32.xlu1 %v758_v19  ;;  %v837_v18 = vld [vmem:[#allocation2 + $0x1f] ss:$0 sm:$0xff] }
 0xcab   :  { %v734_v21 = vpop.xlane.xlu2 %733 }
 0xcac   :  { %v735_v22 = vsel %vm731_vm8, %v734_v21, %v713_v1 }
 0xcad   :  { %v754_v23 = vmul.f32 %v750_v14, %v735_v22 }
 0xcaf   :  { %755 = vadd.xlane.f32.xlu0 %v754_v23 }
 0xcb3   :  { %v746_v25 = vpop.xlane.xlu2 %745 }
 0xcb4   :  { %v747_v26 = vsel %vm731_vm8, %v746_v25, %v725_v7  ;;  %v52_v7 = vld [vmem:[%s2920_s0 + $0x20] sm:$0xff] }
 0xcb5   :  { %v766_v27 = vmul.f32 %v750_v14, %v747_v26  ;;  %v187_v9 = vsel %vm185_vm13, %v52_v7, 0.0  ;;  %vm889_vm13 = vcmp.eq.s32.totalorder %v2135_v2, 33 }
 0xcb7   :  { %767 = vadd.xlane.f32.xlu0 %v766_v27 }
 0xccf   :  { %v764_v29 = vpop.xlane.xlu2 %763  ;;  %v760_v30 = vpop.xlane.xlu1 %759 }
 0xcd0   :  { %v765_v32 = vsel %vm753_vm9, %v764_v29, %v743_v15  ;;  %v761_v33 = vsel %vm753_vm9, %v760_v30, %v739_v17 }
 0xcd1   :  { %v784_v34 = vmul.f32 %v772_v31, %v765_v32  ;;  %v780_v35 = vmul.f32 %v772_v31, %v761_v33 }
 0xcd3   :  { %785 = vadd.xlane.f32.xlu0 %v784_v34  ;;  %781 = vadd.xlane.f32.xlu2 %v780_v35 }
 0xd22   :  { %v756_v36 = vpop.xlane.xlu0 %755 }
 0xd23   :  { %v757_v37 = vsel %vm753_vm9, %v756_v36, %v735_v22  ;;  %v838_v22 = vxor.u32 2147483648, %v837_v18 }
 0xd24   :  { %v776_v38 = vmul.f32 %v772_v31, %v757_v37 }
 0xd26   :  { %777 = vadd.xlane.f32.xlu1 %v776_v38 }
 0xd2a   :  { %v768_v39 = vpop.xlane.xlu0 %767 }
 0xd2b   :  { %v769_v40 = vsel %vm753_vm9, %v768_v39, %v747_v26  ;;  %vm841_vm9 = vcmp.eq.s32.totalorder %v2135_v2, 31 }
 0xd2c   :  { %v788_v41 = vmul.f32 %v772_v31, %v769_v40 }
 0xd2e   :  { %789 = vadd.xlane.f32.xlu1 %v788_v41 }
 0xd46   :  { %v782_v43 = vpop.xlane.xlu2 %781  ;;  %v786_v44 = vpop.xlane.xlu0 %785 }
 0xd47   :  { %v783_v46 = vsel %vm775_vm10, %v782_v43, %v761_v33  ;;  %v787_v48 = vsel %vm775_vm10, %v786_v44, %v765_v32 }
 0xd48   :  { %v802_v49 = vmul.f32 %v794_v45, %v783_v46  ;;  %v806_v50 = vmul.f32 %v794_v45, %v787_v48 }
 0xd4a   :  { %803 = vadd.xlane.f32.xlu0 %v802_v49  ;;  %807 = vadd.xlane.f32.xlu1 %v806_v50 }
 0xd99   :  { %v778_v51 = vpop.xlane.xlu1 %777 }
 0xd9a   :  { %v779_v52 = vsel %vm775_vm10, %v778_v51, %v757_v37  ;;  %v192_v37 = vsel %vm191_vm4, %v52_v7, 0.0  ;;  %vm993_vm4 = vcmp.eq.s32.totalorder %v2135_v2, 37 }
 0xd9b   :  { %v798_v53 = vmul.f32 %v794_v45, %v779_v52 }
 0xd9d   :  { %799 = vadd.xlane.f32.xlu2 %v798_v53 }
 0xda1   :  { %v790_v54 = vpop.xlane.xlu1 %789 }
 0xda2   :  { %v791_v55 = vsel %vm775_vm10, %v790_v54, %v769_v40  ;;  %vm333_vm10 = vcmp.eq.s32.totalorder %v2135_v2, %v2295_v6 }
 0xda3   :  { %v810_v56 = vmul.f32 %v794_v45, %v791_v55 }
 0xda5   :  { %811 = vadd.xlane.f32.xlu2 %v810_v56  ;;  %v334_v56 = vsel %vm333_vm10, -1.0, %v2121_v61 }
 0xdbd   :  { %v808_v59 = vpop.xlane.xlu1 %807  ;;  %v804_v60 = vpop.xlane.xlu0 %803 }
 0xdbe   :  { %v809_v63 = vsel %vm797_vm12, %v808_v59, %v787_v48  ;;  %v805_v0 = vsel %vm797_vm12, %v804_v60, %v783_v46 }
 0xdbf   :  { %v828_v1 = vmul.f32 %v816_v62, %v809_v63  ;;  %v824_v4 = vmul.f32 %v816_v62, %v805_v0 }
 0xdc1   :  { %829 = vadd.xlane.f32.xlu2 %v828_v1  ;;  %825 = vadd.xlane.f32.xlu1 %v824_v4 }
 0xdc9   :  { %188 = vadd.xlane.f32.xlu1 %v187_v9 }
 0xe10   :  { %v800_v10 = vpop.xlane.xlu2 %799 }
 0xe11   :  { %v801_v12 = vsel %vm797_vm12, %v800_v10, %v779_v52 }
 0xe12   :  { %v820_v13 = vmul.f32 %v816_v62, %v801_v12 }
 0xe14   :  { %821 = vadd.xlane.f32.xlu0 %v820_v13 }
 0xe18   :  { %v812_v14 = vpop.xlane.xlu2 %811 }
 0xe19   :  { %v813_v15 = vsel %vm797_vm12, %v812_v14, %v791_v55  ;;  %vm863_vm12 = vcmp.eq.s32.totalorder %v2135_v2, 32 }
 0xe1a   :  { %v832_v17 = vmul.f32 %v816_v62, %v813_v15 }
 0xe1c   :  { %833 = vadd.xlane.f32.xlu0 %v832_v17 }
 0xe34   :  { %v830_v19 = vpop.xlane.xlu2 %829  ;;  %v826_v21 = vpop.xlane.xlu1 %825 }
 0xe35   :  { %v831_v23 = vsel %vm819_vm14, %v830_v19, %v809_v63  ;;  %v827_v25 = vsel %vm819_vm14, %v826_v21, %v805_v0 }
 0xe36   :  { %v850_v26 = vmul.f32 %v838_v22, %v831_v23  ;;  %v846_v27 = vmul.f32 %v838_v22, %v827_v25 }
 0xe38   :  { %851 = vadd.xlane.f32.xlu1 %v850_v26  ;;  %847 = vadd.xlane.f32.xlu0 %v846_v27 }
 0xe3c   :  { %v2311_v28 = vpop.xlane.xlu1 %188 }
 0xe3d   :  { %2112 = vrcp.f32 %v2311_v28  ;;  %v204_v31 = vand.u32 2147483648, %v2311_v28  ;;  %vm198_vm2 = vweird.f32 %v2311_v28  ;;  %v202_v33 = vand.u32 2147483647, %v2311_v28 }
 0xe3f   :  { %v205_v35 = vor.u32 1.1754944e-38, %v204_v31  ;;  %vm203_vm8 = vcmp.eq.f32.partialorder %v202_v33, 8.507059e+37 }
 0xe43   :  { %v2113_v29 = vpop.eup %2112 }
 0xe44   :  { %v194_v30 = vmul.f32 %v2113_v29, %v2311_v28  ;;  %vm199_vm3 = vweird.f32 %v2113_v29 }
 0xe45   :  { %vm200_vm7 = vmor %vm198_vm2, %vm199_vm3  ;;  %vm967_vm3 = vcmp.eq.s32.totalorder %v2135_v2, 36 }
 0xe46   :  { %v195_v32 = vsub.f32 1.0, %v194_v30 }
 0xe48   :  { %v196_v34 = vmul.f32 %v2113_v29, %v195_v32 }
 0xe4a   :  { %v197_v36 = vadd.f32 %v2113_v29, %v196_v34 }
 0xe4c   :  { %v201_v38 = vsel %vm200_vm7, %v2113_v29, %v197_v36 }
 0xe4d   :  { %v2324_v39 = vsel %vm203_vm8, %v205_v35, %v201_v38  ;;  %vm1019_vm8 = vcmp.eq.s32.totalorder %v2135_v2, 38 }
 0xe4e   :  { %v207_v40 = vmul.f32 %v2324_v39, %v192_v37 }
 0xe50   :  { %208 = vst [vmem:[#allocation2 + $0x20] sm:$0xff] %v207_v40 }
 0xe57   :  { %v859_v48 = vld [vmem:[#allocation2 + $0x20] ss:$0 sm:$0xff]  ;;  %v885_v4 = vld [vmem:[#allocation2 + $0x21] ss:$0 sm:$0xff]  ;;  %v911_v27 = vld [vmem:[#allocation2 + $0x22] ss:$0 sm:$0xff] }
 0xe58   :  { %v860_v49 = vxor.u32 2147483648, %v859_v48  ;;  %v886_v9 = vxor.u32 2147483648, %v885_v4  ;;  %v912_v31 = vxor.u32 2147483648, %v911_v27  ;;  %v963_v4 = vld [vmem:[#allocation2 + $0x24] ss:$0 sm:$0xff] }
 0xe59   :  { %v989_v27 = vld [vmem:[#allocation2 + $0x25] ss:$0 sm:$0xff] }
 0xe5a   :  { %v880_v57 = vmul.f32 %v860_v49, %v334_v56 }
 0xe87   :  { %v822_v41 = vpop.xlane.xlu0 %821 }
 0xe88   :  { %v823_v42 = vsel %vm819_vm14, %v822_v41, %v801_v12 }
 0xe89   :  { %v842_v43 = vmul.f32 %v838_v22, %v823_v42 }
 0xe8b   :  { %843 = vadd.xlane.f32.xlu2 %v842_v43 }
 0xe8f   :  { %v834_v44 = vpop.xlane.xlu0 %833 }
 0xe90   :  { %v835_v45 = vsel %vm819_vm14, %v834_v44, %v813_v15  ;;  %vm915_vm14 = vcmp.eq.s32.totalorder %v2135_v2, 34 }
 0xe91   :  { %v854_v46 = vmul.f32 %v838_v22, %v835_v45 }
 0xe93   :  { %855 = vadd.xlane.f32.xlu2 %v854_v46  ;;  %v937_v46 = vld [vmem:[#allocation2 + $0x23] ss:$0 sm:$0xff] }
 0xeab   :  { %v852_v50 = vpop.xlane.xlu1 %851  ;;  %v848_v51 = vpop.xlane.xlu0 %847 }
 0xeac   :  { %v853_v52 = vsel %vm841_vm9, %v852_v50, %v831_v23  ;;  %v849_v53 = vsel %vm841_vm9, %v848_v51, %v827_v25  ;;  %v938_v50 = vxor.u32 2147483648, %v937_v46  ;;  %v1015_v46 = vld [vmem:[#allocation2 + $0x26] ss:$0 sm:$0xff] }
 0xead   :  { %v872_v54 = vmul.f32 %v860_v49, %v853_v52  ;;  %v868_v55 = vmul.f32 %v860_v49, %v849_v53 }
 0xeaf   :  { %873 = vadd.xlane.f32.xlu2 %v872_v54  ;;  %869 = vadd.xlane.f32.xlu1 %v868_v55 }
 0xeb7   :  { %881 = vadd.xlane.f32.xlu1 %v880_v57 }
 0xefe   :  { %v844_v59 = vpop.xlane.xlu2 %843 }
 0xeff   :  { %v845_v60 = vsel %vm841_vm9, %v844_v59, %v823_v42 }
 0xf00   :  { %v864_v62 = vmul.f32 %v860_v49, %v845_v60 }
 0xf02   :  { %865 = vadd.xlane.f32.xlu0 %v864_v62 }
 0xf06   :  { %v856_v63 = vpop.xlane.xlu2 %855 }
 0xf07   :  { %v857_v0 = vsel %vm841_vm9, %v856_v63, %v835_v45 }
 0xf08   :  { %v876_v1 = vmul.f32 %v860_v49, %v857_v0 }
 0xf0a   :  { %877 = vadd.xlane.f32.xlu0 %v876_v1 }
 0xf22   :  { %v874_v6 = vpop.xlane.xlu2 %873  ;;  %v870_v7 = vpop.xlane.xlu1 %869 }
 0xf23   :  { %v875_v10 = vsel %vm863_vm12, %v874_v6, %v853_v52  ;;  %v871_v12 = vsel %vm863_vm12, %v870_v7, %v849_v53 }
 0xf24   :  { %v898_v13 = vmul.f32 %v886_v9, %v875_v10  ;;  %v894_v14 = vmul.f32 %v886_v9, %v871_v12 }
 0xf26   :  { %899 = vadd.xlane.f32.xlu1 %v898_v13  ;;  %895 = vadd.xlane.f32.xlu0 %v894_v14 }
 0xf2a   :  { %v882_v15 = vpop.xlane.xlu1 %881 }
 0xf2b   :  { %v883_v17 = vsel %vm863_vm12, %v882_v15, %v334_v56 }
 0xf2c   :  { %v906_v18 = vmul.f32 %v886_v9, %v883_v17 }
 0xf2e   :  { %907 = vadd.xlane.f32.xlu0 %v906_v18 }
 0xf75   :  { %v866_v19 = vpop.xlane.xlu0 %865 }
 0xf76   :  { %v867_v21 = vsel %vm863_vm12, %v866_v19, %v845_v60 }
 0xf77   :  { %v890_v22 = vmul.f32 %v886_v9, %v867_v21 }
 0xf79   :  { %891 = vadd.xlane.f32.xlu2 %v890_v22 }
 0xf7d   :  { %v878_v23 = vpop.xlane.xlu0 %877 }
 0xf7e   :  { %v879_v25 = vsel %vm863_vm12, %v878_v23, %v857_v0 }
 0xf7f   :  { %v902_v26 = vmul.f32 %v886_v9, %v879_v25  ;;  %v964_v9 = vxor.u32 2147483648, %v963_v4 }
 0xf81   :  { %903 = vadd.xlane.f32.xlu2 %v902_v26 }
 0xf99   :  { %v900_v29 = vpop.xlane.xlu1 %899  ;;  %v896_v30 = vpop.xlane.xlu0 %895 }
 0xf9a   :  { %v901_v32 = vsel %vm889_vm13, %v900_v29, %v875_v10  ;;  %v897_v33 = vsel %vm889_vm13, %v896_v30, %v871_v12 }
 0xf9b   :  { %v924_v34 = vmul.f32 %v912_v31, %v901_v32  ;;  %v920_v35 = vmul.f32 %v912_v31, %v897_v33 }
 0xf9d   :  { %925 = vadd.xlane.f32.xlu0 %v924_v34  ;;  %921 = vadd.xlane.f32.xlu2 %v920_v35 }
 0xfa1   :  { %v908_v36 = vpop.xlane.xlu0 %907 }
 0xfa2   :  { %v909_v37 = vsel %vm889_vm13, %v908_v36, %v883_v17 }
 0xfa3   :  { %v932_v38 = vmul.f32 %v912_v31, %v909_v37 }
 0xfa5   :  { %933 = vadd.xlane.f32.xlu2 %v932_v38 }
 0xfec   :  { %v892_v40 = vpop.xlane.xlu2 %891 }
 0xfed   :  { %v893_v41 = vsel %vm889_vm13, %v892_v40, %v867_v21 }
 0xfee   :  { %v916_v42 = vmul.f32 %v912_v31, %v893_v41 }
 0xff0   :  { %917 = vadd.xlane.f32.xlu1 %v916_v42 }
 0xff4   :  { %v904_v43 = vpop.xlane.xlu2 %903 }
 0xff5   :  { %v905_v44 = vsel %vm889_vm13, %v904_v43, %v879_v25 }
 0xff6   :  { %v928_v45 = vmul.f32 %v912_v31, %v905_v44  ;;  %v990_v31 = vxor.u32 2147483648, %v989_v27 }
 0xff8   :  { %929 = vadd.xlane.f32.xlu1 %v928_v45 }
0x1010   :  { %v922_v48 = vpop.xlane.xlu2 %921  ;;  %v926_v49 = vpop.xlane.xlu0 %925 }
0x1011   :  { %v923_v51 = vsel %vm915_vm14, %v922_v48, %v897_v33  ;;  %v927_v52 = vsel %vm915_vm14, %v926_v49, %v901_v32 }
0x1012   :  { %v946_v53 = vmul.f32 %v938_v50, %v923_v51  ;;  %v950_v54 = vmul.f32 %v938_v50, %v927_v52 }
0x1014   :  { %947 = vadd.xlane.f32.xlu1 %v946_v53  ;;  %951 = vadd.xlane.f32.xlu2 %v950_v54 }
0x1018   :  { %v934_v55 = vpop.xlane.xlu2 %933 }
0x1019   :  { %v935_v56 = vsel %vm915_vm14, %v934_v55, %v909_v37 }
0x101a   :  { %v958_v57 = vmul.f32 %v938_v50, %v935_v56 }
0x101c   :  { %959 = vadd.xlane.f32.xlu1 %v958_v57 }
0x1063   :  { %v918_v59 = vpop.xlane.xlu1 %917 }
0x1064   :  { %v919_v60 = vsel %vm915_vm14, %v918_v59, %v893_v41  ;;  %v2406_v59 = vadd.s32 40, %v2137_v3 }
0x1065   :  { %v942_v62 = vmul.f32 %v938_v50, %v919_v60 }
0x1066   :  { %vm214_vm7 = vcmp.eq.s32.totalorder %v2406_v59, %v2135_v2  ;;  %vm219_vm9 = vcmp.ge.s32.totalorder %v2406_v59, %v2135_v2 }
0x1067   :  { %943 = vadd.xlane.f32.xlu0 %v942_v62  ;;  %vm220_vm13 = vmand %vm219_vm9, %vm65_vm1  ;;  %vm1131_vm9 = vcmp.eq.s32.totalorder %v2135_v2, 42 }
0x106b   :  { %v930_v63 = vpop.xlane.xlu1 %929 }
0x106c   :  { %v931_v0 = vsel %vm915_vm14, %v930_v63, %v905_v44 }
0x106d   :  { %v954_v1 = vmul.f32 %v938_v50, %v931_v0  ;;  %v1016_v50 = vxor.u32 2147483648, %v1015_v46 }
0x106f   :  { %955 = vadd.xlane.f32.xlu0 %v954_v1 }
0x1087   :  { %v948_v6 = vpop.xlane.xlu1 %947  ;;  %v952_v7 = vpop.xlane.xlu2 %951 }
0x1088   :  { %v949_v10 = vsel %vm941_vm15, %v948_v6, %v923_v51  ;;  %v953_v12 = vsel %vm941_vm15, %v952_v7, %v927_v52 }
0x1089   :  { %v972_v13 = vmul.f32 %v964_v9, %v949_v10  ;;  %v976_v14 = vmul.f32 %v964_v9, %v953_v12 }
0x108b   :  { %973 = vadd.xlane.f32.xlu0 %v972_v13  ;;  %977 = vadd.xlane.f32.xlu1 %v976_v14 }
0x108f   :  { %v960_v15 = vpop.xlane.xlu1 %959 }
0x1090   :  { %v961_v17 = vsel %vm941_vm15, %v960_v15, %v935_v56 }
0x1091   :  { %v984_v18 = vmul.f32 %v964_v9, %v961_v17 }
0x1093   :  { %985 = vadd.xlane.f32.xlu0 %v984_v18 }
0x10da   :  { %v944_v19 = vpop.xlane.xlu0 %943 }
0x10db   :  { %v945_v21 = vsel %vm941_vm15, %v944_v19, %v919_v60  ;;  %v54_v60 = vld [vmem:[%s2920_s0 + $0x28] sm:$0xff] }
0x10dc   :  { %v968_v22 = vmul.f32 %v964_v9, %v945_v21  ;;  %v216_v62 = vsel %vm214_vm7, %v54_v60, 0.0  ;;  %vm1071_vm7 = vcmp.eq.s32.totalorder %v2135_v2, 40 }
0x10de   :  { %969 = vadd.xlane.f32.xlu2 %v968_v22 }
0x10e2   :  { %v956_v23 = vpop.xlane.xlu0 %955 }
0x10e3   :  { %v957_v25 = vsel %vm941_vm15, %v956_v23, %v931_v0 }
0x10e4   :  { %v980_v26 = vmul.f32 %v964_v9, %v957_v25  ;;  %v1041_v9 = vld [vmem:[#allocation2 + $0x27] ss:$0 sm:$0xff] }
0x10e5   :  { %v1042_v13 = vxor.u32 2147483648, %v1041_v9 }
0x10e6   :  { %981 = vadd.xlane.f32.xlu2 %v980_v26 }
0x10fe   :  { %v978_v29 = vpop.xlane.xlu1 %977  ;;  %v974_v30 = vpop.xlane.xlu0 %973 }
0x10ff   :  { %v979_v32 = vsel %vm967_vm3, %v978_v29, %v953_v12  ;;  %v975_v33 = vsel %vm967_vm3, %v974_v30, %v949_v10 }
0x1100   :  { %v1002_v34 = vmul.f32 %v990_v31, %v979_v32  ;;  %v998_v35 = vmul.f32 %v990_v31, %v975_v33 }
0x1102   :  { %1003 = vadd.xlane.f32.xlu0 %v1002_v34  ;;  %999 = vadd.xlane.f32.xlu2 %v998_v35  ;;  %v221_v34 = vsel %vm220_vm13, %v54_v60, 0.0  ;;  %vm1191_vm13 = vcmp.eq.s32.totalorder %v2135_v2, 44 }
0x1106   :  { %v986_v36 = vpop.xlane.xlu0 %985 }
0x1107   :  { %v987_v37 = vsel %vm967_vm3, %v986_v36, %v961_v17 }
0x1108   :  { %v1010_v38 = vmul.f32 %v990_v31, %v987_v37 }
0x110a   :  { %1011 = vadd.xlane.f32.xlu2 %v1010_v38 }
0x1151   :  { %v970_v40 = vpop.xlane.xlu2 %969 }
0x1152   :  { %v971_v41 = vsel %vm967_vm3, %v970_v40, %v945_v21 }
0x1153   :  { %v994_v42 = vmul.f32 %v990_v31, %v971_v41 }
0x1155   :  { %995 = vadd.xlane.f32.xlu1 %v994_v42 }
0x1159   :  { %v982_v43 = vpop.xlane.xlu2 %981 }
0x115a   :  { %v983_v44 = vsel %vm967_vm3, %v982_v43, %v957_v25  ;;  %vm1045_vm3 = vcmp.eq.s32.totalorder %v2135_v2, 39 }
0x115b   :  { %v1006_v45 = vmul.f32 %v990_v31, %v983_v44 }
0x115d   :  { %1007 = vadd.xlane.f32.xlu1 %v1006_v45 }
0x1175   :  { %v1000_v48 = vpop.xlane.xlu2 %999  ;;  %v1004_v49 = vpop.xlane.xlu0 %1003 }
0x1176   :  { %v1001_v51 = vsel %vm993_vm4, %v1000_v48, %v975_v33  ;;  %v1005_v52 = vsel %vm993_vm4, %v1004_v49, %v979_v32 }
0x1177   :  { %v1024_v53 = vmul.f32 %v1016_v50, %v1001_v51  ;;  %v1028_v54 = vmul.f32 %v1016_v50, %v1005_v52 }
0x1179   :  { %1025 = vadd.xlane.f32.xlu1 %v1024_v53  ;;  %1029 = vadd.xlane.f32.xlu2 %v1028_v54 }
0x117d   :  { %v1012_v55 = vpop.xlane.xlu2 %1011 }
0x117e   :  { %v1013_v56 = vsel %vm993_vm4, %v1012_v55, %v987_v37 }
0x117f   :  { %v1036_v57 = vmul.f32 %v1016_v50, %v1013_v56 }
0x1181   :  { %1037 = vadd.xlane.f32.xlu1 %v1036_v57  ;;  %217 = vadd.xlane.f32.xlu2 %v216_v62 }
0x11c8   :  { %v996_v63 = vpop.xlane.xlu1 %995 }
0x11c9   :  { %v997_v0 = vsel %vm993_vm4, %v996_v63, %v971_v41 }
0x11ca   :  { %v1020_v1 = vmul.f32 %v1016_v50, %v997_v0 }
0x11cc   :  { %1021 = vadd.xlane.f32.xlu0 %v1020_v1 }
0x11d0   :  { %v1008_v4 = vpop.xlane.xlu1 %1007 }
0x11d1   :  { %v1009_v6 = vsel %vm993_vm4, %v1008_v4, %v983_v44  ;;  %vm340_vm4 = vcmp.eq.s32.totalorder %v2135_v2, %v2406_v59 }
0x11d2   :  { %v1032_v7 = vmul.f32 %v1016_v50, %v1009_v6  ;;  %v341_v54 = vsel %vm340_vm4, -1.0, %v2121_v61 }
0x11d4   :  { %1033 = vadd.xlane.f32.xlu0 %v1032_v7 }
0x11ec   :  { %v1026_v10 = vpop.xlane.xlu1 %1025  ;;  %v1030_v12 = vpop.xlane.xlu2 %1029 }
0x11ed   :  { %v1027_v14 = vsel %vm1019_vm8, %v1026_v10, %v1001_v51  ;;  %v1031_v15 = vsel %vm1019_vm8, %v1030_v12, %v1005_v52 }
0x11ee   :  { %v1050_v17 = vmul.f32 %v1042_v13, %v1027_v14  ;;  %v1054_v18 = vmul.f32 %v1042_v13, %v1031_v15 }
0x11f0   :  { %1051 = vadd.xlane.f32.xlu1 %v1050_v17  ;;  %1055 = vadd.xlane.f32.xlu2 %v1054_v18 }
0x11f4   :  { %v1038_v19 = vpop.xlane.xlu1 %1037  ;;  %v2424_v23 = vpop.xlane.xlu2 %217 }
0x11f5   :  { %v1039_v21 = vsel %vm1019_vm8, %v1038_v19, %v1013_v56  ;;  %2114 = vrcp.f32 %v2424_v23  ;;  %v233_v27 = vand.u32 2147483648, %v2424_v23  ;;  %vm227_vm10 = vweird.f32 %v2424_v23 }
0x11f6   :  { %v1062_v22 = vmul.f32 %v1042_v13, %v1039_v21  ;;  %v231_v30 = vand.u32 2147483647, %v2424_v23 }
0x11f7   :  { %v234_v32 = vor.u32 1.1754944e-38, %v233_v27 }
0x11f8   :  { %1063 = vadd.xlane.f32.xlu1 %v1062_v22  ;;  %vm232_vm15 = vcmp.eq.f32.partialorder %v231_v30, 8.507059e+37 }
0x11fb   :  { %v2115_v25 = vpop.eup %2114 }
0x11fc   :  { %v223_v26 = vmul.f32 %v2115_v25, %v2424_v23  ;;  %vm228_vm12 = vweird.f32 %v2115_v25 }
0x11fd   :  { %vm229_vm14 = vmor %vm227_vm10, %vm228_vm12  ;;  %vm1161_vm12 = vcmp.eq.s32.totalorder %v2135_v2, 43 }
0x11fe   :  { %v224_v29 = vsub.f32 1.0, %v223_v26 }
0x1200   :  { %v225_v31 = vmul.f32 %v2115_v25, %v224_v29 }
0x1202   :  { %v226_v33 = vadd.f32 %v2115_v25, %v225_v31 }
0x1204   :  { %v230_v35 = vsel %vm229_vm14, %v2115_v25, %v226_v33  ;;  %vm1221_vm14 = vcmp.eq.s32.totalorder %v2135_v2, 45 }
0x1205   :  { %v2437_v36 = vsel %vm232_vm15, %v234_v32, %v230_v35 }
0x1206   :  { %v236_v37 = vmul.f32 %v2437_v36, %v221_v34 }
0x1208   :  { %237 = vst [vmem:[#allocation2 + $0x28] sm:$0xff] %v236_v37 }
0x120f   :  { %v1067_v45 = vld [vmem:[#allocation2 + $0x28] ss:$0 sm:$0xff]  ;;  %v1127_v33 = vld [vmem:[#allocation2 + $0x2a] ss:$0 sm:$0xff] }
0x1210   :  { %v1068_v46 = vxor.u32 2147483648, %v1067_v45  ;;  %v1128_v37 = vxor.u32 2147483648, %v1127_v33 }
0x1212   :  { %v1092_v56 = vmul.f32 %v1068_v46, %v341_v54 }
0x123f   :  { %v1022_v38 = vpop.xlane.xlu0 %1021 }
0x1240   :  { %v1023_v40 = vsel %vm1019_vm8, %v1022_v38, %v997_v0 }
0x1241   :  { %v1046_v41 = vmul.f32 %v1042_v13, %v1023_v40 }
0x1243   :  { %1047 = vadd.xlane.f32.xlu0 %v1046_v41 }
0x1247   :  { %v1034_v42 = vpop.xlane.xlu0 %1033 }
0x1248   :  { %v1035_v43 = vsel %vm1019_vm8, %v1034_v42, %v1009_v6  ;;  %v1097_v6 = vld [vmem:[#allocation2 + $0x29] ss:$0 sm:$0xff]  ;;  %vm1101_vm8 = vcmp.eq.s32.totalorder %v2135_v2, 41 }
0x1249   :  { %v1058_v44 = vmul.f32 %v1042_v13, %v1035_v43  ;;  %v1098_v10 = vxor.u32 2147483648, %v1097_v6 }
0x124b   :  { %1059 = vadd.xlane.f32.xlu0 %v1058_v44 }
0x1263   :  { %v1052_v48 = vpop.xlane.xlu1 %1051  ;;  %v1056_v49 = vpop.xlane.xlu2 %1055 }
0x1264   :  { %v1053_v50 = vsel %vm1045_vm3, %v1052_v48, %v1027_v14  ;;  %v1057_v51 = vsel %vm1045_vm3, %v1056_v49, %v1031_v15 }
0x1265   :  { %v1080_v52 = vmul.f32 %v1068_v46, %v1057_v51  ;;  %v1076_v53 = vmul.f32 %v1068_v46, %v1053_v50 }
0x1267   :  { %1081 = vadd.xlane.f32.xlu1 %v1080_v52  ;;  %1077 = vadd.xlane.f32.xlu0 %v1076_v53 }
0x126b   :  { %v1064_v55 = vpop.xlane.xlu1 %1063 }
0x126c   :  { %v1065_v57 = vsel %vm1045_vm3, %v1064_v55, %v1039_v21 }
0x126d   :  { %v1088_v60 = vmul.f32 %v1068_v46, %v1065_v57 }
0x126f   :  { %1093 = vadd.xlane.f32.xlu1 %v1092_v56  ;;  %1089 = vadd.xlane.f32.xlu0 %v1088_v60  ;;  %v1157_v56 = vld [vmem:[#allocation2 + $0x2b] ss:$0 sm:$0xff] }
0x12b6   :  { %v1048_v62 = vpop.xlane.xlu0 %1047 }
0x12b7   :  { %v1049_v63 = vsel %vm1045_vm3, %v1048_v62, %v1023_v40  ;;  %v1158_v62 = vxor.u32 2147483648, %v1157_v56 }
0x12b8   :  { %v1072_v0 = vmul.f32 %v1068_v46, %v1049_v63 }
0x12ba   :  { %1073 = vadd.xlane.f32.xlu2 %v1072_v0 }
0x12be   :  { %v1060_v1 = vpop.xlane.xlu0 %1059 }
0x12bf   :  { %v1061_v59 = vsel %vm1045_vm3, %v1060_v1, %v1035_v43  ;;  %vm1251_vm3 = vcmp.eq.s32.totalorder %v2135_v2, 46 }
0x12c0   :  { %v1084_v4 = vmul.f32 %v1068_v46, %v1061_v59 }
0x12c2   :  { %1085 = vadd.xlane.f32.xlu2 %v1084_v4 }
0x12da   :  { %v1082_v7 = vpop.xlane.xlu1 %1081  ;;  %v1078_v9 = vpop.xlane.xlu0 %1077 }
0x12db   :  { %v1083_v12 = vsel %vm1071_vm7, %v1082_v7, %v1057_v51  ;;  %v1079_v13 = vsel %vm1071_vm7, %v1078_v9, %v1053_v50 }
0x12dc   :  { %v1110_v14 = vmul.f32 %v1098_v10, %v1083_v12  ;;  %v1106_v15 = vmul.f32 %v1098_v10, %v1079_v13 }
0x12de   :  { %1111 = vadd.xlane.f32.xlu1 %v1110_v14  ;;  %1107 = vadd.xlane.f32.xlu0 %v1106_v15 }
0x12e2   :  { %v1094_v17 = vpop.xlane.xlu1 %1093  ;;  %v1090_v18 = vpop.xlane.xlu0 %1089 }
0x12e3   :  { %v1095_v19 = vsel %vm1071_vm7, %v1094_v17, %v341_v54  ;;  %v1091_v21 = vsel %vm1071_vm7, %v1090_v18, %v1065_v57 }
0x12e4   :  { %v1122_v22 = vmul.f32 %v1098_v10, %v1095_v19  ;;  %v1118_v25 = vmul.f32 %v1098_v10, %v1091_v21 }
0x12e6   :  { %1123 = vadd.xlane.f32.xlu1 %v1122_v22  ;;  %1119 = vadd.xlane.f32.xlu0 %v1118_v25 }
0x132d   :  { %v1074_v26 = vpop.xlane.xlu2 %1073 }
0x132e   :  { %v1075_v27 = vsel %vm1071_vm7, %v1074_v26, %v1049_v63 }
0x132f   :  { %v1102_v29 = vmul.f32 %v1098_v10, %v1075_v27 }
0x1331   :  { %1103 = vadd.xlane.f32.xlu2 %v1102_v29 }
0x1335   :  { %v1086_v30 = vpop.xlane.xlu2 %1085 }
0x1336   :  { %v1087_v31 = vsel %vm1071_vm7, %v1086_v30, %v1061_v59 }
0x1337   :  { %v1114_v32 = vmul.f32 %v1098_v10, %v1087_v31 }
0x1339   :  { %1115 = vadd.xlane.f32.xlu2 %v1114_v32 }
0x1351   :  { %v1112_v34 = vpop.xlane.xlu1 %1111  ;;  %v1108_v35 = vpop.xlane.xlu0 %1107 }
0x1352   :  { %v1113_v38 = vsel %vm1101_vm8, %v1112_v34, %v1083_v12  ;;  %v1109_v40 = vsel %vm1101_vm8, %v1108_v35, %v1079_v13 }
0x1353   :  { %v1140_v41 = vmul.f32 %v1128_v37, %v1113_v38  ;;  %v1136_v42 = vmul.f32 %v1128_v37, %v1109_v40 }
0x1355   :  { %1141 = vadd.xlane.f32.xlu1 %v1140_v41  ;;  %1137 = vadd.xlane.f32.xlu0 %v1136_v42 }
0x1359   :  { %v1124_v43 = vpop.xlane.xlu1 %1123  ;;  %v1120_v44 = vpop.xlane.xlu0 %1119 }
0x135a   :  { %v1125_v45 = vsel %vm1101_vm8, %v1124_v43, %v1095_v19  ;;  %v1121_v46 = vsel %vm1101_vm8, %v1120_v44, %v1091_v21  ;;  %v1187_v21 = vld [vmem:[#allocation2 + $0x2c] ss:$0 sm:$0xff] }
0x135b   :  { %v1152_v48 = vmul.f32 %v1128_v37, %v1125_v45  ;;  %v1148_v49 = vmul.f32 %v1128_v37, %v1121_v46  ;;  %v1188_v22 = vxor.u32 2147483648, %v1187_v21 }
0x135d   :  { %1153 = vadd.xlane.f32.xlu1 %v1152_v48  ;;  %1149 = vadd.xlane.f32.xlu0 %v1148_v49 }
0x13a4   :  { %v1104_v50 = vpop.xlane.xlu2 %1103 }
0x13a5   :  { %v1105_v51 = vsel %vm1101_vm8, %v1104_v50, %v1075_v27 }
0x13a6   :  { %v1132_v52 = vmul.f32 %v1128_v37, %v1105_v51 }
0x13a8   :  { %1133 = vadd.xlane.f32.xlu2 %v1132_v52 }
0x13ac   :  { %v1116_v53 = vpop.xlane.xlu2 %1115 }
0x13ad   :  { %v1117_v54 = vsel %vm1101_vm8, %v1116_v53, %v1087_v31 }
0x13ae   :  { %v1144_v55 = vmul.f32 %v1128_v37, %v1117_v54 }
0x13b0   :  { %1145 = vadd.xlane.f32.xlu2 %v1144_v55 }
0x13c8   :  { %v1142_v57 = vpop.xlane.xlu1 %1141  ;;  %v1138_v60 = vpop.xlane.xlu0 %1137 }
0x13c9   :  { %v1143_v63 = vsel %vm1131_vm9, %v1142_v57, %v1113_v38  ;;  %v1139_v0 = vsel %vm1131_vm9, %v1138_v60, %v1109_v40 }
0x13ca   :  { %v1170_v1 = vmul.f32 %v1158_v62, %v1143_v63  ;;  %v1166_v59 = vmul.f32 %v1158_v62, %v1139_v0 }
0x13cc   :  { %1171 = vadd.xlane.f32.xlu1 %v1170_v1  ;;  %1167 = vadd.xlane.f32.xlu0 %v1166_v59 }
0x13d0   :  { %v1154_v4 = vpop.xlane.xlu1 %1153  ;;  %v1150_v6 = vpop.xlane.xlu0 %1149 }
0x13d1   :  { %v1155_v7 = vsel %vm1131_vm9, %v1154_v4, %v1125_v45  ;;  %v1151_v9 = vsel %vm1131_vm9, %v1150_v6, %v1121_v46  ;;  %v1217_v46 = vld [vmem:[#allocation2 + $0x2d] ss:$0 sm:$0xff] }
0x13d2   :  { %v1182_v10 = vmul.f32 %v1158_v62, %v1155_v7  ;;  %v1178_v12 = vmul.f32 %v1158_v62, %v1151_v9  ;;  %v1218_v48 = vxor.u32 2147483648, %v1217_v46 }
0x13d4   :  { %1183 = vadd.xlane.f32.xlu1 %v1182_v10  ;;  %1179 = vadd.xlane.f32.xlu0 %v1178_v12 }
0x141b   :  { %v1134_v13 = vpop.xlane.xlu2 %1133 }
0x141c   :  { %v1135_v14 = vsel %vm1131_vm9, %v1134_v13, %v1105_v51 }
0x141d   :  { %v1162_v15 = vmul.f32 %v1158_v62, %v1135_v14 }
0x141f   :  { %1163 = vadd.xlane.f32.xlu2 %v1162_v15 }
0x1423   :  { %v1146_v17 = vpop.xlane.xlu2 %1145 }
0x1424   :  { %v1147_v18 = vsel %vm1131_vm9, %v1146_v17, %v1117_v54 }
0x1425   :  { %v1174_v19 = vmul.f32 %v1158_v62, %v1147_v18 }
0x1427   :  { %1175 = vadd.xlane.f32.xlu2 %v1174_v19 }
0x143f   :  { %v1172_v25 = vpop.xlane.xlu1 %1171  ;;  %v1168_v26 = vpop.xlane.xlu0 %1167 }
0x1440   :  { %v1173_v27 = vsel %vm1161_vm12, %v1172_v25, %v1143_v63  ;;  %v1169_v29 = vsel %vm1161_vm12, %v1168_v26, %v1139_v0 }
0x1441   :  { %v1200_v30 = vmul.f32 %v1188_v22, %v1173_v27  ;;  %v1196_v31 = vmul.f32 %v1188_v22, %v1169_v29 }
0x1443   :  { %1201 = vadd.xlane.f32.xlu1 %v1200_v30  ;;  %1197 = vadd.xlane.f32.xlu0 %v1196_v31 }
0x1447   :  { %v1184_v32 = vpop.xlane.xlu1 %1183  ;;  %v1180_v33 = vpop.xlane.xlu0 %1179 }
0x1448   :  { %v1185_v34 = vsel %vm1161_vm12, %v1184_v32, %v1155_v7  ;;  %v1181_v35 = vsel %vm1161_vm12, %v1180_v33, %v1151_v9  ;;  %v1247_v9 = vld [vmem:[#allocation2 + $0x2e] ss:$0 sm:$0xff] }
0x1449   :  { %v1212_v37 = vmul.f32 %v1188_v22, %v1185_v34  ;;  %v1208_v38 = vmul.f32 %v1188_v22, %v1181_v35  ;;  %v1248_v10 = vxor.u32 2147483648, %v1247_v9 }
0x144b   :  { %1213 = vadd.xlane.f32.xlu1 %v1212_v37  ;;  %1209 = vadd.xlane.f32.xlu0 %v1208_v38  ;;  %v56_v37 = vld [vmem:[%s2920_s0 + $0x30] sm:$0xff] }
0x1492   :  { %v1164_v40 = vpop.xlane.xlu2 %1163 }
0x1493   :  { %v1165_v41 = vsel %vm1161_vm12, %v1164_v40, %v1135_v14  ;;  %v1277_v40 = vld [vmem:[#allocation2 + $0x2f] ss:$0 sm:$0xff] }
0x1494   :  { %v1192_v42 = vmul.f32 %v1188_v22, %v1165_v41 }
0x1496   :  { %1193 = vadd.xlane.f32.xlu2 %v1192_v42 }
0x149a   :  { %v1176_v43 = vpop.xlane.xlu2 %1175 }
0x149b   :  { %v1177_v44 = vsel %vm1161_vm12, %v1176_v43, %v1147_v18 }
0x149c   :  { %v1204_v45 = vmul.f32 %v1188_v22, %v1177_v44 }
0x149e   :  { %1205 = vadd.xlane.f32.xlu2 %v1204_v45 }
0x14b6   :  { %v1202_v49 = vpop.xlane.xlu1 %1201  ;;  %v1198_v50 = vpop.xlane.xlu0 %1197 }
0x14b7   :  { %v1203_v51 = vsel %vm1191_vm13, %v1202_v49, %v1173_v27  ;;  %v1199_v52 = vsel %vm1191_vm13, %v1198_v50, %v1169_v29 }
0x14b8   :  { %v1230_v53 = vmul.f32 %v1218_v48, %v1203_v51  ;;  %v1226_v54 = vmul.f32 %v1218_v48, %v1199_v52 }
0x14ba   :  { %1231 = vadd.xlane.f32.xlu1 %v1230_v53  ;;  %1227 = vadd.xlane.f32.xlu0 %v1226_v54 }
0x14be   :  { %v1214_v55 = vpop.xlane.xlu1 %1213  ;;  %v1210_v56 = vpop.xlane.xlu0 %1209 }
0x14bf   :  { %v1215_v57 = vsel %vm1191_vm13, %v1214_v55, %v1185_v34  ;;  %v1211_v60 = vsel %vm1191_vm13, %v1210_v56, %v1181_v35  ;;  %v2537_v35 = vadd.s32 48, %v2137_v3 }
0x14c0   :  { %v1242_v62 = vmul.f32 %v1218_v48, %v1215_v57  ;;  %v1238_v63 = vmul.f32 %v1218_v48, %v1211_v60 }
0x14c1   :  { %vm243_vm15 = vcmp.eq.s32.totalorder %v2537_v35, %v2135_v2  ;;  %vm248_vm4 = vcmp.ge.s32.totalorder %v2537_v35, %v2135_v2 }
0x14c2   :  { %1243 = vadd.xlane.f32.xlu1 %v1242_v62  ;;  %1239 = vadd.xlane.f32.xlu0 %v1238_v63  ;;  %v245_v38 = vsel %vm243_vm15, %v56_v37, 0.0  ;;  %vm249_vm9 = vmand %vm248_vm4, %vm65_vm1  ;;  %vm347_vm15 = vcmp.eq.s32.totalorder %v2135_v2, %v2537_v35  ;;  %vm1345_vm4 = vcmp.eq.s32.totalorder %v2135_v2, 49 }
0x1509   :  { %v1194_v0 = vpop.xlane.xlu2 %1193 }
0x150a   :  { %v1195_v1 = vsel %vm1191_vm13, %v1194_v0, %v1165_v41  ;;  %v1278_v41 = vxor.u32 2147483648, %v1277_v40 }
0x150b   :  { %v1222_v59 = vmul.f32 %v1218_v48, %v1195_v1 }
0x150d   :  { %1223 = vadd.xlane.f32.xlu2 %v1222_v59 }
0x1511   :  { %v1206_v4 = vpop.xlane.xlu2 %1205 }
0x1512   :  { %v1207_v6 = vsel %vm1191_vm13, %v1206_v4, %v1177_v44 }
0x1513   :  { %v1234_v7 = vmul.f32 %v1218_v48, %v1207_v6 }
0x1515   :  { %1235 = vadd.xlane.f32.xlu2 %v1234_v7 }
0x152d   :  { %v1232_v12 = vpop.xlane.xlu1 %1231  ;;  %v1228_v13 = vpop.xlane.xlu0 %1227 }
0x152e   :  { %v1233_v14 = vsel %vm1221_vm14, %v1232_v12, %v1203_v51  ;;  %v1229_v15 = vsel %vm1221_vm14, %v1228_v13, %v1199_v52  ;;  %v250_v13 = vsel %vm249_vm9, %v56_v37, 0.0  ;;  %vm1413_vm9 = vcmp.eq.s32.totalorder %v2135_v2, 51 }
0x152f   :  { %v1260_v17 = vmul.f32 %v1248_v10, %v1233_v14  ;;  %v1256_v18 = vmul.f32 %v1248_v10, %v1229_v15 }
0x1531   :  { %1261 = vadd.xlane.f32.xlu1 %v1260_v17  ;;  %1257 = vadd.xlane.f32.xlu0 %v1256_v18 }
0x1535   :  { %v1244_v19 = vpop.xlane.xlu1 %1243  ;;  %v1240_v21 = vpop.xlane.xlu0 %1239 }
0x1536   :  { %v1245_v22 = vsel %vm1221_vm14, %v1244_v19, %v1215_v57  ;;  %v1241_v25 = vsel %vm1221_vm14, %v1240_v21, %v1211_v60 }
0x1537   :  { %v1272_v26 = vmul.f32 %v1248_v10, %v1245_v22  ;;  %v1268_v27 = vmul.f32 %v1248_v10, %v1241_v25 }
0x1539   :  { %1273 = vadd.xlane.f32.xlu1 %v1272_v26  ;;  %1269 = vadd.xlane.f32.xlu0 %v1268_v27 }
0x1580   :  { %v1224_v29 = vpop.xlane.xlu2 %1223 }
0x1581   :  { %v1225_v30 = vsel %vm1221_vm14, %v1224_v29, %v1195_v1 }
0x1582   :  { %v1252_v31 = vmul.f32 %v1248_v10, %v1225_v30 }
0x1584   :  { %1253 = vadd.xlane.f32.xlu2 %v1252_v31 }
0x1588   :  { %v1236_v32 = vpop.xlane.xlu2 %1235 }
0x1589   :  { %v1237_v33 = vsel %vm1221_vm14, %v1236_v32, %v1207_v6  ;;  %vm1281_vm14 = vcmp.eq.s32.totalorder %v2135_v2, 47 }
0x158a   :  { %v1264_v34 = vmul.f32 %v1248_v10, %v1237_v33 }
0x158c   :  { %1265 = vadd.xlane.f32.xlu2 %v1264_v34 }
0x1594   :  { %246 = vadd.xlane.f32.xlu2 %v245_v38 }
0x15a4   :  { %v1262_v42 = vpop.xlane.xlu1 %1261  ;;  %v1258_v43 = vpop.xlane.xlu0 %1257 }
0x15a5   :  { %v1263_v44 = vsel %vm1251_vm3, %v1262_v42, %v1233_v14  ;;  %v1259_v45 = vsel %vm1251_vm3, %v1258_v43, %v1229_v15 }
0x15a6   :  { %v1290_v46 = vmul.f32 %v1278_v41, %v1263_v44  ;;  %v1286_v48 = vmul.f32 %v1278_v41, %v1259_v45 }
0x15a8   :  { %1291 = vadd.xlane.f32.xlu2 %v1290_v46  ;;  %1287 = vadd.xlane.f32.xlu1 %v1286_v48 }
0x15ac   :  { %v1274_v49 = vpop.xlane.xlu1 %1273  ;;  %v1270_v50 = vpop.xlane.xlu0 %1269 }
0x15ad   :  { %v1275_v51 = vsel %vm1251_vm3, %v1274_v49, %v1245_v22  ;;  %v1271_v52 = vsel %vm1251_vm3, %v1270_v50, %v1241_v25 }
0x15ae   :  { %v1302_v53 = vmul.f32 %v1278_v41, %v1275_v51  ;;  %v1298_v54 = vmul.f32 %v1278_v41, %v1271_v52 }
0x15b0   :  { %1303 = vadd.xlane.f32.xlu2 %v1302_v53  ;;  %1299 = vadd.xlane.f32.xlu1 %v1298_v54 }
0x15f7   :  { %v1254_v55 = vpop.xlane.xlu2 %1253 }
0x15f8   :  { %v1255_v56 = vsel %vm1251_vm3, %v1254_v55, %v1225_v30 }
0x15f9   :  { %v1282_v57 = vmul.f32 %v1278_v41, %v1255_v56 }
0x15fb   :  { %1283 = vadd.xlane.f32.xlu0 %v1282_v57 }
0x15ff   :  { %v1266_v60 = vpop.xlane.xlu2 %1265 }
0x1600   :  { %v1267_v62 = vsel %vm1251_vm3, %v1266_v60, %v1237_v33  ;;  %vm1311_vm3 = vcmp.eq.s32.totalorder %v2135_v2, 48 }
0x1601   :  { %v1294_v63 = vmul.f32 %v1278_v41, %v1267_v62 }
0x1603   :  { %1295 = vadd.xlane.f32.xlu0 %v1294_v63 }
0x1607   :  { %v2557_v0 = vpop.xlane.xlu2 %246 }
0x1608   :  { %2116 = vrcp.f32 %v2557_v0  ;;  %v262_v4 = vand.u32 2147483648, %v2557_v0  ;;  %vm256_vm7 = vweird.f32 %v2557_v0  ;;  %v260_v7 = vand.u32 2147483647, %v2557_v0 }
0x160a   :  { %v263_v10 = vor.u32 1.1754944e-38, %v262_v4  ;;  %vm261_vm13 = vcmp.eq.f32.partialorder %v260_v7, 8.507059e+37 }
0x160e   :  { %v2117_v1 = vpop.eup %2116 }
0x160f   :  { %v252_v59 = vmul.f32 %v2117_v1, %v2557_v0  ;;  %vm257_vm8 = vweird.f32 %v2117_v1 }
0x1610   :  { %vm258_vm12 = vmor %vm256_vm7, %vm257_vm8  ;;  %vm1379_vm8 = vcmp.eq.s32.totalorder %v2135_v2, 50 }
0x1611   :  { %v253_v6 = vsub.f32 1.0, %v252_v59 }
0x1613   :  { %v254_v9 = vmul.f32 %v2117_v1, %v253_v6 }
0x1615   :  { %v255_v12 = vadd.f32 %v2117_v1, %v254_v9 }
0x1617   :  { %v259_v14 = vsel %vm258_vm12, %v2117_v1, %v255_v12  ;;  %vm1447_vm12 = vcmp.eq.s32.totalorder %v2135_v2, 52 }
0x1618   :  { %v2570_v15 = vsel %vm261_vm13, %v263_v10, %v259_v14  ;;  %vm1481_vm13 = vcmp.eq.s32.totalorder %v2135_v2, 53 }
0x1619   :  { %v265_v17 = vmul.f32 %v2570_v15, %v250_v13 }
0x161b   :  { %266 = vst [vmem:[#allocation2 + $0x30] sm:$0xff] %v265_v17  ;;  %v1292_v18 = vpop.xlane.xlu2 %1291  ;;  %v1288_v19 = vpop.xlane.xlu1 %1287 }
0x161c   :  { %v1293_v25 = vsel %vm1281_vm14, %v1292_v18, %v1263_v44  ;;  %v1289_v26 = vsel %vm1281_vm14, %v1288_v19, %v1259_v45  ;;  %v348_v45 = vsel %vm347_vm15, -1.0, %v2121_v61  ;;  %vm1515_vm15 = vcmp.eq.s32.totalorder %v2135_v2, 54 }
0x1622   :  { %v1307_v21 = vld [vmem:[#allocation2 + $0x30] ss:$0 sm:$0xff]  ;;  %v1341_v48 = vld [vmem:[#allocation2 + $0x31] ss:$0 sm:$0xff]  ;;  %v1375_v14 = vld [vmem:[#allocation2 + $0x32] ss:$0 sm:$0xff] }
0x1623   :  { %v1308_v22 = vxor.u32 2147483648, %v1307_v21  ;;  %v1304_v30 = vpop.xlane.xlu2 %1303  ;;  %v1300_v31 = vpop.xlane.xlu1 %1299  ;;  %v1342_v49 = vxor.u32 2147483648, %v1341_v48  ;;  %v1376_v17 = vxor.u32 2147483648, %v1375_v14 }
0x1624   :  { %v1305_v32 = vsel %vm1281_vm14, %v1304_v30, %v1275_v51  ;;  %v1301_v33 = vsel %vm1281_vm14, %v1300_v31, %v1271_v52 }
0x1625   :  { %v1320_v27 = vmul.f32 %v1308_v22, %v1293_v25  ;;  %v1316_v29 = vmul.f32 %v1308_v22, %v1289_v26  ;;  %v1332_v34 = vmul.f32 %v1308_v22, %v1305_v32  ;;  %v1328_v37 = vmul.f32 %v1308_v22, %v1301_v33 }
0x1626   :  { %v1336_v46 = vmul.f32 %v1308_v22, %v348_v45 }
0x1627   :  { %1321 = vadd.xlane.f32.xlu2 %v1320_v27  ;;  %1317 = vadd.xlane.f32.xlu1 %v1316_v29 }
0x162f   :  { %1333 = vadd.xlane.f32.xlu2 %v1332_v34  ;;  %1329 = vadd.xlane.f32.xlu1 %v1328_v37 }
0x166e   :  { %v1284_v38 = vpop.xlane.xlu0 %1283 }
0x166f   :  { %v1285_v43 = vsel %vm1281_vm14, %v1284_v38, %v1255_v56 }
0x1670   :  { %v1312_v44 = vmul.f32 %v1308_v22, %v1285_v43 }
0x1676   :  { %v1296_v40 = vpop.xlane.xlu0 %1295 }
0x1677   :  { %v1297_v41 = vsel %vm1281_vm14, %v1296_v40, %v1267_v62 }
0x1678   :  { %v1324_v42 = vmul.f32 %v1308_v22, %v1297_v41 }
0x167a   :  { %1325 = vadd.xlane.f32.xlu0 %v1324_v42 }
0x1682   :  { %1313 = vadd.xlane.f32.xlu0 %v1312_v44 }
0x168a   :  { %1337 = vadd.xlane.f32.xlu0 %v1336_v46  ;;  %v1409_v46 = vld [vmem:[#allocation2 + $0x33] ss:$0 sm:$0xff] }
0x168b   :  { %v1410_v48 = vxor.u32 2147483648, %v1409_v46 }
0x169a   :  { %v1322_v50 = vpop.xlane.xlu2 %1321  ;;  %v1318_v51 = vpop.xlane.xlu1 %1317 }
0x169b   :  { %v1323_v52 = vsel %vm1311_vm3, %v1322_v50, %v1293_v25  ;;  %v1319_v53 = vsel %vm1311_vm3, %v1318_v51, %v1289_v26 }
0x169c   :  { %v1354_v54 = vmul.f32 %v1342_v49, %v1323_v52  ;;  %v1350_v55 = vmul.f32 %v1342_v49, %v1319_v53 }
0x169e   :  { %1351 = vadd.xlane.f32.xlu2 %v1350_v55  ;;  %1355 = vadd.xlane.f32.xlu0 %v1354_v54 }
0x16a2   :  { %v1334_v35 = vpop.xlane.xlu2 %1333  ;;  %v1330_v56 = vpop.xlane.xlu1 %1329 }
0x16a3   :  { %v1335_v57 = vsel %vm1311_vm3, %v1334_v35, %v1305_v32  ;;  %v1331_v60 = vsel %vm1311_vm3, %v1330_v56, %v1301_v33 }
0x16a4   :  { %v1366_v62 = vmul.f32 %v1342_v49, %v1335_v57  ;;  %v1362_v63 = vmul.f32 %v1342_v49, %v1331_v60 }
0x16a6   :  { %1363 = vadd.xlane.f32.xlu2 %v1362_v63  ;;  %1367 = vadd.xlane.f32.xlu0 %v1366_v62 }
0x16ed   :  { %v1326_v1 = vpop.xlane.xlu0 %1325 }
0x16ee   :  { %v1327_v59 = vsel %vm1311_vm3, %v1326_v1, %v1297_v41 }
0x16ef   :  { %v1358_v4 = vmul.f32 %v1342_v49, %v1327_v59 }
0x16f1   :  { %1359 = vadd.xlane.f32.xlu1 %v1358_v4 }
0x16f5   :  { %v1314_v6 = vpop.xlane.xlu0 %1313 }
0x16f6   :  { %v1315_v7 = vsel %vm1311_vm3, %v1314_v6, %v1285_v43 }
0x16f7   :  { %v1346_v9 = vmul.f32 %v1342_v49, %v1315_v7 }
0x16f9   :  { %1347 = vadd.xlane.f32.xlu1 %v1346_v9 }
0x16fd   :  { %v1338_v10 = vpop.xlane.xlu0 %1337 }
0x16fe   :  { %v1339_v12 = vsel %vm1311_vm3, %v1338_v10, %v348_v45 }
0x16ff   :  { %v1370_v13 = vmul.f32 %v1342_v49, %v1339_v12 }
0x1701   :  { %1371 = vadd.xlane.f32.xlu1 %v1370_v13  ;;  %v1443_v13 = vld [vmem:[#allocation2 + $0x34] ss:$0 sm:$0xff] }
0x1702   :  { %v1444_v14 = vxor.u32 2147483648, %v1443_v13 }
0x1711   :  { %v1352_v18 = vpop.xlane.xlu2 %1351  ;;  %v1356_v19 = vpop.xlane.xlu0 %1355 }
0x1712   :  { %v1353_v21 = vsel %vm1345_vm4, %v1352_v18, %v1319_v53  ;;  %v1357_v22 = vsel %vm1345_vm4, %v1356_v19, %v1323_v52 }
0x1713   :  { %v1384_v25 = vmul.f32 %v1376_v17, %v1353_v21  ;;  %v1388_v26 = vmul.f32 %v1376_v17, %v1357_v22 }
0x1715   :  { %1385 = vadd.xlane.f32.xlu0 %v1384_v25  ;;  %1389 = vadd.xlane.f32.xlu1 %v1388_v26 }
0x1719   :  { %v1364_v27 = vpop.xlane.xlu2 %1363  ;;  %v1368_v29 = vpop.xlane.xlu0 %1367 }
0x171a   :  { %v1365_v30 = vsel %vm1345_vm4, %v1364_v27, %v1331_v60  ;;  %v1369_v31 = vsel %vm1345_vm4, %v1368_v29, %v1335_v57 }
0x171b   :  { %v1396_v32 = vmul.f32 %v1376_v17, %v1365_v30  ;;  %v1400_v33 = vmul.f32 %v1376_v17, %v1369_v31 }
0x171d   :  { %1397 = vadd.xlane.f32.xlu0 %v1396_v32  ;;  %1401 = vadd.xlane.f32.xlu1 %v1400_v33 }
0x1764   :  { %v1360_v34 = vpop.xlane.xlu1 %1359 }
0x1765   :  { %v1361_v37 = vsel %vm1345_vm4, %v1360_v34, %v1327_v59 }
0x1766   :  { %v1392_v38 = vmul.f32 %v1376_v17, %v1361_v37 }
0x1768   :  { %1393 = vadd.xlane.f32.xlu2 %v1392_v38 }
0x176c   :  { %v1348_v40 = vpop.xlane.xlu1 %1347 }
0x176d   :  { %v1349_v41 = vsel %vm1345_vm4, %v1348_v40, %v1315_v7 }
0x176e   :  { %v1380_v42 = vmul.f32 %v1376_v17, %v1349_v41 }
0x1770   :  { %1381 = vadd.xlane.f32.xlu2 %v1380_v42 }
0x1774   :  { %v1372_v43 = vpop.xlane.xlu1 %1371 }
0x1775   :  { %v1373_v44 = vsel %vm1345_vm4, %v1372_v43, %v1339_v12 }
0x1776   :  { %v1404_v45 = vmul.f32 %v1376_v17, %v1373_v44 }
0x1778   :  { %1405 = vadd.xlane.f32.xlu2 %v1404_v45  ;;  %v1477_v45 = vld [vmem:[#allocation2 + $0x35] ss:$0 sm:$0xff] }
0x1779   :  { %v1478_v46 = vxor.u32 2147483648, %v1477_v45 }
0x1788   :  { %v1390_v49 = vpop.xlane.xlu1 %1389  ;;  %v1386_v50 = vpop.xlane.xlu0 %1385 }
0x1789   :  { %v1391_v51 = vsel %vm1379_vm8, %v1390_v49, %v1357_v22  ;;  %v1387_v52 = vsel %vm1379_vm8, %v1386_v50, %v1353_v21 }
0x178a   :  { %v1422_v53 = vmul.f32 %v1410_v48, %v1391_v51  ;;  %v1418_v54 = vmul.f32 %v1410_v48, %v1387_v52 }
0x178c   :  { %1423 = vadd.xlane.f32.xlu2 %v1422_v53  ;;  %1419 = vadd.xlane.f32.xlu1 %v1418_v54 }
0x1790   :  { %v1402_v55 = vpop.xlane.xlu1 %1401  ;;  %v1398_v35 = vpop.xlane.xlu0 %1397 }
0x1791   :  { %v1403_v56 = vsel %vm1379_vm8, %v1402_v55, %v1369_v31  ;;  %v1399_v57 = vsel %vm1379_vm8, %v1398_v35, %v1365_v30 }
0x1792   :  { %v1434_v60 = vmul.f32 %v1410_v48, %v1403_v56  ;;  %v1430_v62 = vmul.f32 %v1410_v48, %v1399_v57 }
0x1794   :  { %1435 = vadd.xlane.f32.xlu2 %v1434_v60  ;;  %1431 = vadd.xlane.f32.xlu1 %v1430_v62 }
0x17db   :  { %v1394_v63 = vpop.xlane.xlu2 %1393 }
0x17dc   :  { %v1395_v1 = vsel %vm1379_vm8, %v1394_v63, %v1361_v37 }
0x17dd   :  { %v1426_v59 = vmul.f32 %v1410_v48, %v1395_v1 }
0x17df   :  { %1427 = vadd.xlane.f32.xlu0 %v1426_v59 }
0x17e3   :  { %v1382_v4 = vpop.xlane.xlu2 %1381 }
0x17e4   :  { %v1383_v6 = vsel %vm1379_vm8, %v1382_v4, %v1349_v41 }
0x17e5   :  { %v1414_v7 = vmul.f32 %v1410_v48, %v1383_v6 }
0x17e7   :  { %1415 = vadd.xlane.f32.xlu0 %v1414_v7 }
0x17eb   :  { %v1406_v9 = vpop.xlane.xlu2 %1405 }
0x17ec   :  { %v1407_v10 = vsel %vm1379_vm8, %v1406_v9, %v1373_v44 }
0x17ed   :  { %v1438_v12 = vmul.f32 %v1410_v48, %v1407_v10 }
0x17ef   :  { %1439 = vadd.xlane.f32.xlu0 %v1438_v12  ;;  %v1511_v12 = vld [vmem:[#allocation2 + $0x36] ss:$0 sm:$0xff] }
0x17f0   :  { %v1512_v13 = vxor.u32 2147483648, %v1511_v12 }
0x17ff   :  { %v1424_v17 = vpop.xlane.xlu2 %1423  ;;  %v1420_v18 = vpop.xlane.xlu1 %1419 }
0x1800   :  { %v1425_v19 = vsel %vm1413_vm9, %v1424_v17, %v1391_v51  ;;  %v1421_v21 = vsel %vm1413_vm9, %v1420_v18, %v1387_v52 }
0x1801   :  { %v1456_v22 = vmul.f32 %v1444_v14, %v1425_v19  ;;  %v1452_v25 = vmul.f32 %v1444_v14, %v1421_v21 }
0x1803   :  { %1457 = vadd.xlane.f32.xlu0 %v1456_v22  ;;  %1453 = vadd.xlane.f32.xlu2 %v1452_v25 }
0x1807   :  { %v1436_v26 = vpop.xlane.xlu2 %1435  ;;  %v1432_v27 = vpop.xlane.xlu1 %1431 }
0x1808   :  { %v1437_v29 = vsel %vm1413_vm9, %v1436_v26, %v1403_v56  ;;  %v1433_v30 = vsel %vm1413_vm9, %v1432_v27, %v1399_v57 }
0x1809   :  { %v1468_v31 = vmul.f32 %v1444_v14, %v1437_v29  ;;  %v1464_v32 = vmul.f32 %v1444_v14, %v1433_v30 }
0x180b   :  { %1469 = vadd.xlane.f32.xlu0 %v1468_v31  ;;  %1465 = vadd.xlane.f32.xlu2 %v1464_v32  ;;  %v2674_v32 = vadd.s32 56, %v2137_v3 }
0x180d   :  { %vm272_vm14 = vcmp.eq.s32.totalorder %v2674_v32, %v2135_v2  ;;  %vm277_vm3 = vcmp.ge.s32.totalorder %v2674_v32, %v2135_v2 }
0x1852   :  { %v1428_v33 = vpop.xlane.xlu0 %1427 }
0x1853   :  { %v1429_v34 = vsel %vm1413_vm9, %v1428_v33, %v1395_v1  ;;  %v58_v33 = vld [vmem:[%s2920_s0 + $0x38] sm:$0xff] }
0x1854   :  { %v1460_v37 = vmul.f32 %v1444_v14, %v1429_v34 }
0x1856   :  { %1461 = vadd.xlane.f32.xlu1 %v1460_v37 }
0x185a   :  { %v1416_v38 = vpop.xlane.xlu0 %1415 }
0x185b   :  { %v1417_v40 = vsel %vm1413_vm9, %v1416_v38, %v1383_v6 }
0x185c   :  { %v1448_v41 = vmul.f32 %v1444_v14, %v1417_v40 }
0x185e   :  { %1449 = vadd.xlane.f32.xlu1 %v1448_v41 }
0x1862   :  { %v1440_v42 = vpop.xlane.xlu0 %1439 }
0x1863   :  { %v1441_v43 = vsel %vm1413_vm9, %v1440_v42, %v1407_v10  ;;  %vm278_vm9 = vmand %vm277_vm3, %vm65_vm1  ;;  %vm1549_vm1 = vcmp.eq.s32.totalorder %v2135_v2, 55  ;;  %vm1621_vm3 = vcmp.eq.s32.totalorder %v2135_v2, 57 }
0x1864   :  { %v1472_v44 = vmul.f32 %v1444_v14, %v1441_v43 }
0x1866   :  { %1473 = vadd.xlane.f32.xlu1 %v1472_v44 }
0x1876   :  { %v1454_v48 = vpop.xlane.xlu2 %1453  ;;  %v1458_v49 = vpop.xlane.xlu0 %1457 }
0x1877   :  { %v1455_v50 = vsel %vm1447_vm12, %v1454_v48, %v1421_v21  ;;  %v1459_v51 = vsel %vm1447_vm12, %v1458_v49, %v1425_v19 }
0x1878   :  { %v1486_v52 = vmul.f32 %v1478_v46, %v1455_v50  ;;  %v1490_v53 = vmul.f32 %v1478_v46, %v1459_v51 }
0x187a   :  { %1487 = vadd.xlane.f32.xlu0 %v1486_v52  ;;  %1491 = vadd.xlane.f32.xlu1 %v1490_v53 }
0x187e   :  { %v1466_v54 = vpop.xlane.xlu2 %1465  ;;  %v1470_v55 = vpop.xlane.xlu0 %1469 }
0x187f   :  { %v1467_v35 = vsel %vm1447_vm12, %v1466_v54, %v1433_v30  ;;  %v1471_v56 = vsel %vm1447_vm12, %v1470_v55, %v1437_v29 }
0x1880   :  { %v1498_v57 = vmul.f32 %v1478_v46, %v1467_v35  ;;  %v1502_v60 = vmul.f32 %v1478_v46, %v1471_v56 }
0x1882   :  { %1499 = vadd.xlane.f32.xlu0 %v1498_v57  ;;  %1503 = vadd.xlane.f32.xlu1 %v1502_v60 }
0x18c9   :  { %v1462_v62 = vpop.xlane.xlu1 %1461 }
0x18ca   :  { %v1463_v63 = vsel %vm1447_vm12, %v1462_v62, %v1429_v34  ;;  %v274_v34 = vsel %vm272_vm14, %v58_v33, 0.0  ;;  %vm354_vm14 = vcmp.eq.s32.totalorder %v2135_v2, %v2674_v32 }
0x18cb   :  { %v1494_v1 = vmul.f32 %v1478_v46, %v1463_v63 }
0x18cd   :  { %1495 = vadd.xlane.f32.xlu2 %v1494_v1 }
0x18d1   :  { %v1450_v59 = vpop.xlane.xlu1 %1449 }
0x18d2   :  { %v1451_v4 = vsel %vm1447_vm12, %v1450_v59, %v1417_v40 }
0x18d3   :  { %v1482_v6 = vmul.f32 %v1478_v46, %v1451_v4 }
0x18d5   :  { %1483 = vadd.xlane.f32.xlu2 %v1482_v6 }
0x18d9   :  { %v1474_v7 = vpop.xlane.xlu1 %1473 }
0x18da   :  { %v1475_v9 = vsel %vm1447_vm12, %v1474_v7, %v1441_v43 }
0x18db   :  { %v1506_v10 = vmul.f32 %v1478_v46, %v1475_v9  ;;  %v1545_v46 = vld [vmem:[#allocation2 + $0x37] ss:$0 sm:$0xff] }
0x18dc   :  { %v1546_v48 = vxor.u32 2147483648, %v1545_v46 }
0x18dd   :  { %1507 = vadd.xlane.f32.xlu2 %v1506_v10 }
0x18ed   :  { %v1492_v14 = vpop.xlane.xlu1 %1491  ;;  %v1488_v17 = vpop.xlane.xlu0 %1487 }
0x18ee   :  { %v1493_v18 = vsel %vm1481_vm13, %v1492_v14, %v1459_v51  ;;  %v1489_v19 = vsel %vm1481_vm13, %v1488_v17, %v1455_v50 }
0x18ef   :  { %v1524_v21 = vmul.f32 %v1512_v13, %v1493_v18  ;;  %v1520_v22 = vmul.f32 %v1512_v13, %v1489_v19 }
0x18f1   :  { %1525 = vadd.xlane.f32.xlu2 %v1524_v21  ;;  %1521 = vadd.xlane.f32.xlu1 %v1520_v22 }
0x18f5   :  { %v1504_v25 = vpop.xlane.xlu1 %1503  ;;  %v1500_v26 = vpop.xlane.xlu0 %1499 }
0x18f6   :  { %v1505_v27 = vsel %vm1481_vm13, %v1504_v25, %v1471_v56  ;;  %v1501_v29 = vsel %vm1481_vm13, %v1500_v26, %v1467_v35 }
0x18f7   :  { %v1536_v30 = vmul.f32 %v1512_v13, %v1505_v27  ;;  %v1532_v31 = vmul.f32 %v1512_v13, %v1501_v29 }
0x18f9   :  { %1537 = vadd.xlane.f32.xlu2 %v1536_v30  ;;  %1533 = vadd.xlane.f32.xlu1 %v1532_v31 }
0x1901   :  { %275 = vadd.xlane.f32.xlu1 %v274_v34 }
0x1940   :  { %v1496_v37 = vpop.xlane.xlu2 %1495 }
0x1941   :  { %v1497_v38 = vsel %vm1481_vm13, %v1496_v37, %v1463_v63 }
0x1942   :  { %v1528_v40 = vmul.f32 %v1512_v13, %v1497_v38 }
0x1944   :  { %1529 = vadd.xlane.f32.xlu0 %v1528_v40 }
0x1948   :  { %v1484_v41 = vpop.xlane.xlu2 %1483 }
0x1949   :  { %v1485_v3 = vsel %vm1481_vm13, %v1484_v41, %v1451_v4 }
0x194a   :  { %v1516_v42 = vmul.f32 %v1512_v13, %v1485_v3 }
0x194c   :  { %1517 = vadd.xlane.f32.xlu0 %v1516_v42 }
0x1950   :  { %v1508_v43 = vpop.xlane.xlu2 %1507 }
0x1951   :  { %v1509_v44 = vsel %vm1481_vm13, %v1508_v43, %v1475_v9 }
0x1952   :  { %v1540_v45 = vmul.f32 %v1512_v13, %v1509_v44  ;;  %v279_v13 = vsel %vm278_vm9, %v58_v33, 0.0  ;;  %vm1697_vm9 = vcmp.eq.s32.totalorder %v2135_v2, 59 }
0x1954   :  { %1541 = vadd.xlane.f32.xlu0 %v1540_v45 }
0x1964   :  { %v1526_v49 = vpop.xlane.xlu2 %1525  ;;  %v1522_v50 = vpop.xlane.xlu1 %1521 }
0x1965   :  { %v1527_v51 = vsel %vm1515_vm15, %v1526_v49, %v1493_v18  ;;  %v1523_v52 = vsel %vm1515_vm15, %v1522_v50, %v1489_v19  ;;  %v355_v50 = vsel %vm354_vm14, -1.0, %v2121_v61  ;;  %vm1849_vm14 = vcmp.eq.s32.totalorder %v2135_v2, 63 }
0x1966   :  { %v1558_v53 = vmul.f32 %v1546_v48, %v1527_v51  ;;  %v1554_v54 = vmul.f32 %v1546_v48, %v1523_v52 }
0x1968   :  { %1555 = vadd.xlane.f32.xlu0 %v1554_v54  ;;  %1559 = vadd.xlane.f32.xlu1 %v1558_v53 }
0x196c   :  { %v1538_v55 = vpop.xlane.xlu2 %1537  ;;  %v1534_v35 = vpop.xlane.xlu1 %1533 }
0x196d   :  { %v1539_v56 = vsel %vm1515_vm15, %v1538_v55, %v1505_v27  ;;  %v1535_v57 = vsel %vm1515_vm15, %v1534_v35, %v1501_v29 }
0x196e   :  { %v1570_v60 = vmul.f32 %v1546_v48, %v1539_v56  ;;  %v1566_v62 = vmul.f32 %v1546_v48, %v1535_v57 }
0x1970   :  { %1571 = vadd.xlane.f32.xlu1 %v1570_v60  ;;  %1567 = vadd.xlane.f32.xlu0 %v1566_v62 }
0x1974   :  { %v2696_v63 = vpop.xlane.xlu1 %275 }
0x1975   :  { %2118 = vrcp.f32 %v2696_v63  ;;  %v291_v4 = vand.u32 2147483648, %v2696_v63  ;;  %vm285_vm4 = vweird.f32 %v2696_v63  ;;  %v289_v7 = vand.u32 2147483647, %v2696_v63 }
0x1977   :  { %v292_v10 = vor.u32 1.1754944e-38, %v291_v4  ;;  %vm290_vm13 = vcmp.eq.f32.partialorder %v289_v7, 8.507059e+37 }
0x197b   :  { %v2119_v1 = vpop.eup %2118 }
0x197c   :  { %v281_v59 = vmul.f32 %v2119_v1, %v2696_v63  ;;  %vm286_vm8 = vweird.f32 %v2119_v1 }
0x197d   :  { %vm287_vm12 = vmor %vm285_vm4, %vm286_vm8  ;;  %vm1659_vm8 = vcmp.eq.s32.totalorder %v2135_v2, 58 }
0x197e   :  { %v282_v6 = vsub.f32 1.0, %v281_v59 }
0x1980   :  { %v283_v9 = vmul.f32 %v2119_v1, %v282_v6 }
0x1982   :  { %v284_v12 = vadd.f32 %v2119_v1, %v283_v9 }
0x1984   :  { %v288_v14 = vsel %vm287_vm12, %v2119_v1, %v284_v12  ;;  %vm1735_vm12 = vcmp.eq.s32.totalorder %v2135_v2, 60 }
0x1985   :  { %v2709_v17 = vsel %vm290_vm13, %v292_v10, %v288_v14  ;;  %vm1773_vm13 = vcmp.eq.s32.totalorder %v2135_v2, 61 }
0x1986   :  { %v294_v18 = vmul.f32 %v2709_v17, %v279_v13 }
0x1988   :  { %295 = vst [vmem:[#allocation2 + $0x38] sm:$0xff] %v294_v18 }
0x198f   :  { %v1579_v33 = vld [vmem:[#allocation2 + $0x38] ss:$0 sm:$0xff]  ;;  %v1617_v61 = vld [vmem:[#allocation2 + $0x39] ss:$0 sm:$0xff] }
0x1990   :  { %v1580_v34 = vxor.u32 2147483648, %v1579_v33  ;;  %v1618_v62 = vxor.u32 2147483648, %v1617_v61 }
0x19b7   :  { %v1530_v19 = vpop.xlane.xlu0 %1529 }
0x19b8   :  { %v1531_v21 = vsel %vm1515_vm15, %v1530_v19, %v1497_v38 }
0x19b9   :  { %v1562_v22 = vmul.f32 %v1546_v48, %v1531_v21 }
0x19bb   :  { %1563 = vadd.xlane.f32.xlu2 %v1562_v22 }
0x19bf   :  { %v1518_v25 = vpop.xlane.xlu0 %1517 }
0x19c0   :  { %v1519_v26 = vsel %vm1515_vm15, %v1518_v25, %v1485_v3 }
0x19c1   :  { %v1550_v27 = vmul.f32 %v1546_v48, %v1519_v26 }
0x19c3   :  { %1551 = vadd.xlane.f32.xlu2 %v1550_v27 }
0x19c7   :  { %v1542_v29 = vpop.xlane.xlu0 %1541 }
0x19c8   :  { %v1543_v30 = vsel %vm1515_vm15, %v1542_v29, %v1509_v44  ;;  %vm1583_vm15 = vcmp.eq.s32.totalorder %v2135_v2, 56 }
0x19c9   :  { %v1574_v31 = vmul.f32 %v1546_v48, %v1543_v30 }
0x19cb   :  { %1575 = vadd.xlane.f32.xlu2 %v1574_v31 }
0x19db   :  { %v1560_v37 = vpop.xlane.xlu1 %1559  ;;  %v1556_v38 = vpop.xlane.xlu0 %1555 }
0x19dc   :  { %v1561_v40 = vsel %vm1549_vm1, %v1560_v37, %v1527_v51  ;;  %v1557_v41 = vsel %vm1549_vm1, %v1556_v38, %v1523_v52  ;;  %v1612_v51 = vmul.f32 %v1580_v34, %v355_v50 }
0x19dd   :  { %v1592_v3 = vmul.f32 %v1580_v34, %v1561_v40  ;;  %v1588_v42 = vmul.f32 %v1580_v34, %v1557_v41 }
0x19df   :  { %1593 = vadd.xlane.f32.xlu2 %v1592_v3  ;;  %1589 = vadd.xlane.f32.xlu1 %v1588_v42 }
0x19e3   :  { %v1572_v43 = vpop.xlane.xlu1 %1571  ;;  %v1568_v44 = vpop.xlane.xlu0 %1567 }
0x19e4   :  { %v1573_v45 = vsel %vm1549_vm1, %v1572_v43, %v1539_v56  ;;  %v1569_v46 = vsel %vm1549_vm1, %v1568_v44, %v1535_v57 }
0x19e5   :  { %v1604_v48 = vmul.f32 %v1580_v34, %v1573_v45  ;;  %v1600_v49 = vmul.f32 %v1580_v34, %v1569_v46 }
0x19e7   :  { %1605 = vadd.xlane.f32.xlu2 %v1604_v48  ;;  %1601 = vadd.xlane.f32.xlu1 %v1600_v49 }
0x19ef   :  { %1613 = vadd.xlane.f32.xlu1 %v1612_v51 }
0x1a2e   :  { %v1564_v52 = vpop.xlane.xlu2 %1563 }
0x1a2f   :  { %v1565_v53 = vsel %vm1549_vm1, %v1564_v52, %v1531_v21 }
0x1a30   :  { %v1596_v54 = vmul.f32 %v1580_v34, %v1565_v53 }
0x1a32   :  { %1597 = vadd.xlane.f32.xlu0 %v1596_v54 }
0x1a36   :  { %v1552_v55 = vpop.xlane.xlu2 %1551 }
0x1a37   :  { %v1553_v35 = vsel %vm1549_vm1, %v1552_v55, %v1519_v26 }
0x1a38   :  { %v1584_v56 = vmul.f32 %v1580_v34, %v1553_v35 }
0x1a3a   :  { %1585 = vadd.xlane.f32.xlu0 %v1584_v56 }
0x1a3e   :  { %v1576_v57 = vpop.xlane.xlu2 %1575 }
0x1a3f   :  { %v1577_v32 = vsel %vm1549_vm1, %v1576_v57, %v1543_v30  ;;  %vm1811_vm1 = vcmp.eq.s32.totalorder %v2135_v2, 62 }
0x1a40   :  { %v1608_v60 = vmul.f32 %v1580_v34, %v1577_v32 }
0x1a42   :  { %1609 = vadd.xlane.f32.xlu0 %v1608_v60 }
0x1a52   :  { %v1594_v1 = vpop.xlane.xlu2 %1593  ;;  %v1590_v59 = vpop.xlane.xlu1 %1589 }
0x1a53   :  { %v1595_v4 = vsel %vm1583_vm15, %v1594_v1, %v1561_v40  ;;  %v1591_v6 = vsel %vm1583_vm15, %v1590_v59, %v1557_v41  ;;  %v1655_v40 = vld [vmem:[#allocation2 + $0x3a] ss:$0 sm:$0xff] }
0x1a54   :  { %v1630_v7 = vmul.f32 %v1618_v62, %v1595_v4  ;;  %v1626_v9 = vmul.f32 %v1618_v62, %v1591_v6  ;;  %v1656_v41 = vxor.u32 2147483648, %v1655_v40 }
0x1a56   :  { %1627 = vadd.xlane.f32.xlu0 %v1626_v9  ;;  %1631 = vadd.xlane.f32.xlu1 %v1630_v7 }
0x1a5a   :  { %v1606_v10 = vpop.xlane.xlu2 %1605  ;;  %v1602_v12 = vpop.xlane.xlu1 %1601 }
0x1a5b   :  { %v1607_v13 = vsel %vm1583_vm15, %v1606_v10, %v1573_v45  ;;  %v1603_v14 = vsel %vm1583_vm15, %v1602_v12, %v1569_v46 }
0x1a5c   :  { %v1642_v18 = vmul.f32 %v1618_v62, %v1607_v13  ;;  %v1638_v19 = vmul.f32 %v1618_v62, %v1603_v14 }
0x1a5e   :  { %1643 = vadd.xlane.f32.xlu1 %v1642_v18  ;;  %1639 = vadd.xlane.f32.xlu0 %v1638_v19 }
0x1a62   :  { %v1614_v21 = vpop.xlane.xlu1 %1613 }
0x1a63   :  { %v1615_v22 = vsel %vm1583_vm15, %v1614_v21, %v355_v50 }
0x1a64   :  { %v1650_v25 = vmul.f32 %v1618_v62, %v1615_v22 }
0x1a66   :  { %1651 = vadd.xlane.f32.xlu0 %v1650_v25 }
0x1aa5   :  { %v1598_v26 = vpop.xlane.xlu0 %1597 }
0x1aa6   :  { %v1599_v27 = vsel %vm1583_vm15, %v1598_v26, %v1565_v53 }
0x1aa7   :  { %v1634_v29 = vmul.f32 %v1618_v62, %v1599_v27 }
0x1aa9   :  { %1635 = vadd.xlane.f32.xlu2 %v1634_v29 }
0x1aad   :  { %v1586_v30 = vpop.xlane.xlu0 %1585 }
0x1aae   :  { %v1587_v31 = vsel %vm1583_vm15, %v1586_v30, %v1553_v35 }
0x1aaf   :  { %v1622_v33 = vmul.f32 %v1618_v62, %v1587_v31 }
0x1ab1   :  { %1623 = vadd.xlane.f32.xlu2 %v1622_v33 }
0x1ab5   :  { %v1610_v34 = vpop.xlane.xlu0 %1609 }
0x1ab6   :  { %v1611_v37 = vsel %vm1583_vm15, %v1610_v34, %v1577_v32 }
0x1ab7   :  { %v1646_v38 = vmul.f32 %v1618_v62, %v1611_v37 }
0x1ab9   :  { %1647 = vadd.xlane.f32.xlu2 %v1646_v38 }
0x1ac9   :  { %v1632_v3 = vpop.xlane.xlu1 %1631  ;;  %v1628_v42 = vpop.xlane.xlu0 %1627 }
0x1aca   :  { %v1633_v43 = vsel %vm1621_vm3, %v1632_v3, %v1595_v4  ;;  %v1629_v44 = vsel %vm1621_vm3, %v1628_v42, %v1591_v6  ;;  %v1693_v6 = vld [vmem:[#allocation2 + $0x3b] ss:$0 sm:$0xff] }
0x1acb   :  { %v1668_v45 = vmul.f32 %v1656_v41, %v1633_v43  ;;  %v1664_v46 = vmul.f32 %v1656_v41, %v1629_v44  ;;  %v1694_v7 = vxor.u32 2147483648, %v1693_v6 }
0x1acd   :  { %1669 = vadd.xlane.f32.xlu0 %v1668_v45  ;;  %1665 = vadd.xlane.f32.xlu2 %v1664_v46 }
0x1ad1   :  { %v1644_v48 = vpop.xlane.xlu1 %1643  ;;  %v1640_v49 = vpop.xlane.xlu0 %1639 }
0x1ad2   :  { %v1645_v50 = vsel %vm1621_vm3, %v1644_v48, %v1607_v13  ;;  %v1641_v51 = vsel %vm1621_vm3, %v1640_v49, %v1603_v14 }
0x1ad3   :  { %v1680_v52 = vmul.f32 %v1656_v41, %v1645_v50  ;;  %v1676_v53 = vmul.f32 %v1656_v41, %v1641_v51 }
0x1ad5   :  { %1681 = vadd.xlane.f32.xlu0 %v1680_v52  ;;  %1677 = vadd.xlane.f32.xlu2 %v1676_v53 }
0x1ad9   :  { %v1652_v54 = vpop.xlane.xlu0 %1651 }
0x1ada   :  { %v1653_v55 = vsel %vm1621_vm3, %v1652_v54, %v1615_v22 }
0x1adb   :  { %v1688_v35 = vmul.f32 %v1656_v41, %v1653_v55 }
0x1add   :  { %1689 = vadd.xlane.f32.xlu2 %v1688_v35 }
0x1b1c   :  { %v1636_v56 = vpop.xlane.xlu2 %1635 }
0x1b1d   :  { %v1637_v57 = vsel %vm1621_vm3, %v1636_v56, %v1599_v27 }
0x1b1e   :  { %v1672_v32 = vmul.f32 %v1656_v41, %v1637_v57 }
0x1b20   :  { %1673 = vadd.xlane.f32.xlu1 %v1672_v32 }
0x1b24   :  { %v1624_v60 = vpop.xlane.xlu2 %1623 }
0x1b25   :  { %v1625_v61 = vsel %vm1621_vm3, %v1624_v60, %v1587_v31 }
0x1b26   :  { %v1660_v62 = vmul.f32 %v1656_v41, %v1625_v61 }
0x1b28   :  { %1661 = vadd.xlane.f32.xlu1 %v1660_v62 }
0x1b2c   :  { %v1648_v1 = vpop.xlane.xlu2 %1647 }
0x1b2d   :  { %v1649_v59 = vsel %vm1621_vm3, %v1648_v1, %v1611_v37 }
0x1b2e   :  { %v1684_v4 = vmul.f32 %v1656_v41, %v1649_v59 }
0x1b30   :  { %1685 = vadd.xlane.f32.xlu1 %v1684_v4 }
0x1b40   :  { %v1666_v9 = vpop.xlane.xlu2 %1665  ;;  %v1670_v10 = vpop.xlane.xlu0 %1669 }
0x1b41   :  { %v1667_v12 = vsel %vm1659_vm8, %v1666_v9, %v1629_v44  ;;  %v1671_v13 = vsel %vm1659_vm8, %v1670_v10, %v1633_v43  ;;  %v1731_v44 = vld [vmem:[#allocation2 + $0x3c] ss:$0 sm:$0xff] }
0x1b42   :  { %v1702_v14 = vmul.f32 %v1694_v7, %v1667_v12  ;;  %v1706_v18 = vmul.f32 %v1694_v7, %v1671_v13  ;;  %v1732_v45 = vxor.u32 2147483648, %v1731_v44 }
0x1b44   :  { %1703 = vadd.xlane.f32.xlu1 %v1702_v14  ;;  %1707 = vadd.xlane.f32.xlu2 %v1706_v18 }
0x1b48   :  { %v1678_v19 = vpop.xlane.xlu2 %1677  ;;  %v1682_v21 = vpop.xlane.xlu0 %1681 }
0x1b49   :  { %v1679_v22 = vsel %vm1659_vm8, %v1678_v19, %v1641_v51  ;;  %v1683_v25 = vsel %vm1659_vm8, %v1682_v21, %v1645_v50 }
0x1b4a   :  { %v1714_v26 = vmul.f32 %v1694_v7, %v1679_v22  ;;  %v1718_v27 = vmul.f32 %v1694_v7, %v1683_v25 }
0x1b4c   :  { %1715 = vadd.xlane.f32.xlu1 %v1714_v26  ;;  %1719 = vadd.xlane.f32.xlu2 %v1718_v27 }
0x1b50   :  { %v1690_v29 = vpop.xlane.xlu2 %1689 }
0x1b51   :  { %v1691_v30 = vsel %vm1659_vm8, %v1690_v29, %v1653_v55 }
0x1b52   :  { %v1726_v31 = vmul.f32 %v1694_v7, %v1691_v30 }
0x1b54   :  { %1727 = vadd.xlane.f32.xlu1 %v1726_v31 }
0x1b93   :  { %v1674_v33 = vpop.xlane.xlu1 %1673 }
0x1b94   :  { %v1675_v34 = vsel %vm1659_vm8, %v1674_v33, %v1637_v57 }
0x1b95   :  { %v1710_v37 = vmul.f32 %v1694_v7, %v1675_v34 }
0x1b97   :  { %1711 = vadd.xlane.f32.xlu0 %v1710_v37 }
0x1b9b   :  { %v1662_v38 = vpop.xlane.xlu1 %1661 }
0x1b9c   :  { %v1663_v40 = vsel %vm1659_vm8, %v1662_v38, %v1625_v61 }
0x1b9d   :  { %v1698_v41 = vmul.f32 %v1694_v7, %v1663_v40 }
0x1b9f   :  { %1699 = vadd.xlane.f32.xlu0 %v1698_v41 }
0x1ba3   :  { %v1686_v3 = vpop.xlane.xlu1 %1685 }
0x1ba4   :  { %v1687_v42 = vsel %vm1659_vm8, %v1686_v3, %v1649_v59 }
0x1ba5   :  { %v1722_v43 = vmul.f32 %v1694_v7, %v1687_v42 }
0x1ba7   :  { %1723 = vadd.xlane.f32.xlu0 %v1722_v43 }
0x1bb7   :  { %v1704_v46 = vpop.xlane.xlu1 %1703  ;;  %v1708_v48 = vpop.xlane.xlu2 %1707 }
0x1bb8   :  { %v1705_v49 = vsel %vm1697_vm9, %v1704_v46, %v1667_v12  ;;  %v1709_v50 = vsel %vm1697_vm9, %v1708_v48, %v1671_v13  ;;  %v1769_v13 = vld [vmem:[#allocation2 + $0x3d] ss:$0 sm:$0xff] }
0x1bb9   :  { %v1740_v51 = vmul.f32 %v1732_v45, %v1705_v49  ;;  %v1744_v52 = vmul.f32 %v1732_v45, %v1709_v50  ;;  %v1770_v14 = vxor.u32 2147483648, %v1769_v13 }
0x1bbb   :  { %1741 = vadd.xlane.f32.xlu0 %v1740_v51  ;;  %1745 = vadd.xlane.f32.xlu1 %v1744_v52 }
0x1bbf   :  { %v1716_v53 = vpop.xlane.xlu1 %1715  ;;  %v1720_v54 = vpop.xlane.xlu2 %1719 }
0x1bc0   :  { %v1717_v55 = vsel %vm1697_vm9, %v1716_v53, %v1679_v22  ;;  %v1721_v35 = vsel %vm1697_vm9, %v1720_v54, %v1683_v25 }
0x1bc1   :  { %v1752_v56 = vmul.f32 %v1732_v45, %v1717_v55  ;;  %v1756_v57 = vmul.f32 %v1732_v45, %v1721_v35 }
0x1bc3   :  { %1753 = vadd.xlane.f32.xlu0 %v1752_v56  ;;  %1757 = vadd.xlane.f32.xlu1 %v1756_v57 }
0x1bc7   :  { %v1728_v32 = vpop.xlane.xlu1 %1727 }
0x1bc8   :  { %v1729_v60 = vsel %vm1697_vm9, %v1728_v32, %v1691_v30 }
0x1bc9   :  { %v1764_v61 = vmul.f32 %v1732_v45, %v1729_v60 }
0x1bcb   :  { %1765 = vadd.xlane.f32.xlu0 %v1764_v61 }
0x1c0a   :  { %v1712_v62 = vpop.xlane.xlu0 %1711 }
0x1c0b   :  { %v1713_v1 = vsel %vm1697_vm9, %v1712_v62, %v1675_v34 }
0x1c0c   :  { %v1748_v59 = vmul.f32 %v1732_v45, %v1713_v1 }
0x1c0e   :  { %1749 = vadd.xlane.f32.xlu2 %v1748_v59 }
0x1c12   :  { %v1700_v4 = vpop.xlane.xlu0 %1699 }
0x1c13   :  { %v1701_v6 = vsel %vm1697_vm9, %v1700_v4, %v1663_v40 }
0x1c14   :  { %v1736_v7 = vmul.f32 %v1732_v45, %v1701_v6 }
0x1c16   :  { %1737 = vadd.xlane.f32.xlu2 %v1736_v7 }
0x1c1a   :  { %v1724_v9 = vpop.xlane.xlu0 %1723 }
0x1c1b   :  { %v1725_v10 = vsel %vm1697_vm9, %v1724_v9, %v1687_v42 }
0x1c1c   :  { %v1760_v12 = vmul.f32 %v1732_v45, %v1725_v10 }
0x1c1e   :  { %1761 = vadd.xlane.f32.xlu2 %v1760_v12 }
0x1c2e   :  { %v1746_v18 = vpop.xlane.xlu1 %1745  ;;  %v1742_v19 = vpop.xlane.xlu0 %1741 }
0x1c2f   :  { %v1747_v21 = vsel %vm1735_vm12, %v1746_v18, %v1709_v50  ;;  %v1743_v22 = vsel %vm1735_vm12, %v1742_v19, %v1705_v49  ;;  %v1807_v50 = vld [vmem:[#allocation2 + $0x3e] ss:$0 sm:$0xff] }
0x1c30   :  { %v1782_v25 = vmul.f32 %v1770_v14, %v1747_v21  ;;  %v1778_v26 = vmul.f32 %v1770_v14, %v1743_v22  ;;  %v1808_v51 = vxor.u32 2147483648, %v1807_v50 }
0x1c32   :  { %1783 = vadd.xlane.f32.xlu0 %v1782_v25  ;;  %1779 = vadd.xlane.f32.xlu2 %v1778_v26 }
0x1c36   :  { %v1758_v27 = vpop.xlane.xlu1 %1757  ;;  %v1754_v29 = vpop.xlane.xlu0 %1753 }
0x1c37   :  { %v1759_v30 = vsel %vm1735_vm12, %v1758_v27, %v1721_v35  ;;  %v1755_v31 = vsel %vm1735_vm12, %v1754_v29, %v1717_v55 }
0x1c38   :  { %v1794_v33 = vmul.f32 %v1770_v14, %v1759_v30  ;;  %v1790_v34 = vmul.f32 %v1770_v14, %v1755_v31 }
0x1c3a   :  { %1795 = vadd.xlane.f32.xlu0 %v1794_v33  ;;  %1791 = vadd.xlane.f32.xlu2 %v1790_v34 }
0x1c3e   :  { %v1766_v37 = vpop.xlane.xlu0 %1765 }
0x1c3f   :  { %v1767_v38 = vsel %vm1735_vm12, %v1766_v37, %v1729_v60 }
0x1c40   :  { %v1802_v40 = vmul.f32 %v1770_v14, %v1767_v38 }
0x1c42   :  { %1803 = vadd.xlane.f32.xlu2 %v1802_v40 }
0x1c81   :  { %v1750_v41 = vpop.xlane.xlu2 %1749 }
0x1c82   :  { %v1751_v3 = vsel %vm1735_vm12, %v1750_v41, %v1713_v1 }
0x1c83   :  { %v1786_v42 = vmul.f32 %v1770_v14, %v1751_v3 }
0x1c85   :  { %1787 = vadd.xlane.f32.xlu1 %v1786_v42 }
0x1c89   :  { %v1738_v43 = vpop.xlane.xlu2 %1737 }
0x1c8a   :  { %v1739_v44 = vsel %vm1735_vm12, %v1738_v43, %v1701_v6 }
0x1c8b   :  { %v1774_v45 = vmul.f32 %v1770_v14, %v1739_v44 }
0x1c8d   :  { %1775 = vadd.xlane.f32.xlu1 %v1774_v45 }
0x1c91   :  { %v1762_v46 = vpop.xlane.xlu2 %1761 }
0x1c92   :  { %v1763_v48 = vsel %vm1735_vm12, %v1762_v46, %v1725_v10 }
0x1c93   :  { %v1798_v49 = vmul.f32 %v1770_v14, %v1763_v48 }
0x1c95   :  { %1799 = vadd.xlane.f32.xlu1 %v1798_v49 }
0x1ca5   :  { %v1780_v52 = vpop.xlane.xlu2 %1779  ;;  %v1784_v53 = vpop.xlane.xlu0 %1783 }
0x1ca6   :  { %v1781_v54 = vsel %vm1773_vm13, %v1780_v52, %v1743_v22  ;;  %v1785_v55 = vsel %vm1773_vm13, %v1784_v53, %v1747_v21  ;;  %v1845_v22 = vld [vmem:[#allocation2 + $0x3f] ss:$0 sm:$0xff] }
0x1ca7   :  { %v1816_v35 = vmul.f32 %v1808_v51, %v1781_v54  ;;  %v1820_v56 = vmul.f32 %v1808_v51, %v1785_v55  ;;  %v1846_v25 = vxor.u32 2147483648, %v1845_v22 }
0x1ca9   :  { %1817 = vadd.xlane.f32.xlu1 %v1816_v35  ;;  %1821 = vadd.xlane.f32.xlu2 %v1820_v56 }
0x1cad   :  { %v1792_v57 = vpop.xlane.xlu2 %1791  ;;  %v1796_v32 = vpop.xlane.xlu0 %1795 }
0x1cae   :  { %v1793_v60 = vsel %vm1773_vm13, %v1792_v57, %v1755_v31  ;;  %v1797_v61 = vsel %vm1773_vm13, %v1796_v32, %v1759_v30 }
0x1caf   :  { %v1828_v62 = vmul.f32 %v1808_v51, %v1793_v60  ;;  %v1832_v1 = vmul.f32 %v1808_v51, %v1797_v61 }
0x1cb1   :  { %1829 = vadd.xlane.f32.xlu1 %v1828_v62  ;;  %1833 = vadd.xlane.f32.xlu2 %v1832_v1 }
0x1cb5   :  { %v1804_v59 = vpop.xlane.xlu2 %1803 }
0x1cb6   :  { %v1805_v4 = vsel %vm1773_vm13, %v1804_v59, %v1767_v38 }
0x1cb7   :  { %v1840_v6 = vmul.f32 %v1808_v51, %v1805_v4 }
0x1cb9   :  { %1841 = vadd.xlane.f32.xlu1 %v1840_v6 }
0x1cf8   :  { %v1788_v7 = vpop.xlane.xlu1 %1787 }
0x1cf9   :  { %v1789_v9 = vsel %vm1773_vm13, %v1788_v7, %v1751_v3 }
0x1cfa   :  { %v1824_v10 = vmul.f32 %v1808_v51, %v1789_v9 }
0x1cfc   :  { %1825 = vadd.xlane.f32.xlu0 %v1824_v10 }
0x1d00   :  { %v1776_v12 = vpop.xlane.xlu1 %1775 }
0x1d01   :  { %v1777_v13 = vsel %vm1773_vm13, %v1776_v12, %v1739_v44 }
0x1d02   :  { %v1812_v14 = vmul.f32 %v1808_v51, %v1777_v13 }
0x1d04   :  { %1813 = vadd.xlane.f32.xlu0 %v1812_v14 }
0x1d08   :  { %v1800_v18 = vpop.xlane.xlu1 %1799 }
0x1d09   :  { %v1801_v19 = vsel %vm1773_vm13, %v1800_v18, %v1763_v48 }
0x1d0a   :  { %v1836_v21 = vmul.f32 %v1808_v51, %v1801_v19 }
0x1d0c   :  { %1837 = vadd.xlane.f32.xlu0 %v1836_v21 }
0x1d1c   :  { %v1818_v26 = vpop.xlane.xlu1 %1817  ;;  %v1822_v27 = vpop.xlane.xlu2 %1821 }
0x1d1d   :  { %v1819_v29 = vsel %vm1811_vm1, %v1818_v26, %v1781_v54  ;;  %v1823_v30 = vsel %vm1811_vm1, %v1822_v27, %v1785_v55 }
0x1d1e   :  { %v1854_v31 = vmul.f32 %v1846_v25, %v1819_v29  ;;  %v1858_v33 = vmul.f32 %v1846_v25, %v1823_v30 }
0x1d20   :  { %1855 = vadd.xlane.f32.xlu0 %v1854_v31  ;;  %1859 = vadd.xlane.f32.xlu1 %v1858_v33 }
0x1d24   :  { %v1830_v34 = vpop.xlane.xlu1 %1829  ;;  %v1834_v37 = vpop.xlane.xlu2 %1833 }
0x1d25   :  { %v1831_v38 = vsel %vm1811_vm1, %v1830_v34, %v1793_v60  ;;  %v1835_v40 = vsel %vm1811_vm1, %v1834_v37, %v1797_v61 }
0x1d26   :  { %v1866_v41 = vmul.f32 %v1846_v25, %v1831_v38  ;;  %v1870_v3 = vmul.f32 %v1846_v25, %v1835_v40 }
0x1d28   :  { %1867 = vadd.xlane.f32.xlu0 %v1866_v41  ;;  %1871 = vadd.xlane.f32.xlu1 %v1870_v3 }
0x1d2c   :  { %v1842_v42 = vpop.xlane.xlu1 %1841 }
0x1d2d   :  { %v1843_v43 = vsel %vm1811_vm1, %v1842_v42, %v1805_v4 }
0x1d2e   :  { %v1878_v44 = vmul.f32 %v1846_v25, %v1843_v43 }
0x1d30   :  { %1879 = vadd.xlane.f32.xlu0 %v1878_v44 }
0x1d6f   :  { %v1826_v45 = vpop.xlane.xlu0 %1825 }
0x1d70   :  { %v1827_v46 = vsel %vm1811_vm1, %v1826_v45, %v1789_v9 }
0x1d71   :  { %v1862_v48 = vmul.f32 %v1846_v25, %v1827_v46 }
0x1d73   :  { %1863 = vadd.xlane.f32.xlu2 %v1862_v48 }
0x1d77   :  { %v1814_v49 = vpop.xlane.xlu0 %1813 }
0x1d78   :  { %v1815_v50 = vsel %vm1811_vm1, %v1814_v49, %v1777_v13 }
0x1d79   :  { %v1850_v51 = vmul.f32 %v1846_v25, %v1815_v50 }
0x1d7b   :  { %1851 = vadd.xlane.f32.xlu2 %v1850_v51 }
0x1d7f   :  { %v1838_v52 = vpop.xlane.xlu0 %1837 }
0x1d80   :  { %v1839_v53 = vsel %vm1811_vm1, %v1838_v52, %v1801_v19 }
0x1d81   :  { %v1874_v54 = vmul.f32 %v1846_v25, %v1839_v53 }
0x1d83   :  { %1875 = vadd.xlane.f32.xlu2 %v1874_v54 }
0x1d93   :  { %v1860_v55 = vpop.xlane.xlu1 %1859  ;;  %v1856_v35 = vpop.xlane.xlu0 %1855 }
0x1d94   :  { %v1861_v56 = vsel %vm1849_vm14, %v1860_v55, %v1823_v30  ;;  %v1857_v57 = vsel %vm1849_vm14, %v1856_v35, %v1819_v29 }
0x1d95   :  { %v1933_v32 = vmul.f32 %v1861_v56, %v2215_v20  ;;  %v1914_v60 = vmul.f32 %v1857_v57, %v2182_v58 }
0x1d97   :  { %v1935_v61 = vsel %vm140_vm6, %v1861_v56, %v1933_v32  ;;  %v1916_v62 = vsel %vm111_vm0, %v1857_v57, %v1914_v60 }
0x1d98   :  { %2080 = vst [vmem:[%s2921_s1 + $0x10] sm:$0xff] %v1935_v61 }
0x1d99   :  { %2078 = vst [vmem:[%s2921_s1 + $0x8] sm:$0xff] %v1916_v62 }
0x1d9b   :  { %v1872_v1 = vpop.xlane.xlu1 %1871  ;;  %v1868_v59 = vpop.xlane.xlu0 %1867 }
0x1d9c   :  { %v1873_v20 = vsel %vm1849_vm14, %v1872_v1, %v1835_v40  ;;  %v1869_v58 = vsel %vm1849_vm14, %v1868_v59, %v1831_v38 }
0x1d9d   :  { %v1990_v8 = vmul.f32 %v1873_v20, %v2437_v36  ;;  %v1971_v47 = vmul.f32 %v1869_v58, %v2324_v39 }
0x1d9f   :  { %v1992_v4 = vsel %vm227_vm10, %v1873_v20, %v1990_v8  ;;  %v1973_v6 = vsel %vm198_vm2, %v1869_v58, %v1971_v47 }
0x1da0   :  { %2086 = vst [vmem:[%s2921_s1 + $0x28] sm:$0xff] %v1992_v4 }
0x1da1   :  { %2084 = vst [vmem:[%s2921_s1 + $0x20] sm:$0xff] %v1973_v6 }
0x1da3   :  { %v1880_v7 = vpop.xlane.xlu0 %1879 }
0x1da4   :  { %v1881_v36 = vsel %vm1849_vm14, %v1880_v7, %v1843_v43 }
0x1da5   :  { %v2028_v39 = vmul.f32 %v1881_v36, %v2709_v17 }
0x1da7   :  { %v2030_v23 = vsel %vm285_vm4, %v1881_v36, %v2028_v39 }
0x1da8   :  { %2090 = vst [vmem:[%s2921_s1 + $0x38] sm:$0xff] %v2030_v23 }
0x1de6   :  { %v1864_v28 = vpop.xlane.xlu2 %1863 }
0x1de7   :  { %v1865_v9 = vsel %vm1849_vm14, %v1864_v28, %v1827_v46 }
0x1de8   :  { %v1952_v10 = vmul.f32 %v1865_v9, %v2278_v24 }
0x1dea   :  { %v1954_v12 = vsel %vm169_vm11, %v1865_v9, %v1952_v10 }
0x1deb   :  { %2082 = vst [vmem:[%s2921_s1 + $0x18] sm:$0xff] %v1954_v12 }
0x1dee   :  { %v1852_v17 = vpop.xlane.xlu2 %1851 }
0x1def   :  { %v1853_v63 = vsel %vm1849_vm14, %v1852_v17, %v1815_v50 }
0x1df0   :  { %v1896_v13 = vmul.f32 %v1853_v63, %v2155_v16 }
0x1df2   :  { %v1898_v14 = vsel %vm82_vm5, %v1853_v63, %v1896_v13 }
0x1df3   :  { %2076 = vst [vmem:[%s2921_s1] sm:$0xff] %v1898_v14 }
0x1df6   :  { %v1876_v24 = vpop.xlane.xlu2 %1875 }
0x1df7   :  { %v1877_v11 = vsel %vm1849_vm14, %v1876_v24, %v1839_v53 }
0x1df8   :  { %v2009_v18 = vmul.f32 %v1877_v11, %v2570_v15 }
0x1dfa   :  { %v2011_v19 = vsel %vm256_vm7, %v1877_v11, %v2009_v18 }
0x1dfb   :  { %2088 = vst [vmem:[%s2921_s1 + $0x30] sm:$0xff] %v2011_v19 }

// kernel: custom-call.26
= control target key start
LH: loop header
LB: loop body
LE: loop exit
PB: predicated region body
PF: predicated region fallthrough
CT: control target
= control target key end

     0   :  { %v63_v0 = vlaneseq  ;;  %v2119_v19 = vmov -1.0   ;;  %s2994_s0 = inlined_call_operand.vmem [shape: f32[1,64,64], index: 0, kind: input, shape index: {}]   ;;  %s2995_s1 = inlined_call_operand.vmem [shape: f32[1,64,64], index: 1, kind: output, shape index: {}]  }
   0x1   :  { %v58_v3 = vld [vmem:[%s2994_s0 + $0x38] sm:$0xff]  ;;  %v56_v35 = vld [vmem:[%s2994_s0 + $0x30] sm:$0xff] }
   0x2   :  { %v2131_v1 = vand.u32 127, %v63_v0  ;;  %v2133_v2 = vshrl.u32 %v63_v0, 7 }
   0x4   :  { %v271_v4 = vadd.s32 56, %v2133_v2  ;;  %vm65_vm1 = vcmp.lt.s32.totalorder %v2131_v1, 64  ;;  %vm353_vm8 = vcmp.eq.s32.totalorder %v2131_v1, 63  ;;  %vm361_vm10 = vcmp.eq.s32.totalorder %v2131_v1, 62 }
   0x5   :  { %v354_v20 = vsel %vm353_vm8, 1.0, %v2119_v19  ;;  %vm371_vm11 = vcmp.eq.s32.totalorder %v2131_v1, 61  ;;  %v242_v36 = vadd.s32 48, %v2133_v2  ;;  %vm381_vm13 = vcmp.eq.s32.totalorder %v2131_v1, 60 }
   0x6   :  { %vm272_vm0 = vcmp.eq.s32.totalorder %v271_v4, %v2131_v1  ;;  %vm277_vm2 = vcmp.le.s32.totalorder %v271_v4, %v2131_v1  ;;  %vm350_vm9 = vcmp.eq.s32.totalorder %v2131_v1, %v271_v4 }
   0x7   :  { %v274_v5 = vsel %vm272_vm0, %v58_v3, 0.0  ;;  %vm278_vm3 = vmand %vm277_vm2, %vm65_vm1  ;;  %v355_v21 = vsel %vm350_vm9, %v354_v20, 0.0  ;;  %vm243_vm12 = vcmp.eq.s32.totalorder %v242_v36, %v2131_v1  ;;  %vm248_vm14 = vcmp.le.s32.totalorder %v242_v36, %v2131_v1 }
   0x8   :  { %275 = vadd.xlane.f32.xlu0 %v274_v5  ;;  %v279_v14 = vsel %vm278_vm3, %v58_v3, 0.0  ;;  %v245_v37 = vsel %vm243_vm12, %v56_v35, 0.0  ;;  %vm249_vm2 = vmand %vm248_vm14, %vm65_vm1  ;;  %vm343_vm8 = vcmp.eq.s32.totalorder %v2131_v1, %v242_v36  ;;  %vm411_vm9 = vcmp.eq.s32.totalorder %v2131_v1, 57 }
   0x9   :  { %v250_v52 = vsel %vm249_vm2, %v56_v35, 0.0  ;;  %vm445_vm12 = vcmp.eq.s32.totalorder %v2131_v1, 54  ;;  %vm473_vm14 = vcmp.eq.s32.totalorder %v2131_v1, 52  ;;  %vm501_vm2 = vcmp.eq.s32.totalorder %v2131_v1, 50 }
  0x7b   :  { %v2140_v6 = vpop.xlane.xlu0 %275 }
  0x7c   :  { %2103 = vrcp.f32 %v2140_v6  ;;  %v291_v10 = vand.u32 2147483648, %v2140_v6  ;;  %v289_v12 = vand.u32 2147483647, %v2140_v6  ;;  %vm2996_vm5 = vweird.f32 %v2140_v6 }
  0x7e   :  { %v292_v15 = vor.u32 1.1754944e-38, %v291_v10  ;;  %vm290_vm7 = vcmp.eq.f32.partialorder %v289_v12, 8.507059e+37 }
  0x82   :  { %v2104_v7 = vpop.eup %2103 }
  0x83   :  { %v281_v8 = vmul.f32 %v2104_v7, %v2140_v6  ;;  %vm286_vm4 = vweird.f32 %v2104_v7 }
  0x84   :  { %vm287_vm6 = vmor %vm2996_vm5, %vm286_vm4  ;;  %vm1549_vm5 = vcmp.eq.s32.totalorder %v2131_v1, 8 }
  0x85   :  { %v282_v9 = vsub.f32 1.0, %v281_v8 }
  0x87   :  { %v283_v11 = vmul.f32 %v2104_v7, %v282_v9 }
  0x89   :  { %v284_v13 = vadd.f32 %v2104_v7, %v283_v11 }
  0x8b   :  { %v288_v16 = vsel %vm287_vm6, %v2104_v7, %v284_v13  ;;  %vm391_vm6 = vcmp.eq.s32.totalorder %v2131_v1, 59  ;;  %v2120_v7 = vmov 0.0  }
  0x8c   :  { %v2153_v17 = vsel %vm290_vm7, %v292_v15, %v288_v16  ;;  %vm401_vm7 = vcmp.eq.s32.totalorder %v2131_v1, 58  ;;  %v344_v8 = vsel %vm343_vm8, -1.0, %v2120_v7 }
  0x8d   :  { %v294_v18 = vmul.f32 %v2153_v17, %v279_v14 }
  0x8f   :  { %295 = vst [vmem:[#allocation2 + $0x38] sm:$0xff] %v294_v18 }
  0x96   :  { %v357_v22 = vld [vmem:[#allocation2 + $0x3e] ss:$0 sm:$0xff]  ;;  %v367_v25 = vld [vmem:[#allocation2 + $0x3d] ss:$0 sm:$0xff]  ;;  %v377_v30 = vld [vmem:[#allocation2 + $0x3c] ss:$0 sm:$0xff] }
  0x97   :  { %v358_v23 = vxor.u32 2147483648, %v357_v22  ;;  %v368_v27 = vxor.u32 2147483648, %v367_v25  ;;  %v378_v32 = vxor.u32 2147483648, %v377_v30  ;;  %v387_v38 = vld [vmem:[#allocation2 + $0x3b] ss:$0 sm:$0xff] }
  0x98   :  { %v388_v40 = vxor.u32 2147483648, %v387_v38  ;;  %v397_v56 = vld [vmem:[#allocation2 + $0x3a] ss:$0 sm:$0xff]  ;;  %v407_v61 = vld [vmem:[#allocation2 + $0x39] ss:$0 sm:$0xff] }
  0x99   :  { %v362_v24 = vmul.f32 %v358_v23, %v355_v21  ;;  %v398_v58 = vxor.u32 2147483648, %v397_v56  ;;  %v408_v63 = vxor.u32 2147483648, %v407_v61  ;;  %v417_v10 = vld [vmem:[#allocation2 + $0x38] ss:$0 sm:$0xff] }
  0x9a   :  { %v418_v12 = vxor.u32 2147483648, %v417_v10 }
  0x9b   :  { %363 = vadd.xlane.f32.xlu0 %v362_v24 }
 0x10e   :  { %v364_v26 = vpop.xlane.xlu0 %363 }
 0x10f   :  { %v365_v28 = vsel %vm361_vm10, %v364_v26, %v355_v21  ;;  %vm431_vm10 = vcmp.eq.s32.totalorder %v2131_v1, 55 }
 0x110   :  { %v372_v29 = vmul.f32 %v368_v27, %v365_v28 }
 0x112   :  { %373 = vadd.xlane.f32.xlu1 %v372_v29 }
 0x185   :  { %v374_v31 = vpop.xlane.xlu1 %373 }
 0x186   :  { %v375_v33 = vsel %vm371_vm11, %v374_v31, %v365_v28  ;;  %vm421_vm11 = vcmp.eq.s32.totalorder %v2131_v1, 56 }
 0x187   :  { %v382_v34 = vmul.f32 %v378_v32, %v375_v33 }
 0x189   :  { %383 = vadd.xlane.f32.xlu1 %v382_v34 }
 0x191   :  { %246 = vadd.xlane.f32.xlu1 %v245_v37 }
 0x1fc   :  { %v384_v39 = vpop.xlane.xlu1 %383 }
 0x1fd   :  { %v385_v41 = vsel %vm381_vm13, %v384_v39, %v375_v33  ;;  %vm459_vm13 = vcmp.eq.s32.totalorder %v2131_v1, 53 }
 0x1fe   :  { %v392_v42 = vmul.f32 %v388_v40, %v385_v41 }
 0x200   :  { %393 = vadd.xlane.f32.xlu2 %v392_v42 }
 0x204   :  { %v2166_v43 = vpop.xlane.xlu1 %246 }
 0x205   :  { %2105 = vrcp.f32 %v2166_v43  ;;  %v262_v46 = vand.u32 2147483648, %v2166_v43  ;;  %vm256_vm15 = vweird.f32 %v2166_v43  ;;  %v260_v48 = vand.u32 2147483647, %v2166_v43 }
 0x207   :  { %v263_v50 = vor.u32 1.1754944e-38, %v262_v46  ;;  %vm261_vm4 = vcmp.eq.f32.partialorder %v260_v48, 8.507059e+37 }
 0x20b   :  { %v2106_v44 = vpop.eup %2105 }
 0x20c   :  { %v252_v45 = vmul.f32 %v2106_v44, %v2166_v43  ;;  %vm257_vm0 = vweird.f32 %v2106_v44 }
 0x20d   :  { %vm258_vm3 = vmor %vm256_vm15, %vm257_vm0  ;;  %vm487_vm0 = vcmp.eq.s32.totalorder %v2131_v1, 51 }
 0x20e   :  { %v253_v47 = vsub.f32 1.0, %v252_v45 }
 0x210   :  { %v254_v49 = vmul.f32 %v2106_v44, %v253_v47 }
 0x212   :  { %v255_v51 = vadd.f32 %v2106_v44, %v254_v49 }
 0x214   :  { %v259_v53 = vsel %vm258_vm3, %v2106_v44, %v255_v51  ;;  %vm515_vm3 = vcmp.eq.s32.totalorder %v2131_v1, 49 }
 0x215   :  { %v2178_v54 = vsel %vm261_vm4, %v263_v50, %v259_v53 }
 0x216   :  { %v265_v55 = vmul.f32 %v2178_v54, %v250_v52 }
 0x218   :  { %266 = vst [vmem:[#allocation2 + $0x30] sm:$0xff] %v265_v55 }
 0x21f   :  { %v427_v3 = vld [vmem:[#allocation2 + $0x37] ss:$0 sm:$0xff]  ;;  %v441_v15 = vld [vmem:[#allocation2 + $0x36] ss:$0 sm:$0xff]  ;;  %v455_v24 = vld [vmem:[#allocation2 + $0x35] ss:$0 sm:$0xff] }
 0x220   :  { %v428_v5 = vxor.u32 2147483648, %v427_v3  ;;  %v442_v16 = vxor.u32 2147483648, %v441_v15  ;;  %v456_v26 = vxor.u32 2147483648, %v455_v24  ;;  %v469_v32 = vld [vmem:[#allocation2 + $0x34] ss:$0 sm:$0xff] }
 0x221   :  { %v470_v34 = vxor.u32 2147483648, %v469_v32  ;;  %v483_v40 = vld [vmem:[#allocation2 + $0x33] ss:$0 sm:$0xff]  ;;  %v497_v49 = vld [vmem:[#allocation2 + $0x32] ss:$0 sm:$0xff] }
 0x222   :  { %v432_v9 = vmul.f32 %v428_v5, %v344_v8  ;;  %v484_v42 = vxor.u32 2147483648, %v483_v40  ;;  %v498_v51 = vxor.u32 2147483648, %v497_v49 }
 0x273   :  { %v394_v57 = vpop.xlane.xlu2 %393 }
 0x274   :  { %v395_v59 = vsel %vm391_vm6, %v394_v57, %v385_v41 }
 0x275   :  { %v402_v60 = vmul.f32 %v398_v58, %v395_v59  ;;  %v511_v58 = vld [vmem:[#allocation2 + $0x31] ss:$0 sm:$0xff] }
 0x277   :  { %403 = vadd.xlane.f32.xlu2 %v402_v60  ;;  %v512_v60 = vxor.u32 2147483648, %v511_v58 }
 0x2ea   :  { %v404_v62 = vpop.xlane.xlu2 %403 }
 0x2eb   :  { %v405_v0 = vsel %vm401_vm7, %v404_v62, %v395_v59 }
 0x2ec   :  { %v412_v4 = vmul.f32 %v408_v63, %v405_v0 }
 0x2ee   :  { %413 = vadd.xlane.f32.xlu0 %v412_v4  ;;  %v213_v4 = vadd.s32 40, %v2133_v2 }
 0x2f0   :  { %vm214_vm4 = vcmp.eq.s32.totalorder %v213_v4, %v2131_v1  ;;  %vm219_vm6 = vcmp.le.s32.totalorder %v213_v4, %v2131_v1 }
 0x2f6   :  { %433 = vadd.xlane.f32.xlu0 %v432_v9 }
 0x361   :  { %v414_v11 = vpop.xlane.xlu0 %413 }
 0x362   :  { %v415_v13 = vsel %vm411_vm9, %v414_v11, %v405_v0  ;;  %vm220_vm9 = vmand %vm219_vm6, %vm65_vm1  ;;  %vm633_vm6 = vcmp.eq.s32.totalorder %v2131_v1, 42 }
 0x363   :  { %v422_v14 = vmul.f32 %v418_v12, %v415_v13 }
 0x365   :  { %423 = vadd.xlane.f32.xlu2 %v422_v14 }
 0x369   :  { %v434_v18 = vpop.xlane.xlu0 %433 }
 0x36a   :  { %v435_v19 = vsel %vm431_vm10, %v434_v18, %v344_v8  ;;  %v54_v8 = vld [vmem:[%s2994_s0 + $0x28] sm:$0xff] }
 0x36b   :  { %v446_v20 = vmul.f32 %v442_v16, %v435_v19  ;;  %v216_v12 = vsel %vm214_vm4, %v54_v8, 0.0  ;;  %vm615_vm4 = vcmp.eq.s32.totalorder %v2131_v1, 43 }
 0x36d   :  { %447 = vadd.xlane.f32.xlu2 %v446_v20 }
 0x3d8   :  { %v424_v21 = vpop.xlane.xlu2 %423 }
 0x3d9   :  { %v425_v22 = vsel %vm421_vm11, %v424_v21, %v415_v13 }
 0x3da   :  { %v436_v23 = vmul.f32 %v428_v5, %v425_v22  ;;  %v525_v5 = vld [vmem:[#allocation2 + $0x30] ss:$0 sm:$0xff] }
 0x3db   :  { %v526_v10 = vxor.u32 2147483648, %v525_v5 }
 0x3dc   :  { %437 = vadd.xlane.f32.xlu1 %v436_v23 }
 0x3e0   :  { %v448_v25 = vpop.xlane.xlu2 %447 }
 0x3e1   :  { %v449_v27 = vsel %vm445_vm12, %v448_v25, %v435_v19 }
 0x3e2   :  { %v460_v28 = vmul.f32 %v456_v26, %v449_v27 }
 0x3e4   :  { %461 = vadd.xlane.f32.xlu1 %v460_v28 }
 0x44f   :  { %v438_v29 = vpop.xlane.xlu1 %437 }
 0x450   :  { %v439_v30 = vsel %vm431_vm10, %v438_v29, %v425_v22 }
 0x451   :  { %v450_v31 = vmul.f32 %v442_v16, %v439_v30 }
 0x453   :  { %451 = vadd.xlane.f32.xlu0 %v450_v31 }
 0x457   :  { %v462_v33 = vpop.xlane.xlu1 %461 }
 0x458   :  { %v463_v35 = vsel %vm459_vm13, %v462_v33, %v449_v27  ;;  %v221_v27 = vsel %vm220_vm9, %v54_v8, 0.0  ;;  %vm651_vm9 = vcmp.eq.s32.totalorder %v2131_v1, 41 }
 0x459   :  { %v474_v36 = vmul.f32 %v470_v34, %v463_v35 }
 0x45b   :  { %475 = vadd.xlane.f32.xlu0 %v474_v36 }
 0x4c6   :  { %v452_v37 = vpop.xlane.xlu0 %451 }
 0x4c7   :  { %v453_v38 = vsel %vm445_vm12, %v452_v37, %v439_v30  ;;  %vm336_vm12 = vcmp.eq.s32.totalorder %v2131_v1, %v213_v4 }
 0x4c8   :  { %v464_v39 = vmul.f32 %v456_v26, %v453_v38  ;;  %v337_v33 = vsel %vm336_vm12, -1.0, %v2120_v7 }
 0x4ca   :  { %465 = vadd.xlane.f32.xlu2 %v464_v39 }
 0x4ce   :  { %v476_v41 = vpop.xlane.xlu0 %475 }
 0x4cf   :  { %v477_v44 = vsel %vm473_vm14, %v476_v41, %v463_v35 }
 0x4d0   :  { %v488_v45 = vmul.f32 %v484_v42, %v477_v44 }
 0x4d2   :  { %489 = vadd.xlane.f32.xlu2 %v488_v45 }
 0x53d   :  { %v466_v46 = vpop.xlane.xlu2 %465 }
 0x53e   :  { %v467_v47 = vsel %vm459_vm13, %v466_v46, %v453_v38  ;;  %vm529_vm13 = vcmp.eq.s32.totalorder %v2131_v1, 48 }
 0x53f   :  { %v478_v48 = vmul.f32 %v470_v34, %v467_v47 }
 0x541   :  { %479 = vadd.xlane.f32.xlu1 %v478_v48 }
 0x545   :  { %v490_v50 = vpop.xlane.xlu2 %489 }
 0x546   :  { %v491_v52 = vsel %vm487_vm0, %v490_v50, %v477_v44 }
 0x547   :  { %v502_v53 = vmul.f32 %v498_v51, %v491_v52 }
 0x549   :  { %503 = vadd.xlane.f32.xlu1 %v502_v53 }
 0x5b4   :  { %v480_v55 = vpop.xlane.xlu1 %479 }
 0x5b5   :  { %v481_v56 = vsel %vm473_vm14, %v480_v55, %v467_v47  ;;  %vm543_vm14 = vcmp.eq.s32.totalorder %v2131_v1, 47 }
 0x5b6   :  { %v492_v57 = vmul.f32 %v484_v42, %v481_v56 }
 0x5b8   :  { %493 = vadd.xlane.f32.xlu0 %v492_v57 }
 0x5bc   :  { %v504_v59 = vpop.xlane.xlu1 %503 }
 0x5bd   :  { %v505_v61 = vsel %vm501_vm2, %v504_v59, %v491_v52 }
 0x5be   :  { %v516_v62 = vmul.f32 %v512_v60, %v505_v61 }
 0x5c0   :  { %517 = vadd.xlane.f32.xlu0 %v516_v62 }
 0x62b   :  { %v494_v63 = vpop.xlane.xlu0 %493 }
 0x62c   :  { %v495_v0 = vsel %vm487_vm0, %v494_v63, %v481_v56  ;;  %vm561_vm0 = vcmp.eq.s32.totalorder %v2131_v1, 46 }
 0x62d   :  { %v506_v3 = vmul.f32 %v498_v51, %v495_v0 }
 0x62f   :  { %507 = vadd.xlane.f32.xlu2 %v506_v3 }
 0x633   :  { %v518_v9 = vpop.xlane.xlu0 %517 }
 0x634   :  { %v519_v11 = vsel %vm515_vm3, %v518_v9, %v505_v61 }
 0x635   :  { %v530_v13 = vmul.f32 %v526_v10, %v519_v11 }
 0x637   :  { %531 = vadd.xlane.f32.xlu0 %v530_v13  ;;  %217 = vadd.xlane.f32.xlu2 %v216_v12 }
 0x6a2   :  { %v508_v14 = vpop.xlane.xlu2 %507 }
 0x6a3   :  { %v509_v15 = vsel %vm501_vm2, %v508_v14, %v495_v0  ;;  %vm579_vm2 = vcmp.eq.s32.totalorder %v2131_v1, 45 }
 0x6a4   :  { %v520_v16 = vmul.f32 %v512_v60, %v509_v15 }
 0x6a6   :  { %521 = vadd.xlane.f32.xlu1 %v520_v16 }
 0x6aa   :  { %v2225_v18 = vpop.xlane.xlu2 %217  ;;  %v532_v31 = vpop.xlane.xlu0 %531 }
 0x6ab   :  { %2107 = vrcp.f32 %v2225_v18  ;;  %v233_v21 = vand.u32 2147483648, %v2225_v18  ;;  %vm227_vm7 = vweird.f32 %v2225_v18  ;;  %v231_v23 = vand.u32 2147483647, %v2225_v18 }
 0x6ac   :  { %v533_v35 = vsel %vm529_vm13, %v532_v31, %v519_v11 }
 0x6ad   :  { %v234_v25 = vor.u32 1.1754944e-38, %v233_v21  ;;  %vm232_vm11 = vcmp.eq.f32.partialorder %v231_v23, 8.507059e+37 }
 0x6b1   :  { %v2108_v19 = vpop.eup %2107 }
 0x6b2   :  { %v223_v20 = vmul.f32 %v2108_v19, %v2225_v18  ;;  %vm228_vm8 = vweird.f32 %v2108_v19 }
 0x6b3   :  { %vm229_vm10 = vmor %vm227_vm7, %vm228_vm8 }
 0x6b4   :  { %v224_v22 = vsub.f32 1.0, %v223_v20 }
 0x6b6   :  { %v225_v24 = vmul.f32 %v2108_v19, %v224_v22 }
 0x6b8   :  { %v226_v26 = vadd.f32 %v2108_v19, %v225_v24 }
 0x6ba   :  { %v230_v28 = vsel %vm229_vm10, %v2108_v19, %v226_v26 }
 0x6bb   :  { %v2237_v29 = vsel %vm232_vm11, %v234_v25, %v230_v28 }
 0x6bc   :  { %v236_v30 = vmul.f32 %v2237_v29, %v221_v27 }
 0x6be   :  { %237 = vst [vmem:[#allocation2 + $0x28] sm:$0xff] %v236_v30 }
 0x6c5   :  { %v539_v32 = vld [vmem:[#allocation2 + $0x2f] ss:$0 sm:$0xff]  ;;  %v557_v41 = vld [vmem:[#allocation2 + $0x2e] ss:$0 sm:$0xff]  ;;  %v575_v53 = vld [vmem:[#allocation2 + $0x2d] ss:$0 sm:$0xff] }
 0x6c6   :  { %v540_v34 = vxor.u32 2147483648, %v539_v32  ;;  %v558_v42 = vxor.u32 2147483648, %v557_v41  ;;  %v576_v57 = vxor.u32 2147483648, %v575_v53  ;;  %v593_v3 = vld [vmem:[#allocation2 + $0x2c] ss:$0 sm:$0xff] }
 0x6c7   :  { %v594_v8 = vxor.u32 2147483648, %v593_v3  ;;  %v611_v16 = vld [vmem:[#allocation2 + $0x2b] ss:$0 sm:$0xff]  ;;  %v629_v30 = vld [vmem:[#allocation2 + $0x2a] ss:$0 sm:$0xff] }
 0x6c8   :  { %v548_v36 = vmul.f32 %v540_v34, %v533_v35  ;;  %v544_v37 = vmul.f32 %v540_v34, %v337_v33  ;;  %v612_v21 = vxor.u32 2147483648, %v611_v16  ;;  %v647_v41 = vld [vmem:[#allocation2 + $0x29] ss:$0 sm:$0xff] }
 0x6ca   :  { %549 = vadd.xlane.f32.xlu0 %v548_v36  ;;  %545 = vadd.xlane.f32.xlu2 %v544_v37 }
 0x719   :  { %v522_v38 = vpop.xlane.xlu1 %521 }
 0x71a   :  { %v523_v39 = vsel %vm515_vm3, %v522_v38, %v509_v15  ;;  %vm597_vm3 = vcmp.eq.s32.totalorder %v2131_v1, 44 }
 0x71b   :  { %v534_v40 = vmul.f32 %v526_v10, %v523_v39 }
 0x71d   :  { %535 = vadd.xlane.f32.xlu1 %v534_v40 }
 0x73d   :  { %v550_v44 = vpop.xlane.xlu0 %549  ;;  %v546_v45 = vpop.xlane.xlu2 %545 }
 0x73e   :  { %v551_v46 = vsel %vm543_vm14, %v550_v44, %v533_v35  ;;  %v547_v47 = vsel %vm543_vm14, %v546_v45, %v337_v33  ;;  %v630_v33 = vxor.u32 2147483648, %v629_v30  ;;  %v648_v45 = vxor.u32 2147483648, %v647_v41 }
 0x73f   :  { %v566_v48 = vmul.f32 %v558_v42, %v551_v46  ;;  %v562_v49 = vmul.f32 %v558_v42, %v547_v47 }
 0x741   :  { %567 = vadd.xlane.f32.xlu0 %v566_v48  ;;  %563 = vadd.xlane.f32.xlu2 %v562_v49 }
 0x790   :  { %v536_v50 = vpop.xlane.xlu1 %535 }
 0x791   :  { %v537_v51 = vsel %vm529_vm13, %v536_v50, %v523_v39  ;;  %v184_v50 = vadd.s32 32, %v2133_v2 }
 0x792   :  { %v552_v52 = vmul.f32 %v540_v34, %v537_v51 }
 0x793   :  { %vm185_vm8 = vcmp.eq.s32.totalorder %v184_v50, %v2131_v1  ;;  %vm190_vm10 = vcmp.le.s32.totalorder %v184_v50, %v2131_v1 }
 0x794   :  { %553 = vadd.xlane.f32.xlu1 %v552_v52  ;;  %vm191_vm13 = vmand %vm190_vm10, %vm65_vm1  ;;  %vm775_vm10 = vcmp.eq.s32.totalorder %v2131_v1, 35 }
 0x7b4   :  { %v568_v55 = vpop.xlane.xlu0 %567  ;;  %v564_v56 = vpop.xlane.xlu2 %563 }
 0x7b5   :  { %v569_v58 = vsel %vm561_vm0, %v568_v55, %v551_v46  ;;  %v565_v59 = vsel %vm561_vm0, %v564_v56, %v547_v47 }
 0x7b6   :  { %v584_v60 = vmul.f32 %v576_v57, %v569_v58  ;;  %v580_v61 = vmul.f32 %v576_v57, %v565_v59 }
 0x7b8   :  { %585 = vadd.xlane.f32.xlu0 %v584_v60  ;;  %581 = vadd.xlane.f32.xlu2 %v580_v61 }
 0x807   :  { %v554_v62 = vpop.xlane.xlu1 %553 }
 0x808   :  { %v555_v63 = vsel %vm543_vm14, %v554_v62, %v537_v51  ;;  %v52_v51 = vld [vmem:[%s2994_s0 + $0x20] sm:$0xff] }
 0x809   :  { %v570_v0 = vmul.f32 %v558_v42, %v555_v63  ;;  %v187_v52 = vsel %vm185_vm8, %v52_v51, 0.0  ;;  %vm731_vm8 = vcmp.eq.s32.totalorder %v2131_v1, 37 }
 0x80b   :  { %571 = vadd.xlane.f32.xlu1 %v570_v0 }
 0x82b   :  { %v586_v4 = vpop.xlane.xlu0 %585  ;;  %v582_v5 = vpop.xlane.xlu2 %581 }
 0x82c   :  { %v587_v9 = vsel %vm579_vm2, %v586_v4, %v569_v58  ;;  %v583_v10 = vsel %vm579_vm2, %v582_v5, %v565_v59 }
 0x82d   :  { %v602_v11 = vmul.f32 %v594_v8, %v587_v9  ;;  %v598_v12 = vmul.f32 %v594_v8, %v583_v10 }
 0x82f   :  { %603 = vadd.xlane.f32.xlu0 %v602_v11  ;;  %599 = vadd.xlane.f32.xlu2 %v598_v12  ;;  %v192_v11 = vsel %vm191_vm13, %v52_v51, 0.0 }
 0x87e   :  { %v572_v13 = vpop.xlane.xlu1 %571 }
 0x87f   :  { %v573_v14 = vsel %vm561_vm0, %v572_v13, %v555_v63 }
 0x880   :  { %v588_v15 = vmul.f32 %v576_v57, %v573_v14  ;;  %v665_v57 = vld [vmem:[#allocation2 + $0x28] ss:$0 sm:$0xff] }
 0x881   :  { %v666_v59 = vxor.u32 2147483648, %v665_v57 }
 0x882   :  { %589 = vadd.xlane.f32.xlu1 %v588_v15 }
 0x8a2   :  { %v604_v19 = vpop.xlane.xlu0 %603  ;;  %v600_v20 = vpop.xlane.xlu2 %599 }
 0x8a3   :  { %v605_v22 = vsel %vm597_vm3, %v604_v19, %v587_v9  ;;  %v601_v23 = vsel %vm597_vm3, %v600_v20, %v583_v10 }
 0x8a4   :  { %v620_v24 = vmul.f32 %v612_v21, %v605_v22  ;;  %v616_v25 = vmul.f32 %v612_v21, %v601_v23 }
 0x8a6   :  { %621 = vadd.xlane.f32.xlu0 %v620_v24  ;;  %617 = vadd.xlane.f32.xlu2 %v616_v25 }
 0x8f5   :  { %v590_v26 = vpop.xlane.xlu1 %589 }
 0x8f6   :  { %v591_v27 = vsel %vm579_vm2, %v590_v26, %v573_v14  ;;  %vm329_vm2 = vcmp.eq.s32.totalorder %v2131_v1, %v184_v50 }
 0x8f7   :  { %v606_v28 = vmul.f32 %v594_v8, %v591_v27  ;;  %v330_v15 = vsel %vm329_vm2, -1.0, %v2120_v7 }
 0x8f9   :  { %607 = vadd.xlane.f32.xlu1 %v606_v28 }
 0x919   :  { %v622_v31 = vpop.xlane.xlu0 %621  ;;  %v618_v32 = vpop.xlane.xlu2 %617 }
 0x91a   :  { %v623_v34 = vsel %vm615_vm4, %v622_v31, %v605_v22  ;;  %v619_v35 = vsel %vm615_vm4, %v618_v32, %v601_v23 }
 0x91b   :  { %v638_v36 = vmul.f32 %v630_v33, %v623_v34  ;;  %v634_v37 = vmul.f32 %v630_v33, %v619_v35 }
 0x91d   :  { %639 = vadd.xlane.f32.xlu0 %v638_v36  ;;  %635 = vadd.xlane.f32.xlu2 %v634_v37 }
 0x96c   :  { %v608_v38 = vpop.xlane.xlu1 %607 }
 0x96d   :  { %v609_v39 = vsel %vm597_vm3, %v608_v38, %v591_v27  ;;  %vm669_vm3 = vcmp.eq.s32.totalorder %v2131_v1, 40 }
 0x96e   :  { %v624_v40 = vmul.f32 %v612_v21, %v609_v39 }
 0x970   :  { %625 = vadd.xlane.f32.xlu1 %v624_v40 }
 0x990   :  { %v640_v42 = vpop.xlane.xlu0 %639  ;;  %v636_v44 = vpop.xlane.xlu2 %635 }
 0x991   :  { %v641_v46 = vsel %vm633_vm6, %v640_v42, %v623_v34  ;;  %v637_v47 = vsel %vm633_vm6, %v636_v44, %v619_v35 }
 0x992   :  { %v656_v48 = vmul.f32 %v648_v45, %v641_v46  ;;  %v652_v49 = vmul.f32 %v648_v45, %v637_v47 }
 0x994   :  { %657 = vadd.xlane.f32.xlu0 %v656_v48  ;;  %653 = vadd.xlane.f32.xlu2 %v652_v49 }
 0x99c   :  { %188 = vadd.xlane.f32.xlu2 %v187_v52 }
 0x9e3   :  { %v626_v53 = vpop.xlane.xlu1 %625 }
 0x9e4   :  { %v627_v55 = vsel %vm615_vm4, %v626_v53, %v609_v39  ;;  %vm687_vm4 = vcmp.eq.s32.totalorder %v2131_v1, 39 }
 0x9e5   :  { %v642_v56 = vmul.f32 %v630_v33, %v627_v55 }
 0x9e7   :  { %643 = vadd.xlane.f32.xlu1 %v642_v56 }
 0xa07   :  { %v654_v58 = vpop.xlane.xlu2 %653  ;;  %v658_v24 = vpop.xlane.xlu0 %657 }
 0xa08   :  { %v655_v60 = vsel %vm651_vm9, %v654_v58, %v637_v47  ;;  %v659_v25 = vsel %vm651_vm9, %v658_v24, %v641_v46 }
 0xa09   :  { %v670_v61 = vmul.f32 %v666_v59, %v655_v60  ;;  %v674_v26 = vmul.f32 %v666_v59, %v659_v25 }
 0xa0b   :  { %671 = vadd.xlane.f32.xlu0 %v670_v61 }
 0xa0f   :  { %v2297_v62 = vpop.xlane.xlu2 %188 }
 0xa10   :  { %2109 = vrcp.f32 %v2297_v62  ;;  %v204_v3 = vand.u32 2147483648, %v2297_v62  ;;  %vm198_vm11 = vweird.f32 %v2297_v62  ;;  %v202_v5 = vand.u32 2147483647, %v2297_v62 }
 0xa12   :  { %v205_v9 = vor.u32 1.1754944e-38, %v204_v3  ;;  %vm203_vm0 = vcmp.eq.f32.partialorder %v202_v5, 8.507059e+37 }
 0xa16   :  { %v2110_v63 = vpop.eup %2109 }
 0xa17   :  { %v194_v0 = vmul.f32 %v2110_v63, %v2297_v62  ;;  %vm199_vm12 = vweird.f32 %v2110_v63 }
 0xa18   :  { %vm200_vm14 = vmor %vm198_vm11, %vm199_vm12  ;;  %vm797_vm12 = vcmp.eq.s32.totalorder %v2131_v1, 34 }
 0xa19   :  { %v195_v4 = vsub.f32 1.0, %v194_v0 }
 0xa1b   :  { %v196_v8 = vmul.f32 %v2110_v63, %v195_v4 }
 0xa1d   :  { %v197_v10 = vadd.f32 %v2110_v63, %v196_v8 }
 0xa1f   :  { %v201_v12 = vsel %vm200_vm14, %v2110_v63, %v197_v10  ;;  %vm819_vm14 = vcmp.eq.s32.totalorder %v2131_v1, 33 }
 0xa20   :  { %v2309_v13 = vsel %vm203_vm0, %v205_v9, %v201_v12 }
 0xa21   :  { %v207_v14 = vmul.f32 %v2309_v13, %v192_v11 }
 0xa23   :  { %208 = vst [vmem:[#allocation2 + $0x20] sm:$0xff] %v207_v14 }
 0xa2a   :  { %v683_v16 = vld [vmem:[#allocation2 + $0x27] ss:$0 sm:$0xff]  ;;  %v705_v31 = vld [vmem:[#allocation2 + $0x26] ss:$0 sm:$0xff]  ;;  %v727_v46 = vld [vmem:[#allocation2 + $0x25] ss:$0 sm:$0xff] }
 0xa2b   :  { %v684_v19 = vxor.u32 2147483648, %v683_v16  ;;  %v706_v32 = vxor.u32 2147483648, %v705_v31  ;;  %v728_v47 = vxor.u32 2147483648, %v727_v46  ;;  %v749_v61 = vld [vmem:[#allocation2 + $0x24] ss:$0 sm:$0xff] }
 0xa2c   :  { %v750_v0 = vxor.u32 2147483648, %v749_v61 }
 0xa2d   :  { %v688_v20 = vmul.f32 %v684_v19, %v330_v15 }
 0xa2f   :  { %689 = vadd.xlane.f32.xlu0 %v688_v20 }
 0xa5a   :  { %v644_v21 = vpop.xlane.xlu1 %643 }
 0xa5b   :  { %v645_v22 = vsel %vm633_vm6, %v644_v21, %v627_v55  ;;  %vm709_vm6 = vcmp.eq.s32.totalorder %v2131_v1, 38 }
 0xa5c   :  { %v660_v23 = vmul.f32 %v648_v45, %v645_v22 }
 0xa5e   :  { %661 = vadd.xlane.f32.xlu1 %v660_v23 }
 0xa66   :  { %675 = vadd.xlane.f32.xlu1 %v674_v26 }
 0xa7e   :  { %v672_v27 = vpop.xlane.xlu0 %671 }
 0xa7f   :  { %v673_v28 = vsel %vm669_vm3, %v672_v27, %v655_v60 }
 0xa80   :  { %v692_v30 = vmul.f32 %v684_v19, %v673_v28 }
 0xa82   :  { %693 = vadd.xlane.f32.xlu1 %v692_v30 }
 0xaa2   :  { %v690_v33 = vpop.xlane.xlu0 %689 }
 0xaa3   :  { %v691_v34 = vsel %vm687_vm4, %v690_v33, %v330_v15 }
 0xaa4   :  { %v710_v35 = vmul.f32 %v706_v32, %v691_v34 }
 0xaa6   :  { %711 = vadd.xlane.f32.xlu1 %v710_v35 }
 0xad1   :  { %v662_v36 = vpop.xlane.xlu1 %661 }
 0xad2   :  { %v663_v37 = vsel %vm651_vm9, %v662_v36, %v645_v22  ;;  %vm753_vm9 = vcmp.eq.s32.totalorder %v2131_v1, 36 }
 0xad3   :  { %v678_v38 = vmul.f32 %v666_v59, %v663_v37 }
 0xad5   :  { %679 = vadd.xlane.f32.xlu2 %v678_v38 }
 0xad9   :  { %v676_v39 = vpop.xlane.xlu1 %675 }
 0xada   :  { %v677_v40 = vsel %vm669_vm3, %v676_v39, %v659_v25 }
 0xadb   :  { %v696_v41 = vmul.f32 %v684_v19, %v677_v40 }
 0xadd   :  { %697 = vadd.xlane.f32.xlu2 %v696_v41 }
 0xaf5   :  { %v694_v42 = vpop.xlane.xlu1 %693 }
 0xaf6   :  { %v695_v44 = vsel %vm687_vm4, %v694_v42, %v673_v28 }
 0xaf7   :  { %v714_v45 = vmul.f32 %v706_v32, %v695_v44 }
 0xaf9   :  { %715 = vadd.xlane.f32.xlu2 %v714_v45 }
 0xb19   :  { %v712_v48 = vpop.xlane.xlu1 %711 }
 0xb1a   :  { %v713_v49 = vsel %vm709_vm6, %v712_v48, %v691_v34  ;;  %v793_v34 = vld [vmem:[#allocation2 + $0x22] ss:$0 sm:$0xff] }
 0xb1b   :  { %v732_v50 = vmul.f32 %v728_v47, %v713_v49  ;;  %v794_v36 = vxor.u32 2147483648, %v793_v34 }
 0xb1d   :  { %733 = vadd.xlane.f32.xlu2 %v732_v50 }
 0xb48   :  { %v680_v51 = vpop.xlane.xlu2 %679 }
 0xb49   :  { %v681_v52 = vsel %vm669_vm3, %v680_v51, %v663_v37 }
 0xb4a   :  { %v700_v53 = vmul.f32 %v684_v19, %v681_v52  ;;  %v771_v19 = vld [vmem:[#allocation2 + $0x23] ss:$0 sm:$0xff] }
 0xb4b   :  { %v772_v21 = vxor.u32 2147483648, %v771_v19 }
 0xb4c   :  { %701 = vadd.xlane.f32.xlu0 %v700_v53 }
 0xb50   :  { %v698_v55 = vpop.xlane.xlu2 %697 }
 0xb51   :  { %v699_v56 = vsel %vm687_vm4, %v698_v55, %v677_v40 }
 0xb52   :  { %v718_v57 = vmul.f32 %v706_v32, %v699_v56 }
 0xb54   :  { %719 = vadd.xlane.f32.xlu0 %v718_v57 }
 0xb6c   :  { %v716_v58 = vpop.xlane.xlu2 %715 }
 0xb6d   :  { %v717_v59 = vsel %vm709_vm6, %v716_v58, %v695_v44 }
 0xb6e   :  { %v736_v60 = vmul.f32 %v728_v47, %v717_v59 }
 0xb70   :  { %737 = vadd.xlane.f32.xlu0 %v736_v60 }
 0xb90   :  { %v734_v63 = vpop.xlane.xlu2 %733 }
 0xb91   :  { %v735_v3 = vsel %vm731_vm8, %v734_v63, %v713_v49  ;;  %v815_v49 = vld [vmem:[#allocation2 + $0x21] ss:$0 sm:$0xff] }
 0xb92   :  { %v754_v4 = vmul.f32 %v750_v0, %v735_v3  ;;  %v816_v51 = vxor.u32 2147483648, %v815_v49 }
 0xb94   :  { %755 = vadd.xlane.f32.xlu0 %v754_v4  ;;  %v50_v4 = vld [vmem:[%s2994_s0 + $0x18] sm:$0xff] }
 0xbbf   :  { %v702_v5 = vpop.xlane.xlu0 %701 }
 0xbc0   :  { %v703_v8 = vsel %vm687_vm4, %v702_v5, %v681_v52 }
 0xbc1   :  { %v722_v9 = vmul.f32 %v706_v32, %v703_v8 }
 0xbc3   :  { %723 = vadd.xlane.f32.xlu1 %v722_v9 }
 0xbc7   :  { %v720_v10 = vpop.xlane.xlu0 %719 }
 0xbc8   :  { %v721_v11 = vsel %vm709_vm6, %v720_v10, %v699_v56 }
 0xbc9   :  { %v740_v12 = vmul.f32 %v728_v47, %v721_v11 }
 0xbcb   :  { %741 = vadd.xlane.f32.xlu1 %v740_v12 }
 0xbe3   :  { %v738_v14 = vpop.xlane.xlu0 %737 }
 0xbe4   :  { %v739_v15 = vsel %vm731_vm8, %v738_v14, %v717_v59 }
 0xbe5   :  { %v758_v16 = vmul.f32 %v750_v0, %v739_v15 }
 0xbe7   :  { %759 = vadd.xlane.f32.xlu1 %v758_v16  ;;  %v837_v16 = vld [vmem:[#allocation2 + $0x20] ss:$0 sm:$0xff] }
 0xc07   :  { %v756_v20 = vpop.xlane.xlu0 %755 }
 0xc08   :  { %v757_v22 = vsel %vm753_vm9, %v756_v20, %v735_v3  ;;  %v155_v3 = vadd.s32 24, %v2133_v2  ;;  %v838_v20 = vxor.u32 2147483648, %v837_v16 }
 0xc09   :  { %v776_v23 = vmul.f32 %v772_v21, %v757_v22 }
 0xc0a   :  { %vm156_vm13 = vcmp.eq.s32.totalorder %v155_v3, %v2131_v1  ;;  %vm161_vm0 = vcmp.le.s32.totalorder %v155_v3, %v2131_v1 }
 0xc0b   :  { %777 = vadd.xlane.f32.xlu1 %v776_v23  ;;  %v158_v5 = vsel %vm156_vm13, %v50_v4, 0.0  ;;  %vm162_vm4 = vmand %vm161_vm0, %vm65_vm1  ;;  %vm889_vm13 = vcmp.eq.s32.totalorder %v2131_v1, 30  ;;  %vm941_vm0 = vcmp.eq.s32.totalorder %v2131_v1, 28 }
 0xc36   :  { %v724_v24 = vpop.xlane.xlu1 %723 }
 0xc37   :  { %v725_v25 = vsel %vm709_vm6, %v724_v24, %v703_v8 }
 0xc38   :  { %v744_v26 = vmul.f32 %v728_v47, %v725_v25 }
 0xc3a   :  { %745 = vadd.xlane.f32.xlu2 %v744_v26 }
 0xc3e   :  { %v742_v27 = vpop.xlane.xlu1 %741 }
 0xc3f   :  { %v743_v28 = vsel %vm731_vm8, %v742_v27, %v721_v11 }
 0xc40   :  { %v762_v30 = vmul.f32 %v750_v0, %v743_v28 }
 0xc42   :  { %763 = vadd.xlane.f32.xlu2 %v762_v30 }
 0xc5a   :  { %v760_v31 = vpop.xlane.xlu1 %759 }
 0xc5b   :  { %v761_v32 = vsel %vm753_vm9, %v760_v31, %v739_v15 }
 0xc5c   :  { %v780_v33 = vmul.f32 %v772_v21, %v761_v32 }
 0xc5e   :  { %781 = vadd.xlane.f32.xlu2 %v780_v33  ;;  %v163_v33 = vsel %vm162_vm4, %v50_v4, 0.0  ;;  %vm993_vm4 = vcmp.eq.s32.totalorder %v2131_v1, 26 }
 0xc7e   :  { %v778_v35 = vpop.xlane.xlu1 %777 }
 0xc7f   :  { %v779_v37 = vsel %vm775_vm10, %v778_v35, %v757_v22 }
 0xc80   :  { %v798_v38 = vmul.f32 %v794_v36, %v779_v37 }
 0xc82   :  { %799 = vadd.xlane.f32.xlu2 %v798_v38 }
 0xcad   :  { %v746_v39 = vpop.xlane.xlu2 %745 }
 0xcae   :  { %v747_v40 = vsel %vm731_vm8, %v746_v39, %v725_v25 }
 0xcaf   :  { %v766_v41 = vmul.f32 %v750_v0, %v747_v40 }
 0xcb1   :  { %767 = vadd.xlane.f32.xlu0 %v766_v41 }
 0xcb5   :  { %v764_v42 = vpop.xlane.xlu2 %763 }
 0xcb6   :  { %v765_v44 = vsel %vm753_vm9, %v764_v42, %v743_v28 }
 0xcb7   :  { %v784_v45 = vmul.f32 %v772_v21, %v765_v44 }
 0xcb9   :  { %785 = vadd.xlane.f32.xlu0 %v784_v45 }
 0xcd1   :  { %v782_v46 = vpop.xlane.xlu2 %781 }
 0xcd2   :  { %v783_v47 = vsel %vm775_vm10, %v782_v46, %v761_v32 }
 0xcd3   :  { %v802_v48 = vmul.f32 %v794_v36, %v783_v47 }
 0xcd5   :  { %803 = vadd.xlane.f32.xlu0 %v802_v48 }
 0xcf5   :  { %v800_v50 = vpop.xlane.xlu2 %799 }
 0xcf6   :  { %v801_v52 = vsel %vm797_vm12, %v800_v50, %v779_v37 }
 0xcf7   :  { %v820_v53 = vmul.f32 %v816_v51, %v801_v52 }
 0xcf9   :  { %821 = vadd.xlane.f32.xlu0 %v820_v53 }
 0xd24   :  { %v768_v55 = vpop.xlane.xlu0 %767 }
 0xd25   :  { %v769_v56 = vsel %vm753_vm9, %v768_v55, %v747_v40  ;;  %vm322_vm9 = vcmp.eq.s32.totalorder %v2131_v1, %v155_v3 }
 0xd26   :  { %v788_v57 = vmul.f32 %v772_v21, %v769_v56  ;;  %v323_v48 = vsel %vm322_vm9, -1.0, %v2120_v7 }
 0xd28   :  { %789 = vadd.xlane.f32.xlu1 %v788_v57 }
 0xd2c   :  { %v786_v58 = vpop.xlane.xlu0 %785 }
 0xd2d   :  { %v787_v59 = vsel %vm775_vm10, %v786_v58, %v765_v44 }
 0xd2e   :  { %v806_v60 = vmul.f32 %v794_v36, %v787_v59 }
 0xd30   :  { %807 = vadd.xlane.f32.xlu1 %v806_v60 }
 0xd48   :  { %v804_v61 = vpop.xlane.xlu0 %803 }
 0xd49   :  { %v805_v63 = vsel %vm797_vm12, %v804_v61, %v783_v47 }
 0xd4a   :  { %v824_v0 = vmul.f32 %v816_v51, %v805_v63 }
 0xd4c   :  { %825 = vadd.xlane.f32.xlu1 %v824_v0 }
 0xd54   :  { %159 = vadd.xlane.f32.xlu1 %v158_v5 }
 0xd6c   :  { %v822_v15 = vpop.xlane.xlu0 %821 }
 0xd6d   :  { %v823_v19 = vsel %vm819_vm14, %v822_v15, %v801_v52 }
 0xd6e   :  { %v842_v21 = vmul.f32 %v838_v20, %v823_v19 }
 0xd9b   :  { %v790_v8 = vpop.xlane.xlu1 %789 }
 0xd9c   :  { %v791_v9 = vsel %vm775_vm10, %v790_v8, %v769_v56  ;;  %vm841_vm10 = vcmp.eq.s32.totalorder %v2131_v1, 32 }
 0xd9d   :  { %v810_v10 = vmul.f32 %v794_v36, %v791_v9 }
 0xd9f   :  { %811 = vadd.xlane.f32.xlu2 %v810_v10 }
 0xda3   :  { %v808_v11 = vpop.xlane.xlu1 %807 }
 0xda4   :  { %v809_v12 = vsel %vm797_vm12, %v808_v11, %v787_v59 }
 0xda5   :  { %v828_v14 = vmul.f32 %v816_v51, %v809_v12 }
 0xda7   :  { %829 = vadd.xlane.f32.xlu2 %v828_v14 }
 0xdaf   :  { %843 = vadd.xlane.f32.xlu2 %v842_v21 }
 0xdbf   :  { %v826_v22 = vpop.xlane.xlu1 %825 }
 0xdc0   :  { %v827_v40 = vsel %vm819_vm14, %v826_v22, %v805_v63 }
 0xdc1   :  { %v846_v45 = vmul.f32 %v838_v20, %v827_v40 }
 0xdc7   :  { %v2387_v23 = vpop.xlane.xlu1 %159 }
 0xdc8   :  { %2111 = vrcp.f32 %v2387_v23  ;;  %v175_v26 = vand.u32 2147483648, %v2387_v23  ;;  %vm169_vm2 = vweird.f32 %v2387_v23  ;;  %v173_v28 = vand.u32 2147483647, %v2387_v23 }
 0xdca   :  { %v176_v31 = vor.u32 1.1754944e-38, %v175_v26  ;;  %vm174_vm8 = vcmp.eq.f32.partialorder %v173_v28, 8.507059e+37 }
 0xdce   :  { %v2112_v24 = vpop.eup %2111 }
 0xdcf   :  { %v165_v25 = vmul.f32 %v2112_v24, %v2387_v23  ;;  %vm170_vm3 = vweird.f32 %v2112_v24 }
 0xdd0   :  { %vm171_vm6 = vmor %vm169_vm2, %vm170_vm3  ;;  %vm967_vm3 = vcmp.eq.s32.totalorder %v2131_v1, 27 }
 0xdd1   :  { %v166_v27 = vsub.f32 1.0, %v165_v25 }
 0xdd3   :  { %v167_v30 = vmul.f32 %v2112_v24, %v166_v27 }
 0xdd5   :  { %v168_v32 = vadd.f32 %v2112_v24, %v167_v30 }
 0xdd7   :  { %v172_v34 = vsel %vm171_vm6, %v2112_v24, %v168_v32  ;;  %vm1019_vm6 = vcmp.eq.s32.totalorder %v2131_v1, 25 }
 0xdd8   :  { %v2399_v35 = vsel %vm174_vm8, %v176_v31, %v172_v34 }
 0xdd9   :  { %v178_v36 = vmul.f32 %v2399_v35, %v163_v33 }
 0xddb   :  { %179 = vst [vmem:[#allocation2 + $0x18] sm:$0xff] %v178_v36 }
 0xde2   :  { %v859_v44 = vld [vmem:[#allocation2 + $0x1f] ss:$0 sm:$0xff]  ;;  %v885_v0 = vld [vmem:[#allocation2 + $0x1e] ss:$0 sm:$0xff]  ;;  %v911_v25 = vld [vmem:[#allocation2 + $0x1d] ss:$0 sm:$0xff] }
 0xde3   :  { %v860_v47 = vxor.u32 2147483648, %v859_v44  ;;  %v886_v3 = vxor.u32 2147483648, %v885_v0  ;;  %v912_v28 = vxor.u32 2147483648, %v911_v25  ;;  %v963_v0 = vld [vmem:[#allocation2 + $0x1b] ss:$0 sm:$0xff] }
 0xde4   :  { %v989_v25 = vld [vmem:[#allocation2 + $0x1a] ss:$0 sm:$0xff] }
 0xde5   :  { %v864_v50 = vmul.f32 %v860_v47, %v323_v48 }
 0xe12   :  { %v812_v37 = vpop.xlane.xlu2 %811 }
 0xe13   :  { %v813_v38 = vsel %vm797_vm12, %v812_v37, %v791_v9  ;;  %vm863_vm12 = vcmp.eq.s32.totalorder %v2131_v1, 31 }
 0xe14   :  { %v832_v39 = vmul.f32 %v816_v51, %v813_v38 }
 0xe16   :  { %833 = vadd.xlane.f32.xlu0 %v832_v39 }
 0xe1a   :  { %v830_v41 = vpop.xlane.xlu2 %829 }
 0xe1b   :  { %v831_v42 = vsel %vm819_vm14, %v830_v41, %v809_v12 }
 0xe1c   :  { %v850_v46 = vmul.f32 %v838_v20, %v831_v42 }
 0xe1e   :  { %847 = vadd.xlane.f32.xlu0 %v846_v45  ;;  %851 = vadd.xlane.f32.xlu1 %v850_v46  ;;  %v937_v45 = vld [vmem:[#allocation2 + $0x1c] ss:$0 sm:$0xff] }
 0xe22   :  { %v844_v49 = vpop.xlane.xlu2 %843 }
 0xe23   :  { %v845_v51 = vsel %vm841_vm10, %v844_v49, %v823_v19 }
 0xe24   :  { %v868_v52 = vmul.f32 %v860_v47, %v845_v51 }
 0xe26   :  { %869 = vadd.xlane.f32.xlu1 %v868_v52  ;;  %865 = vadd.xlane.f32.xlu0 %v864_v50 }
 0xe89   :  { %v834_v53 = vpop.xlane.xlu0 %833 }
 0xe8a   :  { %v835_v55 = vsel %vm819_vm14, %v834_v53, %v813_v38  ;;  %vm915_vm14 = vcmp.eq.s32.totalorder %v2131_v1, 29 }
 0xe8b   :  { %v854_v56 = vmul.f32 %v838_v20, %v835_v55 }
 0xe8d   :  { %855 = vadd.xlane.f32.xlu2 %v854_v56 }
 0xe91   :  { %v848_v57 = vpop.xlane.xlu0 %847  ;;  %v852_v58 = vpop.xlane.xlu1 %851 }
 0xe92   :  { %v849_v59 = vsel %vm841_vm10, %v848_v57, %v827_v40  ;;  %v853_v60 = vsel %vm841_vm10, %v852_v58, %v831_v42 }
 0xe93   :  { %v872_v61 = vmul.f32 %v860_v47, %v849_v59  ;;  %v876_v63 = vmul.f32 %v860_v47, %v853_v60 }
 0xe95   :  { %873 = vadd.xlane.f32.xlu2 %v872_v61  ;;  %877 = vadd.xlane.f32.xlu0 %v876_v63 }
 0xe99   :  { %v866_v4 = vpop.xlane.xlu0 %865  ;;  %v870_v5 = vpop.xlane.xlu1 %869 }
 0xe9a   :  { %v867_v8 = vsel %vm863_vm12, %v866_v4, %v323_v48  ;;  %v871_v9 = vsel %vm863_vm12, %v870_v5, %v845_v51  ;;  %v938_v48 = vxor.u32 2147483648, %v937_v45  ;;  %v964_v5 = vxor.u32 2147483648, %v963_v0  ;;  %v1015_v45 = vld [vmem:[#allocation2 + $0x19] ss:$0 sm:$0xff] }
 0xe9b   :  { %v890_v10 = vmul.f32 %v886_v3, %v867_v8  ;;  %v894_v11 = vmul.f32 %v886_v3, %v871_v9  ;;  %v126_v0 = vadd.s32 16, %v2133_v2 }
 0xe9d   :  { %891 = vadd.xlane.f32.xlu2 %v890_v10  ;;  %895 = vadd.xlane.f32.xlu0 %v894_v11  ;;  %vm127_vm8 = vcmp.eq.s32.totalorder %v126_v0, %v2131_v1  ;;  %vm132_vm9 = vcmp.le.s32.totalorder %v126_v0, %v2131_v1 }
 0xf00   :  { %v856_v12 = vpop.xlane.xlu2 %855 }
 0xf01   :  { %v857_v14 = vsel %vm841_vm10, %v856_v12, %v835_v55 }
 0xf02   :  { %v880_v15 = vmul.f32 %v860_v47, %v857_v14 }
 0xf04   :  { %881 = vadd.xlane.f32.xlu1 %v880_v15 }
 0xf08   :  { %v874_v16 = vpop.xlane.xlu2 %873  ;;  %v878_v19 = vpop.xlane.xlu0 %877 }
 0xf09   :  { %v875_v20 = vsel %vm863_vm12, %v874_v16, %v849_v59  ;;  %v879_v21 = vsel %vm863_vm12, %v878_v19, %v853_v60 }
 0xf0a   :  { %v898_v22 = vmul.f32 %v886_v3, %v875_v20  ;;  %v902_v24 = vmul.f32 %v886_v3, %v879_v21 }
 0xf0c   :  { %899 = vadd.xlane.f32.xlu1 %v898_v22  ;;  %903 = vadd.xlane.f32.xlu2 %v902_v24 }
 0xf10   :  { %v892_v26 = vpop.xlane.xlu2 %891  ;;  %v896_v27 = vpop.xlane.xlu0 %895 }
 0xf11   :  { %v893_v30 = vsel %vm889_vm13, %v892_v26, %v867_v8  ;;  %v897_v31 = vsel %vm889_vm13, %v896_v27, %v871_v9 }
 0xf12   :  { %v916_v32 = vmul.f32 %v912_v28, %v893_v30  ;;  %v920_v33 = vmul.f32 %v912_v28, %v897_v31 }
 0xf14   :  { %917 = vadd.xlane.f32.xlu1 %v916_v32  ;;  %921 = vadd.xlane.f32.xlu2 %v920_v33 }
 0xf77   :  { %v882_v34 = vpop.xlane.xlu1 %881 }
 0xf78   :  { %v883_v36 = vsel %vm863_vm12, %v882_v34, %v857_v14 }
 0xf79   :  { %v906_v37 = vmul.f32 %v886_v3, %v883_v36 }
 0xf7b   :  { %907 = vadd.xlane.f32.xlu0 %v906_v37 }
 0xf7f   :  { %v904_v38 = vpop.xlane.xlu2 %903  ;;  %v900_v39 = vpop.xlane.xlu1 %899 }
 0xf80   :  { %v905_v40 = vsel %vm889_vm13, %v904_v38, %v879_v21  ;;  %v901_v41 = vsel %vm889_vm13, %v900_v39, %v875_v20 }
 0xf81   :  { %v928_v42 = vmul.f32 %v912_v28, %v905_v40  ;;  %v924_v44 = vmul.f32 %v912_v28, %v901_v41 }
 0xf83   :  { %929 = vadd.xlane.f32.xlu1 %v928_v42  ;;  %925 = vadd.xlane.f32.xlu0 %v924_v44 }
 0xf87   :  { %v922_v46 = vpop.xlane.xlu2 %921  ;;  %v918_v47 = vpop.xlane.xlu1 %917 }
 0xf88   :  { %v923_v49 = vsel %vm915_vm14, %v922_v46, %v897_v31  ;;  %v919_v50 = vsel %vm915_vm14, %v918_v47, %v893_v30 }
 0xf89   :  { %v946_v51 = vmul.f32 %v938_v48, %v923_v49  ;;  %v942_v52 = vmul.f32 %v938_v48, %v919_v50 }
 0xf8b   :  { %947 = vadd.xlane.f32.xlu1 %v946_v51  ;;  %943 = vadd.xlane.f32.xlu0 %v942_v52 }
 0xfee   :  { %v908_v53 = vpop.xlane.xlu0 %907 }
 0xfef   :  { %v909_v55 = vsel %vm889_vm13, %v908_v53, %v883_v36  ;;  %vm133_vm13 = vmand %vm132_vm9, %vm65_vm1  ;;  %vm1131_vm9 = vcmp.eq.s32.totalorder %v2131_v1, 21 }
 0xff0   :  { %v932_v56 = vmul.f32 %v912_v28, %v909_v55  ;;  %v990_v28 = vxor.u32 2147483648, %v989_v25 }
 0xff2   :  { %933 = vadd.xlane.f32.xlu2 %v932_v56 }
 0xff6   :  { %v926_v57 = vpop.xlane.xlu0 %925  ;;  %v930_v58 = vpop.xlane.xlu1 %929 }
 0xff7   :  { %v927_v59 = vsel %vm915_vm14, %v926_v57, %v901_v41  ;;  %v931_v60 = vsel %vm915_vm14, %v930_v58, %v905_v40 }
 0xff8   :  { %v950_v61 = vmul.f32 %v938_v48, %v927_v59  ;;  %v954_v63 = vmul.f32 %v938_v48, %v931_v60 }
 0xffa   :  { %951 = vadd.xlane.f32.xlu2 %v950_v61  ;;  %955 = vadd.xlane.f32.xlu0 %v954_v63 }
 0xffe   :  { %v944_v3 = vpop.xlane.xlu0 %943  ;;  %v948_v4 = vpop.xlane.xlu1 %947 }
 0xfff   :  { %v945_v8 = vsel %vm941_vm0, %v944_v3, %v919_v50  ;;  %v949_v9 = vsel %vm941_vm0, %v948_v4, %v923_v49  ;;  %v1041_v3 = vld [vmem:[#allocation2 + $0x18] ss:$0 sm:$0xff]  ;;  %v48_v4 = vld [vmem:[%s2994_s0 + $0x10] sm:$0xff] }
0x1000   :  { %v968_v10 = vmul.f32 %v964_v5, %v945_v8  ;;  %v972_v11 = vmul.f32 %v964_v5, %v949_v9 }
0x1002   :  { %969 = vadd.xlane.f32.xlu2 %v968_v10  ;;  %973 = vadd.xlane.f32.xlu0 %v972_v11  ;;  %v129_v10 = vsel %vm127_vm8, %v48_v4, 0.0  ;;  %vm1101_vm8 = vcmp.eq.s32.totalorder %v2131_v1, 22 }
0x1065   :  { %v934_v12 = vpop.xlane.xlu2 %933 }
0x1066   :  { %v935_v14 = vsel %vm915_vm14, %v934_v12, %v909_v55 }
0x1067   :  { %v958_v15 = vmul.f32 %v938_v48, %v935_v14  ;;  %v1016_v48 = vxor.u32 2147483648, %v1015_v45 }
0x1069   :  { %959 = vadd.xlane.f32.xlu1 %v958_v15 }
0x106d   :  { %v952_v16 = vpop.xlane.xlu2 %951  ;;  %v956_v19 = vpop.xlane.xlu0 %955 }
0x106e   :  { %v953_v20 = vsel %vm941_vm0, %v952_v16, %v927_v59  ;;  %v957_v21 = vsel %vm941_vm0, %v956_v19, %v931_v60 }
0x106f   :  { %v976_v22 = vmul.f32 %v964_v5, %v953_v20  ;;  %v980_v24 = vmul.f32 %v964_v5, %v957_v21 }
0x1071   :  { %977 = vadd.xlane.f32.xlu1 %v976_v22  ;;  %981 = vadd.xlane.f32.xlu2 %v980_v24 }
0x1075   :  { %v970_v26 = vpop.xlane.xlu2 %969  ;;  %v974_v27 = vpop.xlane.xlu0 %973 }
0x1076   :  { %v971_v30 = vsel %vm967_vm3, %v970_v26, %v945_v8  ;;  %v975_v31 = vsel %vm967_vm3, %v974_v27, %v949_v9  ;;  %v1042_v8 = vxor.u32 2147483648, %v1041_v3 }
0x1077   :  { %v994_v32 = vmul.f32 %v990_v28, %v971_v30  ;;  %v998_v33 = vmul.f32 %v990_v28, %v975_v31 }
0x1079   :  { %995 = vadd.xlane.f32.xlu1 %v994_v32  ;;  %999 = vadd.xlane.f32.xlu2 %v998_v33 }
0x10dc   :  { %v960_v34 = vpop.xlane.xlu1 %959 }
0x10dd   :  { %v961_v36 = vsel %vm941_vm0, %v960_v34, %v935_v14 }
0x10de   :  { %v984_v37 = vmul.f32 %v964_v5, %v961_v36 }
0x10e0   :  { %985 = vadd.xlane.f32.xlu0 %v984_v37 }
0x10e4   :  { %v982_v38 = vpop.xlane.xlu2 %981  ;;  %v978_v39 = vpop.xlane.xlu1 %977 }
0x10e5   :  { %v983_v40 = vsel %vm967_vm3, %v982_v38, %v957_v21  ;;  %v979_v41 = vsel %vm967_vm3, %v978_v39, %v953_v20  ;;  %v134_v39 = vsel %vm133_vm13, %v48_v4, 0.0  ;;  %vm1191_vm13 = vcmp.eq.s32.totalorder %v2131_v1, 19 }
0x10e6   :  { %v1006_v42 = vmul.f32 %v990_v28, %v983_v40  ;;  %v1002_v44 = vmul.f32 %v990_v28, %v979_v41 }
0x10e8   :  { %1007 = vadd.xlane.f32.xlu1 %v1006_v42  ;;  %1003 = vadd.xlane.f32.xlu0 %v1002_v44 }
0x10ec   :  { %v1000_v46 = vpop.xlane.xlu2 %999  ;;  %v996_v47 = vpop.xlane.xlu1 %995 }
0x10ed   :  { %v1001_v49 = vsel %vm993_vm4, %v1000_v46, %v975_v31  ;;  %v997_v50 = vsel %vm993_vm4, %v996_v47, %v971_v30 }
0x10ee   :  { %v1024_v51 = vmul.f32 %v1016_v48, %v1001_v49  ;;  %v1020_v52 = vmul.f32 %v1016_v48, %v997_v50 }
0x10f0   :  { %1025 = vadd.xlane.f32.xlu1 %v1024_v51  ;;  %1021 = vadd.xlane.f32.xlu0 %v1020_v52 }
0x1153   :  { %v986_v53 = vpop.xlane.xlu0 %985 }
0x1154   :  { %v987_v55 = vsel %vm967_vm3, %v986_v53, %v961_v36  ;;  %vm315_vm3 = vcmp.eq.s32.totalorder %v2131_v1, %v126_v0 }
0x1155   :  { %v1010_v56 = vmul.f32 %v990_v28, %v987_v55  ;;  %v316_v46 = vsel %vm315_vm3, -1.0, %v2120_v7  ;;  %vm1251_vm3 = vcmp.eq.s32.totalorder %v2131_v1, 17 }
0x1157   :  { %1011 = vadd.xlane.f32.xlu2 %v1010_v56 }
0x115b   :  { %v1004_v57 = vpop.xlane.xlu0 %1003  ;;  %v1008_v58 = vpop.xlane.xlu1 %1007 }
0x115c   :  { %v1005_v59 = vsel %vm993_vm4, %v1004_v57, %v979_v41  ;;  %v1009_v60 = vsel %vm993_vm4, %v1008_v58, %v983_v40 }
0x115d   :  { %v1028_v61 = vmul.f32 %v1016_v48, %v1005_v59  ;;  %v1032_v63 = vmul.f32 %v1016_v48, %v1009_v60 }
0x115f   :  { %1029 = vadd.xlane.f32.xlu2 %v1028_v61  ;;  %1033 = vadd.xlane.f32.xlu0 %v1032_v63 }
0x1163   :  { %v1022_v5 = vpop.xlane.xlu0 %1021  ;;  %v1026_v16 = vpop.xlane.xlu1 %1025 }
0x1164   :  { %v1023_v9 = vsel %vm1019_vm6, %v1022_v5, %v997_v50  ;;  %v1027_v19 = vsel %vm1019_vm6, %v1026_v16, %v1001_v49 }
0x1165   :  { %v1046_v11 = vmul.f32 %v1042_v8, %v1023_v9  ;;  %v1050_v26 = vmul.f32 %v1042_v8, %v1027_v19 }
0x1167   :  { %1047 = vadd.xlane.f32.xlu0 %v1046_v11  ;;  %130 = vadd.xlane.f32.xlu2 %v129_v10 }
0x11ca   :  { %v1012_v12 = vpop.xlane.xlu2 %1011 }
0x11cb   :  { %v1013_v14 = vsel %vm993_vm4, %v1012_v12, %v987_v55  ;;  %vm1045_vm4 = vcmp.eq.s32.totalorder %v2131_v1, 24 }
0x11cc   :  { %v1036_v15 = vmul.f32 %v1016_v48, %v1013_v14 }
0x11ce   :  { %1037 = vadd.xlane.f32.xlu1 %v1036_v15 }
0x11d2   :  { %v1030_v20 = vpop.xlane.xlu2 %1029  ;;  %v1034_v21 = vpop.xlane.xlu0 %1033 }
0x11d3   :  { %v1031_v22 = vsel %vm1019_vm6, %v1030_v20, %v1005_v59  ;;  %v1035_v24 = vsel %vm1019_vm6, %v1034_v21, %v1009_v60 }
0x11d4   :  { %v1058_v25 = vmul.f32 %v1042_v8, %v1035_v24  ;;  %v1054_v27 = vmul.f32 %v1042_v8, %v1031_v22 }
0x11d6   :  { %1059 = vadd.xlane.f32.xlu0 %v1058_v25  ;;  %1051 = vadd.xlane.f32.xlu1 %v1050_v26 }
0x11d7   :  { %1055 = vadd.xlane.f32.xlu2 %v1054_v27 }
0x11da   :  { %v2501_v28 = vpop.xlane.xlu2 %130  ;;  %v1048_v44 = vpop.xlane.xlu0 %1047 }
0x11db   :  { %2113 = vrcp.f32 %v2501_v28  ;;  %v146_v32 = vand.u32 2147483648, %v2501_v28  ;;  %vm140_vm10 = vweird.f32 %v2501_v28  ;;  %v144_v34 = vand.u32 2147483647, %v2501_v28 }
0x11dc   :  { %v1049_v48 = vsel %vm1045_vm4, %v1048_v44, %v1023_v9 }
0x11dd   :  { %v147_v37 = vor.u32 1.1754944e-38, %v146_v32  ;;  %vm145_vm0 = vcmp.eq.f32.partialorder %v144_v34, 8.507059e+37 }
0x11e1   :  { %v2114_v30 = vpop.eup %2113 }
0x11e2   :  { %v136_v31 = vmul.f32 %v2114_v30, %v2501_v28  ;;  %vm141_vm12 = vweird.f32 %v2114_v30 }
0x11e3   :  { %vm142_vm14 = vmor %vm140_vm10, %vm141_vm12  ;;  %vm1161_vm12 = vcmp.eq.s32.totalorder %v2131_v1, 20 }
0x11e4   :  { %v137_v33 = vsub.f32 1.0, %v136_v31 }
0x11e6   :  { %v138_v36 = vmul.f32 %v2114_v30, %v137_v33 }
0x11e8   :  { %v139_v38 = vadd.f32 %v2114_v30, %v138_v36 }
0x11ea   :  { %v143_v40 = vsel %vm142_vm14, %v2114_v30, %v139_v38  ;;  %vm1221_vm14 = vcmp.eq.s32.totalorder %v2131_v1, 18 }
0x11eb   :  { %v2513_v41 = vsel %vm145_vm0, %v147_v37, %v143_v40 }
0x11ec   :  { %v149_v42 = vmul.f32 %v2513_v41, %v134_v39 }
0x11ee   :  { %150 = vst [vmem:[#allocation2 + $0x10] sm:$0xff] %v149_v42 }
0x11f5   :  { %v1067_v45 = vld [vmem:[#allocation2 + $0x17] ss:$0 sm:$0xff]  ;;  %v1097_v3 = vld [vmem:[#allocation2 + $0x16] ss:$0 sm:$0xff]  ;;  %v1127_v31 = vld [vmem:[#allocation2 + $0x15] ss:$0 sm:$0xff] }
0x11f6   :  { %v1068_v47 = vxor.u32 2147483648, %v1067_v45  ;;  %v1098_v4 = vxor.u32 2147483648, %v1097_v3  ;;  %v1128_v34 = vxor.u32 2147483648, %v1127_v31 }
0x11f8   :  { %v1076_v49 = vmul.f32 %v1068_v47, %v1049_v48  ;;  %v1072_v50 = vmul.f32 %v1068_v47, %v316_v46 }
0x11fa   :  { %1077 = vadd.xlane.f32.xlu0 %v1076_v49  ;;  %1073 = vadd.xlane.f32.xlu2 %v1072_v50 }
0x1241   :  { %v1038_v51 = vpop.xlane.xlu1 %1037 }
0x1242   :  { %v1039_v52 = vsel %vm1019_vm6, %v1038_v51, %v1013_v14  ;;  %vm1071_vm6 = vcmp.eq.s32.totalorder %v2131_v1, 23 }
0x1243   :  { %v1062_v53 = vmul.f32 %v1042_v8, %v1039_v52 }
0x1245   :  { %1063 = vadd.xlane.f32.xlu1 %v1062_v53 }
0x1249   :  { %v1060_v55 = vpop.xlane.xlu0 %1059  ;;  %v1052_v56 = vpop.xlane.xlu1 %1051 }
0x124a   :  { %v1061_v57 = vsel %vm1045_vm4, %v1060_v55, %v1035_v24  ;;  %v1053_v58 = vsel %vm1045_vm4, %v1052_v56, %v1027_v19  ;;  %v1056_v59 = vpop.xlane.xlu2 %1055  ;;  %v1157_v55 = vld [vmem:[#allocation2 + $0x14] ss:$0 sm:$0xff] }
0x124b   :  { %v1057_v60 = vsel %vm1045_vm4, %v1056_v59, %v1031_v22  ;;  %v1080_v61 = vmul.f32 %v1068_v47, %v1053_v58  ;;  %v1088_v63 = vmul.f32 %v1068_v47, %v1061_v57 }
0x124c   :  { %v1084_v0 = vmul.f32 %v1068_v47, %v1057_v60 }
0x124d   :  { %1081 = vadd.xlane.f32.xlu1 %v1080_v61  ;;  %1089 = vadd.xlane.f32.xlu0 %v1088_v63 }
0x124e   :  { %1085 = vadd.xlane.f32.xlu2 %v1084_v0 }
0x126d   :  { %v1078_v5 = vpop.xlane.xlu0 %1077  ;;  %v1074_v8 = vpop.xlane.xlu2 %1073 }
0x126e   :  { %v1079_v9 = vsel %vm1071_vm6, %v1078_v5, %v1049_v48  ;;  %v1075_v10 = vsel %vm1071_vm6, %v1074_v8, %v316_v46 }
0x126f   :  { %v1106_v11 = vmul.f32 %v1098_v4, %v1079_v9  ;;  %v1102_v12 = vmul.f32 %v1098_v4, %v1075_v10 }
0x1271   :  { %1107 = vadd.xlane.f32.xlu0 %v1106_v11  ;;  %1103 = vadd.xlane.f32.xlu2 %v1102_v12 }
0x12b8   :  { %v1064_v14 = vpop.xlane.xlu1 %1063 }
0x12b9   :  { %v1065_v15 = vsel %vm1045_vm4, %v1064_v14, %v1039_v52 }
0x12ba   :  { %v1092_v16 = vmul.f32 %v1068_v47, %v1065_v15 }
0x12bc   :  { %1093 = vadd.xlane.f32.xlu1 %v1092_v16 }
0x12c0   :  { %v1082_v19 = vpop.xlane.xlu1 %1081  ;;  %v1090_v20 = vpop.xlane.xlu0 %1089 }
0x12c1   :  { %v1083_v21 = vsel %vm1071_vm6, %v1082_v19, %v1053_v58  ;;  %v1091_v22 = vsel %vm1071_vm6, %v1090_v20, %v1061_v57  ;;  %v1086_v24 = vpop.xlane.xlu2 %1085  ;;  %v1158_v58 = vxor.u32 2147483648, %v1157_v55  ;;  %v1187_v19 = vld [vmem:[#allocation2 + $0x13] ss:$0 sm:$0xff] }
0x12c2   :  { %v1087_v25 = vsel %vm1071_vm6, %v1086_v24, %v1057_v60  ;;  %v1110_v26 = vmul.f32 %v1098_v4, %v1083_v21  ;;  %v1118_v27 = vmul.f32 %v1098_v4, %v1091_v22  ;;  %v1188_v20 = vxor.u32 2147483648, %v1187_v19 }
0x12c3   :  { %v1114_v30 = vmul.f32 %v1098_v4, %v1087_v25 }
0x12c4   :  { %1111 = vadd.xlane.f32.xlu1 %v1110_v26  ;;  %1119 = vadd.xlane.f32.xlu0 %v1118_v27 }
0x12c5   :  { %1115 = vadd.xlane.f32.xlu2 %v1114_v30 }
0x12e4   :  { %v1108_v32 = vpop.xlane.xlu0 %1107  ;;  %v1104_v33 = vpop.xlane.xlu2 %1103 }
0x12e5   :  { %v1109_v36 = vsel %vm1101_vm8, %v1108_v32, %v1079_v9  ;;  %v1105_v37 = vsel %vm1101_vm8, %v1104_v33, %v1075_v10 }
0x12e6   :  { %v1136_v38 = vmul.f32 %v1128_v34, %v1109_v36  ;;  %v1132_v39 = vmul.f32 %v1128_v34, %v1105_v37 }
0x12e8   :  { %1137 = vadd.xlane.f32.xlu0 %v1136_v38  ;;  %1133 = vadd.xlane.f32.xlu2 %v1132_v39 }
0x132f   :  { %v1094_v40 = vpop.xlane.xlu1 %1093 }
0x1330   :  { %v1095_v42 = vsel %vm1071_vm6, %v1094_v40, %v1065_v15 }
0x1331   :  { %v1122_v44 = vmul.f32 %v1098_v4, %v1095_v42 }
0x1333   :  { %1123 = vadd.xlane.f32.xlu1 %v1122_v44 }
0x1337   :  { %v1112_v45 = vpop.xlane.xlu1 %1111  ;;  %v1120_v46 = vpop.xlane.xlu0 %1119 }
0x1338   :  { %v1113_v47 = vsel %vm1101_vm8, %v1112_v45, %v1083_v21  ;;  %v1121_v48 = vsel %vm1101_vm8, %v1120_v46, %v1091_v22  ;;  %v1116_v49 = vpop.xlane.xlu2 %1115  ;;  %v1217_v45 = vld [vmem:[#allocation2 + $0x12] ss:$0 sm:$0xff] }
0x1339   :  { %v1117_v50 = vsel %vm1101_vm8, %v1116_v49, %v1087_v25  ;;  %v1140_v51 = vmul.f32 %v1128_v34, %v1113_v47  ;;  %v1148_v52 = vmul.f32 %v1128_v34, %v1121_v48  ;;  %v1218_v46 = vxor.u32 2147483648, %v1217_v45 }
0x133a   :  { %v1144_v53 = vmul.f32 %v1128_v34, %v1117_v50 }
0x133b   :  { %1141 = vadd.xlane.f32.xlu1 %v1140_v51  ;;  %1149 = vadd.xlane.f32.xlu0 %v1148_v52 }
0x133c   :  { %1145 = vadd.xlane.f32.xlu2 %v1144_v53 }
0x135b   :  { %v1138_v56 = vpop.xlane.xlu0 %1137  ;;  %v1134_v57 = vpop.xlane.xlu2 %1133 }
0x135c   :  { %v1139_v59 = vsel %vm1131_vm9, %v1138_v56, %v1109_v36  ;;  %v1135_v60 = vsel %vm1131_vm9, %v1134_v57, %v1105_v37 }
0x135d   :  { %v1166_v61 = vmul.f32 %v1158_v58, %v1139_v59  ;;  %v1162_v63 = vmul.f32 %v1158_v58, %v1135_v60 }
0x135f   :  { %1167 = vadd.xlane.f32.xlu0 %v1166_v61  ;;  %1163 = vadd.xlane.f32.xlu2 %v1162_v63 }
0x13a6   :  { %v1124_v0 = vpop.xlane.xlu1 %1123 }
0x13a7   :  { %v1125_v3 = vsel %vm1101_vm8, %v1124_v0, %v1095_v42 }
0x13a8   :  { %v1152_v4 = vmul.f32 %v1128_v34, %v1125_v3 }
0x13aa   :  { %1153 = vadd.xlane.f32.xlu1 %v1152_v4 }
0x13ae   :  { %v1142_v5 = vpop.xlane.xlu1 %1141  ;;  %v1150_v8 = vpop.xlane.xlu0 %1149 }
0x13af   :  { %v1143_v9 = vsel %vm1131_vm9, %v1142_v5, %v1113_v47  ;;  %v1151_v10 = vsel %vm1131_vm9, %v1150_v8, %v1121_v48  ;;  %v1146_v11 = vpop.xlane.xlu2 %1145  ;;  %v1247_v5 = vld [vmem:[#allocation2 + $0x11] ss:$0 sm:$0xff] }
0x13b0   :  { %v1178_v12 = vmul.f32 %v1158_v58, %v1151_v10  ;;  %v1147_v14 = vsel %vm1131_vm9, %v1146_v11, %v1117_v50  ;;  %v1170_v15 = vmul.f32 %v1158_v58, %v1143_v9  ;;  %v1248_v8 = vxor.u32 2147483648, %v1247_v5 }
0x13b1   :  { %v1174_v16 = vmul.f32 %v1158_v58, %v1147_v14 }
0x13b2   :  { %1171 = vadd.xlane.f32.xlu1 %v1170_v15  ;;  %1179 = vadd.xlane.f32.xlu0 %v1178_v12 }
0x13b3   :  { %1175 = vadd.xlane.f32.xlu2 %v1174_v16 }
0x13d2   :  { %v1168_v21 = vpop.xlane.xlu0 %1167  ;;  %v1164_v22 = vpop.xlane.xlu2 %1163 }
0x13d3   :  { %v1169_v24 = vsel %vm1161_vm12, %v1168_v21, %v1139_v59  ;;  %v1165_v25 = vsel %vm1161_vm12, %v1164_v22, %v1135_v60 }
0x13d4   :  { %v1196_v26 = vmul.f32 %v1188_v20, %v1169_v24  ;;  %v1192_v27 = vmul.f32 %v1188_v20, %v1165_v25 }
0x13d6   :  { %1197 = vadd.xlane.f32.xlu0 %v1196_v26  ;;  %1193 = vadd.xlane.f32.xlu2 %v1192_v27 }
0x141d   :  { %v1154_v30 = vpop.xlane.xlu1 %1153 }
0x141e   :  { %v1155_v31 = vsel %vm1131_vm9, %v1154_v30, %v1125_v3 }
0x141f   :  { %v1182_v32 = vmul.f32 %v1158_v58, %v1155_v31 }
0x1421   :  { %1183 = vadd.xlane.f32.xlu1 %v1182_v32 }
0x1425   :  { %v1172_v33 = vpop.xlane.xlu1 %1171  ;;  %v1180_v34 = vpop.xlane.xlu0 %1179 }
0x1426   :  { %v1173_v36 = vsel %vm1161_vm12, %v1172_v33, %v1143_v9  ;;  %v1181_v37 = vsel %vm1161_vm12, %v1180_v34, %v1151_v10  ;;  %v1176_v38 = vpop.xlane.xlu2 %1175  ;;  %v97_v33 = vadd.s32 8, %v2133_v2  ;;  %v46_v34 = vld [vmem:[%s2994_s0 + $0x8] sm:$0xff] }
0x1427   :  { %v1200_v39 = vmul.f32 %v1188_v20, %v1173_v36  ;;  %v1208_v40 = vmul.f32 %v1188_v20, %v1181_v37  ;;  %v1177_v42 = vsel %vm1161_vm12, %v1176_v38, %v1147_v14 }
0x1428   :  { %v1204_v44 = vmul.f32 %v1188_v20, %v1177_v42  ;;  %vm98_vm0 = vcmp.eq.s32.totalorder %v97_v33, %v2131_v1  ;;  %vm103_vm4 = vcmp.le.s32.totalorder %v97_v33, %v2131_v1 }
0x1429   :  { %1201 = vadd.xlane.f32.xlu1 %v1200_v39  ;;  %1209 = vadd.xlane.f32.xlu0 %v1208_v40  ;;  %vm104_vm9 = vmand %vm103_vm4, %vm65_vm1  ;;  %vm1345_vm4 = vcmp.eq.s32.totalorder %v2131_v1, 14 }
0x142a   :  { %1205 = vadd.xlane.f32.xlu2 %v1204_v44 }
0x1449   :  { %v1198_v47 = vpop.xlane.xlu0 %1197  ;;  %v1194_v48 = vpop.xlane.xlu2 %1193 }
0x144a   :  { %v1199_v49 = vsel %vm1191_vm13, %v1198_v47, %v1169_v24  ;;  %v1195_v50 = vsel %vm1191_vm13, %v1194_v48, %v1165_v25 }
0x144b   :  { %v1226_v51 = vmul.f32 %v1218_v46, %v1199_v49  ;;  %v1222_v52 = vmul.f32 %v1218_v46, %v1195_v50 }
0x144d   :  { %1227 = vadd.xlane.f32.xlu0 %v1226_v51  ;;  %1223 = vadd.xlane.f32.xlu2 %v1222_v52 }
0x1494   :  { %v1184_v53 = vpop.xlane.xlu1 %1183 }
0x1495   :  { %v1185_v55 = vsel %vm1161_vm12, %v1184_v53, %v1155_v31 }
0x1496   :  { %v1212_v56 = vmul.f32 %v1188_v20, %v1185_v55 }
0x1498   :  { %1213 = vadd.xlane.f32.xlu1 %v1212_v56 }
0x149c   :  { %v1202_v57 = vpop.xlane.xlu1 %1201  ;;  %v1210_v58 = vpop.xlane.xlu0 %1209 }
0x149d   :  { %v1203_v59 = vsel %vm1191_vm13, %v1202_v57, %v1173_v36  ;;  %v1211_v60 = vsel %vm1191_vm13, %v1210_v58, %v1181_v37  ;;  %v1206_v61 = vpop.xlane.xlu2 %1205  ;;  %v100_v36 = vsel %vm98_vm0, %v46_v34, 0.0  ;;  %v1277_v37 = vld [vmem:[#allocation2 + $0x10] ss:$0 sm:$0xff]  ;;  %vm1281_vm0 = vcmp.eq.s32.totalorder %v2131_v1, 16 }
0x149e   :  { %v1230_v63 = vmul.f32 %v1218_v46, %v1203_v59  ;;  %v1238_v0 = vmul.f32 %v1218_v46, %v1211_v60  ;;  %v1207_v3 = vsel %vm1191_vm13, %v1206_v61, %v1177_v42  ;;  %v1278_v38 = vxor.u32 2147483648, %v1277_v37 }
0x149f   :  { %v1234_v4 = vmul.f32 %v1218_v46, %v1207_v3 }
0x14a0   :  { %1231 = vadd.xlane.f32.xlu1 %v1230_v63  ;;  %1239 = vadd.xlane.f32.xlu0 %v1238_v0 }
0x14a1   :  { %1235 = vadd.xlane.f32.xlu2 %v1234_v4 }
0x14c0   :  { %v1228_v9 = vpop.xlane.xlu0 %1227  ;;  %v1224_v10 = vpop.xlane.xlu2 %1223 }
0x14c1   :  { %v1229_v11 = vsel %vm1221_vm14, %v1228_v9, %v1199_v49  ;;  %v1225_v12 = vsel %vm1221_vm14, %v1224_v10, %v1195_v50  ;;  %v105_v10 = vsel %vm104_vm9, %v46_v34, 0.0  ;;  %vm1413_vm9 = vcmp.eq.s32.totalorder %v2131_v1, 12 }
0x14c2   :  { %v1256_v14 = vmul.f32 %v1248_v8, %v1229_v11  ;;  %v1252_v15 = vmul.f32 %v1248_v8, %v1225_v12 }
0x14c4   :  { %1257 = vadd.xlane.f32.xlu0 %v1256_v14  ;;  %1253 = vadd.xlane.f32.xlu2 %v1252_v15 }
0x150b   :  { %v1214_v16 = vpop.xlane.xlu1 %1213 }
0x150c   :  { %v1215_v19 = vsel %vm1191_vm13, %v1214_v16, %v1185_v55 }
0x150d   :  { %v1242_v20 = vmul.f32 %v1218_v46, %v1215_v19 }
0x150f   :  { %1243 = vadd.xlane.f32.xlu1 %v1242_v20 }
0x1513   :  { %v1232_v21 = vpop.xlane.xlu1 %1231  ;;  %v1240_v22 = vpop.xlane.xlu0 %1239 }
0x1514   :  { %v1233_v24 = vsel %vm1221_vm14, %v1232_v21, %v1203_v59  ;;  %v1241_v25 = vsel %vm1221_vm14, %v1240_v22, %v1211_v60  ;;  %v1236_v26 = vpop.xlane.xlu2 %1235 }
0x1515   :  { %v1260_v27 = vmul.f32 %v1248_v8, %v1233_v24  ;;  %v1268_v30 = vmul.f32 %v1248_v8, %v1241_v25  ;;  %v1237_v31 = vsel %vm1221_vm14, %v1236_v26, %v1207_v3 }
0x1516   :  { %v1264_v32 = vmul.f32 %v1248_v8, %v1237_v31 }
0x1517   :  { %1261 = vadd.xlane.f32.xlu1 %v1260_v27  ;;  %1269 = vadd.xlane.f32.xlu0 %v1268_v30 }
0x1518   :  { %1265 = vadd.xlane.f32.xlu2 %v1264_v32 }
0x1520   :  { %101 = vadd.xlane.f32.xlu2 %v100_v36 }
0x1537   :  { %v1254_v39 = vpop.xlane.xlu2 %1253  ;;  %v1258_v47 = vpop.xlane.xlu0 %1257 }
0x1538   :  { %v1255_v40 = vsel %vm1251_vm3, %v1254_v39, %v1225_v12  ;;  %v1259_v48 = vsel %vm1251_vm3, %v1258_v47, %v1229_v11 }
0x1539   :  { %v1282_v42 = vmul.f32 %v1278_v38, %v1255_v40  ;;  %v1286_v52 = vmul.f32 %v1278_v38, %v1259_v48 }
0x153b   :  { %1283 = vadd.xlane.f32.xlu0 %v1282_v42 }
0x1582   :  { %v1244_v44 = vpop.xlane.xlu1 %1243 }
0x1583   :  { %v1245_v45 = vsel %vm1221_vm14, %v1244_v44, %v1215_v19  ;;  %vm308_vm14 = vcmp.eq.s32.totalorder %v2131_v1, %v97_v33 }
0x1584   :  { %v1272_v46 = vmul.f32 %v1248_v8, %v1245_v45  ;;  %v309_v19 = vsel %vm308_vm14, -1.0, %v2120_v7  ;;  %vm69_vm14 = vcmp.eq.s32.totalorder %v2133_v2, %v2131_v1 }
0x1586   :  { %1273 = vadd.xlane.f32.xlu1 %v1272_v46 }
0x158a   :  { %v1262_v49 = vpop.xlane.xlu1 %1261  ;;  %v1270_v57 = vpop.xlane.xlu0 %1269 }
0x158b   :  { %v1263_v50 = vsel %vm1251_vm3, %v1262_v49, %v1233_v24  ;;  %v1266_v51 = vpop.xlane.xlu2 %1265  ;;  %v1271_v58 = vsel %vm1251_vm3, %v1270_v57, %v1241_v25 }
0x158c   :  { %v1290_v53 = vmul.f32 %v1278_v38, %v1263_v50  ;;  %v1267_v55 = vsel %vm1251_vm3, %v1266_v51, %v1237_v31  ;;  %v1298_v60 = vmul.f32 %v1278_v38, %v1271_v58 }
0x158d   :  { %v1294_v56 = vmul.f32 %v1278_v38, %v1267_v55 }
0x158e   :  { %1287 = vadd.xlane.f32.xlu1 %v1286_v52  ;;  %1291 = vadd.xlane.f32.xlu2 %v1290_v53 }
0x158f   :  { %1295 = vadd.xlane.f32.xlu0 %v1294_v56 }
0x1593   :  { %v2625_v59 = vpop.xlane.xlu2 %101 }
0x1594   :  { %2115 = vrcp.f32 %v2625_v59  ;;  %v117_v0 = vand.u32 2147483648, %v2625_v59  ;;  %vm111_vm6 = vweird.f32 %v2625_v59  ;;  %v115_v4 = vand.u32 2147483647, %v2625_v59 }
0x1596   :  { %1299 = vadd.xlane.f32.xlu1 %v1298_v60  ;;  %v118_v8 = vor.u32 1.1754944e-38, %v117_v0  ;;  %vm116_vm13 = vcmp.eq.f32.partialorder %v115_v4, 8.507059e+37 }
0x159a   :  { %v2116_v61 = vpop.eup %2115 }
0x159b   :  { %v107_v63 = vmul.f32 %v2116_v61, %v2625_v59  ;;  %vm112_vm8 = vweird.f32 %v2116_v61 }
0x159c   :  { %vm113_vm12 = vmor %vm111_vm6, %vm112_vm8  ;;  %vm1379_vm8 = vcmp.eq.s32.totalorder %v2131_v1, 13 }
0x159d   :  { %v108_v3 = vsub.f32 1.0, %v107_v63 }
0x159f   :  { %v109_v5 = vmul.f32 %v2116_v61, %v108_v3 }
0x15a1   :  { %v110_v9 = vadd.f32 %v2116_v61, %v109_v5 }
0x15a3   :  { %v114_v11 = vsel %vm113_vm12, %v2116_v61, %v110_v9  ;;  %vm1447_vm12 = vcmp.eq.s32.totalorder %v2131_v1, 11 }
0x15a4   :  { %v2637_v12 = vsel %vm116_vm13, %v118_v8, %v114_v11  ;;  %vm1481_vm13 = vcmp.eq.s32.totalorder %v2131_v1, 10 }
0x15a5   :  { %v120_v14 = vmul.f32 %v2637_v12, %v105_v10 }
0x15a7   :  { %121 = vst [vmem:[#allocation2 + $0x8] sm:$0xff] %v120_v14 }
0x15ae   :  { %v1284_v15 = vpop.xlane.xlu0 %1283  ;;  %v1307_v16 = vld [vmem:[#allocation2 + $0xf] ss:$0 sm:$0xff]  ;;  %v1375_v11 = vld [vmem:[#allocation2 + $0xd] ss:$0 sm:$0xff] }
0x15af   :  { %v1285_v20 = vsel %vm1281_vm0, %v1284_v15, %v1255_v40  ;;  %v1308_v21 = vxor.u32 2147483648, %v1307_v16  ;;  %v1376_v14 = vxor.u32 2147483648, %v1375_v11 }
0x15b1   :  { %v1316_v22 = vmul.f32 %v1308_v21, %v1285_v20  ;;  %v1312_v24 = vmul.f32 %v1308_v21, %v309_v19 }
0x15b3   :  { %1317 = vadd.xlane.f32.xlu1 %v1316_v22  ;;  %1313 = vadd.xlane.f32.xlu0 %v1312_v24 }
0x15f9   :  { %v1274_v25 = vpop.xlane.xlu1 %1273 }
0x15fa   :  { %v1275_v26 = vsel %vm1251_vm3, %v1274_v25, %v1245_v45  ;;  %v1341_v45 = vld [vmem:[#allocation2 + $0xe] ss:$0 sm:$0xff]  ;;  %vm1311_vm3 = vcmp.eq.s32.totalorder %v2131_v1, 15 }
0x15fb   :  { %v1302_v27 = vmul.f32 %v1278_v38, %v1275_v26  ;;  %v1342_v46 = vxor.u32 2147483648, %v1341_v45 }
0x15fd   :  { %1303 = vadd.xlane.f32.xlu2 %v1302_v27 }
0x1601   :  { %v1288_v30 = vpop.xlane.xlu1 %1287  ;;  %v1292_v31 = vpop.xlane.xlu2 %1291 }
0x1602   :  { %v1289_v32 = vsel %vm1281_vm0, %v1288_v30, %v1259_v48  ;;  %v1296_v33 = vpop.xlane.xlu0 %1295  ;;  %v1293_v34 = vsel %vm1281_vm0, %v1292_v31, %v1263_v50 }
0x1603   :  { %v1320_v36 = vmul.f32 %v1308_v21, %v1289_v32  ;;  %v1297_v37 = vsel %vm1281_vm0, %v1296_v33, %v1267_v55  ;;  %v1324_v39 = vmul.f32 %v1308_v21, %v1293_v34 }
0x1604   :  { %v1328_v40 = vmul.f32 %v1308_v21, %v1297_v37 }
0x1605   :  { %1321 = vadd.xlane.f32.xlu2 %v1320_v36  ;;  %1325 = vadd.xlane.f32.xlu0 %v1324_v39 }
0x1606   :  { %1329 = vadd.xlane.f32.xlu1 %v1328_v40 }
0x1609   :  { %v1300_v38 = vpop.xlane.xlu1 %1299 }
0x160a   :  { %v1301_v42 = vsel %vm1281_vm0, %v1300_v38, %v1271_v58 }
0x160b   :  { %v1332_v44 = vmul.f32 %v1308_v21, %v1301_v42 }
0x160d   :  { %1333 = vadd.xlane.f32.xlu2 %v1332_v44  ;;  %v1409_v44 = vld [vmem:[#allocation2 + $0xc] ss:$0 sm:$0xff] }
0x160e   :  { %v1410_v45 = vxor.u32 2147483648, %v1409_v44 }
0x1626   :  { %v1318_v47 = vpop.xlane.xlu1 %1317  ;;  %v1314_v48 = vpop.xlane.xlu0 %1313 }
0x1627   :  { %v1319_v49 = vsel %vm1311_vm3, %v1318_v47, %v1285_v20  ;;  %v1315_v50 = vsel %vm1311_vm3, %v1314_v48, %v309_v19 }
0x1628   :  { %v1350_v51 = vmul.f32 %v1342_v46, %v1319_v49  ;;  %v1346_v52 = vmul.f32 %v1342_v46, %v1315_v50 }
0x162a   :  { %1351 = vadd.xlane.f32.xlu2 %v1350_v51  ;;  %1347 = vadd.xlane.f32.xlu1 %v1346_v52 }
0x1670   :  { %v1304_v53 = vpop.xlane.xlu2 %1303 }
0x1671   :  { %v1305_v55 = vsel %vm1281_vm0, %v1304_v53, %v1275_v26  ;;  %vm1515_vm0 = vcmp.eq.s32.totalorder %v2131_v1, 9 }
0x1672   :  { %v1336_v56 = vmul.f32 %v1308_v21, %v1305_v55 }
0x1674   :  { %1337 = vadd.xlane.f32.xlu0 %v1336_v56 }
0x1678   :  { %v1326_v57 = vpop.xlane.xlu0 %1325  ;;  %v1322_v58 = vpop.xlane.xlu2 %1321 }
0x1679   :  { %v1330_v60 = vpop.xlane.xlu1 %1329  ;;  %v1327_v61 = vsel %vm1311_vm3, %v1326_v57, %v1293_v34  ;;  %v1323_v63 = vsel %vm1311_vm3, %v1322_v58, %v1289_v32 }
0x167a   :  { %v1331_v0 = vsel %vm1311_vm3, %v1330_v60, %v1297_v37  ;;  %v1358_v3 = vmul.f32 %v1342_v46, %v1327_v61  ;;  %v1354_v4 = vmul.f32 %v1342_v46, %v1323_v63 }
0x167b   :  { %v1362_v5 = vmul.f32 %v1342_v46, %v1331_v0 }
0x167c   :  { %1359 = vadd.xlane.f32.xlu1 %v1358_v3  ;;  %1355 = vadd.xlane.f32.xlu0 %v1354_v4 }
0x167d   :  { %1363 = vadd.xlane.f32.xlu2 %v1362_v5 }
0x1680   :  { %v1334_v8 = vpop.xlane.xlu2 %1333 }
0x1681   :  { %v1335_v9 = vsel %vm1311_vm3, %v1334_v8, %v1301_v42 }
0x1682   :  { %v1366_v10 = vmul.f32 %v1342_v46, %v1335_v9 }
0x1684   :  { %1367 = vadd.xlane.f32.xlu0 %v1366_v10  ;;  %v1443_v10 = vld [vmem:[#allocation2 + $0xb] ss:$0 sm:$0xff] }
0x1685   :  { %v1444_v11 = vxor.u32 2147483648, %v1443_v10 }
0x169d   :  { %v1348_v15 = vpop.xlane.xlu1 %1347  ;;  %v1352_v16 = vpop.xlane.xlu2 %1351 }
0x169e   :  { %v1349_v19 = vsel %vm1345_vm4, %v1348_v15, %v1315_v50  ;;  %v1353_v20 = vsel %vm1345_vm4, %v1352_v16, %v1319_v49 }
0x169f   :  { %v1380_v21 = vmul.f32 %v1376_v14, %v1349_v19  ;;  %v1384_v22 = vmul.f32 %v1376_v14, %v1353_v20 }
0x16a1   :  { %1381 = vadd.xlane.f32.xlu2 %v1380_v21  ;;  %1385 = vadd.xlane.f32.xlu0 %v1384_v22 }
0x16e7   :  { %v1338_v24 = vpop.xlane.xlu0 %1337 }
0x16e8   :  { %v1339_v25 = vsel %vm1311_vm3, %v1338_v24, %v1305_v55  ;;  %vm74_vm3 = vcmp.le.s32.totalorder %v2133_v2, %v2131_v1 }
0x16e9   :  { %v1370_v26 = vmul.f32 %v1342_v46, %v1339_v25 }
0x16eb   :  { %1371 = vadd.xlane.f32.xlu1 %v1370_v26 }
0x16ef   :  { %v1360_v27 = vpop.xlane.xlu1 %1359  ;;  %v1356_v30 = vpop.xlane.xlu0 %1355 }
0x16f0   :  { %v1361_v31 = vsel %vm1345_vm4, %v1360_v27, %v1327_v61  ;;  %v1357_v32 = vsel %vm1345_vm4, %v1356_v30, %v1323_v63  ;;  %v1364_v33 = vpop.xlane.xlu2 %1363 }
0x16f1   :  { %v1392_v34 = vmul.f32 %v1376_v14, %v1361_v31  ;;  %v1388_v36 = vmul.f32 %v1376_v14, %v1357_v32  ;;  %v1365_v37 = vsel %vm1345_vm4, %v1364_v33, %v1331_v0 }
0x16f2   :  { %v1396_v39 = vmul.f32 %v1376_v14, %v1365_v37 }
0x16f3   :  { %1393 = vadd.xlane.f32.xlu2 %v1392_v34  ;;  %1389 = vadd.xlane.f32.xlu1 %v1388_v36 }
0x16f4   :  { %1397 = vadd.xlane.f32.xlu0 %v1396_v39 }
0x16f7   :  { %v1368_v40 = vpop.xlane.xlu0 %1367 }
0x16f8   :  { %v1369_v38 = vsel %vm1345_vm4, %v1368_v40, %v1335_v9 }
0x16f9   :  { %v1400_v42 = vmul.f32 %v1376_v14, %v1369_v38 }
0x16fb   :  { %1401 = vadd.xlane.f32.xlu1 %v1400_v42  ;;  %v1477_v42 = vld [vmem:[#allocation2 + $0xa] ss:$0 sm:$0xff] }
0x16fc   :  { %v1478_v44 = vxor.u32 2147483648, %v1477_v42 }
0x1714   :  { %v1386_v46 = vpop.xlane.xlu0 %1385  ;;  %v1382_v47 = vpop.xlane.xlu2 %1381 }
0x1715   :  { %v1387_v48 = vsel %vm1379_vm8, %v1386_v46, %v1353_v20  ;;  %v1383_v49 = vsel %vm1379_vm8, %v1382_v47, %v1349_v19 }
0x1716   :  { %v1418_v50 = vmul.f32 %v1410_v45, %v1387_v48  ;;  %v1414_v51 = vmul.f32 %v1410_v45, %v1383_v49 }
0x1718   :  { %1419 = vadd.xlane.f32.xlu1 %v1418_v50  ;;  %1415 = vadd.xlane.f32.xlu0 %v1414_v51 }
0x175e   :  { %v1372_v52 = vpop.xlane.xlu1 %1371 }
0x175f   :  { %v1373_v53 = vsel %vm1345_vm4, %v1372_v52, %v1339_v25 }
0x1760   :  { %v1404_v55 = vmul.f32 %v1376_v14, %v1373_v53 }
0x1762   :  { %1405 = vadd.xlane.f32.xlu2 %v1404_v55 }
0x1766   :  { %v1390_v56 = vpop.xlane.xlu1 %1389  ;;  %v1394_v57 = vpop.xlane.xlu2 %1393 }
0x1767   :  { %v1391_v58 = vsel %vm1379_vm8, %v1390_v56, %v1357_v32  ;;  %v1398_v60 = vpop.xlane.xlu0 %1397  ;;  %v1395_v61 = vsel %vm1379_vm8, %v1394_v57, %v1361_v31 }
0x1768   :  { %v1422_v63 = vmul.f32 %v1410_v45, %v1391_v58  ;;  %v1399_v0 = vsel %vm1379_vm8, %v1398_v60, %v1365_v37  ;;  %v1426_v3 = vmul.f32 %v1410_v45, %v1395_v61 }
0x1769   :  { %v1430_v4 = vmul.f32 %v1410_v45, %v1399_v0 }
0x176a   :  { %1423 = vadd.xlane.f32.xlu2 %v1422_v63  ;;  %1427 = vadd.xlane.f32.xlu0 %v1426_v3 }
0x176b   :  { %1431 = vadd.xlane.f32.xlu1 %v1430_v4 }
0x176e   :  { %v1402_v5 = vpop.xlane.xlu1 %1401 }
0x176f   :  { %v1403_v8 = vsel %vm1379_vm8, %v1402_v5, %v1369_v38 }
0x1770   :  { %v1434_v9 = vmul.f32 %v1410_v45, %v1403_v8 }
0x1772   :  { %1435 = vadd.xlane.f32.xlu2 %v1434_v9  ;;  %v1511_v9 = vld [vmem:[#allocation2 + $0x9] ss:$0 sm:$0xff] }
0x1773   :  { %v1512_v10 = vxor.u32 2147483648, %v1511_v9 }
0x178b   :  { %v1420_v14 = vpop.xlane.xlu1 %1419  ;;  %v1416_v15 = vpop.xlane.xlu0 %1415 }
0x178c   :  { %v1421_v16 = vsel %vm1413_vm9, %v1420_v14, %v1387_v48  ;;  %v1417_v19 = vsel %vm1413_vm9, %v1416_v15, %v1383_v49 }
0x178d   :  { %v1452_v20 = vmul.f32 %v1444_v11, %v1421_v16  ;;  %v1448_v21 = vmul.f32 %v1444_v11, %v1417_v19 }
0x178f   :  { %1453 = vadd.xlane.f32.xlu2 %v1452_v20  ;;  %1449 = vadd.xlane.f32.xlu1 %v1448_v21 }
0x17d5   :  { %v1406_v22 = vpop.xlane.xlu2 %1405 }
0x17d6   :  { %v1407_v24 = vsel %vm1379_vm8, %v1406_v22, %v1373_v53 }
0x17d7   :  { %v1438_v25 = vmul.f32 %v1410_v45, %v1407_v24 }
0x17d9   :  { %1439 = vadd.xlane.f32.xlu0 %v1438_v25 }
0x17dd   :  { %v1428_v26 = vpop.xlane.xlu0 %1427  ;;  %v1424_v27 = vpop.xlane.xlu2 %1423 }
0x17de   :  { %v1432_v30 = vpop.xlane.xlu1 %1431  ;;  %v1429_v31 = vsel %vm1413_vm9, %v1428_v26, %v1395_v61  ;;  %v1425_v32 = vsel %vm1413_vm9, %v1424_v27, %v1391_v58 }
0x17df   :  { %v1433_v33 = vsel %vm1413_vm9, %v1432_v30, %v1399_v0  ;;  %v1460_v34 = vmul.f32 %v1444_v11, %v1429_v31  ;;  %v1456_v36 = vmul.f32 %v1444_v11, %v1425_v32 }
0x17e0   :  { %v1464_v37 = vmul.f32 %v1444_v11, %v1433_v33 }
0x17e1   :  { %1461 = vadd.xlane.f32.xlu1 %v1460_v34  ;;  %1457 = vadd.xlane.f32.xlu0 %v1456_v36 }
0x17e2   :  { %1465 = vadd.xlane.f32.xlu2 %v1464_v37  ;;  %v44_v37 = vld [vmem:[%s2994_s0] sm:$0xff] }
0x17e3   :  { %v71_v42 = vsel %vm69_vm14, %v44_v37, 0.0  ;;  %vm301_vm14 = vcmp.eq.s32.totalorder %v2131_v1, %v2133_v2 }
0x17e5   :  { %v1436_v39 = vpop.xlane.xlu2 %1435 }
0x17e6   :  { %v1437_v40 = vsel %vm1413_vm9, %v1436_v39, %v1403_v8 }
0x17e7   :  { %v1468_v38 = vmul.f32 %v1444_v11, %v1437_v40 }
0x17e9   :  { %1469 = vadd.xlane.f32.xlu0 %v1468_v38 }
0x1802   :  { %v1450_v45 = vpop.xlane.xlu1 %1449  ;;  %v1454_v46 = vpop.xlane.xlu2 %1453 }
0x1803   :  { %v1451_v47 = vsel %vm1447_vm12, %v1450_v45, %v1417_v19  ;;  %v1455_v48 = vsel %vm1447_vm12, %v1454_v46, %v1421_v16 }
0x1804   :  { %v1482_v49 = vmul.f32 %v1478_v44, %v1451_v47  ;;  %v1486_v50 = vmul.f32 %v1478_v44, %v1455_v48 }
0x1806   :  { %1483 = vadd.xlane.f32.xlu2 %v1482_v49  ;;  %1487 = vadd.xlane.f32.xlu0 %v1486_v50 }
0x184c   :  { %v1440_v51 = vpop.xlane.xlu0 %1439 }
0x184d   :  { %v1441_v52 = vsel %vm1413_vm9, %v1440_v51, %v1407_v24  ;;  %vm75_vm9 = vmand %vm74_vm3, %vm65_vm1  ;;  %vm1583_vm1 = vcmp.eq.s32.totalorder %v2131_v1, 7  ;;  %vm1697_vm3 = vcmp.eq.s32.totalorder %v2131_v1, 4 }
0x184e   :  { %v1472_v53 = vmul.f32 %v1444_v11, %v1441_v52 }
0x1850   :  { %1473 = vadd.xlane.f32.xlu1 %v1472_v53 }
0x1854   :  { %v1462_v55 = vpop.xlane.xlu1 %1461  ;;  %v1458_v56 = vpop.xlane.xlu0 %1457 }
0x1855   :  { %v1463_v57 = vsel %vm1447_vm12, %v1462_v55, %v1429_v31  ;;  %v1459_v58 = vsel %vm1447_vm12, %v1458_v56, %v1425_v32  ;;  %v1466_v60 = vpop.xlane.xlu2 %1465 }
0x1856   :  { %v1494_v61 = vmul.f32 %v1478_v44, %v1463_v57  ;;  %v1490_v63 = vmul.f32 %v1478_v44, %v1459_v58  ;;  %v1467_v0 = vsel %vm1447_vm12, %v1466_v60, %v1433_v33 }
0x1857   :  { %v1498_v3 = vmul.f32 %v1478_v44, %v1467_v0 }
0x1858   :  { %1495 = vadd.xlane.f32.xlu2 %v1494_v61  ;;  %1491 = vadd.xlane.f32.xlu1 %v1490_v63 }
0x1859   :  { %1499 = vadd.xlane.f32.xlu0 %v1498_v3 }
0x185c   :  { %v1470_v4 = vpop.xlane.xlu0 %1469 }
0x185d   :  { %v1471_v5 = vsel %vm1447_vm12, %v1470_v4, %v1437_v40 }
0x185e   :  { %v1502_v8 = vmul.f32 %v1478_v44, %v1471_v5 }
0x1860   :  { %1503 = vadd.xlane.f32.xlu1 %v1502_v8 }
0x1879   :  { %v1488_v11 = vpop.xlane.xlu0 %1487  ;;  %v1484_v14 = vpop.xlane.xlu2 %1483 }
0x187a   :  { %v1489_v15 = vsel %vm1481_vm13, %v1488_v11, %v1455_v48  ;;  %v1485_v16 = vsel %vm1481_vm13, %v1484_v14, %v1451_v47 }
0x187b   :  { %v1520_v19 = vmul.f32 %v1512_v10, %v1489_v15  ;;  %v1516_v20 = vmul.f32 %v1512_v10, %v1485_v16 }
0x187d   :  { %1521 = vadd.xlane.f32.xlu1 %v1520_v19  ;;  %1517 = vadd.xlane.f32.xlu0 %v1516_v20 }
0x18c3   :  { %v1474_v21 = vpop.xlane.xlu1 %1473 }
0x18c4   :  { %v1475_v22 = vsel %vm1447_vm12, %v1474_v21, %v1441_v52 }
0x18c5   :  { %v1506_v24 = vmul.f32 %v1478_v44, %v1475_v22  ;;  %v1545_v44 = vld [vmem:[#allocation2 + $0x8] ss:$0 sm:$0xff] }
0x18c6   :  { %v2751_v45 = vxor.u32 2147483648, %v1545_v44 }
0x18c7   :  { %1507 = vadd.xlane.f32.xlu2 %v1506_v24  ;;  %v76_v24 = vsel %vm75_vm9, %v44_v37, 0.0  ;;  %vm1773_vm9 = vcmp.eq.s32.totalorder %v2131_v1, 2 }
0x18cb   :  { %v1492_v25 = vpop.xlane.xlu1 %1491  ;;  %v1496_v26 = vpop.xlane.xlu2 %1495 }
0x18cc   :  { %v1493_v27 = vsel %vm1481_vm13, %v1492_v25, %v1459_v58  ;;  %v1500_v30 = vpop.xlane.xlu0 %1499  ;;  %v1497_v31 = vsel %vm1481_vm13, %v1496_v26, %v1463_v57 }
0x18cd   :  { %v1524_v32 = vmul.f32 %v1512_v10, %v1493_v27  ;;  %v1501_v33 = vsel %vm1481_vm13, %v1500_v30, %v1467_v0  ;;  %v1528_v34 = vmul.f32 %v1512_v10, %v1497_v31 }
0x18ce   :  { %v1532_v36 = vmul.f32 %v1512_v10, %v1501_v33 }
0x18cf   :  { %1525 = vadd.xlane.f32.xlu2 %v1524_v32  ;;  %1529 = vadd.xlane.f32.xlu0 %v1528_v34 }
0x18d0   :  { %1533 = vadd.xlane.f32.xlu1 %v1532_v36 }
0x18d3   :  { %v1504_v39 = vpop.xlane.xlu1 %1503 }
0x18d4   :  { %v1505_v40 = vsel %vm1481_vm13, %v1504_v39, %v1471_v5 }
0x18d5   :  { %v1536_v38 = vmul.f32 %v1512_v10, %v1505_v40 }
0x18d7   :  { %1537 = vadd.xlane.f32.xlu2 %v1536_v38 }
0x18d8   :  { %72 = vadd.xlane.f32.xlu1 %v71_v42 }
0x18f0   :  { %v1518_v46 = vpop.xlane.xlu0 %1517  ;;  %v1522_v50 = vpop.xlane.xlu1 %1521 }
0x18f1   :  { %v1519_v47 = vsel %vm1515_vm0, %v1518_v46, %v1485_v16  ;;  %v1523_v53 = vsel %vm1515_vm0, %v1522_v50, %v1489_v15 }
0x18f2   :  { %v1550_v48 = vmul.f32 %v2751_v45, %v1519_v47  ;;  %v1554_v61 = vmul.f32 %v2751_v45, %v1523_v53 }
0x18f4   :  { %1551 = vadd.xlane.f32.xlu2 %v1550_v48 }
0x193a   :  { %v1508_v49 = vpop.xlane.xlu2 %1507 }
0x193b   :  { %v1509_v51 = vsel %vm1481_vm13, %v1508_v49, %v1475_v22 }
0x193c   :  { %v1540_v52 = vmul.f32 %v1512_v10, %v1509_v51 }
0x193e   :  { %1541 = vadd.xlane.f32.xlu0 %v1540_v52 }
0x1942   :  { %v1530_v55 = vpop.xlane.xlu0 %1529  ;;  %v1526_v56 = vpop.xlane.xlu2 %1525 }
0x1943   :  { %v1534_v57 = vpop.xlane.xlu1 %1533  ;;  %v1531_v58 = vsel %vm1515_vm0, %v1530_v55, %v1497_v31  ;;  %v1527_v60 = vsel %vm1515_vm0, %v1526_v56, %v1493_v27  ;;  %v302_v31 = vsel %vm301_vm14, -1.0, %v2120_v7 }
0x1944   :  { %v1562_v63 = vmul.f32 %v2751_v45, %v1531_v58  ;;  %v1558_v0 = vmul.f32 %v2751_v45, %v1527_v60  ;;  %v1535_v3 = vsel %vm1515_vm0, %v1534_v57, %v1501_v33 }
0x1945   :  { %v1566_v9 = vmul.f32 %v2751_v45, %v1535_v3 }
0x1946   :  { %1563 = vadd.xlane.f32.xlu2 %v1562_v63  ;;  %1555 = vadd.xlane.f32.xlu0 %v1554_v61 }
0x1947   :  { %1559 = vadd.xlane.f32.xlu1 %v1558_v0 }
0x194a   :  { %v1538_v4 = vpop.xlane.xlu2 %1537 }
0x194b   :  { %v1539_v5 = vsel %vm1515_vm0, %v1538_v4, %v1505_v40  ;;  %v2771_v8 = vpop.xlane.xlu1 %72 }
0x194c   :  { %v1570_v10 = vmul.f32 %v2751_v45, %v1539_v5  ;;  %2117 = vrcp.f32 %v2771_v8  ;;  %v88_v15 = vand.u32 2147483648, %v2771_v8  ;;  %vm82_vm4 = vweird.f32 %v2771_v8 }
0x194d   :  { %v86_v19 = vand.u32 2147483647, %v2771_v8 }
0x194e   :  { %1567 = vadd.xlane.f32.xlu0 %v1566_v9  ;;  %v89_v21 = vor.u32 1.1754944e-38, %v88_v15 }
0x194f   :  { %1571 = vadd.xlane.f32.xlu1 %v1570_v10  ;;  %vm87_vm13 = vcmp.eq.f32.partialorder %v86_v19, 8.507059e+37 }
0x1952   :  { %v2118_v11 = vpop.eup %2117 }
0x1953   :  { %v78_v14 = vmul.f32 %v2118_v11, %v2771_v8  ;;  %vm83_vm8 = vweird.f32 %v2118_v11 }
0x1954   :  { %vm84_vm12 = vmor %vm82_vm4, %vm83_vm8  ;;  %vm1735_vm8 = vcmp.eq.s32.totalorder %v2131_v1, 3 }
0x1955   :  { %v79_v16 = vsub.f32 1.0, %v78_v14 }
0x1957   :  { %v80_v20 = vmul.f32 %v2118_v11, %v79_v16 }
0x1959   :  { %v81_v22 = vadd.f32 %v2118_v11, %v80_v20 }
0x195b   :  { %v85_v25 = vsel %vm84_vm12, %v2118_v11, %v81_v22  ;;  %vm1811_vm12 = vcmp.eq.s32.totalorder %v2131_v1, 1 }
0x195c   :  { %v2786_v26 = vsel %vm87_vm13, %v89_v21, %v85_v25  ;;  %vm1848_vm13 = vcmp.eq.s32.totalorder %v2131_v1, 0 }
0x195d   :  { %v91_v27 = vmul.f32 %v2786_v26, %v76_v24 }
0x195f   :  { %92 = vst [vmem:[#allocation2] sm:$0xff] %v91_v27 }
0x1966   :  { %v1579_v30 = vld [vmem:[#allocation2 + $0x7] ss:$0 sm:$0xff]  ;;  %v1617_v57 = vld [vmem:[#allocation2 + $0x6] ss:$0 sm:$0xff] }
0x1967   :  { %v1552_v32 = vpop.xlane.xlu2 %1551  ;;  %v1580_v33 = vxor.u32 2147483648, %v1579_v30 }
0x1968   :  { %v1553_v34 = vsel %vm1549_vm5, %v1552_v32, %v1519_v47 }
0x1969   :  { %v1588_v36 = vmul.f32 %v1580_v33, %v1553_v34  ;;  %v1584_v37 = vmul.f32 %v1580_v33, %v302_v31 }
0x196b   :  { %1589 = vadd.xlane.f32.xlu1 %v1588_v36  ;;  %1585 = vadd.xlane.f32.xlu0 %v1584_v37 }
0x19b1   :  { %v1542_v39 = vpop.xlane.xlu0 %1541 }
0x19b2   :  { %v1543_v40 = vsel %vm1515_vm0, %v1542_v39, %v1509_v51  ;;  %vm1659_vm0 = vcmp.eq.s32.totalorder %v2131_v1, 5 }
0x19b3   :  { %v1574_v2 = vmul.f32 %v2751_v45, %v1543_v40 }
0x19b5   :  { %1575 = vadd.xlane.f32.xlu2 %v1574_v2 }
0x19b9   :  { %v1556_v38 = vpop.xlane.xlu0 %1555  ;;  %v1564_v42 = vpop.xlane.xlu2 %1563 }
0x19ba   :  { %v1557_v7 = vsel %vm1549_vm5, %v1556_v38, %v1523_v53  ;;  %v1565_v44 = vsel %vm1549_vm5, %v1564_v42, %v1531_v58  ;;  %v1560_v46 = vpop.xlane.xlu1 %1559  ;;  %v1618_v58 = vxor.u32 2147483648, %v1617_v57 }
0x19bb   :  { %v1592_v47 = vmul.f32 %v1580_v33, %v1557_v7  ;;  %v1600_v48 = vmul.f32 %v1580_v33, %v1565_v44  ;;  %v1561_v49 = vsel %vm1549_vm5, %v1560_v46, %v1527_v60 }
0x19bc   :  { %v1596_v50 = vmul.f32 %v1580_v33, %v1561_v49 }
0x19bd   :  { %1593 = vadd.xlane.f32.xlu2 %v1592_v47  ;;  %1601 = vadd.xlane.f32.xlu1 %v1600_v48 }
0x19be   :  { %1597 = vadd.xlane.f32.xlu0 %v1596_v50 }
0x19c1   :  { %v1568_v45 = vpop.xlane.xlu0 %1567 }
0x19c2   :  { %v1569_v51 = vsel %vm1549_vm5, %v1568_v45, %v1535_v3  ;;  %v1572_v52 = vpop.xlane.xlu1 %1571 }
0x19c3   :  { %v1604_v55 = vmul.f32 %v1580_v33, %v1569_v51  ;;  %v1573_v53 = vsel %vm1549_vm5, %v1572_v52, %v1539_v5 }
0x19c4   :  { %v1608_v56 = vmul.f32 %v1580_v33, %v1573_v53 }
0x19c5   :  { %1605 = vadd.xlane.f32.xlu2 %v1604_v55 }
0x19c6   :  { %1609 = vadd.xlane.f32.xlu0 %v1608_v56 }
0x19de   :  { %v1586_v60 = vpop.xlane.xlu0 %1585  ;;  %v1590_v61 = vpop.xlane.xlu1 %1589 }
0x19df   :  { %v1587_v63 = vsel %vm1583_vm1, %v1586_v60, %v302_v31  ;;  %v1591_v0 = vsel %vm1583_vm1, %v1590_v61, %v1553_v34  ;;  %v1655_v34 = vld [vmem:[#allocation2 + $0x5] ss:$0 sm:$0xff] }
0x19e0   :  { %v1622_v3 = vmul.f32 %v1618_v58, %v1587_v63  ;;  %v1626_v4 = vmul.f32 %v1618_v58, %v1591_v0  ;;  %v1656_v36 = vxor.u32 2147483648, %v1655_v34 }
0x19e2   :  { %1623 = vadd.xlane.f32.xlu2 %v1622_v3  ;;  %1627 = vadd.xlane.f32.xlu0 %v1626_v4 }
0x1a28   :  { %v1576_v5 = vpop.xlane.xlu2 %1575 }
0x1a29   :  { %v1577_v9 = vsel %vm1549_vm5, %v1576_v5, %v1543_v40  ;;  %vm1621_vm5 = vcmp.eq.s32.totalorder %v2131_v1, 6 }
0x1a2a   :  { %v1612_v10 = vmul.f32 %v1580_v33, %v1577_v9 }
0x1a2c   :  { %1613 = vadd.xlane.f32.xlu1 %v1612_v10 }
0x1a30   :  { %v1594_v11 = vpop.xlane.xlu2 %1593  ;;  %v1602_v14 = vpop.xlane.xlu1 %1601 }
0x1a31   :  { %v1595_v15 = vsel %vm1583_vm1, %v1594_v11, %v1557_v7  ;;  %v1598_v16 = vpop.xlane.xlu0 %1597  ;;  %v1603_v19 = vsel %vm1583_vm1, %v1602_v14, %v1565_v44 }
0x1a32   :  { %v1630_v20 = vmul.f32 %v1618_v58, %v1595_v15  ;;  %v1599_v21 = vsel %vm1583_vm1, %v1598_v16, %v1561_v49  ;;  %v1638_v22 = vmul.f32 %v1618_v58, %v1603_v19 }
0x1a33   :  { %v1634_v24 = vmul.f32 %v1618_v58, %v1599_v21 }
0x1a34   :  { %1631 = vadd.xlane.f32.xlu1 %v1630_v20  ;;  %1639 = vadd.xlane.f32.xlu0 %v1638_v22 }
0x1a35   :  { %1635 = vadd.xlane.f32.xlu2 %v1634_v24 }
0x1a38   :  { %v1606_v25 = vpop.xlane.xlu2 %1605 }
0x1a39   :  { %v1607_v27 = vsel %vm1583_vm1, %v1606_v25, %v1569_v51  ;;  %v1610_v30 = vpop.xlane.xlu0 %1609 }
0x1a3a   :  { %v1642_v31 = vmul.f32 %v1618_v58, %v1607_v27  ;;  %v1611_v32 = vsel %vm1583_vm1, %v1610_v30, %v1573_v53 }
0x1a3b   :  { %v1646_v33 = vmul.f32 %v1618_v58, %v1611_v32 }
0x1a3c   :  { %1643 = vadd.xlane.f32.xlu1 %v1642_v31 }
0x1a3d   :  { %1647 = vadd.xlane.f32.xlu2 %v1646_v33 }
0x1a55   :  { %v1624_v37 = vpop.xlane.xlu2 %1623  ;;  %v1628_v39 = vpop.xlane.xlu0 %1627 }
0x1a56   :  { %v1625_v40 = vsel %vm1621_vm5, %v1624_v37, %v1587_v63  ;;  %v1629_v2 = vsel %vm1621_vm5, %v1628_v39, %v1591_v0  ;;  %v1693_v0 = vld [vmem:[#allocation2 + $0x4] ss:$0 sm:$0xff] }
0x1a57   :  { %v1660_v38 = vmul.f32 %v1656_v36, %v1625_v40  ;;  %v1664_v42 = vmul.f32 %v1656_v36, %v1629_v2  ;;  %v1694_v3 = vxor.u32 2147483648, %v1693_v0 }
0x1a59   :  { %1661 = vadd.xlane.f32.xlu1 %v1660_v38  ;;  %1665 = vadd.xlane.f32.xlu2 %v1664_v42 }
0x1a9f   :  { %v1614_v7 = vpop.xlane.xlu1 %1613 }
0x1aa0   :  { %v1615_v44 = vsel %vm1583_vm1, %v1614_v7, %v1577_v9 }
0x1aa1   :  { %v1650_v46 = vmul.f32 %v1618_v58, %v1615_v44 }
0x1aa3   :  { %1651 = vadd.xlane.f32.xlu0 %v1650_v46 }
0x1aa7   :  { %v1640_v47 = vpop.xlane.xlu0 %1639  ;;  %v1632_v48 = vpop.xlane.xlu1 %1631 }
0x1aa8   :  { %v1636_v49 = vpop.xlane.xlu2 %1635  ;;  %v1641_v50 = vsel %vm1621_vm5, %v1640_v47, %v1603_v19  ;;  %v1633_v45 = vsel %vm1621_vm5, %v1632_v48, %v1595_v15 }
0x1aa9   :  { %v1637_v51 = vsel %vm1621_vm5, %v1636_v49, %v1599_v21  ;;  %v1676_v52 = vmul.f32 %v1656_v36, %v1641_v50  ;;  %v1668_v55 = vmul.f32 %v1656_v36, %v1633_v45 }
0x1aaa   :  { %v1672_v53 = vmul.f32 %v1656_v36, %v1637_v51 }
0x1aab   :  { %1677 = vadd.xlane.f32.xlu2 %v1676_v52  ;;  %1669 = vadd.xlane.f32.xlu0 %v1668_v55 }
0x1aac   :  { %1673 = vadd.xlane.f32.xlu1 %v1672_v53 }
0x1aaf   :  { %v1644_v56 = vpop.xlane.xlu1 %1643 }
0x1ab0   :  { %v1648_v57 = vpop.xlane.xlu2 %1647  ;;  %v1645_v58 = vsel %vm1621_vm5, %v1644_v56, %v1607_v27 }
0x1ab1   :  { %v1649_v60 = vsel %vm1621_vm5, %v1648_v57, %v1611_v32  ;;  %v1680_v61 = vmul.f32 %v1656_v36, %v1645_v58 }
0x1ab2   :  { %v1684_v63 = vmul.f32 %v1656_v36, %v1649_v60 }
0x1ab3   :  { %1681 = vadd.xlane.f32.xlu0 %v1680_v61 }
0x1ab4   :  { %1685 = vadd.xlane.f32.xlu1 %v1684_v63 }
0x1acc   :  { %v1666_v4 = vpop.xlane.xlu2 %1665  ;;  %v1662_v5 = vpop.xlane.xlu1 %1661 }
0x1acd   :  { %v1667_v9 = vsel %vm1659_vm0, %v1666_v4, %v1629_v2  ;;  %v1663_v10 = vsel %vm1659_vm0, %v1662_v5, %v1625_v40  ;;  %v1731_v2 = vld [vmem:[#allocation2 + $0x3] ss:$0 sm:$0xff] }
0x1ace   :  { %v1702_v11 = vmul.f32 %v1694_v3, %v1667_v9  ;;  %v1698_v14 = vmul.f32 %v1694_v3, %v1663_v10  ;;  %v1732_v38 = vxor.u32 2147483648, %v1731_v2 }
0x1ad0   :  { %1703 = vadd.xlane.f32.xlu1 %v1702_v11  ;;  %1699 = vadd.xlane.f32.xlu0 %v1698_v14 }
0x1b16   :  { %v1652_v15 = vpop.xlane.xlu0 %1651 }
0x1b17   :  { %v1653_v16 = vsel %vm1621_vm5, %v1652_v15, %v1615_v44 }
0x1b18   :  { %v1688_v19 = vmul.f32 %v1656_v36, %v1653_v16 }
0x1b1a   :  { %1689 = vadd.xlane.f32.xlu2 %v1688_v19 }
0x1b1e   :  { %v1678_v20 = vpop.xlane.xlu2 %1677  ;;  %v1670_v21 = vpop.xlane.xlu0 %1669 }
0x1b1f   :  { %v1679_v22 = vsel %vm1659_vm0, %v1678_v20, %v1641_v50  ;;  %v1671_v24 = vsel %vm1659_vm0, %v1670_v21, %v1633_v45  ;;  %v1674_v25 = vpop.xlane.xlu1 %1673 }
0x1b20   :  { %v1714_v27 = vmul.f32 %v1694_v3, %v1679_v22  ;;  %v1706_v30 = vmul.f32 %v1694_v3, %v1671_v24  ;;  %v1675_v31 = vsel %vm1659_vm0, %v1674_v25, %v1637_v51 }
0x1b21   :  { %v1710_v32 = vmul.f32 %v1694_v3, %v1675_v31 }
0x1b22   :  { %1715 = vadd.xlane.f32.xlu1 %v1714_v27  ;;  %1707 = vadd.xlane.f32.xlu2 %v1706_v30 }
0x1b23   :  { %1711 = vadd.xlane.f32.xlu0 %v1710_v32 }
0x1b26   :  { %v1682_v33 = vpop.xlane.xlu0 %1681 }
0x1b27   :  { %v1683_v34 = vsel %vm1659_vm0, %v1682_v33, %v1645_v58  ;;  %v1686_v36 = vpop.xlane.xlu1 %1685 }
0x1b28   :  { %v1718_v37 = vmul.f32 %v1694_v3, %v1683_v34  ;;  %v1687_v39 = vsel %vm1659_vm0, %v1686_v36, %v1649_v60 }
0x1b29   :  { %v1722_v40 = vmul.f32 %v1694_v3, %v1687_v39 }
0x1b2a   :  { %1719 = vadd.xlane.f32.xlu2 %v1718_v37 }
0x1b2b   :  { %1723 = vadd.xlane.f32.xlu0 %v1722_v40 }
0x1b43   :  { %v1700_v42 = vpop.xlane.xlu0 %1699  ;;  %v1704_v7 = vpop.xlane.xlu1 %1703 }
0x1b44   :  { %v1701_v44 = vsel %vm1697_vm3, %v1700_v42, %v1663_v10  ;;  %v1705_v46 = vsel %vm1697_vm3, %v1704_v7, %v1667_v9  ;;  %v1769_v10 = vld [vmem:[#allocation2 + $0x2] ss:$0 sm:$0xff] }
0x1b45   :  { %v1736_v47 = vmul.f32 %v1732_v38, %v1701_v44  ;;  %v1740_v48 = vmul.f32 %v1732_v38, %v1705_v46  ;;  %v1770_v11 = vxor.u32 2147483648, %v1769_v10 }
0x1b47   :  { %1737 = vadd.xlane.f32.xlu2 %v1736_v47  ;;  %1741 = vadd.xlane.f32.xlu0 %v1740_v48 }
0x1b8d   :  { %v1690_v49 = vpop.xlane.xlu2 %1689 }
0x1b8e   :  { %v1691_v50 = vsel %vm1659_vm0, %v1690_v49, %v1653_v16 }
0x1b8f   :  { %v1726_v45 = vmul.f32 %v1694_v3, %v1691_v50 }
0x1b91   :  { %1727 = vadd.xlane.f32.xlu1 %v1726_v45 }
0x1b95   :  { %v1708_v51 = vpop.xlane.xlu2 %1707  ;;  %v1716_v52 = vpop.xlane.xlu1 %1715 }
0x1b96   :  { %v1709_v55 = vsel %vm1697_vm3, %v1708_v51, %v1671_v24  ;;  %v1712_v53 = vpop.xlane.xlu0 %1711  ;;  %v1717_v56 = vsel %vm1697_vm3, %v1716_v52, %v1679_v22 }
0x1b97   :  { %v1744_v57 = vmul.f32 %v1732_v38, %v1709_v55  ;;  %v1713_v58 = vsel %vm1697_vm3, %v1712_v53, %v1675_v31  ;;  %v1752_v60 = vmul.f32 %v1732_v38, %v1717_v56 }
0x1b98   :  { %v1748_v61 = vmul.f32 %v1732_v38, %v1713_v58 }
0x1b99   :  { %1745 = vadd.xlane.f32.xlu1 %v1744_v57  ;;  %1753 = vadd.xlane.f32.xlu0 %v1752_v60 }
0x1b9a   :  { %1749 = vadd.xlane.f32.xlu2 %v1748_v61 }
0x1b9d   :  { %v1720_v63 = vpop.xlane.xlu2 %1719 }
0x1b9e   :  { %v1721_v0 = vsel %vm1697_vm3, %v1720_v63, %v1683_v34  ;;  %v1724_v3 = vpop.xlane.xlu0 %1723 }
0x1b9f   :  { %v1756_v4 = vmul.f32 %v1732_v38, %v1721_v0  ;;  %v1725_v5 = vsel %vm1697_vm3, %v1724_v3, %v1687_v39 }
0x1ba0   :  { %v1760_v9 = vmul.f32 %v1732_v38, %v1725_v5 }
0x1ba1   :  { %1757 = vadd.xlane.f32.xlu1 %v1756_v4 }
0x1ba2   :  { %1761 = vadd.xlane.f32.xlu2 %v1760_v9 }
0x1bba   :  { %v1738_v14 = vpop.xlane.xlu2 %1737  ;;  %v1742_v15 = vpop.xlane.xlu0 %1741 }
0x1bbb   :  { %v1739_v16 = vsel %vm1735_vm8, %v1738_v14, %v1701_v44  ;;  %v1743_v19 = vsel %vm1735_vm8, %v1742_v15, %v1705_v46  ;;  %v1807_v46 = vld [vmem:[#allocation2 + $0x1] ss:$0 sm:$0xff] }
0x1bbc   :  { %v1774_v20 = vmul.f32 %v1770_v11, %v1739_v16  ;;  %v1778_v21 = vmul.f32 %v1770_v11, %v1743_v19  ;;  %v1808_v47 = vxor.u32 2147483648, %v1807_v46 }
0x1bbe   :  { %1775 = vadd.xlane.f32.xlu1 %v1774_v20  ;;  %1779 = vadd.xlane.f32.xlu2 %v1778_v21 }
0x1c04   :  { %v1728_v22 = vpop.xlane.xlu1 %1727 }
0x1c05   :  { %v1729_v24 = vsel %vm1697_vm3, %v1728_v22, %v1691_v50 }
0x1c06   :  { %v1764_v25 = vmul.f32 %v1732_v38, %v1729_v24 }
0x1c08   :  { %1765 = vadd.xlane.f32.xlu0 %v1764_v25 }
0x1c0c   :  { %v1754_v27 = vpop.xlane.xlu0 %1753  ;;  %v1746_v30 = vpop.xlane.xlu1 %1745 }
0x1c0d   :  { %v1750_v31 = vpop.xlane.xlu2 %1749  ;;  %v1755_v32 = vsel %vm1735_vm8, %v1754_v27, %v1717_v56  ;;  %v1747_v33 = vsel %vm1735_vm8, %v1746_v30, %v1709_v55 }
0x1c0e   :  { %v1751_v34 = vsel %vm1735_vm8, %v1750_v31, %v1713_v58  ;;  %v1790_v36 = vmul.f32 %v1770_v11, %v1755_v32  ;;  %v1782_v37 = vmul.f32 %v1770_v11, %v1747_v33 }
0x1c0f   :  { %v1786_v39 = vmul.f32 %v1770_v11, %v1751_v34 }
0x1c10   :  { %1791 = vadd.xlane.f32.xlu2 %v1790_v36  ;;  %1783 = vadd.xlane.f32.xlu0 %v1782_v37 }
0x1c11   :  { %1787 = vadd.xlane.f32.xlu1 %v1786_v39 }
0x1c14   :  { %v1758_v40 = vpop.xlane.xlu1 %1757 }
0x1c15   :  { %v1762_v2 = vpop.xlane.xlu2 %1761  ;;  %v1759_v38 = vsel %vm1735_vm8, %v1758_v40, %v1721_v0 }
0x1c16   :  { %v1763_v42 = vsel %vm1735_vm8, %v1762_v2, %v1725_v5  ;;  %v1794_v7 = vmul.f32 %v1770_v11, %v1759_v38 }
0x1c17   :  { %v1798_v44 = vmul.f32 %v1770_v11, %v1763_v42 }
0x1c18   :  { %1795 = vadd.xlane.f32.xlu0 %v1794_v7 }
0x1c19   :  { %1799 = vadd.xlane.f32.xlu1 %v1798_v44 }
0x1c31   :  { %v1780_v48 = vpop.xlane.xlu2 %1779  ;;  %v1776_v49 = vpop.xlane.xlu1 %1775 }
0x1c32   :  { %v1781_v50 = vsel %vm1773_vm9, %v1780_v48, %v1743_v19  ;;  %v1777_v45 = vsel %vm1773_vm9, %v1776_v49, %v1739_v16  ;;  %v1844_v19 = vld [vmem:[#allocation2] ss:$0 sm:$0xff] }
0x1c33   :  { %v1816_v51 = vmul.f32 %v1808_v47, %v1781_v50  ;;  %v1812_v52 = vmul.f32 %v1808_v47, %v1777_v45  ;;  %v1845_v20 = vxor.u32 2147483648, %v1844_v19 }
0x1c35   :  { %1817 = vadd.xlane.f32.xlu1 %v1816_v51  ;;  %1813 = vadd.xlane.f32.xlu0 %v1812_v52 }
0x1c7b   :  { %v1766_v55 = vpop.xlane.xlu0 %1765 }
0x1c7c   :  { %v1767_v53 = vsel %vm1735_vm8, %v1766_v55, %v1729_v24 }
0x1c7d   :  { %v1802_v56 = vmul.f32 %v1770_v11, %v1767_v53 }
0x1c7f   :  { %1803 = vadd.xlane.f32.xlu2 %v1802_v56 }
0x1c83   :  { %v1792_v57 = vpop.xlane.xlu2 %1791  ;;  %v1784_v58 = vpop.xlane.xlu0 %1783 }
0x1c84   :  { %v1793_v60 = vsel %vm1773_vm9, %v1792_v57, %v1755_v32  ;;  %v1785_v61 = vsel %vm1773_vm9, %v1784_v58, %v1747_v33  ;;  %v1788_v63 = vpop.xlane.xlu1 %1787 }
0x1c85   :  { %v1828_v0 = vmul.f32 %v1808_v47, %v1793_v60  ;;  %v1820_v3 = vmul.f32 %v1808_v47, %v1785_v61  ;;  %v1789_v4 = vsel %vm1773_vm9, %v1788_v63, %v1751_v34 }
0x1c86   :  { %v1824_v5 = vmul.f32 %v1808_v47, %v1789_v4 }
0x1c87   :  { %1829 = vadd.xlane.f32.xlu1 %v1828_v0  ;;  %1821 = vadd.xlane.f32.xlu2 %v1820_v3 }
0x1c88   :  { %1825 = vadd.xlane.f32.xlu0 %v1824_v5 }
0x1c8b   :  { %v1796_v9 = vpop.xlane.xlu0 %1795 }
0x1c8c   :  { %v1797_v10 = vsel %vm1773_vm9, %v1796_v9, %v1759_v38  ;;  %v1800_v11 = vpop.xlane.xlu1 %1799 }
0x1c8d   :  { %v1832_v14 = vmul.f32 %v1808_v47, %v1797_v10  ;;  %v1801_v15 = vsel %vm1773_vm9, %v1800_v11, %v1763_v42 }
0x1c8e   :  { %v1836_v16 = vmul.f32 %v1808_v47, %v1801_v15 }
0x1c8f   :  { %1833 = vadd.xlane.f32.xlu2 %v1832_v14 }
0x1c90   :  { %1837 = vadd.xlane.f32.xlu0 %v1836_v16 }
0x1ca8   :  { %v1814_v21 = vpop.xlane.xlu0 %1813  ;;  %v1818_v22 = vpop.xlane.xlu1 %1817 }
0x1ca9   :  { %v1815_v24 = vsel %vm1811_vm12, %v1814_v21, %v1777_v45  ;;  %v1819_v25 = vsel %vm1811_vm12, %v1818_v22, %v1781_v50 }
0x1caa   :  { %v1849_v27 = vmul.f32 %v1845_v20, %v1815_v24  ;;  %v1853_v30 = vmul.f32 %v1845_v20, %v1819_v25 }
0x1cac   :  { %1850 = vadd.xlane.f32.xlu2 %v1849_v27  ;;  %1854 = vadd.xlane.f32.xlu0 %v1853_v30 }
0x1cf2   :  { %v1804_v31 = vpop.xlane.xlu2 %1803 }
0x1cf3   :  { %v1805_v32 = vsel %vm1773_vm9, %v1804_v31, %v1767_v53 }
0x1cf4   :  { %v1840_v33 = vmul.f32 %v1808_v47, %v1805_v32 }
0x1cf6   :  { %1841 = vadd.xlane.f32.xlu1 %v1840_v33 }
0x1cfa   :  { %v1822_v34 = vpop.xlane.xlu2 %1821  ;;  %v1830_v36 = vpop.xlane.xlu1 %1829 }
0x1cfb   :  { %v1823_v37 = vsel %vm1811_vm12, %v1822_v34, %v1785_v61  ;;  %v1826_v39 = vpop.xlane.xlu0 %1825  ;;  %v1831_v40 = vsel %vm1811_vm12, %v1830_v36, %v1793_v60 }
0x1cfc   :  { %v1857_v2 = vmul.f32 %v1845_v20, %v1823_v37  ;;  %v1827_v38 = vsel %vm1811_vm12, %v1826_v39, %v1789_v4  ;;  %v1865_v42 = vmul.f32 %v1845_v20, %v1831_v40 }
0x1cfd   :  { %v1861_v7 = vmul.f32 %v1845_v20, %v1827_v38 }
0x1cfe   :  { %1858 = vadd.xlane.f32.xlu1 %v1857_v2  ;;  %1866 = vadd.xlane.f32.xlu0 %v1865_v42 }
0x1cff   :  { %1862 = vadd.xlane.f32.xlu2 %v1861_v7 }
0x1d02   :  { %v1834_v44 = vpop.xlane.xlu2 %1833 }
0x1d03   :  { %v1835_v46 = vsel %vm1811_vm12, %v1834_v44, %v1797_v10  ;;  %v1838_v47 = vpop.xlane.xlu0 %1837 }
0x1d04   :  { %v1869_v48 = vmul.f32 %v1845_v20, %v1835_v46  ;;  %v1839_v49 = vsel %vm1811_vm12, %v1838_v47, %v1801_v15 }
0x1d05   :  { %v1873_v50 = vmul.f32 %v1845_v20, %v1839_v49 }
0x1d06   :  { %1870 = vadd.xlane.f32.xlu1 %v1869_v48 }
0x1d07   :  { %1874 = vadd.xlane.f32.xlu2 %v1873_v50 }
0x1d1f   :  { %v1851_v45 = vpop.xlane.xlu2 %1850  ;;  %v1855_v51 = vpop.xlane.xlu0 %1854 }
0x1d20   :  { %v1852_v52 = vsel %vm1848_vm13, %v1851_v45, %v1815_v24  ;;  %v1856_v55 = vsel %vm1848_vm13, %v1855_v51, %v1819_v25 }
0x1d21   :  { %v1895_v53 = vmul.f32 %v1852_v52, %v2786_v26  ;;  %v1913_v56 = vmul.f32 %v1856_v55, %v2637_v12 }
0x1d23   :  { %v1897_v57 = vsel %vm82_vm4, %v1852_v52, %v1895_v53  ;;  %v1915_v58 = vsel %vm111_vm6, %v1856_v55, %v1913_v56 }
0x1d24   :  { %2075 = vst [vmem:[%s2995_s1] sm:$0xff] %v1897_v57 }
0x1d25   :  { %2077 = vst [vmem:[%s2995_s1 + $0x8] sm:$0xff] %v1915_v58 }
0x1d69   :  { %v1842_v60 = vpop.xlane.xlu1 %1841 }
0x1d6a   :  { %v1843_v26 = vsel %vm1811_vm12, %v1842_v60, %v1805_v32 }
0x1d6b   :  { %v1877_v61 = vmul.f32 %v1845_v20, %v1843_v26 }
0x1d6d   :  { %1878 = vadd.xlane.f32.xlu0 %v1877_v61 }
0x1d71   :  { %v1867_v12 = vpop.xlane.xlu0 %1866  ;;  %v1859_v8 = vpop.xlane.xlu1 %1858 }
0x1d72   :  { %v1863_v63 = vpop.xlane.xlu2 %1862  ;;  %v1868_v59 = vsel %vm1848_vm13, %v1867_v12, %v1831_v40  ;;  %v1860_v0 = vsel %vm1848_vm13, %v1859_v8, %v1823_v37 }
0x1d73   :  { %v1864_v3 = vsel %vm1848_vm13, %v1863_v63, %v1827_v38  ;;  %v1970_v4 = vmul.f32 %v1868_v59, %v2309_v13  ;;  %v1932_v5 = vmul.f32 %v1860_v0, %v2513_v41 }
0x1d74   :  { %v1951_v9 = vmul.f32 %v1864_v3, %v2399_v35 }
0x1d75   :  { %v1972_v10 = vsel %vm198_vm11, %v1868_v59, %v1970_v4  ;;  %v1934_v11 = vsel %vm140_vm10, %v1860_v0, %v1932_v5  ;;  %vm2997_vm11 = vweird.f32 %v2140_v6 }
0x1d76   :  { %v1953_v14 = vsel %vm169_vm2, %v1864_v3, %v1951_v9  ;;  %2083 = vst [vmem:[%s2995_s1 + $0x20] sm:$0xff] %v1972_v10 }
0x1d77   :  { %2081 = vst [vmem:[%s2995_s1 + $0x18] sm:$0xff] %v1953_v14 }
0x1d78   :  { %2079 = vst [vmem:[%s2995_s1 + $0x10] sm:$0xff] %v1934_v11 }
0x1d79   :  { %v1871_v62 = vpop.xlane.xlu1 %1870 }
0x1d7a   :  { %v1875_v13 = vpop.xlane.xlu2 %1874  ;;  %v1872_v35 = vsel %vm1848_vm13, %v1871_v62, %v1835_v46 }
0x1d7b   :  { %v1876_v23 = vsel %vm1848_vm13, %v1875_v13, %v1839_v49  ;;  %v1989_v28 = vmul.f32 %v1872_v35, %v2237_v29 }
0x1d7c   :  { %v2008_v41 = vmul.f32 %v1876_v23, %v2178_v54 }
0x1d7d   :  { %v1991_v15 = vsel %vm227_vm7, %v1872_v35, %v1989_v28 }
0x1d7e   :  { %v2010_v16 = vsel %vm256_vm15, %v1876_v23, %v2008_v41  ;;  %2085 = vst [vmem:[%s2995_s1 + $0x28] sm:$0xff] %v1991_v15 }
0x1d7f   :  { %2087 = vst [vmem:[%s2995_s1 + $0x30] sm:$0xff] %v2010_v16 }
0x1de0   :  { %v1879_v19 = vpop.xlane.xlu0 %1878 }
0x1de1   :  { %v1880_v29 = vsel %vm1848_vm13, %v1879_v19, %v1843_v26 }
0x1de2   :  { %v2027_v54 = vmul.f32 %v1880_v29, %v2153_v17 }
0x1de4   :  { %v2029_v18 = vsel %vm2997_vm11, %v1880_v29, %v2027_v54 }
0x1de5   :  { %2089 = vst [vmem:[%s2995_s1 + $0x38] sm:$0xff] %v2029_v18 }

// kernel: custom-call.22
= control target key start
LH: loop header
LB: loop body
LE: loop exit
PB: predicated region body
PF: predicated region fallthrough
CT: control target
= control target key end

     0   :  { %5 = vsyncpa [#allocation4], 0  ;;  %s1064_s0 = inlined_call_operand.vmem [shape: f32[32,32], index: 0, kind: input, shape index: {}]   ;;  %s1065_s1 = inlined_call_operand.vmem [shape: f32[32,32], index: 1, kind: output, shape index: {0}]   ;;  %s1066_s2 = inlined_call_operand.hbm [shape: s32[32], index: 2, kind: output, shape index: {1}]   ;;  %s1067_s3 = inlined_call_operand.vmem [shape: s32[32], index: 3, kind: output, shape index: {2}]  }
   0x1   :  { %s15_s14 = scalar_lea.vmem %s1064_s0, 24 }
   0x2   :  { %p556_p0 = scmp.gt.s32.totalorder %s1064_s0, %s15_s14 }
   0x3   :  { %s855_s17 = smov (!%p556_p0), [#allocation0]   ;;  %s859_s20 = smov (!%p556_p0), %s1064_s0  }
   0x4   :  { %557 = sbr.rel (%p556_p0) target bundleno = 17 (0x11), region = 165 }
   0x9 LB: > { %v49_v0 = vld [vmem:[%s861_s20] sm:$0xff]  ;;  %s51_s20 = scalar_lea.vmem %s861_s20, 8   ;;  %s861_s20 = sphi %s859_s20, %s51_s20   ;;  %s857_s17 = sphi %s855_s17, %s52_s17  }
   0xa   : > { %50 = vst [vmem:[%s857_s17] sm:$0xff] %v49_v0  ;;  %s52_s17 = scalar_lea.vmem %s857_s17, 8   ;;  %p46_p1 = scmp.gt.s32.totalorder %s51_s20, %s15_s14 }
   0xc   :  { %48 = sbr.rel (!%p46_p1) target bundleno = 9 (0x9), region = 171 }
  0x11 PF:  { %v62_v1 = vld [vmem:[#allocation0] sm:$0xff]  ;;  %v66_v2 = vld [vmem:[#allocation0 + $0x8] sm:$0xff]  ;;  %v70_v3 = vld [vmem:[#allocation0 + $0x10] sm:$0xff]  ;;  %v77_v4 = vlaneseq  ;;  %v879_v7 = vmov 0   ;;  %s863_s0 = smov 0  }
  0x12   :  { %63 = vst [vmem:[#allocation1] sm:$0xff] %v62_v1  ;;  %v74_v5 = vld [vmem:[#allocation0 + $0x18] sm:$0xff] }
  0x13   :  { %67 = vst [vmem:[#allocation1 + $0x8] sm:$0xff] %v66_v2  ;;  %v911_v6 = vshrl.u32 %v77_v4, 7 }
  0x14   :  { %71 = vst [vmem:[#allocation1 + $0x10] sm:$0xff] %v70_v3 }
  0x15   :  { %75 = vst [vmem:[#allocation1 + $0x18] sm:$0xff] %v74_v5 }
  0x16   :  { %76 = vst [vmem:[#allocation2] sm:$0x1] %v879_v7 }
  0x17 LB: > { %s614_s21 = sshll.u32 %s865_s0, 3  ;;  %s85_s0 = sadd.s32 1, %s865_s0   ;;  %s865_s0 = sphi %s863_s0, %s85_s0  }
  0x18   : > { %v89_v8 = vstv %s614_s21  ;;  %s87_s22 = scalar_lea.vmem [#allocation7], %s614_s21  ;;  %p82_p2 = scmp.ge.s32.totalorder %s85_s0, 4  }
  0x19   : > { %v90_v9 = vadd.s32 %v89_v8, %v911_v6  ;;  %s914_s23 = smov (%p82_p2), 0  }
  0x1a   :  { %84 = sbr.rel (!%p82_p2) target bundleno = 23 (0x17), region = 182 }
  0x1b   : > { %91 = vst [vmem:[%s87_s22] sm:$0xff] %v90_v9 }
  0x1f LB: > { %v102_v10 = vld [vmem:[#allocation1] sm:$0xff]  ;;  %v114_v11 = vld [vmem:[#allocation1 + $0x8] sm:$0xff]  ;;  %v920_v12 = vadd.s32 8, %v911_v6  ;;  %v923_v14 = vstv %s869_s23  ;;  %v126_v16 = vld [vmem:[#allocation1 + $0x10] sm:$0xff]  ;;  %v928_v17 = vadd.s32 16, %v911_v6  ;;  %v935_v22 = vadd.s32 24, %v911_v6  ;;  %s869_s23 = sphi %s914_s23, %s97_s23  }
  0x20   : > { %v103_v13 = vand.u32 2147483647, %v102_v10  ;;  %v115_v15 = vand.u32 2147483647, %v114_v11  ;;  %vm106_vm0 = vcmp.ge.s32.totalorder %v911_v6, %v923_v14  ;;  %v127_v20 = vand.u32 2147483647, %v126_v16 }
  0x21   : > { %vm118_vm3 = vcmp.ge.s32.totalorder %v920_v12, %v923_v14  ;;  %v138_v21 = vld [vmem:[#allocation1 + $0x18] sm:$0xff]  ;;  %vm130_vm6 = vcmp.ge.s32.totalorder %v928_v17, %v923_v14  ;;  %vm142_vm9 = vcmp.ge.s32.totalorder %v935_v22, %v923_v14  ;;  %s184_s24 = ssub.s32 128, %s869_s23  ;;  %v946_v58 = vand.u32 127, %v77_v4  ;;  %v193_v60 = vld [vmem:[#allocation2] ss:$0 sm:$0xff]  ;;  %s196_s26 = scalar_lea.vmem [#allocation1], %s869_s23 }
  0x22   : > { %vm616_vm1 = vcmp.gt.f32.partialorder %v103_v13, -inf  ;;  %v139_v25 = vand.u32 2147483647, %v138_v21  ;;  %v198_v61 = vld [vmem:[%s196_s26] ss:$0 sm:$0xff]  ;;  %s202_s28 = scalar_lea.vmem [#allocation7], %s869_s23 }
  0x23   : > { %vm110_vm2 = vmand %vm106_vm0, %vm616_vm1  ;;  %v204_v1 = vld [vmem:[%s202_s28] ss:$0 sm:$0xff]  ;;  %s97_s23 = sadd.s32 1, %s869_s23  }
  0x24   : > { %v111_v18 = vsel %vm110_vm2, %v911_v6, %v923_v14  ;;  %v112_v19 = vsel %vm110_vm2, %v103_v13, -inf  ;;  %p94_p3 = scmp.ge.s32.totalorder %s97_s23, 32  }
  0x25   : > { %vm121_vm4 = vcmp.lt.f32.partialorder %v112_v19, %v115_v15  ;;  %s871_s5 = smov (%p94_p3), %s1065_s1   ;;  %s875_s6 = smov (%p94_p3), [#allocation1]  }
  0x26   : > { %vm122_vm5 = vmand %vm118_vm3, %vm121_vm4  ;;  %vm950_vm3 = vcmp.eq.s32.totalorder %v946_v58, %v923_v14 }
  0x27   : > { %v123_v23 = vsel %vm122_vm5, %v920_v12, %v111_v18  ;;  %v124_v24 = vsel %vm122_vm5, %v115_v15, %v112_v19  ;;  %vm306_vm5 = vcmp.gt.s32.totalorder %v935_v22, %v923_v14 }
  0x28   : > { %vm133_vm7 = vcmp.lt.f32.partialorder %v124_v24, %v127_v20 }
  0x29   : > { %vm134_vm8 = vmand %vm130_vm6, %vm133_vm7  ;;  %vm250_vm6 = vcmp.gt.s32.totalorder %v920_v12, %v923_v14  ;;  %vm222_vm7 = vcmp.gt.s32.totalorder %v911_v6, %v923_v14 }
  0x2a   : > { %v135_v26 = vsel %vm134_vm8, %v928_v17, %v123_v23  ;;  %v136_v27 = vsel %vm134_vm8, %v127_v20, %v124_v24 }
  0x2b   : > { %vm145_vm10 = vcmp.lt.f32.partialorder %v136_v27, %v139_v25 }
  0x2c   : > { %vm146_vm11 = vmand %vm142_vm9, %vm145_vm10  ;;  %vm1068_vm9 = vcmp.gt.s32.totalorder %v928_v17, %v923_v14 }
  0x2d   : > { %v147_v28 = vsel %vm146_vm11, %v935_v22, %v135_v26  ;;  %v148_v29 = vsel %vm146_vm11, %v139_v25, %v136_v27 }
  0x2e   : > { %v149_v30 = vrot.slane %v148_v29, 1  ;;  %v150_v31 = vrot.slane %v147_v28, 1 }
  0x30   : > { %vm151_vm12 = vcmp.ge.f32.partialorder %v149_v30, %v148_v29  ;;  %v154_v32 = vrot.slane %v149_v30, 1  ;;  %v155_v33 = vrot.slane %v150_v31, 1 }
  0x31   : > { %v152_v34 = vsel %vm151_vm12, %v149_v30, %v148_v29  ;;  %v153_v35 = vsel %vm151_vm12, %v150_v31, %v147_v28 }
  0x32   : > { %vm156_vm13 = vcmp.ge.f32.partialorder %v154_v32, %v152_v34  ;;  %v159_v36 = vrot.slane %v154_v32, 1  ;;  %v160_v37 = vrot.slane %v155_v33, 1 }
  0x33   : > { %v157_v38 = vsel %vm156_vm13, %v154_v32, %v152_v34  ;;  %v158_v39 = vsel %vm156_vm13, %v155_v33, %v153_v35 }
  0x34   : > { %vm161_vm14 = vcmp.ge.f32.partialorder %v159_v36, %v157_v38  ;;  %v164_v40 = vrot.slane %v159_v36, 1  ;;  %v165_v41 = vrot.slane %v160_v37, 1 }
  0x35   : > { %v162_v42 = vsel %vm161_vm14, %v159_v36, %v157_v38  ;;  %v163_v43 = vsel %vm161_vm14, %v160_v37, %v158_v39 }
  0x36   : > { %vm166_vm15 = vcmp.ge.f32.partialorder %v164_v40, %v162_v42  ;;  %v169_v44 = vrot.slane %v164_v40, 1  ;;  %v170_v45 = vrot.slane %v165_v41, 1 }
  0x37   : > { %v167_v46 = vsel %vm166_vm15, %v164_v40, %v162_v42  ;;  %v168_v47 = vsel %vm166_vm15, %v165_v41, %v163_v43 }
  0x38   : > { %vm171_vm0 = vcmp.ge.f32.partialorder %v169_v44, %v167_v46  ;;  %v174_v48 = vrot.slane %v169_v44, 1  ;;  %v175_v49 = vrot.slane %v170_v45, 1 }
  0x39   : > { %v172_v50 = vsel %vm171_vm0, %v169_v44, %v167_v46  ;;  %v173_v51 = vsel %vm171_vm0, %v170_v45, %v168_v47  ;;  %vm1002_vm0 = vmand %vm306_vm5, %vm950_vm3 }
  0x3a   : > { %vm176_vm1 = vcmp.ge.f32.partialorder %v174_v48, %v172_v50  ;;  %v179_v52 = vrot.slane %v174_v48, 1  ;;  %v180_v53 = vrot.slane %v175_v49, 1 }
  0x3b   : > { %v177_v54 = vsel %vm176_vm1, %v174_v48, %v172_v50  ;;  %v178_v55 = vsel %vm176_vm1, %v175_v49, %v173_v51 }
  0x3c   : > { %vm181_vm2 = vcmp.ge.f32.partialorder %v179_v52, %v177_v54 }
  0x3d   : > { %v183_v56 = vsel %vm181_vm2, %v180_v53, %v178_v55  ;;  %vm1011_vm2 = vmand %vm250_vm6, %vm950_vm3 }
  0x3e   : > { %185 = vrot.lane.b32.xlu0 %v183_v56, %s184_s24 }
  0xb0   : > { %v186_v57 = vpop.permute.xlu0 %185 }
  0xb1   : > { %624 = vpush %v186_v57 }
  0xe2   : > { %s625_s25 = spop %624 }
  0xe3   : > { %v192_v62 = vstv %s625_s25  ;;  %s197_s27 = scalar_lea.vmem [#allocation1], %s625_s25  ;;  %s203_s29 = scalar_lea.vmem [#allocation7], %s625_s25 }
  0xe4   : > { %v194_v63 = vsel %vm950_vm3, %v192_v62, %v193_v60  ;;  %v957_v0 = vld [vmem:[%s197_s27] ss:$0 sm:$0xff] }
  0xe5   : > { %195 = vst [vmem:[#allocation2] sm:$0x1] %v194_v63  ;;  %v205_v2 = vld [vmem:[%s203_s29] ss:$0 sm:$0xff]  ;;  %vm208_vm4 = vcmp.ne.f32.partialorder %v957_v0, 0.0 }
  0xe6   : > { %200 = vst [vmem:[%s197_s27] sm:$0x1] %v198_v61  ;;  %vm209_vm8 = vmand %vm950_vm3, %vm208_vm4 }
  0xe7   : > { %201 = vst [vmem:[%s196_s26] sm:$0x1] %v957_v0  ;;  %v210_v3 = vsel %vm209_vm8, %v957_v0, 1.0 }
  0xe8   : > { %206 = vst [vmem:[%s203_s29] sm:$0x1] %v204_v1  ;;  %v307_v5 = vsel %vm306_vm5, %v210_v3, 1.0  ;;  %v251_v7 = vsel %vm250_vm6, %v210_v3, 1.0  ;;  %v223_v8 = vsel %vm222_vm7, %v210_v3, 1.0  ;;  %v985_v9 = vsel %vm1068_vm9, %v210_v3, 1.0 }
  0xe9   : > { %207 = vst [vmem:[%s202_s28] sm:$0x1] %v205_v2  ;;  %757 = vrcp.f32 %v307_v5  ;;  %v317_v10 = vand.u32 2147483647, %v307_v5  ;;  %v319_v11 = vand.u32 2147483648, %v307_v5  ;;  %v261_v15 = vand.u32 2147483647, %v251_v7 }
  0xea   : > { %759 = vrcp.f32 %v251_v7  ;;  %v263_v16 = vand.u32 2147483648, %v251_v7  ;;  %vm313_vm10 = vweird.f32 %v307_v5  ;;  %vm257_vm11 = vweird.f32 %v251_v7 }
  0xeb   : > { %761 = vrcp.f32 %v223_v8  ;;  %vm988_vm12 = vcmp.eq.f32.partialorder %v317_v10, 8.507059e+37  ;;  %v320_v25 = vor.u32 1.1754944e-38, %v319_v11  ;;  %vm992_vm13 = vcmp.eq.f32.partialorder %v261_v15, 8.507059e+37 }
  0xec   : > { %763 = vrcp.f32 %v985_v9  ;;  %v264_v30 = vor.u32 1.1754944e-38, %v263_v16  ;;  %vm229_vm14 = vweird.f32 %v223_v8  ;;  %v233_v36 = vand.u32 2147483647, %v223_v8 }
  0xed   : > { %v235_v37 = vand.u32 2147483648, %v223_v8  ;;  %vm285_vm8 = vweird.f32 %v985_v9  ;;  %v289_v42 = vand.u32 2147483647, %v985_v9  ;;  %v291_v43 = vand.u32 2147483648, %v985_v9 }
  0xee   : > { %v303_v46 = vld [vmem:[#allocation1 + $0x18] sm:$0xff]  ;;  %v247_v51 = vld [vmem:[#allocation1 + $0x8] sm:$0xff]  ;;  %v219_v57 = vld [vmem:[#allocation1] sm:$0xff] }
  0xef   : > { %v758_v13 = vpop.eup %757  ;;  %v236_v49 = vor.u32 1.1754944e-38, %v235_v37  ;;  %v292_v1 = vor.u32 1.1754944e-38, %v291_v43 }
  0xf0   : > { %v760_v18 = vpop.eup %759  ;;  %v309_v19 = vmul.f32 %v758_v13, %v307_v5  ;;  %vm314_vm15 = vweird.f32 %v758_v13 }
  0xf1   : > { %v762_v20 = vpop.eup %761  ;;  %v253_v21 = vmul.f32 %v760_v18, %v251_v7  ;;  %vm258_vm1 = vweird.f32 %v760_v18  ;;  %vm315_vm5 = vmor %vm313_vm10, %vm314_vm15  ;;  %vm234_vm15 = vcmp.eq.f32.partialorder %v233_v36, 8.507059e+37  ;;  %v275_v7 = vld [vmem:[#allocation1 + $0x10] sm:$0xff] }
  0xf2   : > { %v310_v23 = vsub.f32 1.0, %v309_v19  ;;  %v225_v26 = vmul.f32 %v762_v20, %v223_v8  ;;  %v764_v27 = vpop.eup %763  ;;  %vm230_vm4 = vweird.f32 %v762_v20  ;;  %vm259_vm9 = vmor %vm257_vm11, %vm258_vm1 }
  0xf3   : > { %v254_v28 = vsub.f32 1.0, %v253_v21  ;;  %v281_v33 = vmul.f32 %v764_v27, %v985_v9  ;;  %vm286_vm6 = vweird.f32 %v764_v27  ;;  %vm231_vm10 = vmor %vm229_vm14, %vm230_vm4  ;;  %vm214_vm14 = vcmp.gt.s32.totalorder %v946_v58, %v923_v14  ;;  %v332_v58 = vld [vmem:[#allocation7 + $0x8] sm:$0xff] (%p94_p3) }
  0xf4   : > { %v311_v31 = vmul.f32 %v758_v13, %v310_v23  ;;  %v226_v32 = vsub.f32 1.0, %v225_v26  ;;  %vm1031_vm11 = vmand %vm222_vm7, %vm950_vm3  ;;  %vm290_vm7 = vcmp.eq.f32.partialorder %v289_v42, 8.507059e+37  ;;  %v215_v10 = vsel %vm214_vm14, %v957_v0, 0.0  ;;  %v334_v0 = vld [vmem:[#allocation7 + $0x10] sm:$0xff] (%p94_p3)  ;;  %v384_v26 = vld [vmem:[#allocation2] sm:$0x1] (%p94_p3) }
  0xf5   : > { %v255_v35 = vmul.f32 %v760_v18, %v254_v28  ;;  %v282_v22 = vsub.f32 1.0, %v281_v33  ;;  %387 = vst [vmem:[#allocation3] sm:$0x1] (%p94_p3), %v384_v26 }
  0xf6   : > { %v312_v38 = vadd.f32 %v758_v13, %v311_v31  ;;  %v227_v40 = vmul.f32 %v762_v20, %v226_v32 }
  0xf7   : > { %v256_v41 = vadd.f32 %v760_v18, %v255_v35  ;;  %v283_v45 = vmul.f32 %v764_v27, %v282_v22 }
  0xf8   : > { %v316_v44 = vsel %vm315_vm5, %v758_v13, %v312_v38  ;;  %v228_v12 = vadd.f32 %v762_v20, %v227_v40 }
  0xf9   : > { %v321_v47 = vsel %vm988_vm12, %v320_v25, %v316_v44  ;;  %v260_v48 = vsel %vm259_vm9, %v760_v18, %v256_v41  ;;  %v284_v55 = vadd.f32 %v764_v27, %v283_v45  ;;  %vm287_vm9 = vmor %vm285_vm8, %vm286_vm6  ;;  %vm1081_vm12 = vcmp.gt.s32.totalorder %v928_v17, %v923_v14  ;;  %v330_v14 = vld [vmem:[#allocation7] sm:$0xff] (%p94_p3)  ;;  %v336_v25 = vld [vmem:[#allocation7 + $0x18] sm:$0xff] (%p94_p3) }
  0xfa   : > { %v322_v50 = vmul.f32 %v321_v47, %v303_v46  ;;  %v265_v52 = vsel %vm992_vm13, %v264_v30, %v260_v48  ;;  %v232_v53 = vsel %vm231_vm10, %v762_v20, %v228_v12  ;;  %vm295_vm13 = vmand %vm1081_vm12, %vm950_vm3 }
  0xfb   : > { %v266_v56 = vmul.f32 %v265_v52, %v247_v51  ;;  %v237_v60 = vsel %vm234_vm15, %v236_v49, %v232_v53  ;;  %v288_v63 = vsel %vm287_vm9, %v764_v27, %v284_v55 }
  0xfc   : > { %v324_v61 = vsel %vm1002_vm0, %v322_v50, 0.0  ;;  %v238_v62 = vmul.f32 %v237_v60, %v219_v57  ;;  %v293_v5 = vsel %vm290_vm7, %v292_v1, %v288_v63 }
  0xfd   : > { %325 = vadd.xlane.f32.xlu2 %v324_v61  ;;  %v268_v2 = vsel %vm1011_vm2, %v266_v56, 0.0  ;;  %v294_v8 = vmul.f32 %v293_v5, %v275_v7 }
  0xfe   : > { %269 = vadd.xlane.f32.xlu1 %v268_v2  ;;  %v240_v3 = vsel %vm1031_vm11, %v238_v62, 0.0 }
  0xff   : > { %241 = vadd.xlane.f32.xlu0 %v240_v3  ;;  %v296_v9 = vsel %vm295_vm13, %v294_v8, 0.0 }
 0x106   : > { %297 = vadd.xlane.f32.xlu1 %v296_v9 }
 0x128   :  { %349 = vxpose.xlu0.b32.start [1/4] (short) (narrow) (%p94_p3), %v330_v14, 8 }
 0x130   :  { %350 = vxpose.xlu0.b32.cont [2/4] (short) (narrow) (%p94_p3), %v332_v58, 8 }
 0x138   :  { %351 = vxpose.xlu0.b32.cont [3/4] (short) (narrow) (%p94_p3), %v334_v0, 8 }
 0x140   :  { %352 = vxpose.xlu0.b32.end [4/4] (short) (narrow) (%p94_p3), %v336_v25, 8 }
 0x170   : > { %v326_v11 = vpop.xlane.xlu2 %325 }
 0x171   : > { %v327_v13 = vmul.f32 %v326_v11, %v215_v10  ;;  %v270_v15 = vpop.xlane.xlu1 %269 }
 0x172   : > { %v271_v16 = vmul.f32 %v270_v15, %v215_v10  ;;  %v242_v18 = vpop.xlane.xlu0 %241 }
 0x173   : > { %v328_v19 = vsub.f32 %v322_v50, %v327_v13  ;;  %v243_v20 = vmul.f32 %v242_v18, %v215_v10 }
 0x174   : > { %v272_v21 = vsub.f32 %v266_v56, %v271_v16 }
 0x175   : > { %329 = vst [vmem:[#allocation1 + $0x18] sm:$0xff] %v328_v19  ;;  %v244_v59 = vsub.f32 %v238_v62, %v243_v20 }
 0x176   : > { %273 = vst [vmem:[#allocation1 + $0x8] sm:$0xff] %v272_v21 }
 0x177   : > { %245 = vst [vmem:[#allocation1] sm:$0xff] %v244_v59 }
 0x179   : > { %v298_v17 = vpop.xlane.xlu1 %297 }
 0x17a   : > { %v299_v23 = vmul.f32 %v298_v17, %v215_v10 }
 0x17c   : > { %v300_v24 = vsub.f32 %v294_v8, %v299_v23  ;;  %96 = sbr.rel (!%p94_p3) target bundleno = 31 (0x1f), region = 193 }
 0x17e   : > { %301 = vst [vmem:[#allocation1 + $0x10] sm:$0xff] %v300_v24 }
 0x1cc   :  { %v365_v27 = vpop.trf.xlu0 }
 0x1cd   :  { %381 = vst [vmem:[#allocation5] sm:$0x1] %v365_v27 }
 0x1d4   :  { %v390_v28 = vld [vmem:[#allocation5] sm:$0x1] }
 0x1d5   :  { %393 = vst [vmem:[#allocation6] sm:$0x1] %v390_v28 }
 0x1d6 LB: > { %v437_v4 = vld [vmem:[%s877_s6] sm:$0xff]  ;;  %s439_s6 = scalar_lea.vmem %s877_s6, 8   ;;  %s877_s6 = sphi %s875_s6, %s439_s6   ;;  %s873_s5 = sphi %s871_s5, %s440_s5  }
 0x1d7   : > { %438 = vst [vmem:[%s873_s5] sm:$0xff] %v437_v4  ;;  %s440_s5 = scalar_lea.vmem %s873_s5, 8   ;;  %p434_p4 = scmp.gt.s32.totalorder %s439_s6, [#allocation1 + $0x18] }
 0x1d8   :  { %s457_s9 = sshll.u32 (%p434_p4), %s1066_s2, 4  ;;  %s880_s10 = smov (%p434_p4), [#allocation3]   ;;  %s458_s9 = int_to_ptr.hbm [resolvable:$true] %s457_s9 }
 0x1d9   :  { %436 = sbr.rel (!%p434_p4) target bundleno = 470 (0x1d6), region = 215  ;;  %s455_s1 = sshll.u32 (%p434_p4), %s880_s10, 4  ;;  %s456_s1 = int_to_ptr.vmem [resolvable:$true] %s455_s1 }
 0x1da   :  { %460 = dma.vmem_to_hbm [thread:$0]  (%p434_p4), %s456_s1, 16, %s458_s9, [#allocation4]  }
 0x1dc   :  { %v517_v6 = vld [vmem:[#allocation6] sm:$0x1] (%p434_p4) }
 0x1dd   :  { %518 = vst [vmem:[%s1067_s3] sm:$0x1] (%p434_p4), %v517_v6 }
 0x1de   :  { %853 = dma.done.wait [#allocation4], 16  }
 0x1df   :  { %854 = vsyncadd [#allocation4], 4294967280 }
 0x1e0   :  { %525 = vsyncpa [#allocation4], 1 }

// kernel: custom-call.24
= control target key start
LH: loop header
LB: loop body
LE: loop exit
PB: predicated region body
PF: predicated region fallthrough
CT: control target
= control target key end

     0   :  { %v47_v0 = vlaneseq  ;;  %v836_v18 = vmov -1.0   ;;  %v837_v61 = vmov 0.0   ;;  %s1040_s0 = inlined_call_operand.vmem [shape: f32[1,32,32], index: 0, kind: input, shape index: {}]   ;;  %s1041_s1 = inlined_call_operand.vmem [shape: f32[1,32,32], index: 1, kind: output, shape index: {}]  }
   0x1   :  { %v36_v1 = vld [vmem:[%s1040_s0] sm:$0xff]  ;;  %v38_v39 = vld [vmem:[%s1040_s0 + $0x8] sm:$0xff] }
   0x2   :  { %v851_v2 = vand.u32 127, %v47_v0  ;;  %v853_v3 = vshrl.u32 %v47_v0, 7 }
   0x4   :  { %vm53_vm0 = vcmp.eq.s32.totalorder %v853_v3, %v851_v2  ;;  %vm49_vm1 = vcmp.lt.s32.totalorder %v851_v2, 32  ;;  %vm58_vm2 = vcmp.ge.s32.totalorder %v853_v3, %v851_v2  ;;  %vm172_vm8 = vcmp.eq.s32.totalorder %v851_v2, 0 }
   0x5   :  { %v55_v4 = vsel %vm53_vm0, %v36_v1, 0.0  ;;  %vm59_vm3 = vmand %vm58_vm2, %vm49_vm1  ;;  %vm169_vm9 = vcmp.eq.s32.totalorder %v851_v2, %v853_v3  ;;  %v173_v19 = vsel %vm172_vm8, 1.0, %v836_v18  ;;  %vm201_vm10 = vcmp.eq.s32.totalorder %v851_v2, 1 }
   0x6   :  { %56 = vadd.xlane.f32.xlu0 %v55_v4  ;;  %v60_v13 = vsel %vm59_vm3, %v36_v1, 0.0  ;;  %v174_v20 = vsel %vm169_vm9, %v173_v19, 0.0  ;;  %vm211_vm11 = vcmp.eq.s32.totalorder %v851_v2, 2  ;;  %vm221_vm12 = vcmp.eq.s32.totalorder %v851_v2, 3 }
   0x7   :  { %v81_v40 = vadd.s32 8, %v853_v3  ;;  %vm231_vm14 = vcmp.eq.s32.totalorder %v851_v2, 4  ;;  %vm241_vm8 = vcmp.eq.s32.totalorder %v851_v2, 5  ;;  %vm251_vm9 = vcmp.eq.s32.totalorder %v851_v2, 6 }
   0x9   :  { %vm82_vm13 = vcmp.eq.s32.totalorder %v81_v40, %v851_v2  ;;  %vm87_vm15 = vcmp.ge.s32.totalorder %v81_v40, %v851_v2 }
   0xa   :  { %v84_v41 = vsel %vm82_vm13, %v38_v39, 0.0  ;;  %vm88_vm3 = vmand %vm87_vm15, %vm49_vm1  ;;  %vm299_vm13 = vcmp.eq.s32.totalorder %v851_v2, 10  ;;  %vm327_vm15 = vcmp.eq.s32.totalorder %v851_v2, 12 }
   0xb   :  { %v89_v56 = vsel %vm88_vm3, %v38_v39, 0.0  ;;  %vm341_vm3 = vcmp.eq.s32.totalorder %v851_v2, 13 }
  0x79   :  { %v857_v5 = vpop.xlane.xlu0 %56 }
  0x7a   :  { %828 = vrcp.f32 %v857_v5  ;;  %v72_v9 = vand.u32 2147483648, %v857_v5  ;;  %v70_v11 = vand.u32 2147483647, %v857_v5  ;;  %vm66_vm5 = vweird.f32 %v857_v5 }
  0x7c   :  { %v73_v14 = vor.u32 1.1754944e-38, %v72_v9  ;;  %vm71_vm7 = vcmp.eq.f32.partialorder %v70_v11, 8.507059e+37 }
  0x80   :  { %v829_v6 = vpop.eup %828 }
  0x81   :  { %v62_v7 = vmul.f32 %v829_v6, %v857_v5  ;;  %vm67_vm4 = vweird.f32 %v829_v6 }
  0x82   :  { %vm68_vm6 = vmor %vm66_vm5, %vm67_vm4 }
  0x83   :  { %v63_v8 = vsub.f32 1.0, %v62_v7 }
  0x85   :  { %v64_v10 = vmul.f32 %v829_v6, %v63_v8 }
  0x87   :  { %v65_v12 = vadd.f32 %v829_v6, %v64_v10 }
  0x89   :  { %v69_v15 = vsel %vm68_vm6, %v829_v6, %v65_v12 }
  0x8a   :  { %v871_v16 = vsel %vm71_vm7, %v73_v14, %v69_v15  ;;  %vm180_vm7 = vcmp.eq.s32.totalorder %v851_v2, %v81_v40 }
  0x8b   :  { %v75_v17 = vmul.f32 %v871_v16, %v60_v13  ;;  %v181_v62 = vsel %vm180_vm7, -1.0, %v837_v61 }
  0x8d   :  { %76 = vst [vmem:[#allocation2] sm:$0xff] %v75_v17 }
  0x94   :  { %v197_v21 = vld [vmem:[#allocation2 + $0x1] ss:$0 sm:$0xff]  ;;  %v207_v24 = vld [vmem:[#allocation2 + $0x2] ss:$0 sm:$0xff]  ;;  %v217_v29 = vld [vmem:[#allocation2 + $0x3] ss:$0 sm:$0xff] }
  0x95   :  { %v198_v22 = vxor.u32 2147483648, %v197_v21  ;;  %v208_v26 = vxor.u32 2147483648, %v207_v24  ;;  %v218_v31 = vxor.u32 2147483648, %v217_v29  ;;  %v227_v34 = vld [vmem:[#allocation2 + $0x4] ss:$0 sm:$0xff] }
  0x96   :  { %v228_v36 = vxor.u32 2147483648, %v227_v34  ;;  %v237_v42 = vld [vmem:[#allocation2 + $0x5] ss:$0 sm:$0xff]  ;;  %v247_v60 = vld [vmem:[#allocation2 + $0x6] ss:$0 sm:$0xff] }
  0x97   :  { %v202_v23 = vmul.f32 %v198_v22, %v174_v20  ;;  %v238_v44 = vxor.u32 2147483648, %v237_v42  ;;  %v248_v1 = vxor.u32 2147483648, %v247_v60  ;;  %v257_v9 = vld [vmem:[#allocation2 + $0x7] ss:$0 sm:$0xff] }
  0x98   :  { %v258_v11 = vxor.u32 2147483648, %v257_v9 }
  0x99   :  { %203 = vadd.xlane.f32.xlu0 %v202_v23 }
 0x10c   :  { %v204_v25 = vpop.xlane.xlu0 %203 }
 0x10d   :  { %v205_v27 = vsel %vm201_vm10, %v204_v25, %v174_v20  ;;  %vm261_vm10 = vcmp.eq.s32.totalorder %v851_v2, 7 }
 0x10e   :  { %v212_v28 = vmul.f32 %v208_v26, %v205_v27 }
 0x110   :  { %213 = vadd.xlane.f32.xlu1 %v212_v28 }
 0x183   :  { %v214_v30 = vpop.xlane.xlu1 %213 }
 0x184   :  { %v215_v32 = vsel %vm211_vm11, %v214_v30, %v205_v27  ;;  %vm271_vm11 = vcmp.eq.s32.totalorder %v851_v2, 8 }
 0x185   :  { %v222_v33 = vmul.f32 %v218_v31, %v215_v32 }
 0x187   :  { %223 = vadd.xlane.f32.xlu1 %v222_v33 }
 0x18f   :  { %85 = vadd.xlane.f32.xlu1 %v84_v41 }
 0x1fa   :  { %v224_v35 = vpop.xlane.xlu1 %223 }
 0x1fb   :  { %v225_v37 = vsel %vm221_vm12, %v224_v35, %v215_v32  ;;  %vm285_vm12 = vcmp.eq.s32.totalorder %v851_v2, 9 }
 0x1fc   :  { %v232_v38 = vmul.f32 %v228_v36, %v225_v37 }
 0x1fe   :  { %233 = vadd.xlane.f32.xlu2 %v232_v38 }
 0x202   :  { %v886_v47 = vpop.xlane.xlu1 %85 }
 0x203   :  { %830 = vrcp.f32 %v886_v47  ;;  %v101_v50 = vand.u32 2147483648, %v886_v47  ;;  %vm95_vm0 = vweird.f32 %v886_v47  ;;  %v99_v52 = vand.u32 2147483647, %v886_v47 }
 0x205   :  { %v102_v54 = vor.u32 1.1754944e-38, %v101_v50  ;;  %vm100_vm6 = vcmp.eq.f32.partialorder %v99_v52, 8.507059e+37 }
 0x209   :  { %v831_v48 = vpop.eup %830 }
 0x20a   :  { %v91_v49 = vmul.f32 %v831_v48, %v886_v47  ;;  %vm96_vm2 = vweird.f32 %v831_v48 }
 0x20b   :  { %vm97_vm4 = vmor %vm95_vm0, %vm96_vm2 }
 0x20c   :  { %v92_v51 = vsub.f32 1.0, %v91_v49 }
 0x20e   :  { %v93_v53 = vmul.f32 %v831_v48, %v92_v51 }
 0x210   :  { %v94_v55 = vadd.f32 %v831_v48, %v93_v53 }
 0x212   :  { %v98_v57 = vsel %vm97_vm4, %v831_v48, %v94_v55 }
 0x213   :  { %v898_v58 = vsel %vm100_vm6, %v102_v54, %v98_v57  ;;  %v40_v57 = vld [vmem:[%s1040_s0 + $0x10] sm:$0xff] }
 0x214   :  { %v104_v59 = vmul.f32 %v898_v58, %v89_v56  ;;  %v110_v56 = vadd.s32 16, %v853_v3 }
 0x216   :  { %105 = vst [vmem:[#allocation2 + $0x8] sm:$0xff] %v104_v59  ;;  %vm111_vm2 = vcmp.eq.s32.totalorder %v110_v56, %v851_v2  ;;  %vm116_vm4 = vcmp.ge.s32.totalorder %v110_v56, %v851_v2 }
 0x217   :  { %v113_v59 = vsel %vm111_vm2, %v40_v57, 0.0  ;;  %vm419_vm2 = vcmp.eq.s32.totalorder %v851_v2, 18 }
 0x21d   :  { %v267_v63 = vld [vmem:[#allocation2 + $0x8] ss:$0 sm:$0xff]  ;;  %v281_v18 = vld [vmem:[#allocation2 + $0x9] ss:$0 sm:$0xff]  ;;  %v295_v26 = vld [vmem:[#allocation2 + $0xa] ss:$0 sm:$0xff] }
 0x21e   :  { %v268_v4 = vxor.u32 2147483648, %v267_v63  ;;  %v282_v20 = vxor.u32 2147483648, %v281_v18  ;;  %v296_v28 = vxor.u32 2147483648, %v295_v26  ;;  %v309_v34 = vld [vmem:[#allocation2 + $0xb] ss:$0 sm:$0xff] }
 0x21f   :  { %v310_v36 = vxor.u32 2147483648, %v309_v34  ;;  %v323_v42 = vld [vmem:[#allocation2 + $0xc] ss:$0 sm:$0xff]  ;;  %v337_v51 = vld [vmem:[#allocation2 + $0xd] ss:$0 sm:$0xff] }
 0x220   :  { %v276_v8 = vmul.f32 %v268_v4, %v181_v62  ;;  %v338_v53 = vxor.u32 2147483648, %v337_v51 }
 0x222   :  { %277 = vadd.xlane.f32.xlu1 %v276_v8 }
 0x271   :  { %v234_v43 = vpop.xlane.xlu2 %233 }
 0x272   :  { %v235_v45 = vsel %vm231_vm14, %v234_v43, %v225_v37  ;;  %vm313_vm14 = vcmp.eq.s32.totalorder %v851_v2, 11 }
 0x273   :  { %v242_v46 = vmul.f32 %v238_v44, %v235_v45  ;;  %v324_v44 = vxor.u32 2147483648, %v323_v42 }
 0x275   :  { %243 = vadd.xlane.f32.xlu2 %v242_v46 }
 0x295   :  { %v278_v19 = vpop.xlane.xlu1 %277 }
 0x296   :  { %v279_v21 = vsel %vm271_vm11, %v278_v19, %v181_v62 }
 0x297   :  { %v290_v22 = vmul.f32 %v282_v20, %v279_v21 }
 0x2e8   :  { %v244_v0 = vpop.xlane.xlu2 %243 }
 0x2e9   :  { %v245_v6 = vsel %vm241_vm8, %v244_v0, %v235_v45  ;;  %v351_v0 = vld [vmem:[#allocation2 + $0xe] ss:$0 sm:$0xff]  ;;  %vm117_vm8 = vmand %vm116_vm4, %vm49_vm1  ;;  %vm455_vm4 = vcmp.eq.s32.totalorder %v851_v2, 20 }
 0x2ea   :  { %v252_v7 = vmul.f32 %v248_v1, %v245_v6  ;;  %v118_v18 = vsel %vm117_vm8, %v40_v57, 0.0 }
 0x2ec   :  { %253 = vadd.xlane.f32.xlu0 %v252_v7 }
 0x35f   :  { %v254_v10 = vpop.xlane.xlu0 %253 }
 0x360   :  { %v255_v12 = vsel %vm251_vm9, %v254_v10, %v245_v6 }
 0x361   :  { %v262_v13 = vmul.f32 %v258_v11, %v255_v12 }
 0x363   :  { %263 = vadd.xlane.f32.xlu2 %v262_v13 }
 0x3d6   :  { %v264_v14 = vpop.xlane.xlu2 %263 }
 0x3d7   :  { %v265_v15 = vsel %vm261_vm10, %v264_v14, %v255_v12 }
 0x3d8   :  { %v272_v17 = vmul.f32 %v268_v4, %v265_v15  ;;  %v352_v4 = vxor.u32 2147483648, %v351_v0 }
 0x3da   :  { %273 = vadd.xlane.f32.xlu0 %v272_v17 }
 0x3e2   :  { %291 = vadd.xlane.f32.xlu0 %v290_v22 }
 0x44d   :  { %v274_v23 = vpop.xlane.xlu0 %273 }
 0x44e   :  { %v275_v24 = vsel %vm271_vm11, %v274_v23, %v265_v15  ;;  %vm355_vm11 = vcmp.eq.s32.totalorder %v851_v2, 14 }
 0x44f   :  { %v286_v25 = vmul.f32 %v282_v20, %v275_v24 }
 0x451   :  { %287 = vadd.xlane.f32.xlu2 %v286_v25  ;;  %v365_v25 = vld [vmem:[#allocation2 + $0xf] ss:$0 sm:$0xff] }
 0x455   :  { %v292_v27 = vpop.xlane.xlu0 %291 }
 0x456   :  { %v293_v29 = vsel %vm285_vm12, %v292_v27, %v279_v21  ;;  %v366_v27 = vxor.u32 2147483648, %v365_v25 }
 0x457   :  { %v304_v30 = vmul.f32 %v296_v28, %v293_v29 }
 0x459   :  { %305 = vadd.xlane.f32.xlu2 %v304_v30 }
 0x4c4   :  { %v288_v31 = vpop.xlane.xlu2 %287 }
 0x4c5   :  { %v289_v32 = vsel %vm285_vm12, %v288_v31, %v275_v24  ;;  %vm187_vm12 = vcmp.eq.s32.totalorder %v851_v2, %v110_v56 }
 0x4c6   :  { %v300_v33 = vmul.f32 %v296_v28, %v289_v32 }
 0x4c8   :  { %301 = vadd.xlane.f32.xlu1 %v300_v33 }
 0x4cc   :  { %v306_v35 = vpop.xlane.xlu2 %305 }
 0x4cd   :  { %v307_v37 = vsel %vm299_vm13, %v306_v35, %v293_v29 }
 0x4ce   :  { %v318_v38 = vmul.f32 %v310_v36, %v307_v37 }
 0x4d0   :  { %319 = vadd.xlane.f32.xlu1 %v318_v38 }
 0x53b   :  { %v302_v39 = vpop.xlane.xlu1 %301 }
 0x53c   :  { %v303_v40 = vsel %vm299_vm13, %v302_v39, %v289_v32  ;;  %v188_v32 = vsel %vm187_vm12, -1.0, %v837_v61  ;;  %vm369_vm13 = vcmp.eq.s32.totalorder %v851_v2, 15 }
 0x53d   :  { %v314_v41 = vmul.f32 %v310_v36, %v303_v40 }
 0x53f   :  { %315 = vadd.xlane.f32.xlu0 %v314_v41 }
 0x543   :  { %v320_v43 = vpop.xlane.xlu1 %319 }
 0x544   :  { %v321_v45 = vsel %vm313_vm14, %v320_v43, %v307_v37 }
 0x545   :  { %v332_v46 = vmul.f32 %v324_v44, %v321_v45 }
 0x547   :  { %333 = vadd.xlane.f32.xlu0 %v332_v46 }
 0x5b2   :  { %v316_v48 = vpop.xlane.xlu0 %315 }
 0x5b3   :  { %v317_v49 = vsel %vm313_vm14, %v316_v48, %v303_v40  ;;  %vm383_vm14 = vcmp.eq.s32.totalorder %v851_v2, 16 }
 0x5b4   :  { %v328_v50 = vmul.f32 %v324_v44, %v317_v49 }
 0x5b6   :  { %329 = vadd.xlane.f32.xlu2 %v328_v50 }
 0x5ba   :  { %v334_v52 = vpop.xlane.xlu0 %333 }
 0x5bb   :  { %v335_v54 = vsel %vm327_vm15, %v334_v52, %v321_v45 }
 0x5bc   :  { %v346_v55 = vmul.f32 %v338_v53, %v335_v54 }
 0x5be   :  { %347 = vadd.xlane.f32.xlu2 %v346_v55 }
 0x5c6   :  { %114 = vadd.xlane.f32.xlu2 %v113_v59 }
 0x629   :  { %v330_v60 = vpop.xlane.xlu2 %329 }
 0x62a   :  { %v331_v62 = vsel %vm327_vm15, %v330_v60, %v317_v49  ;;  %vm401_vm15 = vcmp.eq.s32.totalorder %v851_v2, 17 }
 0x62b   :  { %v342_v63 = vmul.f32 %v338_v53, %v331_v62 }
 0x62d   :  { %343 = vadd.xlane.f32.xlu1 %v342_v63 }
 0x631   :  { %v348_v1 = vpop.xlane.xlu2 %347 }
 0x632   :  { %v349_v6 = vsel %vm341_vm3, %v348_v1, %v335_v54 }
 0x633   :  { %v360_v7 = vmul.f32 %v352_v4, %v349_v6 }
 0x635   :  { %361 = vadd.xlane.f32.xlu1 %v360_v7 }
 0x639   :  { %v919_v8 = vpop.xlane.xlu2 %114 }
 0x63a   :  { %832 = vrcp.f32 %v919_v8  ;;  %v130_v11 = vand.u32 2147483648, %v919_v8  ;;  %vm124_vm6 = vweird.f32 %v919_v8  ;;  %v128_v13 = vand.u32 2147483647, %v919_v8 }
 0x63c   :  { %v131_v15 = vor.u32 1.1754944e-38, %v130_v11  ;;  %vm129_vm10 = vcmp.eq.f32.partialorder %v128_v13, 8.507059e+37 }
 0x640   :  { %v833_v9 = vpop.eup %832 }
 0x641   :  { %v120_v10 = vmul.f32 %v833_v9, %v919_v8  ;;  %vm125_vm7 = vweird.f32 %v833_v9 }
 0x642   :  { %vm126_vm9 = vmor %vm124_vm6, %vm125_vm7  ;;  %vm473_vm7 = vcmp.eq.s32.totalorder %v851_v2, 21 }
 0x643   :  { %v121_v12 = vsub.f32 1.0, %v120_v10 }
 0x645   :  { %v122_v14 = vmul.f32 %v833_v9, %v121_v12 }
 0x647   :  { %v123_v17 = vadd.f32 %v833_v9, %v122_v14 }
 0x649   :  { %v127_v19 = vsel %vm126_vm9, %v833_v9, %v123_v17  ;;  %vm491_vm9 = vcmp.eq.s32.totalorder %v851_v2, 22 }
 0x64a   :  { %v931_v20 = vsel %vm129_vm10, %v131_v15, %v127_v19 }
 0x64b   :  { %v133_v21 = vmul.f32 %v931_v20, %v118_v18 }
 0x64d   :  { %134 = vst [vmem:[#allocation2 + $0x10] sm:$0xff] %v133_v21 }
 0x654   :  { %v379_v29 = vld [vmem:[#allocation2 + $0x10] ss:$0 sm:$0xff]  ;;  %v397_v40 = vld [vmem:[#allocation2 + $0x11] ss:$0 sm:$0xff]  ;;  %v415_v52 = vld [vmem:[#allocation2 + $0x12] ss:$0 sm:$0xff] }
 0x655   :  { %v380_v31 = vxor.u32 2147483648, %v379_v29  ;;  %v398_v41 = vxor.u32 2147483648, %v397_v40  ;;  %v416_v54 = vxor.u32 2147483648, %v415_v52  ;;  %v433_v1 = vld [vmem:[#allocation2 + $0x13] ss:$0 sm:$0xff] }
 0x656   :  { %v451_v17 = vld [vmem:[#allocation2 + $0x14] ss:$0 sm:$0xff]  ;;  %v469_v29 = vld [vmem:[#allocation2 + $0x15] ss:$0 sm:$0xff]  ;;  %v487_v40 = vld [vmem:[#allocation2 + $0x16] ss:$0 sm:$0xff] }
 0x657   :  { %v392_v33 = vmul.f32 %v380_v31, %v188_v32  ;;  %v452_v19 = vxor.u32 2147483648, %v451_v17 }
 0x6a0   :  { %v344_v22 = vpop.xlane.xlu1 %343 }
 0x6a1   :  { %v345_v23 = vsel %vm341_vm3, %v344_v22, %v331_v62  ;;  %vm437_vm3 = vcmp.eq.s32.totalorder %v851_v2, 19 }
 0x6a2   :  { %v356_v24 = vmul.f32 %v352_v4, %v345_v23 }
 0x6a4   :  { %357 = vadd.xlane.f32.xlu0 %v356_v24 }
 0x6a8   :  { %v362_v26 = vpop.xlane.xlu1 %361 }
 0x6a9   :  { %v363_v28 = vsel %vm355_vm11, %v362_v26, %v349_v6  ;;  %v434_v6 = vxor.u32 2147483648, %v433_v1 }
 0x6aa   :  { %v374_v30 = vmul.f32 %v366_v27, %v363_v28 }
 0x6ac   :  { %375 = vadd.xlane.f32.xlu1 %v374_v30 }
 0x6b4   :  { %393 = vadd.xlane.f32.xlu1 %v392_v33 }
 0x717   :  { %v358_v34 = vpop.xlane.xlu0 %357 }
 0x718   :  { %v359_v35 = vsel %vm355_vm11, %v358_v34, %v345_v23 }
 0x719   :  { %v370_v36 = vmul.f32 %v366_v27, %v359_v35 }
 0x71b   :  { %371 = vadd.xlane.f32.xlu0 %v370_v36 }
 0x71f   :  { %v376_v37 = vpop.xlane.xlu1 %375 }
 0x720   :  { %v377_v38 = vsel %vm369_vm13, %v376_v37, %v363_v28 }
 0x721   :  { %v388_v39 = vmul.f32 %v380_v31, %v377_v38 }
 0x723   :  { %389 = vadd.xlane.f32.xlu0 %v388_v39 }
 0x727   :  { %v394_v42 = vpop.xlane.xlu1 %393 }
 0x728   :  { %v395_v43 = vsel %vm383_vm14, %v394_v42, %v188_v32  ;;  %v488_v42 = vxor.u32 2147483648, %v487_v40 }
 0x729   :  { %v410_v44 = vmul.f32 %v398_v41, %v395_v43 }
 0x72b   :  { %411 = vadd.xlane.f32.xlu1 %v410_v44 }
 0x78e   :  { %v372_v45 = vpop.xlane.xlu0 %371 }
 0x78f   :  { %v373_v46 = vsel %vm369_vm13, %v372_v45, %v359_v35 }
 0x790   :  { %v384_v48 = vmul.f32 %v380_v31, %v373_v46  ;;  %v470_v31 = vxor.u32 2147483648, %v469_v29 }
 0x792   :  { %385 = vadd.xlane.f32.xlu2 %v384_v48 }
 0x796   :  { %v390_v49 = vpop.xlane.xlu0 %389 }
 0x797   :  { %v391_v50 = vsel %vm383_vm14, %v390_v49, %v377_v38 }
 0x798   :  { %v406_v51 = vmul.f32 %v398_v41, %v391_v50 }
 0x79a   :  { %407 = vadd.xlane.f32.xlu0 %v406_v51 }
 0x79e   :  { %v412_v53 = vpop.xlane.xlu1 %411 }
 0x79f   :  { %v413_v55 = vsel %vm401_vm15, %v412_v53, %v395_v43 }
 0x7a0   :  { %v428_v56 = vmul.f32 %v416_v54, %v413_v55 }
 0x7a2   :  { %429 = vadd.xlane.f32.xlu1 %v428_v56  ;;  %v505_v56 = vld [vmem:[#allocation2 + $0x17] ss:$0 sm:$0xff] }
 0x805   :  { %v386_v57 = vpop.xlane.xlu2 %385 }
 0x806   :  { %v387_v59 = vsel %vm383_vm14, %v386_v57, %v373_v46  ;;  %v42_v57 = vld [vmem:[%s1040_s0 + $0x18] sm:$0xff] }
 0x807   :  { %v402_v60 = vmul.f32 %v398_v41, %v387_v59 }
 0x809   :  { %403 = vadd.xlane.f32.xlu2 %v402_v60  ;;  %v506_v60 = vxor.u32 2147483648, %v505_v56 }
 0x80d   :  { %v408_v62 = vpop.xlane.xlu0 %407 }
 0x80e   :  { %v409_v63 = vsel %vm401_vm15, %v408_v62, %v391_v50 }
 0x80f   :  { %v424_v0 = vmul.f32 %v416_v54, %v409_v63 }
 0x811   :  { %425 = vadd.xlane.f32.xlu0 %v424_v0 }
 0x815   :  { %v430_v4 = vpop.xlane.xlu1 %429 }
 0x816   :  { %v431_v7 = vsel %vm419_vm2, %v430_v4, %v413_v55  ;;  %v139_v55 = vadd.s32 24, %v853_v3 }
 0x817   :  { %v446_v9 = vmul.f32 %v434_v6, %v431_v7 }
 0x818   :  { %vm140_vm8 = vcmp.eq.s32.totalorder %v139_v55, %v851_v2  ;;  %vm145_vm10 = vcmp.ge.s32.totalorder %v139_v55, %v851_v2 }
 0x819   :  { %447 = vadd.xlane.f32.xlu1 %v446_v9  ;;  %vm146_vm13 = vmand %vm145_vm10, %vm49_vm1  ;;  %vm194_vm1 = vcmp.eq.s32.totalorder %v851_v2, %v139_v55  ;;  %vm637_vm10 = vcmp.eq.s32.totalorder %v851_v2, 29 }
 0x87c   :  { %v404_v10 = vpop.xlane.xlu2 %403 }
 0x87d   :  { %v405_v11 = vsel %vm401_vm15, %v404_v10, %v387_v59 }
 0x87e   :  { %v420_v12 = vmul.f32 %v416_v54, %v405_v11 }
 0x880   :  { %421 = vadd.xlane.f32.xlu2 %v420_v12 }
 0x884   :  { %v426_v13 = vpop.xlane.xlu0 %425 }
 0x885   :  { %v427_v14 = vsel %vm419_vm2, %v426_v13, %v409_v63  ;;  %v142_v63 = vsel %vm140_vm8, %v42_v57, 0.0  ;;  %vm593_vm8 = vcmp.eq.s32.totalorder %v851_v2, 27 }
 0x886   :  { %v442_v15 = vmul.f32 %v434_v6, %v427_v14 }
 0x888   :  { %443 = vadd.xlane.f32.xlu0 %v442_v15 }
 0x88c   :  { %v448_v18 = vpop.xlane.xlu1 %447 }
 0x88d   :  { %v449_v21 = vsel %vm437_vm3, %v448_v18, %v431_v7 }
 0x88e   :  { %v464_v22 = vmul.f32 %v452_v19, %v449_v21 }
 0x890   :  { %465 = vadd.xlane.f32.xlu1 %v464_v22 }
 0x8f3   :  { %v422_v23 = vpop.xlane.xlu2 %421 }
 0x8f4   :  { %v423_v24 = vsel %vm419_vm2, %v422_v23, %v405_v11  ;;  %vm509_vm2 = vcmp.eq.s32.totalorder %v851_v2, 23 }
 0x8f5   :  { %v438_v25 = vmul.f32 %v434_v6, %v423_v24 }
 0x8f7   :  { %439 = vadd.xlane.f32.xlu2 %v438_v25 }
 0x8fb   :  { %v444_v26 = vpop.xlane.xlu0 %443 }
 0x8fc   :  { %v445_v27 = vsel %vm437_vm3, %v444_v26, %v427_v14 }
 0x8fd   :  { %v460_v28 = vmul.f32 %v452_v19, %v445_v27 }
 0x8ff   :  { %461 = vadd.xlane.f32.xlu0 %v460_v28 }
 0x903   :  { %v466_v30 = vpop.xlane.xlu1 %465 }
 0x904   :  { %v467_v32 = vsel %vm455_vm4, %v466_v30, %v449_v21  ;;  %v147_v21 = vsel %vm146_vm13, %v42_v57, 0.0  ;;  %vm681_vm13 = vcmp.eq.s32.totalorder %v851_v2, 31 }
 0x905   :  { %v482_v33 = vmul.f32 %v470_v31, %v467_v32 }
 0x907   :  { %483 = vadd.xlane.f32.xlu1 %v482_v33 }
 0x96a   :  { %v440_v34 = vpop.xlane.xlu2 %439 }
 0x96b   :  { %v441_v35 = vsel %vm437_vm3, %v440_v34, %v423_v24  ;;  %vm527_vm3 = vcmp.eq.s32.totalorder %v851_v2, 24 }
 0x96c   :  { %v456_v36 = vmul.f32 %v452_v19, %v441_v35 }
 0x96e   :  { %457 = vadd.xlane.f32.xlu2 %v456_v36  ;;  %v195_v36 = vsel %vm194_vm1, -1.0, %v837_v61 }
 0x972   :  { %v462_v37 = vpop.xlane.xlu0 %461 }
 0x973   :  { %v463_v38 = vsel %vm455_vm4, %v462_v37, %v445_v27 }
 0x974   :  { %v478_v39 = vmul.f32 %v470_v31, %v463_v38 }
 0x976   :  { %479 = vadd.xlane.f32.xlu0 %v478_v39 }
 0x97a   :  { %v484_v41 = vpop.xlane.xlu1 %483 }
 0x97b   :  { %v485_v43 = vsel %vm473_vm7, %v484_v41, %v467_v32 }
 0x97c   :  { %v500_v44 = vmul.f32 %v488_v42, %v485_v43 }
 0x97e   :  { %501 = vadd.xlane.f32.xlu1 %v500_v44 }
 0x9e1   :  { %v458_v45 = vpop.xlane.xlu2 %457 }
 0x9e2   :  { %v459_v46 = vsel %vm455_vm4, %v458_v45, %v441_v35  ;;  %vm549_vm4 = vcmp.eq.s32.totalorder %v851_v2, 25 }
 0x9e3   :  { %v474_v48 = vmul.f32 %v470_v31, %v459_v46 }
 0x9e5   :  { %475 = vadd.xlane.f32.xlu2 %v474_v48 }
 0x9e9   :  { %v480_v49 = vpop.xlane.xlu0 %479 }
 0x9ea   :  { %v481_v50 = vsel %vm473_vm7, %v480_v49, %v463_v38 }
 0x9eb   :  { %v496_v51 = vmul.f32 %v488_v42, %v481_v50 }
 0x9ed   :  { %497 = vadd.xlane.f32.xlu0 %v496_v51 }
 0x9f1   :  { %v502_v1 = vpop.xlane.xlu1 %501 }
 0x9f2   :  { %v503_v4 = vsel %vm491_vm9, %v502_v1, %v485_v43 }
 0x9f3   :  { %v518_v3 = vmul.f32 %v506_v60, %v503_v4 }
 0xa58   :  { %v476_v52 = vpop.xlane.xlu2 %475 }
 0xa59   :  { %v477_v53 = vsel %vm473_vm7, %v476_v52, %v459_v46  ;;  %vm571_vm7 = vcmp.eq.s32.totalorder %v851_v2, 26 }
 0xa5a   :  { %v492_v54 = vmul.f32 %v488_v42, %v477_v53 }
 0xa5c   :  { %493 = vadd.xlane.f32.xlu2 %v492_v54 }
 0xa60   :  { %v498_v59 = vpop.xlane.xlu0 %497 }
 0xa61   :  { %v499_v62 = vsel %vm491_vm9, %v498_v59, %v481_v50 }
 0xa62   :  { %v514_v0 = vmul.f32 %v506_v60, %v499_v62 }
 0xa64   :  { %143 = vadd.xlane.f32.xlu2 %v142_v63  ;;  %515 = vadd.xlane.f32.xlu1 %v514_v0 }
 0xa6c   :  { %519 = vadd.xlane.f32.xlu2 %v518_v3 }
 0xacf   :  { %v494_v6 = vpop.xlane.xlu2 %493 }
 0xad0   :  { %v495_v7 = vsel %vm491_vm9, %v494_v6, %v477_v53  ;;  %vm615_vm9 = vcmp.eq.s32.totalorder %v851_v2, 28 }
 0xad1   :  { %v510_v9 = vmul.f32 %v506_v60, %v495_v7 }
 0xad3   :  { %511 = vadd.xlane.f32.xlu0 %v510_v9 }
 0xad7   :  { %v982_v10 = vpop.xlane.xlu2 %143  ;;  %v516_v25 = vpop.xlane.xlu1 %515 }
 0xad8   :  { %834 = vrcp.f32 %v982_v10  ;;  %v159_v13 = vand.u32 2147483648, %v982_v10  ;;  %vm153_vm11 = vweird.f32 %v982_v10  ;;  %v157_v15 = vand.u32 2147483647, %v982_v10 }
 0xad9   :  { %v517_v29 = vsel %vm509_vm2, %v516_v25, %v499_v62 }
 0xada   :  { %v160_v18 = vor.u32 1.1754944e-38, %v159_v13  ;;  %vm158_vm15 = vcmp.eq.f32.partialorder %v157_v15, 8.507059e+37 }
 0xade   :  { %v835_v11 = vpop.eup %834 }
 0xadf   :  { %v149_v12 = vmul.f32 %v835_v11, %v982_v10  ;;  %vm154_vm12 = vweird.f32 %v835_v11  ;;  %v520_v26 = vpop.xlane.xlu2 %519 }
 0xae0   :  { %vm155_vm14 = vmor %vm153_vm11, %vm154_vm12  ;;  %v521_v30 = vsel %vm509_vm2, %v520_v26, %v503_v4  ;;  %vm659_vm12 = vcmp.eq.s32.totalorder %v851_v2, 30 }
 0xae1   :  { %v150_v14 = vsub.f32 1.0, %v149_v12 }
 0xae3   :  { %v151_v17 = vmul.f32 %v835_v11, %v150_v14 }
 0xae5   :  { %v152_v19 = vadd.f32 %v835_v11, %v151_v17 }
 0xae7   :  { %v156_v22 = vsel %vm155_vm14, %v835_v11, %v152_v19 }
 0xae8   :  { %v994_v23 = vsel %vm158_vm15, %v160_v18, %v156_v22 }
 0xae9   :  { %v162_v24 = vmul.f32 %v994_v23, %v147_v21 }
 0xaeb   :  { %163 = vst [vmem:[#allocation2 + $0x18] sm:$0xff] %v162_v24 }
 0xaf2   :  { %v523_v27 = vld [vmem:[#allocation2 + $0x18] ss:$0 sm:$0xff]  ;;  %v545_v38 = vld [vmem:[#allocation2 + $0x19] ss:$0 sm:$0xff]  ;;  %v567_v52 = vld [vmem:[#allocation2 + $0x1a] ss:$0 sm:$0xff] }
 0xaf3   :  { %v524_v28 = vxor.u32 2147483648, %v523_v27  ;;  %v546_v41 = vxor.u32 2147483648, %v545_v38  ;;  %v568_v55 = vxor.u32 2147483648, %v567_v52  ;;  %v589_v6 = vld [vmem:[#allocation2 + $0x1b] ss:$0 sm:$0xff] }
 0xaf4   :  { %v590_v11 = vxor.u32 2147483648, %v589_v6  ;;  %v611_v25 = vld [vmem:[#allocation2 + $0x1c] ss:$0 sm:$0xff] }
 0xaf5   :  { %v536_v31 = vmul.f32 %v524_v28, %v521_v30  ;;  %v532_v32 = vmul.f32 %v524_v28, %v517_v29  ;;  %v540_v37 = vmul.f32 %v524_v28, %v195_v36 }
 0xaf7   :  { %537 = vadd.xlane.f32.xlu2 %v536_v31  ;;  %533 = vadd.xlane.f32.xlu1 %v532_v32 }
 0xb46   :  { %v512_v33 = vpop.xlane.xlu0 %511 }
 0xb47   :  { %v513_v34 = vsel %vm509_vm2, %v512_v33, %v495_v7 }
 0xb48   :  { %v528_v35 = vmul.f32 %v524_v28, %v513_v34  ;;  %v612_v28 = vxor.u32 2147483648, %v611_v25 }
 0xb4a   :  { %529 = vadd.xlane.f32.xlu0 %v528_v35 }
 0xb52   :  { %541 = vadd.xlane.f32.xlu0 %v540_v37 }
 0xb6a   :  { %v538_v39 = vpop.xlane.xlu2 %537  ;;  %v534_v40 = vpop.xlane.xlu1 %533 }
 0xb6b   :  { %v539_v42 = vsel %vm527_vm3, %v538_v39, %v521_v30  ;;  %v535_v43 = vsel %vm527_vm3, %v534_v40, %v517_v29  ;;  %v633_v39 = vld [vmem:[#allocation2 + $0x1d] ss:$0 sm:$0xff] }
 0xb6c   :  { %v554_v44 = vmul.f32 %v546_v41, %v535_v43  ;;  %v558_v45 = vmul.f32 %v546_v41, %v539_v42 }
 0xb6e   :  { %555 = vadd.xlane.f32.xlu2 %v554_v44  ;;  %559 = vadd.xlane.f32.xlu0 %v558_v45 }
 0xbbd   :  { %v530_v46 = vpop.xlane.xlu0 %529 }
 0xbbe   :  { %v531_v48 = vsel %vm527_vm3, %v530_v46, %v513_v34 }
 0xbbf   :  { %v550_v49 = vmul.f32 %v546_v41, %v531_v48 }
 0xbc1   :  { %551 = vadd.xlane.f32.xlu1 %v550_v49 }
 0xbc5   :  { %v542_v50 = vpop.xlane.xlu0 %541 }
 0xbc6   :  { %v543_v61 = vsel %vm527_vm3, %v542_v50, %v195_v36 }
 0xbc7   :  { %v562_v51 = vmul.f32 %v546_v41, %v543_v61 }
 0xbc9   :  { %563 = vadd.xlane.f32.xlu1 %v562_v51 }
 0xbe1   :  { %v556_v53 = vpop.xlane.xlu2 %555  ;;  %v560_v54 = vpop.xlane.xlu0 %559 }
 0xbe2   :  { %v557_v56 = vsel %vm549_vm4, %v556_v53, %v535_v43  ;;  %v561_v57 = vsel %vm549_vm4, %v560_v54, %v539_v42  ;;  %v634_v42 = vxor.u32 2147483648, %v633_v39  ;;  %v655_v53 = vld [vmem:[#allocation2 + $0x1e] ss:$0 sm:$0xff] }
 0xbe3   :  { %v576_v59 = vmul.f32 %v568_v55, %v557_v56  ;;  %v580_v60 = vmul.f32 %v568_v55, %v561_v57 }
 0xbe5   :  { %577 = vadd.xlane.f32.xlu0 %v576_v59  ;;  %581 = vadd.xlane.f32.xlu1 %v580_v60 }
 0xc34   :  { %v552_v62 = vpop.xlane.xlu1 %551 }
 0xc35   :  { %v553_v63 = vsel %vm549_vm4, %v552_v62, %v531_v48 }
 0xc36   :  { %v572_v0 = vmul.f32 %v568_v55, %v553_v63 }
 0xc38   :  { %573 = vadd.xlane.f32.xlu2 %v572_v0 }
 0xc3c   :  { %v564_v1 = vpop.xlane.xlu1 %563 }
 0xc3d   :  { %v565_v4 = vsel %vm549_vm4, %v564_v1, %v543_v61 }
 0xc3e   :  { %v584_v3 = vmul.f32 %v568_v55, %v565_v4 }
 0xc40   :  { %585 = vadd.xlane.f32.xlu2 %v584_v3 }
 0xc58   :  { %v582_v7 = vpop.xlane.xlu1 %581  ;;  %v578_v9 = vpop.xlane.xlu0 %577 }
 0xc59   :  { %v583_v12 = vsel %vm571_vm7, %v582_v7, %v561_v57  ;;  %v579_v13 = vsel %vm571_vm7, %v578_v9, %v557_v56  ;;  %v656_v56 = vxor.u32 2147483648, %v655_v53  ;;  %v677_v7 = vld [vmem:[#allocation2 + $0x1f] ss:$0 sm:$0xff] }
 0xc5a   :  { %v602_v14 = vmul.f32 %v590_v11, %v583_v12  ;;  %v598_v15 = vmul.f32 %v590_v11, %v579_v13 }
 0xc5c   :  { %603 = vadd.xlane.f32.xlu2 %v602_v14  ;;  %599 = vadd.xlane.f32.xlu1 %v598_v15 }
 0xcab   :  { %v574_v17 = vpop.xlane.xlu2 %573 }
 0xcac   :  { %v575_v18 = vsel %vm571_vm7, %v574_v17, %v553_v63 }
 0xcad   :  { %v594_v19 = vmul.f32 %v590_v11, %v575_v18 }
 0xcaf   :  { %595 = vadd.xlane.f32.xlu0 %v594_v19 }
 0xcb3   :  { %v586_v21 = vpop.xlane.xlu2 %585 }
 0xcb4   :  { %v587_v22 = vsel %vm571_vm7, %v586_v21, %v565_v4 }
 0xcb5   :  { %v606_v24 = vmul.f32 %v590_v11, %v587_v22 }
 0xcb7   :  { %607 = vadd.xlane.f32.xlu0 %v606_v24 }
 0xccf   :  { %v604_v26 = vpop.xlane.xlu2 %603  ;;  %v600_v27 = vpop.xlane.xlu1 %599 }
 0xcd0   :  { %v605_v29 = vsel %vm593_vm8, %v604_v26, %v583_v12  ;;  %v601_v30 = vsel %vm593_vm8, %v600_v27, %v579_v13  ;;  %v678_v12 = vxor.u32 2147483648, %v677_v7 }
 0xcd1   :  { %v624_v31 = vmul.f32 %v612_v28, %v605_v29  ;;  %v620_v32 = vmul.f32 %v612_v28, %v601_v30 }
 0xcd3   :  { %625 = vadd.xlane.f32.xlu0 %v624_v31  ;;  %621 = vadd.xlane.f32.xlu2 %v620_v32 }
 0xd22   :  { %v596_v33 = vpop.xlane.xlu0 %595 }
 0xd23   :  { %v597_v34 = vsel %vm593_vm8, %v596_v33, %v575_v18 }
 0xd24   :  { %v616_v35 = vmul.f32 %v612_v28, %v597_v34 }
 0xd26   :  { %617 = vadd.xlane.f32.xlu1 %v616_v35 }
 0xd2a   :  { %v608_v36 = vpop.xlane.xlu0 %607 }
 0xd2b   :  { %v609_v37 = vsel %vm593_vm8, %v608_v36, %v587_v22 }
 0xd2c   :  { %v628_v38 = vmul.f32 %v612_v28, %v609_v37 }
 0xd2e   :  { %629 = vadd.xlane.f32.xlu1 %v628_v38 }
 0xd46   :  { %v622_v40 = vpop.xlane.xlu2 %621  ;;  %v626_v41 = vpop.xlane.xlu0 %625 }
 0xd47   :  { %v623_v43 = vsel %vm615_vm9, %v622_v40, %v601_v30  ;;  %v627_v44 = vsel %vm615_vm9, %v626_v41, %v605_v29 }
 0xd48   :  { %v642_v45 = vmul.f32 %v634_v42, %v623_v43  ;;  %v646_v46 = vmul.f32 %v634_v42, %v627_v44 }
 0xd4a   :  { %643 = vadd.xlane.f32.xlu0 %v642_v45  ;;  %647 = vadd.xlane.f32.xlu1 %v646_v46 }
 0xd99   :  { %v618_v48 = vpop.xlane.xlu1 %617 }
 0xd9a   :  { %v619_v49 = vsel %vm615_vm9, %v618_v48, %v597_v34 }
 0xd9b   :  { %v638_v50 = vmul.f32 %v634_v42, %v619_v49 }
 0xd9d   :  { %639 = vadd.xlane.f32.xlu2 %v638_v50 }
 0xda1   :  { %v630_v61 = vpop.xlane.xlu1 %629 }
 0xda2   :  { %v631_v51 = vsel %vm615_vm9, %v630_v61, %v609_v37 }
 0xda3   :  { %v650_v52 = vmul.f32 %v634_v42, %v631_v51 }
 0xda5   :  { %651 = vadd.xlane.f32.xlu2 %v650_v52 }
 0xdbd   :  { %v648_v54 = vpop.xlane.xlu1 %647  ;;  %v644_v55 = vpop.xlane.xlu0 %643 }
 0xdbe   :  { %v649_v57 = vsel %vm637_vm10, %v648_v54, %v627_v44  ;;  %v645_v59 = vsel %vm637_vm10, %v644_v55, %v623_v43 }
 0xdbf   :  { %v668_v60 = vmul.f32 %v656_v56, %v649_v57  ;;  %v664_v62 = vmul.f32 %v656_v56, %v645_v59 }
 0xdc1   :  { %669 = vadd.xlane.f32.xlu2 %v668_v60  ;;  %665 = vadd.xlane.f32.xlu1 %v664_v62 }
 0xe10   :  { %v640_v63 = vpop.xlane.xlu2 %639 }
 0xe11   :  { %v641_v0 = vsel %vm637_vm10, %v640_v63, %v619_v49 }
 0xe12   :  { %v660_v1 = vmul.f32 %v656_v56, %v641_v0 }
 0xe14   :  { %661 = vadd.xlane.f32.xlu0 %v660_v1 }
 0xe18   :  { %v652_v4 = vpop.xlane.xlu2 %651 }
 0xe19   :  { %v653_v3 = vsel %vm637_vm10, %v652_v4, %v631_v51 }
 0xe1a   :  { %v672_v6 = vmul.f32 %v656_v56, %v653_v3 }
 0xe1c   :  { %673 = vadd.xlane.f32.xlu0 %v672_v6 }
 0xe34   :  { %v670_v9 = vpop.xlane.xlu2 %669  ;;  %v666_v11 = vpop.xlane.xlu1 %665 }
 0xe35   :  { %v671_v13 = vsel %vm659_vm12, %v670_v9, %v649_v57  ;;  %v667_v14 = vsel %vm659_vm12, %v666_v11, %v645_v59 }
 0xe36   :  { %v690_v15 = vmul.f32 %v678_v12, %v671_v13  ;;  %v686_v17 = vmul.f32 %v678_v12, %v667_v14 }
 0xe38   :  { %691 = vadd.xlane.f32.xlu0 %v690_v15  ;;  %687 = vadd.xlane.f32.xlu2 %v686_v17 }
 0xe87   :  { %v662_v18 = vpop.xlane.xlu0 %661 }
 0xe88   :  { %v663_v19 = vsel %vm659_vm12, %v662_v18, %v641_v0 }
 0xe89   :  { %v682_v21 = vmul.f32 %v678_v12, %v663_v19 }
 0xe8b   :  { %683 = vadd.xlane.f32.xlu1 %v682_v21 }
 0xe8f   :  { %v674_v22 = vpop.xlane.xlu0 %673 }
 0xe90   :  { %v675_v24 = vsel %vm659_vm12, %v674_v22, %v653_v3 }
 0xe91   :  { %v694_v25 = vmul.f32 %v678_v12, %v675_v24 }
 0xe93   :  { %695 = vadd.xlane.f32.xlu1 %v694_v25 }
 0xeab   :  { %v688_v26 = vpop.xlane.xlu2 %687  ;;  %v692_v27 = vpop.xlane.xlu0 %691 }
 0xeac   :  { %v689_v28 = vsel %vm681_vm13, %v688_v26, %v667_v14  ;;  %v693_v29 = vsel %vm681_vm13, %v692_v27, %v671_v13 }
 0xead   :  { %v730_v30 = vmul.f32 %v689_v28, %v898_v58  ;;  %v749_v31 = vmul.f32 %v693_v29, %v931_v20 }
 0xeaf   :  { %v732_v32 = vsel %vm95_vm0, %v689_v28, %v730_v30  ;;  %v751_v33 = vsel %vm124_vm6, %v693_v29, %v749_v31 }
 0xeb0   :  { %810 = vst [vmem:[%s1041_s1 + $0x8] sm:$0xff] %v732_v32 }
 0xeb1   :  { %812 = vst [vmem:[%s1041_s1 + $0x10] sm:$0xff] %v751_v33 }
 0xefe   :  { %v684_v34 = vpop.xlane.xlu1 %683 }
 0xeff   :  { %v685_v58 = vsel %vm681_vm13, %v684_v34, %v663_v19 }
 0xf00   :  { %v712_v20 = vmul.f32 %v685_v58, %v871_v16 }
 0xf02   :  { %v714_v47 = vsel %vm66_vm5, %v685_v58, %v712_v20 }
 0xf03   :  { %808 = vst [vmem:[%s1041_s1] sm:$0xff] %v714_v47 }
 0xf06   :  { %v696_v8 = vpop.xlane.xlu1 %695 }
 0xf07   :  { %v697_v35 = vsel %vm681_vm13, %v696_v8, %v675_v24 }
 0xf08   :  { %v768_v36 = vmul.f32 %v697_v35, %v994_v23 }
 0xf0a   :  { %v770_v37 = vsel %vm153_vm11, %v697_v35, %v768_v36 }
 0xf0b   :  { %814 = vst [vmem:[%s1041_s1 + $0x18] sm:$0xff] %v770_v37 }

// kernel: custom-call.23
= control target key start
LH: loop header
LB: loop body
LE: loop exit
PB: predicated region body
PF: predicated region fallthrough
CT: control target
= control target key end

     0   :  { %v47_v0 = vlaneseq  ;;  %v835_v19 = vmov -1.0   ;;  %s1141_s0 = inlined_call_operand.vmem [shape: f32[1,32,32], index: 0, kind: input, shape index: {}]   ;;  %s1142_s1 = inlined_call_operand.vmem [shape: f32[1,32,32], index: 1, kind: output, shape index: {}]  }
   0x1   :  { %v42_v3 = vld [vmem:[%s1141_s0 + $0x18] sm:$0xff]  ;;  %v40_v35 = vld [vmem:[%s1141_s0 + $0x10] sm:$0xff] }
   0x2   :  { %v847_v1 = vand.u32 127, %v47_v0  ;;  %v849_v2 = vshrl.u32 %v47_v0, 7 }
   0x4   :  { %v139_v4 = vadd.s32 24, %v849_v2  ;;  %vm49_vm1 = vcmp.lt.s32.totalorder %v847_v1, 32  ;;  %vm193_vm8 = vcmp.eq.s32.totalorder %v847_v1, 31  ;;  %vm201_vm10 = vcmp.eq.s32.totalorder %v847_v1, 30 }
   0x5   :  { %v194_v20 = vsel %vm193_vm8, 1.0, %v835_v19  ;;  %vm211_vm11 = vcmp.eq.s32.totalorder %v847_v1, 29  ;;  %v110_v36 = vadd.s32 16, %v849_v2  ;;  %vm221_vm13 = vcmp.eq.s32.totalorder %v847_v1, 28 }
   0x6   :  { %vm140_vm0 = vcmp.eq.s32.totalorder %v139_v4, %v847_v1  ;;  %vm145_vm2 = vcmp.le.s32.totalorder %v139_v4, %v847_v1  ;;  %vm190_vm9 = vcmp.eq.s32.totalorder %v847_v1, %v139_v4 }
   0x7   :  { %v142_v5 = vsel %vm140_vm0, %v42_v3, 0.0  ;;  %vm146_vm3 = vmand %vm145_vm2, %vm49_vm1  ;;  %v195_v21 = vsel %vm190_vm9, %v194_v20, 0.0  ;;  %vm111_vm12 = vcmp.eq.s32.totalorder %v110_v36, %v847_v1  ;;  %vm116_vm14 = vcmp.le.s32.totalorder %v110_v36, %v847_v1 }
   0x8   :  { %143 = vadd.xlane.f32.xlu0 %v142_v5  ;;  %v147_v14 = vsel %vm146_vm3, %v42_v3, 0.0  ;;  %v113_v37 = vsel %vm111_vm12, %v40_v35, 0.0  ;;  %vm117_vm2 = vmand %vm116_vm14, %vm49_vm1  ;;  %vm183_vm8 = vcmp.eq.s32.totalorder %v847_v1, %v110_v36  ;;  %vm251_vm9 = vcmp.eq.s32.totalorder %v847_v1, 25 }
   0x9   :  { %v118_v52 = vsel %vm117_vm2, %v40_v35, 0.0  ;;  %vm285_vm12 = vcmp.eq.s32.totalorder %v847_v1, 22  ;;  %vm313_vm14 = vcmp.eq.s32.totalorder %v847_v1, 20  ;;  %vm341_vm2 = vcmp.eq.s32.totalorder %v847_v1, 18 }
  0x7b   :  { %v856_v6 = vpop.xlane.xlu0 %143 }
  0x7c   :  { %827 = vrcp.f32 %v856_v6  ;;  %v159_v10 = vand.u32 2147483648, %v856_v6  ;;  %v157_v12 = vand.u32 2147483647, %v856_v6  ;;  %vm153_vm5 = vweird.f32 %v856_v6 }
  0x7e   :  { %v160_v15 = vor.u32 1.1754944e-38, %v159_v10  ;;  %vm158_vm7 = vcmp.eq.f32.partialorder %v157_v12, 8.507059e+37 }
  0x82   :  { %v828_v7 = vpop.eup %827 }
  0x83   :  { %v149_v8 = vmul.f32 %v828_v7, %v856_v6  ;;  %vm154_vm4 = vweird.f32 %v828_v7 }
  0x84   :  { %vm155_vm6 = vmor %vm153_vm5, %vm154_vm4 }
  0x85   :  { %v150_v9 = vsub.f32 1.0, %v149_v8 }
  0x87   :  { %v151_v11 = vmul.f32 %v828_v7, %v150_v9 }
  0x89   :  { %v152_v13 = vadd.f32 %v828_v7, %v151_v11 }
  0x8b   :  { %v156_v16 = vsel %vm155_vm6, %v828_v7, %v152_v13  ;;  %vm231_vm6 = vcmp.eq.s32.totalorder %v847_v1, 27  ;;  %v836_v7 = vmov 0.0  }
  0x8c   :  { %v869_v17 = vsel %vm158_vm7, %v160_v15, %v156_v16  ;;  %vm241_vm7 = vcmp.eq.s32.totalorder %v847_v1, 26  ;;  %v184_v8 = vsel %vm183_vm8, -1.0, %v836_v7 }
  0x8d   :  { %v162_v18 = vmul.f32 %v869_v17, %v147_v14 }
  0x8f   :  { %163 = vst [vmem:[#allocation2 + $0x18] sm:$0xff] %v162_v18 }
  0x96   :  { %v197_v22 = vld [vmem:[#allocation2 + $0x1e] ss:$0 sm:$0xff]  ;;  %v207_v25 = vld [vmem:[#allocation2 + $0x1d] ss:$0 sm:$0xff]  ;;  %v217_v30 = vld [vmem:[#allocation2 + $0x1c] ss:$0 sm:$0xff] }
  0x97   :  { %v198_v23 = vxor.u32 2147483648, %v197_v22  ;;  %v208_v27 = vxor.u32 2147483648, %v207_v25  ;;  %v218_v32 = vxor.u32 2147483648, %v217_v30  ;;  %v227_v38 = vld [vmem:[#allocation2 + $0x1b] ss:$0 sm:$0xff] }
  0x98   :  { %v228_v40 = vxor.u32 2147483648, %v227_v38  ;;  %v237_v56 = vld [vmem:[#allocation2 + $0x1a] ss:$0 sm:$0xff]  ;;  %v247_v61 = vld [vmem:[#allocation2 + $0x19] ss:$0 sm:$0xff] }
  0x99   :  { %v202_v24 = vmul.f32 %v198_v23, %v195_v21  ;;  %v238_v58 = vxor.u32 2147483648, %v237_v56  ;;  %v248_v63 = vxor.u32 2147483648, %v247_v61  ;;  %v257_v10 = vld [vmem:[#allocation2 + $0x18] ss:$0 sm:$0xff] }
  0x9a   :  { %v258_v12 = vxor.u32 2147483648, %v257_v10 }
  0x9b   :  { %203 = vadd.xlane.f32.xlu0 %v202_v24 }
 0x10e   :  { %v204_v26 = vpop.xlane.xlu0 %203 }
 0x10f   :  { %v205_v28 = vsel %vm201_vm10, %v204_v26, %v195_v21  ;;  %vm271_vm10 = vcmp.eq.s32.totalorder %v847_v1, 23 }
 0x110   :  { %v212_v29 = vmul.f32 %v208_v27, %v205_v28 }
 0x112   :  { %213 = vadd.xlane.f32.xlu1 %v212_v29 }
 0x185   :  { %v214_v31 = vpop.xlane.xlu1 %213 }
 0x186   :  { %v215_v33 = vsel %vm211_vm11, %v214_v31, %v205_v28  ;;  %vm261_vm11 = vcmp.eq.s32.totalorder %v847_v1, 24 }
 0x187   :  { %v222_v34 = vmul.f32 %v218_v32, %v215_v33 }
 0x189   :  { %223 = vadd.xlane.f32.xlu1 %v222_v34 }
 0x191   :  { %114 = vadd.xlane.f32.xlu1 %v113_v37 }
 0x1fc   :  { %v224_v39 = vpop.xlane.xlu1 %223 }
 0x1fd   :  { %v225_v41 = vsel %vm221_vm13, %v224_v39, %v215_v33  ;;  %vm299_vm13 = vcmp.eq.s32.totalorder %v847_v1, 21 }
 0x1fe   :  { %v232_v42 = vmul.f32 %v228_v40, %v225_v41 }
 0x200   :  { %233 = vadd.xlane.f32.xlu2 %v232_v42 }
 0x204   :  { %v882_v43 = vpop.xlane.xlu1 %114 }
 0x205   :  { %829 = vrcp.f32 %v882_v43  ;;  %v130_v46 = vand.u32 2147483648, %v882_v43  ;;  %vm124_vm15 = vweird.f32 %v882_v43  ;;  %v128_v48 = vand.u32 2147483647, %v882_v43 }
 0x207   :  { %v131_v50 = vor.u32 1.1754944e-38, %v130_v46  ;;  %vm129_vm4 = vcmp.eq.f32.partialorder %v128_v48, 8.507059e+37 }
 0x20b   :  { %v830_v44 = vpop.eup %829 }
 0x20c   :  { %v120_v45 = vmul.f32 %v830_v44, %v882_v43  ;;  %vm125_vm0 = vweird.f32 %v830_v44 }
 0x20d   :  { %vm126_vm3 = vmor %vm124_vm15, %vm125_vm0  ;;  %vm327_vm0 = vcmp.eq.s32.totalorder %v847_v1, 19 }
 0x20e   :  { %v121_v47 = vsub.f32 1.0, %v120_v45 }
 0x210   :  { %v122_v49 = vmul.f32 %v830_v44, %v121_v47 }
 0x212   :  { %v123_v51 = vadd.f32 %v830_v44, %v122_v49 }
 0x214   :  { %v127_v53 = vsel %vm126_vm3, %v830_v44, %v123_v51  ;;  %vm355_vm3 = vcmp.eq.s32.totalorder %v847_v1, 17 }
 0x215   :  { %v894_v54 = vsel %vm129_vm4, %v131_v50, %v127_v53 }
 0x216   :  { %v133_v55 = vmul.f32 %v894_v54, %v118_v52 }
 0x218   :  { %134 = vst [vmem:[#allocation2 + $0x10] sm:$0xff] %v133_v55 }
 0x21f   :  { %v267_v3 = vld [vmem:[#allocation2 + $0x17] ss:$0 sm:$0xff]  ;;  %v281_v15 = vld [vmem:[#allocation2 + $0x16] ss:$0 sm:$0xff]  ;;  %v295_v24 = vld [vmem:[#allocation2 + $0x15] ss:$0 sm:$0xff] }
 0x220   :  { %v268_v5 = vxor.u32 2147483648, %v267_v3  ;;  %v282_v16 = vxor.u32 2147483648, %v281_v15  ;;  %v296_v26 = vxor.u32 2147483648, %v295_v24  ;;  %v309_v32 = vld [vmem:[#allocation2 + $0x14] ss:$0 sm:$0xff] }
 0x221   :  { %v310_v34 = vxor.u32 2147483648, %v309_v32  ;;  %v323_v40 = vld [vmem:[#allocation2 + $0x13] ss:$0 sm:$0xff]  ;;  %v337_v49 = vld [vmem:[#allocation2 + $0x12] ss:$0 sm:$0xff] }
 0x222   :  { %v272_v9 = vmul.f32 %v268_v5, %v184_v8  ;;  %v324_v42 = vxor.u32 2147483648, %v323_v40  ;;  %v338_v51 = vxor.u32 2147483648, %v337_v49 }
 0x273   :  { %v234_v57 = vpop.xlane.xlu2 %233 }
 0x274   :  { %v235_v59 = vsel %vm231_vm6, %v234_v57, %v225_v41 }
 0x275   :  { %v242_v60 = vmul.f32 %v238_v58, %v235_v59  ;;  %v351_v58 = vld [vmem:[#allocation2 + $0x11] ss:$0 sm:$0xff] }
 0x277   :  { %243 = vadd.xlane.f32.xlu2 %v242_v60  ;;  %v352_v60 = vxor.u32 2147483648, %v351_v58 }
 0x2ea   :  { %v244_v62 = vpop.xlane.xlu2 %243 }
 0x2eb   :  { %v245_v0 = vsel %vm241_vm7, %v244_v62, %v235_v59 }
 0x2ec   :  { %v252_v4 = vmul.f32 %v248_v63, %v245_v0 }
 0x2ee   :  { %253 = vadd.xlane.f32.xlu0 %v252_v4  ;;  %v81_v4 = vadd.s32 8, %v849_v2 }
 0x2f0   :  { %vm82_vm4 = vcmp.eq.s32.totalorder %v81_v4, %v847_v1  ;;  %vm87_vm6 = vcmp.le.s32.totalorder %v81_v4, %v847_v1 }
 0x2f6   :  { %273 = vadd.xlane.f32.xlu0 %v272_v9 }
 0x361   :  { %v254_v11 = vpop.xlane.xlu0 %253 }
 0x362   :  { %v255_v13 = vsel %vm251_vm9, %v254_v11, %v245_v0  ;;  %vm88_vm9 = vmand %vm87_vm6, %vm49_vm1  ;;  %vm473_vm6 = vcmp.eq.s32.totalorder %v847_v1, 10 }
 0x363   :  { %v262_v14 = vmul.f32 %v258_v12, %v255_v13 }
 0x365   :  { %263 = vadd.xlane.f32.xlu2 %v262_v14 }
 0x369   :  { %v274_v18 = vpop.xlane.xlu0 %273 }
 0x36a   :  { %v275_v19 = vsel %vm271_vm10, %v274_v18, %v184_v8  ;;  %v38_v8 = vld [vmem:[%s1141_s0 + $0x8] sm:$0xff] }
 0x36b   :  { %v286_v20 = vmul.f32 %v282_v16, %v275_v19  ;;  %v84_v12 = vsel %vm82_vm4, %v38_v8, 0.0  ;;  %vm455_vm4 = vcmp.eq.s32.totalorder %v847_v1, 11 }
 0x36d   :  { %287 = vadd.xlane.f32.xlu2 %v286_v20 }
 0x3d8   :  { %v264_v21 = vpop.xlane.xlu2 %263 }
 0x3d9   :  { %v265_v22 = vsel %vm261_vm11, %v264_v21, %v255_v13 }
 0x3da   :  { %v276_v23 = vmul.f32 %v268_v5, %v265_v22  ;;  %v365_v5 = vld [vmem:[#allocation2 + $0x10] ss:$0 sm:$0xff] }
 0x3db   :  { %v366_v10 = vxor.u32 2147483648, %v365_v5 }
 0x3dc   :  { %277 = vadd.xlane.f32.xlu1 %v276_v23 }
 0x3e0   :  { %v288_v25 = vpop.xlane.xlu2 %287 }
 0x3e1   :  { %v289_v27 = vsel %vm285_vm12, %v288_v25, %v275_v19 }
 0x3e2   :  { %v300_v28 = vmul.f32 %v296_v26, %v289_v27 }
 0x3e4   :  { %301 = vadd.xlane.f32.xlu1 %v300_v28 }
 0x44f   :  { %v278_v29 = vpop.xlane.xlu1 %277 }
 0x450   :  { %v279_v30 = vsel %vm271_vm10, %v278_v29, %v265_v22 }
 0x451   :  { %v290_v31 = vmul.f32 %v282_v16, %v279_v30 }
 0x453   :  { %291 = vadd.xlane.f32.xlu0 %v290_v31 }
 0x457   :  { %v302_v33 = vpop.xlane.xlu1 %301 }
 0x458   :  { %v303_v35 = vsel %vm299_vm13, %v302_v33, %v289_v27  ;;  %v89_v27 = vsel %vm88_vm9, %v38_v8, 0.0  ;;  %vm491_vm9 = vcmp.eq.s32.totalorder %v847_v1, 9 }
 0x459   :  { %v314_v36 = vmul.f32 %v310_v34, %v303_v35 }
 0x45b   :  { %315 = vadd.xlane.f32.xlu0 %v314_v36 }
 0x4c6   :  { %v292_v37 = vpop.xlane.xlu0 %291 }
 0x4c7   :  { %v293_v38 = vsel %vm285_vm12, %v292_v37, %v279_v30  ;;  %vm176_vm12 = vcmp.eq.s32.totalorder %v847_v1, %v81_v4 }
 0x4c8   :  { %v304_v39 = vmul.f32 %v296_v26, %v293_v38  ;;  %v177_v33 = vsel %vm176_vm12, -1.0, %v836_v7 }
 0x4ca   :  { %305 = vadd.xlane.f32.xlu2 %v304_v39 }
 0x4ce   :  { %v316_v41 = vpop.xlane.xlu0 %315 }
 0x4cf   :  { %v317_v44 = vsel %vm313_vm14, %v316_v41, %v303_v35 }
 0x4d0   :  { %v328_v45 = vmul.f32 %v324_v42, %v317_v44 }
 0x4d2   :  { %329 = vadd.xlane.f32.xlu2 %v328_v45 }
 0x53d   :  { %v306_v46 = vpop.xlane.xlu2 %305 }
 0x53e   :  { %v307_v47 = vsel %vm299_vm13, %v306_v46, %v293_v38  ;;  %vm369_vm13 = vcmp.eq.s32.totalorder %v847_v1, 16 }
 0x53f   :  { %v318_v48 = vmul.f32 %v310_v34, %v307_v47 }
 0x541   :  { %319 = vadd.xlane.f32.xlu1 %v318_v48 }
 0x545   :  { %v330_v50 = vpop.xlane.xlu2 %329 }
 0x546   :  { %v331_v52 = vsel %vm327_vm0, %v330_v50, %v317_v44 }
 0x547   :  { %v342_v53 = vmul.f32 %v338_v51, %v331_v52 }
 0x549   :  { %343 = vadd.xlane.f32.xlu1 %v342_v53 }
 0x5b4   :  { %v320_v55 = vpop.xlane.xlu1 %319 }
 0x5b5   :  { %v321_v56 = vsel %vm313_vm14, %v320_v55, %v307_v47  ;;  %vm383_vm14 = vcmp.eq.s32.totalorder %v847_v1, 15 }
 0x5b6   :  { %v332_v57 = vmul.f32 %v324_v42, %v321_v56 }
 0x5b8   :  { %333 = vadd.xlane.f32.xlu0 %v332_v57 }
 0x5bc   :  { %v344_v59 = vpop.xlane.xlu1 %343 }
 0x5bd   :  { %v345_v61 = vsel %vm341_vm2, %v344_v59, %v331_v52 }
 0x5be   :  { %v356_v62 = vmul.f32 %v352_v60, %v345_v61 }
 0x5c0   :  { %357 = vadd.xlane.f32.xlu0 %v356_v62 }
 0x62b   :  { %v334_v63 = vpop.xlane.xlu0 %333 }
 0x62c   :  { %v335_v0 = vsel %vm327_vm0, %v334_v63, %v321_v56  ;;  %vm401_vm0 = vcmp.eq.s32.totalorder %v847_v1, 14 }
 0x62d   :  { %v346_v3 = vmul.f32 %v338_v51, %v335_v0 }
 0x62f   :  { %347 = vadd.xlane.f32.xlu2 %v346_v3 }
 0x633   :  { %v358_v9 = vpop.xlane.xlu0 %357 }
 0x634   :  { %v359_v11 = vsel %vm355_vm3, %v358_v9, %v345_v61 }
 0x635   :  { %v370_v13 = vmul.f32 %v366_v10, %v359_v11 }
 0x637   :  { %371 = vadd.xlane.f32.xlu0 %v370_v13  ;;  %85 = vadd.xlane.f32.xlu2 %v84_v12 }
 0x6a2   :  { %v348_v14 = vpop.xlane.xlu2 %347 }
 0x6a3   :  { %v349_v15 = vsel %vm341_vm2, %v348_v14, %v335_v0  ;;  %vm419_vm2 = vcmp.eq.s32.totalorder %v847_v1, 13 }
 0x6a4   :  { %v360_v16 = vmul.f32 %v352_v60, %v349_v15 }
 0x6a6   :  { %361 = vadd.xlane.f32.xlu1 %v360_v16 }
 0x6aa   :  { %v941_v18 = vpop.xlane.xlu2 %85  ;;  %v372_v31 = vpop.xlane.xlu0 %371 }
 0x6ab   :  { %831 = vrcp.f32 %v941_v18  ;;  %v101_v21 = vand.u32 2147483648, %v941_v18  ;;  %vm95_vm7 = vweird.f32 %v941_v18  ;;  %v99_v23 = vand.u32 2147483647, %v941_v18 }
 0x6ac   :  { %v373_v35 = vsel %vm369_vm13, %v372_v31, %v359_v11 }
 0x6ad   :  { %v102_v25 = vor.u32 1.1754944e-38, %v101_v21  ;;  %vm100_vm11 = vcmp.eq.f32.partialorder %v99_v23, 8.507059e+37 }
 0x6b1   :  { %v832_v19 = vpop.eup %831 }
 0x6b2   :  { %v91_v20 = vmul.f32 %v832_v19, %v941_v18  ;;  %vm96_vm8 = vweird.f32 %v832_v19 }
 0x6b3   :  { %vm97_vm10 = vmor %vm95_vm7, %vm96_vm8  ;;  %vm53_vm8 = vcmp.eq.s32.totalorder %v849_v2, %v847_v1 }
 0x6b4   :  { %v92_v22 = vsub.f32 1.0, %v91_v20 }
 0x6b6   :  { %v93_v24 = vmul.f32 %v832_v19, %v92_v22 }
 0x6b8   :  { %v94_v26 = vadd.f32 %v832_v19, %v93_v24 }
 0x6ba   :  { %v98_v28 = vsel %vm97_vm10, %v832_v19, %v94_v26  ;;  %vm58_vm10 = vcmp.le.s32.totalorder %v849_v2, %v847_v1 }
 0x6bb   :  { %v953_v29 = vsel %vm100_vm11, %v102_v25, %v98_v28 }
 0x6bc   :  { %v104_v30 = vmul.f32 %v953_v29, %v89_v27 }
 0x6be   :  { %105 = vst [vmem:[#allocation2 + $0x8] sm:$0xff] %v104_v30 }
 0x6c5   :  { %v379_v32 = vld [vmem:[#allocation2 + $0xf] ss:$0 sm:$0xff]  ;;  %v397_v41 = vld [vmem:[#allocation2 + $0xe] ss:$0 sm:$0xff]  ;;  %v415_v53 = vld [vmem:[#allocation2 + $0xd] ss:$0 sm:$0xff] }
 0x6c6   :  { %v380_v34 = vxor.u32 2147483648, %v379_v32  ;;  %v398_v42 = vxor.u32 2147483648, %v397_v41  ;;  %v416_v57 = vxor.u32 2147483648, %v415_v53  ;;  %v433_v3 = vld [vmem:[#allocation2 + $0xc] ss:$0 sm:$0xff] }
 0x6c7   :  { %v434_v8 = vxor.u32 2147483648, %v433_v3  ;;  %v451_v16 = vld [vmem:[#allocation2 + $0xb] ss:$0 sm:$0xff]  ;;  %v469_v30 = vld [vmem:[#allocation2 + $0xa] ss:$0 sm:$0xff] }
 0x6c8   :  { %v388_v36 = vmul.f32 %v380_v34, %v373_v35  ;;  %v384_v37 = vmul.f32 %v380_v34, %v177_v33  ;;  %v452_v21 = vxor.u32 2147483648, %v451_v16  ;;  %v487_v41 = vld [vmem:[#allocation2 + $0x9] ss:$0 sm:$0xff] }
 0x6ca   :  { %389 = vadd.xlane.f32.xlu0 %v388_v36  ;;  %385 = vadd.xlane.f32.xlu2 %v384_v37 }
 0x719   :  { %v362_v38 = vpop.xlane.xlu1 %361 }
 0x71a   :  { %v363_v39 = vsel %vm355_vm3, %v362_v38, %v349_v15  ;;  %vm437_vm3 = vcmp.eq.s32.totalorder %v847_v1, 12 }
 0x71b   :  { %v374_v40 = vmul.f32 %v366_v10, %v363_v39 }
 0x71d   :  { %375 = vadd.xlane.f32.xlu1 %v374_v40 }
 0x73d   :  { %v390_v44 = vpop.xlane.xlu0 %389  ;;  %v386_v45 = vpop.xlane.xlu2 %385 }
 0x73e   :  { %v391_v46 = vsel %vm383_vm14, %v390_v44, %v373_v35  ;;  %v387_v47 = vsel %vm383_vm14, %v386_v45, %v177_v33  ;;  %v470_v33 = vxor.u32 2147483648, %v469_v30  ;;  %v488_v45 = vxor.u32 2147483648, %v487_v41 }
 0x73f   :  { %v406_v48 = vmul.f32 %v398_v42, %v391_v46  ;;  %v402_v49 = vmul.f32 %v398_v42, %v387_v47 }
 0x741   :  { %407 = vadd.xlane.f32.xlu0 %v406_v48  ;;  %403 = vadd.xlane.f32.xlu2 %v402_v49 }
 0x790   :  { %v376_v50 = vpop.xlane.xlu1 %375 }
 0x791   :  { %v377_v51 = vsel %vm369_vm13, %v376_v50, %v363_v39  ;;  %v36_v50 = vld [vmem:[%s1141_s0] sm:$0xff]  ;;  %vm59_vm13 = vmand %vm58_vm10, %vm49_vm1  ;;  %vm509_vm1 = vcmp.eq.s32.totalorder %v847_v1, 8  ;;  %vm637_vm10 = vcmp.eq.s32.totalorder %v847_v1, 2 }
 0x792   :  { %v392_v52 = vmul.f32 %v380_v34, %v377_v51 }
 0x794   :  { %393 = vadd.xlane.f32.xlu1 %v392_v52 }
 0x7b4   :  { %v408_v55 = vpop.xlane.xlu0 %407  ;;  %v404_v56 = vpop.xlane.xlu2 %403 }
 0x7b5   :  { %v409_v58 = vsel %vm401_vm0, %v408_v55, %v391_v46  ;;  %v405_v59 = vsel %vm401_vm0, %v404_v56, %v387_v47  ;;  %v505_v56 = vld [vmem:[#allocation2 + $0x8] ss:$0 sm:$0xff] }
 0x7b6   :  { %v424_v60 = vmul.f32 %v416_v57, %v409_v58  ;;  %v420_v61 = vmul.f32 %v416_v57, %v405_v59 }
 0x7b8   :  { %425 = vadd.xlane.f32.xlu0 %v424_v60  ;;  %421 = vadd.xlane.f32.xlu2 %v420_v61 }
 0x807   :  { %v394_v62 = vpop.xlane.xlu1 %393 }
 0x808   :  { %v395_v63 = vsel %vm383_vm14, %v394_v62, %v377_v51  ;;  %v55_v51 = vsel %vm53_vm8, %v36_v50, 0.0  ;;  %vm593_vm8 = vcmp.eq.s32.totalorder %v847_v1, 4 }
 0x809   :  { %v410_v0 = vmul.f32 %v398_v42, %v395_v63 }
 0x80b   :  { %411 = vadd.xlane.f32.xlu1 %v410_v0 }
 0x82b   :  { %v426_v4 = vpop.xlane.xlu0 %425  ;;  %v422_v5 = vpop.xlane.xlu2 %421 }
 0x82c   :  { %v427_v9 = vsel %vm419_vm2, %v426_v4, %v409_v58  ;;  %v423_v10 = vsel %vm419_vm2, %v422_v5, %v405_v59  ;;  %v506_v58 = vxor.u32 2147483648, %v505_v56 }
 0x82d   :  { %v442_v11 = vmul.f32 %v434_v8, %v427_v9  ;;  %v438_v12 = vmul.f32 %v434_v8, %v423_v10 }
 0x82f   :  { %443 = vadd.xlane.f32.xlu0 %v442_v11  ;;  %439 = vadd.xlane.f32.xlu2 %v438_v12 }
 0x87e   :  { %v412_v13 = vpop.xlane.xlu1 %411 }
 0x87f   :  { %v413_v14 = vsel %vm401_vm0, %v412_v13, %v395_v63 }
 0x880   :  { %v428_v15 = vmul.f32 %v416_v57, %v413_v14 }
 0x882   :  { %429 = vadd.xlane.f32.xlu1 %v428_v15 }
 0x8a2   :  { %v444_v19 = vpop.xlane.xlu0 %443  ;;  %v440_v20 = vpop.xlane.xlu2 %439 }
 0x8a3   :  { %v445_v22 = vsel %vm437_vm3, %v444_v19, %v427_v9  ;;  %v441_v23 = vsel %vm437_vm3, %v440_v20, %v423_v10  ;;  %v60_v10 = vsel %vm59_vm13, %v36_v50, 0.0  ;;  %vm680_vm13 = vcmp.eq.s32.totalorder %v847_v1, 0 }
 0x8a4   :  { %v460_v24 = vmul.f32 %v452_v21, %v445_v22  ;;  %v456_v25 = vmul.f32 %v452_v21, %v441_v23 }
 0x8a6   :  { %461 = vadd.xlane.f32.xlu0 %v460_v24  ;;  %457 = vadd.xlane.f32.xlu2 %v456_v25 }
 0x8f5   :  { %v430_v26 = vpop.xlane.xlu1 %429 }
 0x8f6   :  { %v431_v27 = vsel %vm419_vm2, %v430_v26, %v413_v14  ;;  %vm169_vm2 = vcmp.eq.s32.totalorder %v847_v1, %v849_v2 }
 0x8f7   :  { %v446_v28 = vmul.f32 %v434_v8, %v431_v27  ;;  %v170_v14 = vsel %vm169_vm2, -1.0, %v836_v7 }
 0x8f9   :  { %447 = vadd.xlane.f32.xlu1 %v446_v28 }
 0x919   :  { %v462_v31 = vpop.xlane.xlu0 %461  ;;  %v458_v32 = vpop.xlane.xlu2 %457 }
 0x91a   :  { %v463_v34 = vsel %vm455_vm4, %v462_v31, %v445_v22  ;;  %v459_v35 = vsel %vm455_vm4, %v458_v32, %v441_v23 }
 0x91b   :  { %v478_v36 = vmul.f32 %v470_v33, %v463_v34  ;;  %v474_v37 = vmul.f32 %v470_v33, %v459_v35 }
 0x91d   :  { %479 = vadd.xlane.f32.xlu0 %v478_v36  ;;  %475 = vadd.xlane.f32.xlu2 %v474_v37 }
 0x96c   :  { %v448_v38 = vpop.xlane.xlu1 %447 }
 0x96d   :  { %v449_v39 = vsel %vm437_vm3, %v448_v38, %v431_v27  ;;  %vm527_vm3 = vcmp.eq.s32.totalorder %v847_v1, 7 }
 0x96e   :  { %v464_v40 = vmul.f32 %v452_v21, %v449_v39 }
 0x970   :  { %465 = vadd.xlane.f32.xlu1 %v464_v40 }
 0x990   :  { %v480_v42 = vpop.xlane.xlu0 %479  ;;  %v476_v44 = vpop.xlane.xlu2 %475 }
 0x991   :  { %v481_v46 = vsel %vm473_vm6, %v480_v42, %v463_v34  ;;  %v477_v47 = vsel %vm473_vm6, %v476_v44, %v459_v35 }
 0x992   :  { %v496_v48 = vmul.f32 %v488_v45, %v481_v46  ;;  %v492_v49 = vmul.f32 %v488_v45, %v477_v47 }
 0x994   :  { %497 = vadd.xlane.f32.xlu0 %v496_v48  ;;  %493 = vadd.xlane.f32.xlu2 %v492_v49 }
 0x99c   :  { %56 = vadd.xlane.f32.xlu2 %v55_v51 }
 0x9e3   :  { %v466_v52 = vpop.xlane.xlu1 %465 }
 0x9e4   :  { %v467_v53 = vsel %vm455_vm4, %v466_v52, %v449_v39  ;;  %vm549_vm4 = vcmp.eq.s32.totalorder %v847_v1, 6 }
 0x9e5   :  { %v482_v55 = vmul.f32 %v470_v33, %v467_v53 }
 0x9e7   :  { %483 = vadd.xlane.f32.xlu1 %v482_v55 }
 0xa07   :  { %v494_v57 = vpop.xlane.xlu2 %493  ;;  %v498_v23 = vpop.xlane.xlu0 %497 }
 0xa08   :  { %v495_v59 = vsel %vm491_vm9, %v494_v57, %v477_v47  ;;  %v499_v24 = vsel %vm491_vm9, %v498_v23, %v481_v46 }
 0xa09   :  { %v510_v60 = vmul.f32 %v506_v58, %v495_v59  ;;  %v514_v25 = vmul.f32 %v506_v58, %v499_v24 }
 0xa0b   :  { %511 = vadd.xlane.f32.xlu0 %v510_v60 }
 0xa0f   :  { %v1013_v61 = vpop.xlane.xlu2 %56 }
 0xa10   :  { %833 = vrcp.f32 %v1013_v61  ;;  %v72_v0 = vand.u32 2147483648, %v1013_v61  ;;  %vm66_vm11 = vweird.f32 %v1013_v61  ;;  %v70_v4 = vand.u32 2147483647, %v1013_v61 }
 0xa12   :  { %v73_v8 = vor.u32 1.1754944e-38, %v72_v0  ;;  %vm71_vm0 = vcmp.eq.f32.partialorder %v70_v4, 8.507059e+37 }
 0xa16   :  { %v834_v62 = vpop.eup %833 }
 0xa17   :  { %v62_v63 = vmul.f32 %v834_v62, %v1013_v61  ;;  %vm67_vm12 = vweird.f32 %v834_v62 }
 0xa18   :  { %vm68_vm14 = vmor %vm66_vm11, %vm67_vm12  ;;  %vm659_vm12 = vcmp.eq.s32.totalorder %v847_v1, 1 }
 0xa19   :  { %v63_v3 = vsub.f32 1.0, %v62_v63 }
 0xa1b   :  { %v64_v5 = vmul.f32 %v834_v62, %v63_v3 }
 0xa1d   :  { %v65_v9 = vadd.f32 %v834_v62, %v64_v5 }
 0xa1f   :  { %v69_v11 = vsel %vm68_vm14, %v834_v62, %v65_v9 }
 0xa20   :  { %v1026_v12 = vsel %vm71_vm0, %v73_v8, %v69_v11 }
 0xa21   :  { %v75_v13 = vmul.f32 %v1026_v12, %v60_v10 }
 0xa23   :  { %76 = vst [vmem:[#allocation2] sm:$0xff] %v75_v13 }
 0xa2a   :  { %v523_v15 = vld [vmem:[#allocation2 + $0x7] ss:$0 sm:$0xff]  ;;  %v545_v27 = vld [vmem:[#allocation2 + $0x6] ss:$0 sm:$0xff]  ;;  %v567_v42 = vld [vmem:[#allocation2 + $0x5] ss:$0 sm:$0xff] }
 0xa2b   :  { %v524_v16 = vxor.u32 2147483648, %v523_v15  ;;  %v546_v28 = vxor.u32 2147483648, %v545_v27  ;;  %v568_v44 = vxor.u32 2147483648, %v567_v42 }
 0xa2d   :  { %v528_v19 = vmul.f32 %v524_v16, %v170_v14 }
 0xa2f   :  { %529 = vadd.xlane.f32.xlu0 %v528_v19 }
 0xa5a   :  { %v484_v20 = vpop.xlane.xlu1 %483 }
 0xa5b   :  { %v485_v21 = vsel %vm473_vm6, %v484_v20, %v467_v53  ;;  %vm571_vm6 = vcmp.eq.s32.totalorder %v847_v1, 5 }
 0xa5c   :  { %v500_v22 = vmul.f32 %v488_v45, %v485_v21 }
 0xa5e   :  { %501 = vadd.xlane.f32.xlu1 %v500_v22 }
 0xa66   :  { %515 = vadd.xlane.f32.xlu1 %v514_v25 }
 0xa7e   :  { %v512_v2 = vpop.xlane.xlu0 %511 }
 0xa7f   :  { %v513_v7 = vsel %vm509_vm1, %v512_v2, %v495_v59 }
 0xa80   :  { %v532_v26 = vmul.f32 %v524_v16, %v513_v7 }
 0xa82   :  { %533 = vadd.xlane.f32.xlu1 %v532_v26 }
 0xaa2   :  { %v530_v30 = vpop.xlane.xlu0 %529 }
 0xaa3   :  { %v531_v31 = vsel %vm527_vm3, %v530_v30, %v170_v14  ;;  %v611_v14 = vld [vmem:[#allocation2 + $0x3] ss:$0 sm:$0xff] }
 0xaa4   :  { %v550_v32 = vmul.f32 %v546_v28, %v531_v31 }
 0xaa6   :  { %551 = vadd.xlane.f32.xlu1 %v550_v32 }
 0xad1   :  { %v502_v33 = vpop.xlane.xlu1 %501 }
 0xad2   :  { %v503_v34 = vsel %vm491_vm9, %v502_v33, %v485_v21  ;;  %vm615_vm9 = vcmp.eq.s32.totalorder %v847_v1, 3 }
 0xad3   :  { %v518_v35 = vmul.f32 %v506_v58, %v503_v34  ;;  %v589_v58 = vld [vmem:[#allocation2 + $0x4] ss:$0 sm:$0xff] }
 0xad4   :  { %v590_v60 = vxor.u32 2147483648, %v589_v58 }
 0xad5   :  { %519 = vadd.xlane.f32.xlu2 %v518_v35 }
 0xad9   :  { %v516_v36 = vpop.xlane.xlu1 %515 }
 0xada   :  { %v517_v37 = vsel %vm509_vm1, %v516_v36, %v499_v24 }
 0xadb   :  { %v536_v38 = vmul.f32 %v524_v16, %v517_v37 }
 0xadd   :  { %537 = vadd.xlane.f32.xlu2 %v536_v38 }
 0xaf5   :  { %v534_v39 = vpop.xlane.xlu1 %533 }
 0xaf6   :  { %v535_v40 = vsel %vm527_vm3, %v534_v39, %v513_v7 }
 0xaf7   :  { %v554_v41 = vmul.f32 %v546_v28, %v535_v40 }
 0xaf9   :  { %555 = vadd.xlane.f32.xlu2 %v554_v41 }
 0xb19   :  { %v552_v45 = vpop.xlane.xlu1 %551 }
 0xb1a   :  { %v553_v46 = vsel %vm549_vm4, %v552_v45, %v531_v31 }
 0xb1b   :  { %v572_v47 = vmul.f32 %v568_v44, %v553_v46 }
 0xb1d   :  { %573 = vadd.xlane.f32.xlu2 %v572_v47 }
 0xb48   :  { %v520_v48 = vpop.xlane.xlu2 %519 }
 0xb49   :  { %v521_v49 = vsel %vm509_vm1, %v520_v48, %v503_v34 }
 0xb4a   :  { %v540_v50 = vmul.f32 %v524_v16, %v521_v49  ;;  %v612_v16 = vxor.u32 2147483648, %v611_v14 }
 0xb4c   :  { %541 = vadd.xlane.f32.xlu0 %v540_v50 }
 0xb50   :  { %v538_v51 = vpop.xlane.xlu2 %537 }
 0xb51   :  { %v539_v52 = vsel %vm527_vm3, %v538_v51, %v517_v37 }
 0xb52   :  { %v558_v53 = vmul.f32 %v546_v28, %v539_v52 }
 0xb54   :  { %559 = vadd.xlane.f32.xlu0 %v558_v53 }
 0xb6c   :  { %v556_v55 = vpop.xlane.xlu2 %555 }
 0xb6d   :  { %v557_v56 = vsel %vm549_vm4, %v556_v55, %v535_v40 }
 0xb6e   :  { %v576_v57 = vmul.f32 %v568_v44, %v557_v56 }
 0xb70   :  { %577 = vadd.xlane.f32.xlu0 %v576_v57 }
 0xb90   :  { %v574_v59 = vpop.xlane.xlu2 %573 }
 0xb91   :  { %v575_v62 = vsel %vm571_vm6, %v574_v59, %v553_v46  ;;  %v676_v59 = vld [vmem:[#allocation2] ss:$0 sm:$0xff] }
 0xb92   :  { %v594_v63 = vmul.f32 %v590_v60, %v575_v62 }
 0xb94   :  { %595 = vadd.xlane.f32.xlu0 %v594_v63 }
 0xbbf   :  { %v542_v0 = vpop.xlane.xlu0 %541 }
 0xbc0   :  { %v543_v3 = vsel %vm527_vm3, %v542_v0, %v521_v49 }
 0xbc1   :  { %v562_v4 = vmul.f32 %v546_v28, %v543_v3  ;;  %v633_v28 = vld [vmem:[#allocation2 + $0x2] ss:$0 sm:$0xff] }
 0xbc2   :  { %v634_v31 = vxor.u32 2147483648, %v633_v28 }
 0xbc3   :  { %563 = vadd.xlane.f32.xlu1 %v562_v4 }
 0xbc7   :  { %v560_v5 = vpop.xlane.xlu0 %559 }
 0xbc8   :  { %v561_v8 = vsel %vm549_vm4, %v560_v5, %v539_v52 }
 0xbc9   :  { %v580_v9 = vmul.f32 %v568_v44, %v561_v8 }
 0xbcb   :  { %581 = vadd.xlane.f32.xlu1 %v580_v9 }
 0xbe3   :  { %v578_v10 = vpop.xlane.xlu0 %577 }
 0xbe4   :  { %v579_v11 = vsel %vm571_vm6, %v578_v10, %v557_v56 }
 0xbe5   :  { %v598_v13 = vmul.f32 %v590_v60, %v579_v11 }
 0xbe7   :  { %599 = vadd.xlane.f32.xlu1 %v598_v13 }
 0xc07   :  { %v596_v15 = vpop.xlane.xlu0 %595 }
 0xc08   :  { %v597_v19 = vsel %vm593_vm8, %v596_v15, %v575_v62  ;;  %v677_v62 = vxor.u32 2147483648, %v676_v59 }
 0xc09   :  { %v616_v20 = vmul.f32 %v612_v16, %v597_v19 }
 0xc0b   :  { %617 = vadd.xlane.f32.xlu1 %v616_v20 }
 0xc36   :  { %v564_v21 = vpop.xlane.xlu1 %563 }
 0xc37   :  { %v565_v22 = vsel %vm549_vm4, %v564_v21, %v543_v3 }
 0xc38   :  { %v584_v23 = vmul.f32 %v568_v44, %v565_v22  ;;  %v655_v44 = vld [vmem:[#allocation2 + $0x1] ss:$0 sm:$0xff] }
 0xc39   :  { %v656_v46 = vxor.u32 2147483648, %v655_v44 }
 0xc3a   :  { %585 = vadd.xlane.f32.xlu2 %v584_v23 }
 0xc3e   :  { %v582_v24 = vpop.xlane.xlu1 %581 }
 0xc3f   :  { %v583_v25 = vsel %vm571_vm6, %v582_v24, %v561_v8 }
 0xc40   :  { %v602_v2 = vmul.f32 %v590_v60, %v583_v25 }
 0xc42   :  { %603 = vadd.xlane.f32.xlu2 %v602_v2 }
 0xc5a   :  { %v600_v7 = vpop.xlane.xlu1 %599 }
 0xc5b   :  { %v601_v26 = vsel %vm593_vm8, %v600_v7, %v579_v11 }
 0xc5c   :  { %v620_v27 = vmul.f32 %v612_v16, %v601_v26 }
 0xc5e   :  { %621 = vadd.xlane.f32.xlu2 %v620_v27 }
 0xc7e   :  { %v618_v30 = vpop.xlane.xlu1 %617 }
 0xc7f   :  { %v619_v32 = vsel %vm615_vm9, %v618_v30, %v597_v19 }
 0xc80   :  { %v638_v33 = vmul.f32 %v634_v31, %v619_v32 }
 0xc82   :  { %639 = vadd.xlane.f32.xlu2 %v638_v33 }
 0xcad   :  { %v586_v34 = vpop.xlane.xlu2 %585 }
 0xcae   :  { %v587_v35 = vsel %vm571_vm6, %v586_v34, %v565_v22 }
 0xcaf   :  { %v606_v36 = vmul.f32 %v590_v60, %v587_v35 }
 0xcb1   :  { %607 = vadd.xlane.f32.xlu0 %v606_v36 }
 0xcb5   :  { %v604_v37 = vpop.xlane.xlu2 %603 }
 0xcb6   :  { %v605_v38 = vsel %vm593_vm8, %v604_v37, %v583_v25 }
 0xcb7   :  { %v624_v39 = vmul.f32 %v612_v16, %v605_v38 }
 0xcb9   :  { %625 = vadd.xlane.f32.xlu0 %v624_v39 }
 0xcd1   :  { %v622_v40 = vpop.xlane.xlu2 %621 }
 0xcd2   :  { %v623_v41 = vsel %vm615_vm9, %v622_v40, %v601_v26 }
 0xcd3   :  { %v642_v42 = vmul.f32 %v634_v31, %v623_v41 }
 0xcd5   :  { %643 = vadd.xlane.f32.xlu0 %v642_v42 }
 0xcf5   :  { %v640_v45 = vpop.xlane.xlu2 %639 }
 0xcf6   :  { %v641_v47 = vsel %vm637_vm10, %v640_v45, %v619_v32 }
 0xcf7   :  { %v660_v48 = vmul.f32 %v656_v46, %v641_v47 }
 0xcf9   :  { %661 = vadd.xlane.f32.xlu0 %v660_v48 }
 0xd24   :  { %v608_v49 = vpop.xlane.xlu0 %607 }
 0xd25   :  { %v609_v50 = vsel %vm593_vm8, %v608_v49, %v587_v35 }
 0xd26   :  { %v628_v51 = vmul.f32 %v612_v16, %v609_v50 }
 0xd28   :  { %629 = vadd.xlane.f32.xlu1 %v628_v51 }
 0xd2c   :  { %v626_v52 = vpop.xlane.xlu0 %625 }
 0xd2d   :  { %v627_v53 = vsel %vm615_vm9, %v626_v52, %v605_v38 }
 0xd2e   :  { %v646_v55 = vmul.f32 %v634_v31, %v627_v53 }
 0xd30   :  { %647 = vadd.xlane.f32.xlu1 %v646_v55 }
 0xd48   :  { %v644_v56 = vpop.xlane.xlu0 %643 }
 0xd49   :  { %v645_v57 = vsel %vm637_vm10, %v644_v56, %v623_v41 }
 0xd4a   :  { %v664_v58 = vmul.f32 %v656_v46, %v645_v57 }
 0xd4c   :  { %665 = vadd.xlane.f32.xlu1 %v664_v58 }
 0xd6c   :  { %v662_v60 = vpop.xlane.xlu0 %661 }
 0xd6d   :  { %v663_v63 = vsel %vm659_vm12, %v662_v60, %v641_v47 }
 0xd6e   :  { %v681_v0 = vmul.f32 %v677_v62, %v663_v63 }
 0xd70   :  { %682 = vadd.xlane.f32.xlu1 %v681_v0 }
 0xd9b   :  { %v630_v3 = vpop.xlane.xlu1 %629 }
 0xd9c   :  { %v631_v4 = vsel %vm615_vm9, %v630_v3, %v609_v50 }
 0xd9d   :  { %v650_v5 = vmul.f32 %v634_v31, %v631_v4 }
 0xd9f   :  { %651 = vadd.xlane.f32.xlu2 %v650_v5 }
 0xda3   :  { %v648_v8 = vpop.xlane.xlu1 %647 }
 0xda4   :  { %v649_v9 = vsel %vm637_vm10, %v648_v8, %v627_v53 }
 0xda5   :  { %v668_v10 = vmul.f32 %v656_v46, %v649_v9 }
 0xda7   :  { %669 = vadd.xlane.f32.xlu2 %v668_v10 }
 0xdbf   :  { %v666_v11 = vpop.xlane.xlu1 %665 }
 0xdc0   :  { %v667_v13 = vsel %vm659_vm12, %v666_v11, %v645_v57 }
 0xdc1   :  { %v685_v14 = vmul.f32 %v677_v62, %v667_v13 }
 0xdc3   :  { %686 = vadd.xlane.f32.xlu2 %v685_v14 }
 0xde3   :  { %v683_v15 = vpop.xlane.xlu1 %682 }
 0xde4   :  { %v684_v16 = vsel %vm680_vm13, %v683_v15, %v663_v63 }
 0xde5   :  { %v711_v19 = vmul.f32 %v684_v16, %v1026_v12 }
 0xde7   :  { %v713_v20 = vsel %vm66_vm11, %v684_v16, %v711_v19 }
 0xde8   :  { %807 = vst [vmem:[%s1142_s1] sm:$0xff] %v713_v20 }
 0xe12   :  { %v652_v21 = vpop.xlane.xlu2 %651 }
 0xe13   :  { %v653_v22 = vsel %vm637_vm10, %v652_v21, %v631_v4 }
 0xe14   :  { %v672_v23 = vmul.f32 %v656_v46, %v653_v22 }
 0xe16   :  { %673 = vadd.xlane.f32.xlu0 %v672_v23 }
 0xe1a   :  { %v670_v24 = vpop.xlane.xlu2 %669 }
 0xe1b   :  { %v671_v25 = vsel %vm659_vm12, %v670_v24, %v649_v9 }
 0xe1c   :  { %v689_v2 = vmul.f32 %v677_v62, %v671_v25 }
 0xe1e   :  { %690 = vadd.xlane.f32.xlu0 %v689_v2 }
 0xe36   :  { %v687_v12 = vpop.xlane.xlu2 %686 }
 0xe37   :  { %v688_v61 = vsel %vm680_vm13, %v687_v12, %v667_v13 }
 0xe38   :  { %v729_v7 = vmul.f32 %v688_v61, %v953_v29 }
 0xe3a   :  { %v731_v26 = vsel %vm95_vm7, %v688_v61, %v729_v7 }
 0xe3b   :  { %809 = vst [vmem:[%s1142_s1 + $0x8] sm:$0xff] %v731_v26 }
 0xe89   :  { %v674_v27 = vpop.xlane.xlu0 %673 }
 0xe8a   :  { %v675_v28 = vsel %vm659_vm12, %v674_v27, %v653_v22 }
 0xe8b   :  { %v693_v30 = vmul.f32 %v677_v62, %v675_v28 }
 0xe8d   :  { %694 = vadd.xlane.f32.xlu1 %v693_v30 }
 0xe91   :  { %v691_v31 = vpop.xlane.xlu0 %690 }
 0xe92   :  { %v692_v32 = vsel %vm680_vm13, %v691_v31, %v671_v25 }
 0xe93   :  { %v748_v33 = vmul.f32 %v692_v32, %v894_v54 }
 0xe95   :  { %v750_v18 = vsel %vm124_vm15, %v692_v32, %v748_v33 }
 0xe96   :  { %811 = vst [vmem:[%s1142_s1 + $0x10] sm:$0xff] %v750_v18 }
 0xf00   :  { %v695_v29 = vpop.xlane.xlu1 %694 }
 0xf01   :  { %v696_v34 = vsel %vm680_vm13, %v695_v29, %v675_v28 }
 0xf02   :  { %v767_v35 = vmul.f32 %v696_v34, %v869_v17 }
 0xf04   :  { %v769_v36 = vsel %vm153_vm5, %v696_v34, %v767_v35 }
 0xf05   :  { %813 = vst [vmem:[%s1142_s1 + $0x18] sm:$0xff] %v769_v36 }

// kernel: tile.8
= control target key start
LH: loop header
LB: loop body
LE: loop exit
PB: predicated region body
PF: predicated region fallthrough
CT: control target
= control target key end

     0   :  { %s22_s0 = inlined_call_operand.vmem [shape: f32[64], index: 0, kind: input, shape index: {}]   ;;  %s23_s1 = inlined_call_operand.vmem [shape: f32[2,64], index: 1, kind: output, shape index: {}]  }
   0x1   :  { %v4_v0 = vld [vmem:[%s22_s0] ss:$0 sm:$0xff] }
   0x2   :  { %5 = vst [vmem:[%s23_s1] sm:$0x3] %v4_v0 }

// kernel: tile.9
= control target key start
LH: loop header
LB: loop body
LE: loop exit
PB: predicated region body
PF: predicated region fallthrough
CT: control target
= control target key end

     0   :  { %vm7_vm0 = vcmask 523264   ;;  %vm13_vm1 = vcmask 1048064   ;;  %s39_s0 = inlined_call_operand.vmem [shape: f32[2,64], index: 0, kind: input, shape index: {}]   ;;  %s40_s1 = inlined_call_operand.vmem [shape: f32[1,128], index: 1, kind: output, shape index: {}]  }
   0x1   :  { %v4_v0 = vld [vmem:[%s39_s0] sm:$0x3]  ;;  %s22_s0 = smov 64  }
   0x2   :  { %5 = vst [vmem:[#allocation1] sm:$0x3] %v4_v0 }
   0x9   :  { %v10_v1 = vld [vmem:[#allocation1 + $0x1] sm:$0x1]   ;;  %v6_v2 = vld [vmem:[#allocation1] sm:$0x1]  }
   0xa   :  { %11 = vrot.lane.b32.xlu0 %v10_v1, %s22_s0  ;;  %8 = vst.msk [vmem:[#allocation0] sm:$0x1] %vm7_vm0, %v6_v2  }
  0x7c   :  { %v12_v3 = vpop.permute.xlu0 %11  }
  0x7d   :  { %14 = vst.msk [vmem:[#allocation0] sm:$0x1] %vm13_vm1, %v12_v3  }
  0x84   :  { %v17_v4 = vld [vmem:[#allocation0] sm:$0x1] }
  0x85   :  { %20 = vst [vmem:[%s40_s1] sm:$0x1] %v17_v4 }

// kernel: matrix_exp_spectral_lim_linear.1
= control target key start
LH: loop header
LB: loop body
LE: loop exit
PB: predicated region body
PF: predicated region fallthrough
CT: control target
= control target key end

     0   :  { %vm27_vm0 = vcmask 523264   ;;  %s111_s1 = inlined_call_operand.vmem [shape: f32[64,128], index: 1, kind: input, shape index: {}]   ;;  %s112_s2 = inlined_call_operand.vmem [shape: f32[1,128], index: 2, kind: input, shape index: {}]   ;;  %s113_s0 = inlined_call_operand.vmem [shape: f32[8,64], index: 0, kind: input, shape index: {}]   ;;  %s114_s3 = inlined_call_operand.vmem [shape: f32[8,128], index: 3, kind: output, shape index: {}]  }
   0x1   :  { %v22_v0 = vld [vmem:[%s111_s1 + $0x38] sm:$0xff]  ;;  %v21_v1 = vld [vmem:[%s111_s1 + $0x30] sm:$0xff]  ;;  %v20_v2 = vld [vmem:[%s111_s1 + $0x28] sm:$0xff] }
   0x2   :  { %39 = vmatpush.msra.mxu0 %v22_v0  ;;  %v19_v3 = vld [vmem:[%s111_s1 + $0x20] sm:$0xff]  ;;  %v18_v4 = vld [vmem:[%s111_s1 + $0x18] sm:$0xff]  ;;  %v17_v5 = vld [vmem:[%s111_s1 + $0x10] sm:$0xff] }
   0x3   :  { %v16_v6 = vld [vmem:[%s111_s1 + $0x8] sm:$0xff]  ;;  %v15_v7 = vld [vmem:[%s111_s1] sm:$0xff] }
   0x4   :  { %40 = vmatpush.msra.mxu0 %v21_v1  ;;  %v14_v8 = vld [vmem:[%s113_s0] sm:$0xff] }
   0x5   :  { %v57_v9 = vld [vmem:[%s112_s2] ss:$0 sm:$0xff] }
   0x6   :  { %41 = vmatpush.msra.mxu0 %v20_v2 }
   0x8   :  { %42 = vmatpush.msra.mxu0 %v19_v3 }
   0xa   :  { %43 = vmatpush.msra.mxu0 %v18_v4 }
   0xc   :  { %44 = vmatpush.msra.mxu0 %v17_v5 }
   0xe   :  { %45 = vmatpush.msra.mxu0 %v16_v6 }
  0x10   :  { %46 = vmatpush.msra.mxu0 %v15_v7 }
  0x11   :  { %56 = vmatmul.msk.f32.vlgmr.msra.gmra.mxu0 %vm27_vm0, %v14_v8 }
  0x8e   :  { %v48_v10 = vpop.f32.mrf.mxu0 }
  0x8f   :  { %v49_v11 = vadd.f32 %v57_v9, %v48_v10 }
  0x91   :  { %51 = vst [vmem:[%s114_s3] sm:$0xff] %v49_v11 }

</bundles_post_ra>
